<compile_context>
chip_gen: v7x
topology: tpu7x:2x2x1
jax: 0.10.0
libtpu: 0.0.40
codegen_flags: <defaults>
</compile_context>

<pallas_src>
import functools

import jax
import jax.numpy as jnp
from jax.experimental import pallas as pl
from jax.experimental.pallas import tpu as pltpu


def _round_up(x, m):
    return (x + m - 1) // m * m


# ----------------------------------------------------------------------------
# Fused conv (space-to-depth form) + LeakyReLU Pallas kernel
# ----------------------------------------------------------------------------
def _conv_s2d_kernel(y_ref, w_ref, o_ref, *, ho, wo, slope):
    """y_ref: (nb, ho+1, wo+1, cc) bf16   (space-to-depth of padded input)
       w_ref: (4*cc, c_out) bf16          (rows ordered (dh, dw, ph, pw, c))
       o_ref: (nb*ho*wo, c_out) bf16
    The 4x4/stride-2 conv == 2x2/stride-1 conv on the S2D slab: 4 unit-stride
    taps, each a (M, cc) x (cc, c_out) MXU dot accumulated in f32."""
    nb = y_ref.shape[0]
    cc = y_ref.shape[3]
    m = nb * ho * wo
    c_out = o_ref.shape[1]

    acc = jnp.zeros((m, c_out), jnp.float32)
    for dh in range(2):
        for dw in range(2):
            tap = y_ref[:, dh:dh + ho, dw:dw + wo, :]       # (nb, ho, wo, cc)
            a = tap.reshape(m, cc)                          # wo % 8 == 0 -> clean
            w_tap = w_ref[pl.ds((dh * 2 + dw) * cc, cc), :]
            acc = acc + jnp.dot(a, w_tap, preferred_element_type=jnp.float32)

    acc = jnp.maximum(acc, slope * acc)                     # LeakyReLU(slope)
    o_ref[...] = acc.astype(o_ref.dtype)


def _conv_s2d_pallas(y, w_mat, ho, wo):
    """y: (n, ho+1, wo+1, cc) bf16, w_mat: (4*cc, c_out) bf16
       -> (n*ho*wo, c_out) bf16."""
    n, hp2, wp2, cc = y.shape
    c_out = w_mat.shape[1]
    rows_per_batch = ho * wo
    # Split M only along batch and only when each block is big enough to feed
    # a TensorCore (>=256 rows, matters on v7x); otherwise one grid step.
    nb = 1 if (rows_per_batch >= 256 and n > 1) else n
    grid = (n // nb,)

    return pl.pallas_call(
        functools.partial(_conv_s2d_kernel, ho=ho, wo=wo, slope=0.2),
        out_shape=jax.ShapeDtypeStruct((n * ho * wo, c_out), jnp.bfloat16),
        grid_spec=pltpu.PrefetchScalarGridSpec(
            num_scalar_prefetch=0,
            grid=grid,
            in_specs=[
                pl.BlockSpec((nb, hp2, wp2, cc), lambda i: (i, 0, 0, 0)),
                pl.BlockSpec(w_mat.shape, lambda i: (0, 0)),
            ],
            out_specs=pl.BlockSpec((nb * ho * wo, c_out), lambda i: (i, 0)),
        ),
        compiler_params=pltpu.CompilerParams(
            dimension_semantics=("parallel",)),
    )(y, w_mat)


# ----------------------------------------------------------------------------
# Fallback: single-block GEMM + LeakyReLU (used only for tiny late layers
# where wo % 8 != 0; the patch matrix there is a few tens of KiB).
# ----------------------------------------------------------------------------
def _gemm_lrelu_kernel(a_ref, b_ref, o_ref, *, slope):
    acc = jnp.dot(a_ref[...], b_ref[...], preferred_element_type=jnp.float32)
    acc = jnp.maximum(acc, slope * acc)
    o_ref[...] = acc.astype(o_ref.dtype)


def _gemm_lrelu(a, b):
    m, k = a.shape
    _, c_out = b.shape
    return pl.pallas_call(
        functools.partial(_gemm_lrelu_kernel, slope=0.2),
        out_shape=jax.ShapeDtypeStruct((m, c_out), jnp.bfloat16),
        grid_spec=pltpu.PrefetchScalarGridSpec(
            num_scalar_prefetch=0,
            grid=(1,),
            in_specs=[pl.BlockSpec((m, k), lambda i: (0, 0)),
                      pl.BlockSpec((k, c_out), lambda i: (0, 0))],
            out_specs=pl.BlockSpec((m, c_out), lambda i: (0, 0)),
        ),
        compiler_params=pltpu.CompilerParams(
            dimension_semantics=("arbitrary",)),
    )(a, b)


# ----------------------------------------------------------------------------
# JAX glue: spatial pad + space-to-depth (tiny slabs, no expansion)
# ----------------------------------------------------------------------------
def _s2d_pad(x):
    """x: (N, H, W, C) -> (N, H/2+1, W/2+1, 4C); channel order (ph, pw, c).
    Rearranges the pad-1 input so the 4x4/stride-2 conv becomes a 2x2/stride-1
    conv whose taps are unit-stride slices."""
    n, h, w, c = x.shape
    xp = jnp.pad(x, ((0, 0), (1, 1), (1, 1), (0, 0)))
    hp, wp = h + 2, w + 2
    y = xp.reshape(n, hp // 2, 2, wp // 2, 2, c)
    y = jnp.transpose(y, (0, 1, 3, 2, 4, 5))
    return y.reshape(n, hp // 2, wp // 2, 4 * c)


def _conv_s2d_fallback(y, w_mat, ho, wo):
    """Same contraction as the fused kernel, taps extracted in JAX."""
    n, hp2, wp2, cc = y.shape
    taps = [y[:, dh:dh + ho, dw:dw + wo, :] for dh in range(2) for dw in range(2)]
    a = jnp.concatenate(taps, axis=-1).reshape(n * ho * wo, 4 * cc)
    return _gemm_lrelu(a, w_mat)


# ----------------------------------------------------------------------------
# Parameters
# ----------------------------------------------------------------------------
def init_discriminator_params(key, channels, num_disc_filters):
    ndf = num_disc_filters
    shapes = [
        (ndf, channels, 4, 4),
        (ndf * 2, ndf, 4, 4),
        (ndf * 4, ndf * 2, 4, 4),
        (ndf * 8, ndf * 4, 4, 4),
        (1, ndf * 8, 4, 4),
    ]
    keys = jax.random.split(key, len(shapes))
    # DCGAN-style deterministic init: N(0, 0.02), raw OIHW f32 (PyTorch layout).
    return [0.02 * jax.random.normal(k, s, jnp.float32) for k, s in zip(keys, shapes)]


def prepare_params(weights):
    """One-time weight transform.
    Conv layers: OIHW -> (16*c_pad, c_out) bf16 with rows ordered
    (dh, dw, ph, pw, c) to match the space-to-depth tap layout."""
    convs = []
    for w in weights[:-1]:
        c_out, c_in, kh, kw = w.shape           # kh == kw == 4
        c_pad = _round_up(c_in, 8)
        w_p = jnp.pad(w, ((0, 0), (0, c_pad - c_in), (0, 0), (0, 0)))
        wk = jnp.transpose(w_p, (2, 3, 1, 0))                   # (kh, kw, c, co)
        w6 = wk.reshape(2, 2, 2, 2, c_pad, c_out)               # (dh, ph, dw, pw, c, co)
        w_mat = jnp.transpose(w6, (0, 2, 1, 3, 4, 5)).reshape(16 * c_pad, c_out)
        convs.append(dict(w_mat=w_mat.astype(jnp.bfloat16),
                          c_in=c_in, c_pad=c_pad, c_out=c_out))
    w_last = weights[-1]                                        # (1, C, 4, 4) f32
    final_k = w_last.shape[-1]
    final_w = jnp.transpose(w_last, (2, 3, 1, 0)).reshape(-1, w_last.shape[0])
    return dict(convs=convs, final_w=final_w, final_k=final_k)


# ----------------------------------------------------------------------------
# Forward
# ----------------------------------------------------------------------------
def wgangp_discriminator_forward(x_nchw, params):
    """x: (N, C, H, W) f32 -> (N*Ho*Wo,) f32 (matches .view(-1,1).squeeze(1))."""
    x = jnp.transpose(x_nchw, (0, 2, 3, 1)).astype(jnp.bfloat16)   # NHWC bf16

    for layer in params["convs"]:
        n, h, w, c = x.shape
        assert h % 2 == 0 and w % 2 == 0, "stride-2 conv needs even spatial dims"
        if c < layer["c_pad"]:                     # only the raw 3-ch input
            x = jnp.pad(x, ((0, 0), (0, 0), (0, 0), (0, layer["c_pad"] - c)))
        ho, wo = h // 2, w // 2
        y = _s2d_pad(x)                            # (n, ho+1, wo+1, 4*c_pad)
        if wo % 8 == 0:
            out2d = _conv_s2d_pallas(y, layer["w_mat"], ho, wo)
        else:
            out2d = _conv_s2d_fallback(y, layer["w_mat"], ho, wo)
        x = out2d.reshape(n, ho, wo, layer["c_out"])

    # Final 4x4 valid conv to one channel: M = batch, N = 1 — a pallas_call
    # here would be pure launch/padding overhead, so use a plain f32 dot.
    n, h, w, c = x.shape
    k = params["final_k"]
    ho, wo = h - k + 1, w - k + 1
    taps = [x[:, i:i + ho, j:j + wo, :] for i in range(k) for j in range(k)]
    p = jnp.concatenate(taps, axis=-1).reshape(n * ho * wo, k * k * c)
    y = jnp.dot(p.astype(jnp.float32), params["final_w"],
                precision=jax.lax.Precision.HIGHEST)               # (N*Ho*Wo, 1)
    return y.reshape(-1)


# Pure-JAX reference mirroring the kernel's bf16 quantization points.
def _reference_forward(x, weights):
    f32 = jnp.float32
    y = x.astype(jnp.bfloat16).astype(f32)
    for i, w in enumerate(weights):
        stride, pad = (2, 1) if i < 4 else (1, 0)
        wq = w.astype(jnp.bfloat16).astype(f32) if i < 4 else w
        y = jax.lax.conv_general_dilated(
            y, wq, (stride, stride), [(pad, pad), (pad, pad)],
            dimension_numbers=("NCHW", "OIHW", "NCHW"),
            precision=jax.lax.Precision.HIGHEST)
        if i < 4:
            y = jnp.where(y >= 0.0, y, 0.2 * y)
            y = y.astype(jnp.bfloat16).astype(f32)
    return y.reshape(-1)


if __name__ == "__main__":
    key = jax.random.PRNGKey(0)
    k_x, k_w = jax.random.split(key)

    # spatial must be 64 so the final 4x4 valid conv sees a 4x4 map.
    batch, channels, spatial = 2, 3, 64
    num_disc_filters = 16

    x = jax.random.normal(k_x, (batch, channels, spatial, spatial), jnp.float32)
    weights = init_discriminator_params(k_w, channels, num_disc_filters)
    params = prepare_params(weights)

    fwd = jax.jit(functools.partial(wgangp_discriminator_forward, params=params))
    out = jax.block_until_ready(fwd(x))

    ref = jax.block_until_ready(_reference_forward(x, weights))
    assert out.shape == (batch,), out.shape
    err = float(jnp.max(jnp.abs(out - ref)) / (jnp.max(jnp.abs(ref)) + 1e-8))
    assert err < 2e-2, (err, out, ref)

    print("KERNEL_OK")
</pallas_src>

<mosaic_0001>
module attributes {stable_mosaic.version = 11 : i64} {
  func.func @_conv_s2d_kernel(%arg0: i32, %arg1: memref<1x33x33x32xbf16, #tpu.memory_space<vmem>>, %arg2: memref<128x16xbf16, #tpu.memory_space<vmem>>, %arg3: memref<1024x16xbf16, #tpu.memory_space<vmem>>) attributes {dimension_semantics = [#tpu.dimension_semantics<parallel>], iteration_bounds = array<i64: 2>, scalar_prefetch = 0 : i64, scratch_operands = 0 : i64, tpu.core_type = #tpu.core_type<tc>, window_params = [{transform_indices = @transform_0, window_bounds = array<i64: 1, 33, 33, 32>}, {pipeline_mode = #tpu.pipeline_mode<synchronous>, transform_indices = @transform_1, window_bounds = array<i64: 128, 16>}, {transform_indices = @transform_2, window_bounds = array<i64: 1024, 16>}]} {
    %cst = arith.constant 0.000000e+00 : f32
    %0 = vector.broadcast %cst : f32 to vector<1024x16xf32>
    %c0 = arith.constant 0 : index
    %c0_0 = arith.constant 0 : index
    %c0_1 = arith.constant 0 : index
    %c0_2 = arith.constant 0 : index
    %1 = vector.load %arg1[%c0, %c0_0, %c0_1, %c0_2] : memref<1x33x33x32xbf16, #tpu.memory_space<vmem>>, vector<1x32x32x32xbf16>
    %2 = vector.shape_cast %1 : vector<1x32x32x32xbf16> to vector<1024x32xbf16>
    %c0_3 = arith.constant 0 : index
    %c0_4 = arith.constant 0 : index
    %3 = vector.load %arg2[%c0_3, %c0_4] : memref<128x16xbf16, #tpu.memory_space<vmem>>, vector<32x16xbf16>
    %cst_5 = arith.constant dense<0.000000e+00> : vector<1024x16xf32>
    %4 = tpu.matmul %2, %3, %cst_5 {dimension_numbers = #tpu.dot_dimension_numbers<[1], [0], [0], [1], [0, 0, 1, 1], [], []>} : vector<1024x32xbf16>, vector<32x16xbf16>, vector<1024x16xf32> -> vector<1024x16xf32>
    %5 = arith.addf %0, %4 : vector<1024x16xf32>
    %c0_6 = arith.constant 0 : index
    %c0_7 = arith.constant 0 : index
    %c1 = arith.constant 1 : index
    %c0_8 = arith.constant 0 : index
    %6 = vector.load %arg1[%c0_6, %c0_7, %c1, %c0_8] : memref<1x33x33x32xbf16, #tpu.memory_space<vmem>>, vector<1x32x32x32xbf16>
    %7 = vector.shape_cast %6 : vector<1x32x32x32xbf16> to vector<1024x32xbf16>
    %c32 = arith.constant 32 : index
    %c0_9 = arith.constant 0 : index
    %8 = vector.load %arg2[%c32, %c0_9] : memref<128x16xbf16, #tpu.memory_space<vmem>>, vector<32x16xbf16>
    %cst_10 = arith.constant dense<0.000000e+00> : vector<1024x16xf32>
    %9 = tpu.matmul %7, %8, %cst_10 {dimension_numbers = #tpu.dot_dimension_numbers<[1], [0], [0], [1], [0, 0, 1, 1], [], []>} : vector<1024x32xbf16>, vector<32x16xbf16>, vector<1024x16xf32> -> vector<1024x16xf32>
    %10 = arith.addf %5, %9 : vector<1024x16xf32>
    %c0_11 = arith.constant 0 : index
    %c1_12 = arith.constant 1 : index
    %c0_13 = arith.constant 0 : index
    %c0_14 = arith.constant 0 : index
    %11 = vector.load %arg1[%c0_11, %c1_12, %c0_13, %c0_14] : memref<1x33x33x32xbf16, #tpu.memory_space<vmem>>, vector<1x32x32x32xbf16>
    %12 = vector.shape_cast %11 : vector<1x32x32x32xbf16> to vector<1024x32xbf16>
    %c64 = arith.constant 64 : index
    %c0_15 = arith.constant 0 : index
    %13 = vector.load %arg2[%c64, %c0_15] : memref<128x16xbf16, #tpu.memory_space<vmem>>, vector<32x16xbf16>
    %cst_16 = arith.constant dense<0.000000e+00> : vector<1024x16xf32>
    %14 = tpu.matmul %12, %13, %cst_16 {dimension_numbers = #tpu.dot_dimension_numbers<[1], [0], [0], [1], [0, 0, 1, 1], [], []>} : vector<1024x32xbf16>, vector<32x16xbf16>, vector<1024x16xf32> -> vector<1024x16xf32>
    %15 = arith.addf %10, %14 : vector<1024x16xf32>
    %c0_17 = arith.constant 0 : index
    %c1_18 = arith.constant 1 : index
    %c1_19 = arith.constant 1 : index
    %c0_20 = arith.constant 0 : index
    %16 = vector.load %arg1[%c0_17, %c1_18, %c1_19, %c0_20] : memref<1x33x33x32xbf16, #tpu.memory_space<vmem>>, vector<1x32x32x32xbf16>
    %17 = vector.shape_cast %16 : vector<1x32x32x32xbf16> to vector<1024x32xbf16>
    %c96 = arith.constant 96 : index
    %c0_21 = arith.constant 0 : index
    %18 = vector.load %arg2[%c96, %c0_21] : memref<128x16xbf16, #tpu.memory_space<vmem>>, vector<32x16xbf16>
    %cst_22 = arith.constant dense<0.000000e+00> : vector<1024x16xf32>
    %19 = tpu.matmul %17, %18, %cst_22 {dimension_numbers = #tpu.dot_dimension_numbers<[1], [0], [0], [1], [0, 0, 1, 1], [], []>} : vector<1024x32xbf16>, vector<32x16xbf16>, vector<1024x16xf32> -> vector<1024x16xf32>
    %20 = arith.addf %15, %19 : vector<1024x16xf32>
    %cst_23 = arith.constant 2.000000e-01 : f32
    %21 = vector.broadcast %cst_23 : f32 to vector<1024x16xf32>
    %22 = arith.mulf %21, %20 : vector<1024x16xf32>
    %23 = arith.maximumf %20, %22 : vector<1024x16xf32>
    %24 = arith.truncf %23 : vector<1024x16xf32> to vector<1024x16xbf16>
    %c0_24 = arith.constant 0 : index
    %c0_25 = arith.constant 0 : index
    %25 = vector.load %arg3[%c0_24, %c0_25] : memref<1024x16xbf16, #tpu.memory_space<vmem>>, vector<1024x16xbf16>
    tpu.vector_store %arg3[%c0_24, %c0_25], %24 {strides = array<i32>} : memref<1024x16xbf16, #tpu.memory_space<vmem>>, vector<1024x16xbf16>,
    return
  }
  func.func @transform_0(%arg0: i32) -> (i32, i32, i32, i32) {
    %c0_i32 = arith.constant 0 : i32
    %c0_i32_0 = arith.constant 0 : i32
    %c0_i32_1 = arith.constant 0 : i32
    %c0_i32_2 = arith.constant 0 : i32
    return %arg0, %c0_i32, %c0_i32_0, %c0_i32_1 : i32, i32, i32, i32
  }
  func.func @transform_1(%arg0: i32) -> (i32, i32) {
    %c0_i32 = arith.constant 0 : i32
    %c0_i32_0 = arith.constant 0 : i32
    %c0_i32_1 = arith.constant 0 : i32
    return %c0_i32, %c0_i32_0 : i32, i32
  }
  func.func @transform_2(%arg0: i32) -> (i32, i32) {
    %c0_i32 = arith.constant 0 : i32
    %c0_i32_0 = arith.constant 0 : i32
    return %arg0, %c0_i32 : i32, i32
  }
}

module attributes {stable_mosaic.version = 11 : i64} {
  func.func @_conv_s2d_kernel(%arg0: i32, %arg1: memref<1x17x17x64xbf16, #tpu.memory_space<vmem>>, %arg2: memref<256x32xbf16, #tpu.memory_space<vmem>>, %arg3: memref<256x32xbf16, #tpu.memory_space<vmem>>) attributes {dimension_semantics = [#tpu.dimension_semantics<parallel>], iteration_bounds = array<i64: 2>, scalar_prefetch = 0 : i64, scratch_operands = 0 : i64, tpu.core_type = #tpu.core_type<tc>, window_params = [{transform_indices = @transform_0, window_bounds = array<i64: 1, 17, 17, 64>}, {pipeline_mode = #tpu.pipeline_mode<synchronous>, transform_indices = @transform_1, window_bounds = array<i64: 256, 32>}, {transform_indices = @transform_2, window_bounds = array<i64: 256, 32>}]} {
    %cst = arith.constant 0.000000e+00 : f32
    %0 = vector.broadcast %cst : f32 to vector<256x32xf32>
    %c0 = arith.constant 0 : index
    %c0_0 = arith.constant 0 : index
    %c0_1 = arith.constant 0 : index
    %c0_2 = arith.constant 0 : index
    %1 = vector.load %arg1[%c0, %c0_0, %c0_1, %c0_2] : memref<1x17x17x64xbf16, #tpu.memory_space<vmem>>, vector<1x16x16x64xbf16>
    %2 = vector.shape_cast %1 : vector<1x16x16x64xbf16> to vector<256x64xbf16>
    %c0_3 = arith.constant 0 : index
    %c0_4 = arith.constant 0 : index
    %3 = vector.load %arg2[%c0_3, %c0_4] : memref<256x32xbf16, #tpu.memory_space<vmem>>, vector<64x32xbf16>
    %cst_5 = arith.constant dense<0.000000e+00> : vector<256x32xf32>
    %4 = tpu.matmul %2, %3, %cst_5 {dimension_numbers = #tpu.dot_dimension_numbers<[1], [0], [0], [1], [0, 0, 1, 1], [], []>} : vector<256x64xbf16>, vector<64x32xbf16>, vector<256x32xf32> -> vector<256x32xf32>
    %5 = arith.addf %0, %4 : vector<256x32xf32>
    %c0_6 = arith.constant 0 : index
    %c0_7 = arith.constant 0 : index
    %c1 = arith.constant 1 : index
    %c0_8 = arith.constant 0 : index
    %6 = vector.load %arg1[%c0_6, %c0_7, %c1, %c0_8] : memref<1x17x17x64xbf16, #tpu.memory_space<vmem>>, vector<1x16x16x64xbf16>
    %7 = vector.shape_cast %6 : vector<1x16x16x64xbf16> to vector<256x64xbf16>
    %c64 = arith.constant 64 : index
    %c0_9 = arith.constant 0 : index
    %8 = vector.load %arg2[%c64, %c0_9] : memref<256x32xbf16, #tpu.memory_space<vmem>>, vector<64x32xbf16>
    %cst_10 = arith.constant dense<0.000000e+00> : vector<256x32xf32>
    %9 = tpu.matmul %7, %8, %cst_10 {dimension_numbers = #tpu.dot_dimension_numbers<[1], [0], [0], [1], [0, 0, 1, 1], [], []>} : vector<256x64xbf16>, vector<64x32xbf16>, vector<256x32xf32> -> vector<256x32xf32>
    %10 = arith.addf %5, %9 : vector<256x32xf32>
    %c0_11 = arith.constant 0 : index
    %c1_12 = arith.constant 1 : index
    %c0_13 = arith.constant 0 : index
    %c0_14 = arith.constant 0 : index
    %11 = vector.load %arg1[%c0_11, %c1_12, %c0_13, %c0_14] : memref<1x17x17x64xbf16, #tpu.memory_space<vmem>>, vector<1x16x16x64xbf16>
    %12 = vector.shape_cast %11 : vector<1x16x16x64xbf16> to vector<256x64xbf16>
    %c128 = arith.constant 128 : index
    %c0_15 = arith.constant 0 : index
    %13 = vector.load %arg2[%c128, %c0_15] : memref<256x32xbf16, #tpu.memory_space<vmem>>, vector<64x32xbf16>
    %cst_16 = arith.constant dense<0.000000e+00> : vector<256x32xf32>
    %14 = tpu.matmul %12, %13, %cst_16 {dimension_numbers = #tpu.dot_dimension_numbers<[1], [0], [0], [1], [0, 0, 1, 1], [], []>} : vector<256x64xbf16>, vector<64x32xbf16>, vector<256x32xf32> -> vector<256x32xf32>
    %15 = arith.addf %10, %14 : vector<256x32xf32>
    %c0_17 = arith.constant 0 : index
    %c1_18 = arith.constant 1 : index
    %c1_19 = arith.constant 1 : index
    %c0_20 = arith.constant 0 : index
    %16 = vector.load %arg1[%c0_17, %c1_18, %c1_19, %c0_20] : memref<1x17x17x64xbf16, #tpu.memory_space<vmem>>, vector<1x16x16x64xbf16>
    %17 = vector.shape_cast %16 : vector<1x16x16x64xbf16> to vector<256x64xbf16>
    %c192 = arith.constant 192 : index
    %c0_21 = arith.constant 0 : index
    %18 = vector.load %arg2[%c192, %c0_21] : memref<256x32xbf16, #tpu.memory_space<vmem>>, vector<64x32xbf16>
    %cst_22 = arith.constant dense<0.000000e+00> : vector<256x32xf32>
    %19 = tpu.matmul %17, %18, %cst_22 {dimension_numbers = #tpu.dot_dimension_numbers<[1], [0], [0], [1], [0, 0, 1, 1], [], []>} : vector<256x64xbf16>, vector<64x32xbf16>, vector<256x32xf32> -> vector<256x32xf32>
    %20 = arith.addf %15, %19 : vector<256x32xf32>
    %cst_23 = arith.constant 2.000000e-01 : f32
    %21 = vector.broadcast %cst_23 : f32 to vector<256x32xf32>
    %22 = arith.mulf %21, %20 : vector<256x32xf32>
    %23 = arith.maximumf %20, %22 : vector<256x32xf32>
    %24 = arith.truncf %23 : vector<256x32xf32> to vector<256x32xbf16>
    %c0_24 = arith.constant 0 : index
    %c0_25 = arith.constant 0 : index
    %25 = vector.load %arg3[%c0_24, %c0_25] : memref<256x32xbf16, #tpu.memory_space<vmem>>, vector<256x32xbf16>
    tpu.vector_store %arg3[%c0_24, %c0_25], %24 {strides = array<i32>} : memref<256x32xbf16, #tpu.memory_space<vmem>>, vector<256x32xbf16>,
    return
  }
  func.func @transform_0(%arg0: i32) -> (i32, i32, i32, i32) {
    %c0_i32 = arith.constant 0 : i32
    %c0_i32_0 = arith.constant 0 : i32
    %c0_i32_1 = arith.constant 0 : i32
    %c0_i32_2 = arith.constant 0 : i32
    return %arg0, %c0_i32, %c0_i32_0, %c0_i32_1 : i32, i32, i32, i32
  }
  func.func @transform_1(%arg0: i32) -> (i32, i32) {
    %c0_i32 = arith.constant 0 : i32
    %c0_i32_0 = arith.constant 0 : i32
    %c0_i32_1 = arith.constant 0 : i32
    return %c0_i32, %c0_i32_0 : i32, i32
  }
  func.func @transform_2(%arg0: i32) -> (i32, i32) {
    %c0_i32 = arith.constant 0 : i32
    %c0_i32_0 = arith.constant 0 : i32
    return %arg0, %c0_i32 : i32, i32
  }
}

module attributes {stable_mosaic.version = 11 : i64} {
  func.func @_conv_s2d_kernel(%arg0: i32, %arg1: memref<2x9x9x128xbf16, #tpu.memory_space<vmem>>, %arg2: memref<512x64xbf16, #tpu.memory_space<vmem>>, %arg3: memref<128x64xbf16, #tpu.memory_space<vmem>>) attributes {dimension_semantics = [#tpu.dimension_semantics<parallel>], iteration_bounds = array<i64: 1>, scalar_prefetch = 0 : i64, scratch_operands = 0 : i64, tpu.core_type = #tpu.core_type<tc>, window_params = [{transform_indices = @transform_0, window_bounds = array<i64: 2, 9, 9, 128>}, {pipeline_mode = #tpu.pipeline_mode<synchronous>, transform_indices = @transform_1, window_bounds = array<i64: 512, 64>}, {transform_indices = @transform_2, window_bounds = array<i64: 128, 64>}]} {
    %cst = arith.constant 0.000000e+00 : f32
    %0 = vector.broadcast %cst : f32 to vector<128x64xf32>
    %c0 = arith.constant 0 : index
    %c0_0 = arith.constant 0 : index
    %c0_1 = arith.constant 0 : index
    %c0_2 = arith.constant 0 : index
    %1 = vector.load %arg1[%c0, %c0_0, %c0_1, %c0_2] : memref<2x9x9x128xbf16, #tpu.memory_space<vmem>>, vector<2x8x8x128xbf16>
    %2 = vector.shape_cast %1 : vector<2x8x8x128xbf16> to vector<128x128xbf16>
    %c0_3 = arith.constant 0 : index
    %c0_4 = arith.constant 0 : index
    %3 = vector.load %arg2[%c0_3, %c0_4] : memref<512x64xbf16, #tpu.memory_space<vmem>>, vector<128x64xbf16>
    %cst_5 = arith.constant dense<0.000000e+00> : vector<128x64xf32>
    %4 = tpu.matmul %2, %3, %cst_5 {dimension_numbers = #tpu.dot_dimension_numbers<[1], [0], [0], [1], [0, 0, 1, 1], [], []>} : vector<128x128xbf16>, vector<128x64xbf16>, vector<128x64xf32> -> vector<128x64xf32>
    %5 = arith.addf %0, %4 : vector<128x64xf32>
    %c0_6 = arith.constant 0 : index
    %c0_7 = arith.constant 0 : index
    %c1 = arith.constant 1 : index
    %c0_8 = arith.constant 0 : index
    %6 = vector.load %arg1[%c0_6, %c0_7, %c1, %c0_8] : memref<2x9x9x128xbf16, #tpu.memory_space<vmem>>, vector<2x8x8x128xbf16>
    %7 = vector.shape_cast %6 : vector<2x8x8x128xbf16> to vector<128x128xbf16>
    %c128 = arith.constant 128 : index
    %c0_9 = arith.constant 0 : index
    %8 = vector.load %arg2[%c128, %c0_9] : memref<512x64xbf16, #tpu.memory_space<vmem>>, vector<128x64xbf16>
    %cst_10 = arith.constant dense<0.000000e+00> : vector<128x64xf32>
    %9 = tpu.matmul %7, %8, %cst_10 {dimension_numbers = #tpu.dot_dimension_numbers<[1], [0], [0], [1], [0, 0, 1, 1], [], []>} : vector<128x128xbf16>, vector<128x64xbf16>, vector<128x64xf32> -> vector<128x64xf32>
    %10 = arith.addf %5, %9 : vector<128x64xf32>
    %c0_11 = arith.constant 0 : index
    %c1_12 = arith.constant 1 : index
    %c0_13 = arith.constant 0 : index
    %c0_14 = arith.constant 0 : index
    %11 = vector.load %arg1[%c0_11, %c1_12, %c0_13, %c0_14] : memref<2x9x9x128xbf16, #tpu.memory_space<vmem>>, vector<2x8x8x128xbf16>
    %12 = vector.shape_cast %11 : vector<2x8x8x128xbf16> to vector<128x128xbf16>
    %c256 = arith.constant 256 : index
    %c0_15 = arith.constant 0 : index
    %13 = vector.load %arg2[%c256, %c0_15] : memref<512x64xbf16, #tpu.memory_space<vmem>>, vector<128x64xbf16>
    %cst_16 = arith.constant dense<0.000000e+00> : vector<128x64xf32>
    %14 = tpu.matmul %12, %13, %cst_16 {dimension_numbers = #tpu.dot_dimension_numbers<[1], [0], [0], [1], [0, 0, 1, 1], [], []>} : vector<128x128xbf16>, vector<128x64xbf16>, vector<128x64xf32> -> vector<128x64xf32>
    %15 = arith.addf %10, %14 : vector<128x64xf32>
    %c0_17 = arith.constant 0 : index
    %c1_18 = arith.constant 1 : index
    %c1_19 = arith.constant 1 : index
    %c0_20 = arith.constant 0 : index
    %16 = vector.load %arg1[%c0_17, %c1_18, %c1_19, %c0_20] : memref<2x9x9x128xbf16, #tpu.memory_space<vmem>>, vector<2x8x8x128xbf16>
    %17 = vector.shape_cast %16 : vector<2x8x8x128xbf16> to vector<128x128xbf16>
    %c384 = arith.constant 384 : index
    %c0_21 = arith.constant 0 : index
    %18 = vector.load %arg2[%c384, %c0_21] : memref<512x64xbf16, #tpu.memory_space<vmem>>, vector<128x64xbf16>
    %cst_22 = arith.constant dense<0.000000e+00> : vector<128x64xf32>
    %19 = tpu.matmul %17, %18, %cst_22 {dimension_numbers = #tpu.dot_dimension_numbers<[1], [0], [0], [1], [0, 0, 1, 1], [], []>} : vector<128x128xbf16>, vector<128x64xbf16>, vector<128x64xf32> -> vector<128x64xf32>
    %20 = arith.addf %15, %19 : vector<128x64xf32>
    %cst_23 = arith.constant 2.000000e-01 : f32
    %21 = vector.broadcast %cst_23 : f32 to vector<128x64xf32>
    %22 = arith.mulf %21, %20 : vector<128x64xf32>
    %23 = arith.maximumf %20, %22 : vector<128x64xf32>
    %24 = arith.truncf %23 : vector<128x64xf32> to vector<128x64xbf16>
    %c0_24 = arith.constant 0 : index
    %c0_25 = arith.constant 0 : index
    %25 = vector.load %arg3[%c0_24, %c0_25] : memref<128x64xbf16, #tpu.memory_space<vmem>>, vector<128x64xbf16>
    tpu.vector_store %arg3[%c0_24, %c0_25], %24 {strides = array<i32>} : memref<128x64xbf16, #tpu.memory_space<vmem>>, vector<128x64xbf16>,
    return
  }
  func.func @transform_0(%arg0: i32) -> (i32, i32, i32, i32) {
    %c0_i32 = arith.constant 0 : i32
    %c0_i32_0 = arith.constant 0 : i32
    %c0_i32_1 = arith.constant 0 : i32
    %c0_i32_2 = arith.constant 0 : i32
    return %arg0, %c0_i32, %c0_i32_0, %c0_i32_1 : i32, i32, i32, i32
  }
  func.func @transform_1(%arg0: i32) -> (i32, i32) {
    %c0_i32 = arith.constant 0 : i32
    %c0_i32_0 = arith.constant 0 : i32
    %c0_i32_1 = arith.constant 0 : i32
    return %c0_i32, %c0_i32_0 : i32, i32
  }
  func.func @transform_2(%arg0: i32) -> (i32, i32) {
    %c0_i32 = arith.constant 0 : i32
    %c0_i32_0 = arith.constant 0 : i32
    return %arg0, %c0_i32 : i32, i32
  }
}

module attributes {stable_mosaic.version = 11 : i64} {
  func.func @_gemm_lrelu_kernel(%arg0: i32, %arg1: memref<32x1024xbf16, #tpu.memory_space<vmem>>, %arg2: memref<1024x128xbf16, #tpu.memory_space<vmem>>, %arg3: memref<32x128xbf16, #tpu.memory_space<vmem>>) attributes {dimension_semantics = [#tpu.dimension_semantics<arbitrary>], iteration_bounds = array<i64: 1>, scalar_prefetch = 0 : i64, scratch_operands = 0 : i64, tpu.core_type = #tpu.core_type<tc>, window_params = [{pipeline_mode = #tpu.pipeline_mode<synchronous>, transform_indices = @transform_0, window_bounds = array<i64: 32, 1024>}, {pipeline_mode = #tpu.pipeline_mode<synchronous>, transform_indices = @transform_1, window_bounds = array<i64: 1024, 128>}, {pipeline_mode = #tpu.pipeline_mode<synchronous>, transform_indices = @transform_2, window_bounds = array<i64: 32, 128>}]} {
    %c0 = arith.constant 0 : index
    %c0_0 = arith.constant 0 : index
    %0 = vector.load %arg1[%c0, %c0_0] : memref<32x1024xbf16, #tpu.memory_space<vmem>>, vector<32x1024xbf16>
    %c0_1 = arith.constant 0 : index
    %c0_2 = arith.constant 0 : index
    %1 = vector.load %arg2[%c0_1, %c0_2] : memref<1024x128xbf16, #tpu.memory_space<vmem>>, vector<1024x128xbf16>
    %cst = arith.constant dense<0.000000e+00> : vector<32x128xf32>
    %2 = tpu.matmul %0, %1, %cst {dimension_numbers = #tpu.dot_dimension_numbers<[1], [0], [0], [1], [0, 0, 1, 1], [], []>} : vector<32x1024xbf16>, vector<1024x128xbf16>, vector<32x128xf32> -> vector<32x128xf32>
    %cst_3 = arith.constant 2.000000e-01 : f32
    %3 = vector.broadcast %cst_3 : f32 to vector<32x128xf32>
    %4 = arith.mulf %3, %2 : vector<32x128xf32>
    %5 = arith.maximumf %2, %4 : vector<32x128xf32>
    %6 = arith.truncf %5 : vector<32x128xf32> to vector<32x128xbf16>
    %c0_4 = arith.constant 0 : index
    %c0_5 = arith.constant 0 : index
    %7 = vector.load %arg3[%c0_4, %c0_5] : memref<32x128xbf16, #tpu.memory_space<vmem>>, vector<32x128xbf16>
    tpu.vector_store %arg3[%c0_4, %c0_5], %6 {strides = array<i32>} : memref<32x128xbf16, #tpu.memory_space<vmem>>, vector<32x128xbf16>,
    return
  }
  func.func @transform_0(%arg0: i32) -> (i32, i32) {
    %c0_i32 = arith.constant 0 : i32
    %c0_i32_0 = arith.constant 0 : i32
    %c0_i32_1 = arith.constant 0 : i32
    return %c0_i32, %c0_i32_0 : i32, i32
  }
  func.func @transform_1(%arg0: i32) -> (i32, i32) {
    %c0_i32 = arith.constant 0 : i32
    %c0_i32_0 = arith.constant 0 : i32
    %c0_i32_1 = arith.constant 0 : i32
    return %c0_i32, %c0_i32_0 : i32, i32
  }
  func.func @transform_2(%arg0: i32) -> (i32, i32) {
    %c0_i32 = arith.constant 0 : i32
    %c0_i32_0 = arith.constant 0 : i32
    %c0_i32_1 = arith.constant 0 : i32
    return %c0_i32, %c0_i32_0 : i32, i32
  }
}

</mosaic_0001>

<bundles_post_ra>
// kernel: wgangp_discriminator_forward.4
= control target key start
LH: loop header
LB: loop body
LE: loop exit
PB: predicated region body
PF: predicated region fallthrough
CT: control target
= control target key end

     0   :  { %s11194_s9 = smov 0   ;;  %s12973_s0 = inlined_call_operand.vmem [shape: bf16[2,33,33,32], index: 0, kind: input, shape index: {}]   ;;  %s12974_s1 = inlined_call_operand.vmem [shape: bf16[128,16], index: 1, kind: input, shape index: {}]   ;;  %s12975_s2 = inlined_call_operand.vmem [shape: bf16[2048,16], index: 2, kind: output, shape index: {}]  }
   0x1 LB: > { %s11200_s10 = sadd.s32 4294967295, %s11177_s9   ;;  %p8664_p0 = scmp.ge.s32.totalorder %s11177_s9, 1  ;;  %s11177_s9 = sphi %s11194_s9, %s12_s9  }
   0x2   : > { %p112_p1 = scmp.lt.s32.totalorder %s11177_s9, 3 }
   0x4   : > { %p113_p2 = pnand %p8664_p0, %p112_p1 }
   0x5   : > { %v10919_v0 = vld [vmem:[%s12974_s1 + $0x20] sm:$0xff] (!%p113_p2)   ;;  %p134_p3 = scmp.lt.s32.totalorder (!%p113_p2), %s11200_s10, 1  ;;  %v10920_v1 = vld [vmem:[%s12974_s1 + $0x28] sm:$0xff] (!%p113_p2)   ;;  %v10922_v2 = vld [vmem:[%s12974_s1 + $0x10] sm:$0xff] (!%p113_p2)   ;;  %vm310_vm0 = vsmask.f32 (!%p113_p2), 3328 }
   0x6   : > { %116 = sbr.rel (%p113_p2) target bundleno = 793 (0x319), region = 28  ;;  %10262 = vmatprep.subr.bf16.mxu0 (!%p113_p2), %v10919_v0  ;;  %v10924_v3 = vld [vmem:[%s12974_s1 + $0x18] sm:$0xff] (!%p113_p2)   ;;  %9998 = vmatprep.subr.bf16.mxu1 (!%p113_p2), %v10922_v2  ;;  %vm311_vm1 = vsmask.f32 (!%p113_p2), 7440  ;;  %v11221_v4 = vld [vmem:[%s12974_s1] sm:$0xff] (!%p113_p2)   ;;  %vm1929_vm2 = vcmask (!%p113_p2), 261120  }
   0x7   : > { %10263 = vmatpush3.bf16.msra.mxu0 (!%p113_p2), %v10919_v0  ;;  %9999 = vmatpush3.bf16.msra.mxu1 (!%p113_p2), %v10922_v2  ;;  %v10929_v5 = vld [vmem:[%s12974_s1 + $0x30] sm:$0xff] (!%p113_p2)   ;;  %vm11257_vm3 = vmor (!%p113_p2), %vm310_vm0, %vm311_vm1  ;;  %s8666_s4 = sshll.u32 (!%p113_p2), %s11200_s10, 7  ;;  %vm8475_vm4 = vcmask (!%p113_p2), 125952  }
   0x8   : > { %10264 = vmatprep.subr.bf16.mxu0 (!%p113_p2), %v10920_v1  ;;  %10000 = vmatprep.subr.bf16.mxu1 (!%p113_p2), %v10924_v3  ;;  %p12434_p4 = scmp.lt.s32.totalorder (!%p113_p2), %s8666_s4, 255 }
   0xb   : > { %10265 = vmatpush3.bf16.msra.mxu0 (!%p113_p2), %v10920_v1  ;;  %10001 = vmatpush3.bf16.msra.mxu1 (!%p113_p2), %v10924_v3 }
   0xc   : > { %10394 = vmatprep.subr.bf16.mxu0 (!%p113_p2), %v10929_v5  ;;  %10130 = vmatprep.subr.bf16.mxu1 (!%p113_p2), %v11221_v4 }
   0xd   : > { %s135_s15 = scalar_select %p134_p3, %s11200_s10, 1 }
   0xe   : > { %s12980_s4 = smov (!%p12434_p4, %s8666_s4), 255 }
   0xf   : > { %s10910_s20 = smul.u32 660, %s135_s15  ;;  %s8667_s6 = sshll.u32 %s12980_s4, 2 }
  0x10   : > { %s12483_s10 = scalar_lea.vmem %s12975_s2, %s8667_s6 }
  0x11   : > { %s11226_s25 = scalar_lea.vmem %s12973_s0, %s10910_s20 }
  0x12   : > { %v10921_v6 = vld [vmem:[%s11226_s25 + $0x14] sm:$0xff]   ;;  %v10923_v7 = vld [vmem:[%s11226_s25 + $0x1c] sm:$0xff]   ;;  %v10925_v8 = vld [vmem:[%s11226_s25 + $0x28] sm:$0xff]  }
  0x13   : > { %10266 = vmatprep.mubr.msk.bf16.mxu0 %vm1929_vm2, %v10921_v6  ;;  %v146_v9 = vld [vmem:[%s11226_s25] sm:$0xf]  ;;  %v147_v10 = vld [vmem:[%s11226_s25 + $0x4] sm:$0xf]  ;;  %v11239_v11 = vld [vmem:[%s11226_s25 + $0x8] sm:$0xf] }
  0x14   : > { %10267 = vmatmul.mubr.msk.bf16.vlgmr.msra.gmra.mrb[0].mxu0 %vm1929_vm2, %v10923_v7  ;;  %v11244_v12 = vld [vmem:[%s11226_s25 + $0xc] sm:$0xf]  ;;  %v314_v13 = vshrl.u32 %v146_v9, 16  ;;  %v317_v14 = vshll.u32 %v146_v9, 16  ;;  %v323_v15 = vshll.u32 %v147_v10, 16  ;;  %v327_v16 = vshrl.u32 %v147_v10, 16 }
  0x15   : > { %10270 = vmatprep.mubr.msk.bf16.mxu0 %vm1929_vm2, %v10925_v8  ;;  %10395 = vmatpush3.bf16.msra.mxu0 %v10929_v5  ;;  %v333_v17 = vshll.u32 %v11239_v11, 16  ;;  %v337_v18 = vshrl.u32 %v11239_v11, 16  ;;  %v8799_v19 = vcombine.low %v11239_v11, %v11244_v12  ;;  %v10928_v24 = vld [vmem:[%s11226_s25 + $0x30] sm:$0xff]   ;;  %v343_v28 = vshll.u32 %v11244_v12, 16  ;;  %v10930_v33 = vld [vmem:[%s11226_s25 + $0x3c] sm:$0xff]   ;;  %v10931_v1 = vld [vmem:[%s11226_s25 + $0x44] sm:$0xff]  }
  0x16   : > { %v316_v20 = vrot.slane %v314_v13, 4  ;;  %v319_v21 = vrot.slane %v317_v14, 5  ;;  %v325_v22 = vrot.slane %v323_v15, 5  ;;  %v329_v23 = vrot.slane %v327_v16, 4  ;;  %v278_v27 = vld [vmem:[%s11226_s25 + $0x10] sm:$0x1] }
  0x17   : > { %v335_v25 = vrot.slane %v333_v17, 5  ;;  %v339_v26 = vrot.slane %v337_v18, 4  ;;  %v347_v29 = vshrl.u32 %v11244_v12, 16  ;;  %v353_v32 = vshll.u32 %v278_v27, 16  ;;  %v150_v38 = vld [vmem:[%s11226_s25 + $0x14] sm:$0xf] }
  0x18   : > { %v320_v30 = vor.u32 %v319_v21, %v316_v20  ;;  %v330_v31 = vor.u32 %v329_v23, %v325_v22  ;;  %v345_v36 = vrot.slane %v343_v28, 5  ;;  %v151_v39 = vld [vmem:[%s11226_s25 + $0x18] sm:$0xf]  ;;  %v152_v43 = vld [vmem:[%s11226_s25 + $0x1c] sm:$0xf]  ;;  %v358_v44 = vshrl.u32 %v150_v38, 16 }
  0x19   : > { %v340_v35 = vor.u32 %v339_v26, %v335_v25  ;;  %v349_v37 = vrot.slane %v347_v29, 4  ;;  %v355_v42 = vrot.slane %v353_v32, 5  ;;  %v361_v47 = vshll.u32 %v150_v38, 16  ;;  %v153_v53 = vld [vmem:[%s11226_s25 + $0x20] sm:$0xf]  ;;  %v10932_v5 = vld [vmem:[%s11226_s25 + $0x50] sm:$0xff]  }
  0x1a   : > { %v321_v40 = vrot.slane %v320_v30, 4  ;;  %v331_v41 = vrot.slane %v330_v31, 4  ;;  %v367_v48 = vshll.u32 %v151_v39, 16  ;;  %v360_v51 = vrot.slane %v358_v44, 4  ;;  %v279_v58 = vld [vmem:[%s11226_s25 + $0x24] sm:$0x1] }
  0x1b   : > { %v341_v45 = vrot.slane %v340_v35, 4  ;;  %v350_v46 = vor.u32 %v349_v37, %v345_v36  ;;  %v371_v52 = vshrl.u32 %v151_v39, 16  ;;  %v363_v57 = vrot.slane %v361_v47, 5  ;;  %v154_v6 = vld [vmem:[%s11226_s25 + $0x28] sm:$0xf] }
  0x1c   : > { %10271 = vmatmul.mubr.msk.bf16.gmra.mrb[4].mxu0 %vm1929_vm2, %v10928_v24  ;;  %v326_v49 = vsel %vm11257_vm3, %v321_v40, %v325_v22  ;;  %v336_v50 = vsel %vm11257_vm3, %v331_v41, %v335_v25  ;;  %v369_v59 = vrot.slane %v367_v48, 5  ;;  %v377_v61 = vshll.u32 %v152_v43, 16  ;;  %v155_v13 = vld [vmem:[%s11226_s25 + $0x2c] sm:$0xf]  ;;  %v156_v21 = vld [vmem:[%s11226_s25 + $0x30] sm:$0xf] }
  0x1d   : > { %10274 = vmatprep.mubr.msk.bf16.mxu0 %vm1929_vm2, %v10930_v33  ;;  %v8668_v54 = vcombine.low %v326_v49, %v336_v50  ;;  %v346_v55 = vsel %vm11257_vm3, %v341_v45, %v345_v36  ;;  %v351_v56 = vrot.slane %v350_v46, 4  ;;  %v373_v60 = vrot.slane %v371_v52, 4  ;;  %v157_v28 = vld [vmem:[%s11226_s25 + $0x34] sm:$0xf]  ;;  %v280_v37 = vld [vmem:[%s11226_s25 + $0x38] sm:$0x1] }
  0x1e   : > { %v381_v62 = vshrl.u32 %v152_v43, 16  ;;  %v364_v0 = vor.u32 %v363_v57, %v360_v51  ;;  %v387_v2 = vshll.u32 %v153_v53, 16  ;;  %v391_v3 = vshrl.u32 %v153_v53, 16  ;;  %v159_v43 = vld [vmem:[%s11226_s25 + $0x40] sm:$0xf]  ;;  %v10933_v46 = vld [vmem:[%s11226_s25 + $0x58] sm:$0xff]  }
  0x1f   : > { %10002 = vmatprep.mubr.msk.bf16.mxu1 %vm1929_vm2, %v8668_v54  ;;  %v356_v63 = vsel %vm11257_vm3, %v351_v56, %v355_v42  ;;  %v374_v8 = vor.u32 %v373_v60, %v369_v59  ;;  %v379_v9 = vrot.slane %v377_v61, 5  ;;  %v397_v17 = vshll.u32 %v279_v58, 16  ;;  %v158_v42 = vld [vmem:[%s11226_s25 + $0x3c] sm:$0xf]  ;;  %v10934_v53 = vld [vmem:[%s11226_s25 + $0x64] sm:$0xff]  }
  0x20   : > { %v8669_v7 = vcombine.low %v346_v55, %v356_v63  ;;  %v383_v10 = vrot.slane %v381_v62, 4  ;;  %v365_v14 = vrot.slane %v364_v0, 4  ;;  %v389_v15 = vrot.slane %v387_v2, 5  ;;  %v160_v60 = vld [vmem:[%s11226_s25 + $0x44] sm:$0xf] }
  0x21   : > { %v393_v16 = vrot.slane %v391_v3, 4  ;;  %v375_v18 = vrot.slane %v374_v8, 4  ;;  %v402_v22 = vshrl.u32 %v154_v6, 16  ;;  %v405_v23 = vshll.u32 %v154_v6, 16  ;;  %v161_v8 = vld [vmem:[%s11226_s25 + $0x48] sm:$0xf] }
  0x22   : > { %10003 = vmatmul.mubr.msk.bf16.vlgmr.msra.gmra.mrb[0].mxu1 %vm1929_vm2, %v8669_v7  ;;  %v384_v20 = vor.u32 %v383_v10, %v379_v9  ;;  %v370_v24 = vsel %vm11257_vm3, %v365_v14, %v369_v59  ;;  %v399_v26 = vrot.slane %v397_v17, 5  ;;  %v411_v27 = vshll.u32 %v155_v13, 16 }
  0x23   : > { %10131 = vmatpush3.bf16.msra.mxu1 %v11221_v4  ;;  %v394_v25 = vor.u32 %v393_v16, %v389_v15  ;;  %v380_v29 = vsel %vm11257_vm3, %v375_v18, %v379_v9  ;;  %v404_v31 = vrot.slane %v402_v22, 4  ;;  %v407_v4 = vrot.slane %v405_v23, 5  ;;  %v162_v22 = vld [vmem:[%s11226_s25 + $0x50] sm:$0xf] }
  0x24   : > { %10275 = vmatmul.mubr.msk.bf16.gmra.mrb[8].mxu0 %vm1929_vm2, %v10931_v1  ;;  %v385_v30 = vrot.slane %v384_v20, 4  ;;  %v8670_v32 = vcombine.low %v370_v24, %v380_v29  ;;  %v413_v35 = vrot.slane %v411_v27, 5  ;;  %v415_v36 = vshrl.u32 %v155_v13, 16  ;;  %v10936_v27 = vld [vmem:[%s11226_s25 + $0x78] sm:$0xff]  }
  0x25   : > { %10278 = vmatprep.mubr.msk.bf16.mxu0 %vm1929_vm2, %v10932_v5  ;;  %v395_v33 = vrot.slane %v394_v25, 4  ;;  %v408_v39 = vor.u32 %v407_v4, %v404_v31  ;;  %v421_v40 = vshll.u32 %v156_v21, 16  ;;  %v425_v41 = vshrl.u32 %v156_v21, 16  ;;  %v10935_v21 = vld [vmem:[%s11226_s25 + $0x6c] sm:$0xff]   ;;  %v163_v4 = vld [vmem:[%s11226_s25 + $0x54] sm:$0xf] }
  0x26   : > { %v390_v38 = vsel %vm11257_vm3, %v385_v30, %v389_v15  ;;  %10006 = vmatprep.mubr.msk.bf16.mxu1 %vm1929_vm2, %v8670_v32  ;;  %v417_v45 = vrot.slane %v415_v36, 4  ;;  %v431_v47 = vshll.u32 %v157_v28, 16  ;;  %v435_v48 = vshrl.u32 %v157_v28, 16  ;;  %v281_v15 = vld [vmem:[%s11226_s25 + $0x4c] sm:$0x1] }
  0x27   : > { %v400_v44 = vsel %vm11257_vm3, %v395_v33, %v399_v26  ;;  %v409_v50 = vrot.slane %v408_v39, 4  ;;  %v423_v51 = vrot.slane %v421_v40, 5  ;;  %v427_v52 = vrot.slane %v425_v41, 4  ;;  %v164_v32 = vld [vmem:[%s11226_s25 + $0x58] sm:$0xf] }
  0x28   : > { %v8671_v49 = vcombine.low %v390_v38, %v400_v44  ;;  %v418_v54 = vor.u32 %v417_v45, %v413_v35  ;;  %v433_v55 = vrot.slane %v431_v47, 5  ;;  %v437_v56 = vrot.slane %v435_v48, 4 }
  0x29   : > { %v441_v57 = vshll.u32 %v280_v37, 16  ;;  %v414_v58 = vsel %vm11257_vm3, %v409_v50, %v413_v35  ;;  %v428_v59 = vor.u32 %v427_v52, %v423_v51  ;;  %v446_v61 = vshrl.u32 %v158_v42, 16  ;;  %v165_v50 = vld [vmem:[%s11226_s25 + $0x5c] sm:$0xf] }
  0x2a   : > { %10007 = vmatmul.mubr.msk.bf16.gmra.mrb[4].mxu1 %vm1929_vm2, %v8671_v49  ;;  %v449_v62 = vshll.u32 %v158_v42, 16  ;;  %v419_v63 = vrot.slane %v418_v54, 4  ;;  %v438_v0 = vor.u32 %v437_v56, %v433_v55  ;;  %v455_v2 = vshll.u32 %v159_v43, 16 }
  0x2b   : > { %v443_v1 = vrot.slane %v441_v57, 5  ;;  %v429_v3 = vrot.slane %v428_v59, 4  ;;  %v448_v5 = vrot.slane %v446_v61, 4  ;;  %v459_v7 = vshrl.u32 %v159_v43, 16  ;;  %v10937_v59 = vld [vmem:[%s11226_s25 + $0x80] sm:$0xff]  }
  0x2c   : > { %10279 = vmatmul.mubr.msk.bf16.gmra.mrb[12].mxu0 %vm1929_vm2, %v10933_v46  ;;  %v451_v6 = vrot.slane %v449_v62, 5  ;;  %v424_v9 = vsel %vm11257_vm3, %v419_v63, %v423_v51  ;;  %v439_v10 = vrot.slane %v438_v0, 4  ;;  %v457_v13 = vrot.slane %v455_v2, 5  ;;  %v282_v51 = vld [vmem:[%s11226_s25 + $0x60] sm:$0x1] }
  0x2d   : > { %10282 = vmatprep.mubr.msk.bf16.mxu0 %vm1929_vm2, %v10934_v53  ;;  %v465_v14 = vshll.u32 %v160_v60, 16  ;;  %v8672_v16 = vcombine.low %v414_v58, %v424_v9  ;;  %v434_v17 = vsel %vm11257_vm3, %v429_v3, %v433_v55  ;;  %v461_v20 = vrot.slane %v459_v7, 4  ;;  %v166_v2 = vld [vmem:[%s11226_s25 + $0x64] sm:$0xf] }
  0x2e   : > { %v452_v18 = vor.u32 %v451_v6, %v448_v5  ;;  %v444_v23 = vsel %vm11257_vm3, %v439_v10, %v443_v1  ;;  %v469_v25 = vshrl.u32 %v160_v60, 16  ;;  %v475_v26 = vshll.u32 %v161_v8, 16  ;;  %v10938_v1 = vld [vmem:[%s11226_s25 + $0x8c] sm:$0xff]  }
  0x2f   : > { %v467_v24 = vrot.slane %v465_v14, 5  ;;  %10010 = vmatprep.mubr.msk.bf16.mxu1 %vm1929_vm2, %v8672_v16  ;;  %v8673_v28 = vcombine.low %v434_v17, %v444_v23  ;;  %v462_v30 = vor.u32 %v461_v20, %v457_v13  ;;  %v479_v31 = vshrl.u32 %v161_v8, 16  ;;  %v167_v8 = vld [vmem:[%s11226_s25 + $0x68] sm:$0xf] }
  0x30   : > { %v453_v29 = vrot.slane %v452_v18, 4  ;;  %v471_v33 = vrot.slane %v469_v25, 4  ;;  %v477_v35 = vrot.slane %v475_v26, 5  ;;  %v485_v36 = vshll.u32 %v281_v15, 16  ;;  %v168_v18 = vld [vmem:[%s11226_s25 + $0x6c] sm:$0xf] }
  0x31   : > { %v490_v37 = vshrl.u32 %v162_v22, 16  ;;  %v463_v39 = vrot.slane %v462_v30, 4  ;;  %v481_v40 = vrot.slane %v479_v31, 4  ;;  %v493_v41 = vshll.u32 %v162_v22, 16  ;;  %v169_v25 = vld [vmem:[%s11226_s25 + $0x70] sm:$0xf] }
  0x32   : > { %10011 = vmatmul.mubr.msk.bf16.gmra.mrb[8].mxu1 %vm1929_vm2, %v8673_v28  ;;  %v458_v38 = vsel %vm11257_vm3, %v453_v29, %v457_v13  ;;  %v472_v42 = vor.u32 %v471_v33, %v467_v24  ;;  %v487_v43 = vrot.slane %v485_v36, 5  ;;  %v499_v45 = vshll.u32 %v163_v4, 16  ;;  %v10939_v33 = vld [vmem:[%s11226_s25 + $0x94] sm:$0xff]  }
  0x33   : > { %v492_v44 = vrot.slane %v490_v37, 4  ;;  %v468_v46 = vsel %vm11257_vm3, %v463_v39, %v467_v24  ;;  %v482_v47 = vor.u32 %v481_v40, %v477_v35  ;;  %v495_v48 = vrot.slane %v493_v41, 5  ;;  %v10940_v40 = vld [vmem:[%s11226_s25 + $0xa0] sm:$0xff]  }
  0x34   : > { %10283 = vmatmul.mubr.msk.bf16.gmra.mrb[16].mxu0 %vm1929_vm2, %v10935_v21  ;;  %v503_v49 = vshrl.u32 %v163_v4, 16  ;;  %v8674_v52 = vcombine.low %v458_v38, %v468_v46  ;;  %v473_v53 = vrot.slane %v472_v42, 4  ;;  %v501_v54 = vrot.slane %v499_v45, 5  ;;  %v283_v38 = vld [vmem:[%s11226_s25 + $0x74] sm:$0x1] }
  0x35   : > { %10286 = vmatprep.mubr.msk.bf16.mxu0 %vm1929_vm2, %v10936_v27  ;;  %v509_v55 = vshll.u32 %v164_v32, 16  ;;  %v483_v56 = vrot.slane %v482_v47, 4  ;;  %v496_v57 = vor.u32 %v495_v48, %v492_v44  ;;  %v513_v60 = vshrl.u32 %v164_v32, 16  ;;  %v170_v45 = vld [vmem:[%s11226_s25 + $0x78] sm:$0xf] }
  0x36   : > { %v505_v58 = vrot.slane %v503_v49, 4  ;;  %10014 = vmatprep.mubr.msk.bf16.mxu1 %vm1929_vm2, %v8674_v52  ;;  %v478_v61 = vsel %vm11257_vm3, %v473_v53, %v477_v35  ;;  %v519_v63 = vshll.u32 %v165_v50, 16  ;;  %v523_v0 = vshrl.u32 %v165_v50, 16  ;;  %v171_v50 = vld [vmem:[%s11226_s25 + $0x7c] sm:$0xf] }
  0x37   : > { %v511_v62 = vrot.slane %v509_v55, 5  ;;  %v488_v3 = vsel %vm11257_vm3, %v483_v56, %v487_v43  ;;  %v497_v5 = vrot.slane %v496_v57, 4  ;;  %v515_v7 = vrot.slane %v513_v60, 4  ;;  %v172_v57 = vld [vmem:[%s11226_s25 + $0x80] sm:$0xf] }
  0x38   : > { %v506_v6 = vor.u32 %v505_v58, %v501_v54  ;;  %v8675_v9 = vcombine.low %v478_v61, %v488_v3  ;;  %v521_v10 = vrot.slane %v519_v63, 5  ;;  %v525_v13 = vrot.slane %v523_v0, 4 }
  0x39   : > { %v529_v14 = vshll.u32 %v282_v51, 16  ;;  %v502_v15 = vsel %vm11257_vm3, %v497_v5, %v501_v54  ;;  %v516_v17 = vor.u32 %v515_v7, %v511_v62  ;;  %v534_v20 = vshrl.u32 %v166_v2, 16  ;;  %v173_v5 = vld [vmem:[%s11226_s25 + $0x84] sm:$0xf] }
  0x3a   : > { %v507_v16 = vrot.slane %v506_v6, 4  ;;  %10015 = vmatmul.mubr.msk.bf16.gmra.mrb[12].mxu1 %vm1929_vm2, %v8675_v9  ;;  %v526_v21 = vor.u32 %v525_v13, %v521_v10  ;;  %v537_v23 = vshll.u32 %v166_v2, 16  ;;  %v543_v24 = vshll.u32 %v167_v8, 16 }
  0x3b   : > { %v531_v22 = vrot.slane %v529_v14, 5  ;;  %v517_v27 = vrot.slane %v516_v17, 4  ;;  %v536_v28 = vrot.slane %v534_v20, 4  ;;  %v547_v29 = vshrl.u32 %v167_v8, 16  ;;  %v10941_v20 = vld [vmem:[%s11226_s25 + $0xa8] sm:$0xff]  }
  0x3c   : > { %10287 = vmatmul.mubr.msk.bf16.gmra.mrb[20].mxu0 %vm1929_vm2, %v10937_v59  ;;  %v512_v26 = vsel %vm11257_vm3, %v507_v16, %v511_v62  ;;  %v527_v31 = vrot.slane %v526_v21, 4  ;;  %v539_v4 = vrot.slane %v537_v23, 5  ;;  %v545_v32 = vrot.slane %v543_v24, 5  ;;  %v174_v23 = vld [vmem:[%s11226_s25 + $0x8c] sm:$0xf] }
  0x3d   : > { %10290 = vmatprep.mubr.msk.bf16.mxu0 %vm1929_vm2, %v10938_v1  ;;  %v8676_v30 = vcombine.low %v502_v15, %v512_v26  ;;  %v522_v35 = vsel %vm11257_vm3, %v517_v27, %v521_v10  ;;  %v549_v36 = vrot.slane %v547_v29, 4  ;;  %v553_v37 = vshll.u32 %v168_v18, 16  ;;  %v284_v10 = vld [vmem:[%s11226_s25 + $0x88] sm:$0x1]  ;;  %v175_v29 = vld [vmem:[%s11226_s25 + $0x90] sm:$0xf] }
  0x3e   : > { %v557_v39 = vshrl.u32 %v168_v18, 16  ;;  %v532_v41 = vsel %vm11257_vm3, %v527_v31, %v531_v22  ;;  %v540_v42 = vor.u32 %v539_v4, %v536_v28  ;;  %v563_v43 = vshll.u32 %v169_v25, 16  ;;  %v10942_v28 = vld [vmem:[%s11226_s25 + $0xb4] sm:$0xff]  }
  0x3f   : > { %10018 = vmatprep.mubr.msk.bf16.mxu1 %vm1929_vm2, %v8676_v30  ;;  %v567_v44 = vshrl.u32 %v169_v25, 16  ;;  %v8677_v46 = vcombine.low %v522_v35, %v532_v41  ;;  %v550_v47 = vor.u32 %v549_v36, %v545_v32  ;;  %v555_v48 = vrot.slane %v553_v37, 5 }
  0x40   : > { %v559_v49 = vrot.slane %v557_v39, 4  ;;  %v541_v51 = vrot.slane %v540_v42, 4  ;;  %v565_v52 = vrot.slane %v563_v43, 5  ;;  %v573_v54 = vshll.u32 %v283_v38, 16  ;;  %v177_v43 = vld [vmem:[%s11226_s25 + $0x98] sm:$0xf] }
  0x41   : > { %v569_v53 = vrot.slane %v567_v44, 4  ;;  %v551_v55 = vrot.slane %v550_v47, 4  ;;  %v578_v58 = vshrl.u32 %v170_v45, 16  ;;  %v581_v59 = vshll.u32 %v170_v45, 16 }
  0x42   : > { %v560_v56 = vor.u32 %v559_v49, %v555_v48  ;;  %10019 = vmatmul.mubr.msk.bf16.gmra.mrb[16].mxu1 %vm1929_vm2, %v8677_v46  ;;  %v546_v60 = vsel %vm11257_vm3, %v541_v51, %v545_v32  ;;  %v575_v62 = vrot.slane %v573_v54, 5  ;;  %v587_v63 = vshll.u32 %v171_v50, 16 }
  0x43   : > { %v570_v61 = vor.u32 %v569_v53, %v565_v52  ;;  %v556_v0 = vsel %vm11257_vm3, %v551_v55, %v555_v48  ;;  %v580_v2 = vrot.slane %v578_v58, 4  ;;  %v583_v3 = vrot.slane %v581_v59, 5  ;;  %v285_v48 = vld [vmem:[%s11226_s25 + $0x9c] sm:$0x1]  ;;  %v10961_v58 = vld [vmem:[%s12974_s1 + $0x8] sm:$0xff]  }
  0x44   : > { %10291 = vmatmul.mubr.msk.bf16.gmra.mrb[24].mxu0 %vm1929_vm2, %v10939_v33  ;;  %v561_v1 = vrot.slane %v560_v56, 4  ;;  %v8678_v6 = vcombine.low %v546_v60, %v556_v0  ;;  %v589_v8 = vrot.slane %v587_v63, 5  ;;  %v591_v9 = vshrl.u32 %v171_v50, 16  ;;  %v176_v33 = vld [vmem:[%s11226_s25 + $0x94] sm:$0xf]  ;;  %v10944_v0 = vld [vmem:[%s11226_s25 + $0xc8] sm:$0xff]   ;;  %10132 = vmatprep.subr.bf16.mxu1 %v10961_v58 }
  0x45   : > { %10294 = vmatprep.mubr.msk.bf16.mxu0 %vm1929_vm2, %v10940_v40  ;;  %v571_v7 = vrot.slane %v570_v61, 4  ;;  %v584_v14 = vor.u32 %v583_v3, %v580_v2  ;;  %v597_v15 = vshll.u32 %v172_v57, 16  ;;  %v601_v16 = vshrl.u32 %v172_v57, 16  ;;  %v178_v57 = vld [vmem:[%s11226_s25 + $0xa0] sm:$0xf]  ;;  %10133 = vmatpush3.bf16.msra.mxu1 %v10961_v58 }
  0x46   : > { %v566_v13 = vsel %vm11257_vm3, %v561_v1, %v565_v52  ;;  %10022 = vmatprep.mubr.msk.bf16.mxu1 %vm1929_vm2, %v8678_v6  ;;  %v593_v18 = vrot.slane %v591_v9, 4  ;;  %v607_v21 = vshll.u32 %v173_v5, 16  ;;  %v611_v22 = vshrl.u32 %v173_v5, 16  ;;  %v10943_v61 = vld [vmem:[%s11226_s25 + $0xbc] sm:$0xff]   ;;  %v179_v6 = vld [vmem:[%s11226_s25 + $0xa4] sm:$0xf] }
  0x47   : > { %v576_v17 = vsel %vm11257_vm3, %v571_v7, %v575_v62  ;;  %v585_v25 = vrot.slane %v584_v14, 4  ;;  %v599_v26 = vrot.slane %v597_v15, 5  ;;  %v603_v27 = vrot.slane %v601_v16, 4  ;;  %v180_v16 = vld [vmem:[%s11226_s25 + $0xa8] sm:$0xf] }
  0x48   : > { %v8679_v24 = vcombine.low %v566_v13, %v576_v17  ;;  %v594_v30 = vor.u32 %v593_v18, %v589_v8  ;;  %v609_v31 = vrot.slane %v607_v21, 5  ;;  %v613_v4 = vrot.slane %v611_v22, 4  ;;  %v10963_v18 = vld [vmem:[%s12974_s1 + $0x38] sm:$0xff]  }
  0x49   : > { %v617_v32 = vshll.u32 %v284_v10, 16  ;;  %v590_v35 = vsel %vm11257_vm3, %v585_v25, %v589_v8  ;;  %v604_v36 = vor.u32 %v603_v27, %v599_v26  ;;  %v622_v37 = vshrl.u32 %v174_v23, 16  ;;  %10396 = vmatprep.subr.bf16.mxu0 %v10963_v18 }
  0x4a   : > { %v625_v38 = vshll.u32 %v174_v23, 16  ;;  %10023 = vmatmul.mubr.msk.bf16.gmra.mrb[20].mxu1 %vm1929_vm2, %v8679_v24  ;;  %v595_v39 = vrot.slane %v594_v30, 4  ;;  %v614_v40 = vor.u32 %v613_v4, %v609_v31  ;;  %v631_v42 = vshll.u32 %v175_v29, 16  ;;  %v181_v24 = vld [vmem:[%s11226_s25 + $0xac] sm:$0xf]  ;;  %10397 = vmatpush3.bf16.msra.mxu0 %v10963_v18 }
  0x4b   : > { %v619_v41 = vrot.slane %v617_v32, 5  ;;  %v605_v44 = vrot.slane %v604_v36, 4  ;;  %v624_v45 = vrot.slane %v622_v37, 4  ;;  %v635_v47 = vshrl.u32 %v175_v29, 16  ;;  %v286_v32 = vld [vmem:[%s11226_s25 + $0xb0] sm:$0x1] }
  0x4c   : > { %10295 = vmatmul.mubr.msk.bf16.gmra.mrb[28].mxu0 %vm1929_vm2, %v10941_v20  ;;  %v627_v46 = vrot.slane %v625_v38, 5  ;;  %v600_v49 = vsel %vm11257_vm3, %v595_v39, %v599_v26  ;;  %v615_v50 = vrot.slane %v614_v40, 4  ;;  %v633_v51 = vrot.slane %v631_v42, 5  ;;  %v10945_v37 = vld [vmem:[%s11226_s25 + $0xd0] sm:$0xff]  }
  0x4d   : > { %10298 = vmatprep.mubr.msk.bf16.mxu0 %vm1929_vm2, %v10942_v28  ;;  %v641_v52 = vshll.u32 %v176_v33, 16  ;;  %v8680_v53 = vcombine.low %v590_v35, %v600_v49  ;;  %v610_v54 = vsel %vm11257_vm3, %v605_v44, %v609_v31  ;;  %v637_v56 = vrot.slane %v635_v47, 4  ;;  %v182_v39 = vld [vmem:[%s11226_s25 + $0xb4] sm:$0xf]  ;;  %v10946_v44 = vld [vmem:[%s11226_s25 + $0xdc] sm:$0xff]  }
  0x4e   : > { %v628_v55 = vor.u32 %v627_v46, %v624_v45  ;;  %v620_v59 = vsel %vm11257_vm3, %v615_v50, %v619_v41  ;;  %v645_v62 = vshrl.u32 %v176_v33, 16  ;;  %v651_v63 = vshll.u32 %v177_v43, 16  ;;  %v183_v45 = vld [vmem:[%s11226_s25 + $0xb8] sm:$0xf] }
  0x4f   : > { %v643_v60 = vrot.slane %v641_v52, 5  ;;  %10026 = vmatprep.mubr.msk.bf16.mxu1 %vm1929_vm2, %v8680_v53  ;;  %v8681_v1 = vcombine.low %v610_v54, %v620_v59  ;;  %v638_v3 = vor.u32 %v637_v56, %v633_v51  ;;  %v655_v5 = vshrl.u32 %v177_v43, 16 }
  0x50   : > { %v629_v2 = vrot.slane %v628_v55, 4  ;;  %v647_v7 = vrot.slane %v645_v62, 4  ;;  %v653_v8 = vrot.slane %v651_v63, 5  ;;  %v661_v9 = vshll.u32 %v285_v48, 16 }
  0x51   : > { %v666_v10 = vshrl.u32 %v178_v57, 16  ;;  %v639_v14 = vrot.slane %v638_v3, 4  ;;  %v657_v15 = vrot.slane %v655_v5, 4  ;;  %v669_v17 = vshll.u32 %v178_v57, 16  ;;  %v184_v57 = vld [vmem:[%s11226_s25 + $0xbc] sm:$0xf] }
  0x52   : > { %v634_v13 = vsel %vm11257_vm3, %v629_v2, %v633_v51  ;;  %10027 = vmatmul.mubr.msk.bf16.gmra.mrb[24].mxu1 %vm1929_vm2, %v8681_v1  ;;  %v648_v20 = vor.u32 %v647_v7, %v643_v60  ;;  %v663_v21 = vrot.slane %v661_v9, 5  ;;  %v675_v23 = vshll.u32 %v179_v6, 16  ;;  %v185_v3 = vld [vmem:[%s11226_s25 + $0xc0] sm:$0xf]  ;;  %v287_v9 = vld [vmem:[%s11226_s25 + $0xc4] sm:$0x1] }
  0x53   : > { %v668_v22 = vrot.slane %v666_v10, 4  ;;  %v644_v25 = vsel %vm11257_vm3, %v639_v14, %v643_v60  ;;  %v658_v26 = vor.u32 %v657_v15, %v653_v8  ;;  %v671_v27 = vrot.slane %v669_v17, 5  ;;  %v10947_v15 = vld [vmem:[%s11226_s25 + $0xe4] sm:$0xff]  }
  0x54   : > { %10299 = vmatmul.mubr.msk.bf16.gmra.mrb[32].mxu0 %vm1929_vm2, %v10943_v61  ;;  %v679_v28 = vshrl.u32 %v179_v6, 16  ;;  %v8682_v29 = vcombine.low %v634_v13, %v644_v25  ;;  %v649_v30 = vrot.slane %v648_v20, 4  ;;  %v677_v31 = vrot.slane %v675_v23, 5  ;;  %v186_v17 = vld [vmem:[%s11226_s25 + $0xc8] sm:$0xf] }
  0x55   : > { %10302 = vmatprep.mubr.msk.bf16.mxu0 %vm1929_vm2, %v10944_v0  ;;  %v685_v4 = vshll.u32 %v180_v16, 16  ;;  %v659_v33 = vrot.slane %v658_v26, 4  ;;  %v672_v35 = vor.u32 %v671_v27, %v668_v22  ;;  %v689_v38 = vshrl.u32 %v180_v16, 16  ;;  %v10948_v27 = vld [vmem:[%s11226_s25 + $0xf0] sm:$0xff]  }
  0x56   : > { %v681_v36 = vrot.slane %v679_v28, 4  ;;  %10030 = vmatprep.mubr.msk.bf16.mxu1 %vm1929_vm2, %v8682_v29  ;;  %v654_v40 = vsel %vm11257_vm3, %v649_v30, %v653_v8  ;;  %v695_v42 = vshll.u32 %v181_v24, 16  ;;  %v699_v43 = vshrl.u32 %v181_v24, 16  ;;  %v187_v28 = vld [vmem:[%s11226_s25 + $0xcc] sm:$0xf] }
  0x57   : > { %v687_v41 = vrot.slane %v685_v4, 5  ;;  %v664_v46 = vsel %vm11257_vm3, %v659_v33, %v663_v21  ;;  %v673_v47 = vrot.slane %v672_v35, 4  ;;  %v691_v49 = vrot.slane %v689_v38, 4 }
  0x58   : > { %v682_v48 = vor.u32 %v681_v36, %v677_v31  ;;  %v8683_v50 = vcombine.low %v654_v40, %v664_v46  ;;  %v697_v51 = vrot.slane %v695_v42, 5  ;;  %v701_v52 = vrot.slane %v699_v43, 4  ;;  %v188_v40 = vld [vmem:[%s11226_s25 + $0xd0] sm:$0xf]  ;;  %v189_v42 = vld [vmem:[%s11226_s25 + $0xd4] sm:$0xf] }
  0x59   : > { %v705_v53 = vshll.u32 %v286_v32, 16  ;;  %v678_v54 = vsel %vm11257_vm3, %v673_v47, %v677_v31  ;;  %v692_v56 = vor.u32 %v691_v49, %v687_v41  ;;  %v710_v58 = vshrl.u32 %v182_v39, 16  ;;  %v288_v47 = vld [vmem:[%s11226_s25 + $0xd8] sm:$0x1] }
  0x5a   : > { %v683_v55 = vrot.slane %v682_v48, 4  ;;  %10031 = vmatmul.mubr.msk.bf16.gmra.mrb[28].mxu1 %vm1929_vm2, %v8683_v50  ;;  %v702_v59 = vor.u32 %v701_v52, %v697_v51  ;;  %v713_v61 = vshll.u32 %v182_v39, 16  ;;  %v719_v62 = vshll.u32 %v183_v45, 16 }
  0x5b   : > { %v707_v60 = vrot.slane %v705_v53, 5  ;;  %v693_v0 = vrot.slane %v692_v56, 4  ;;  %v712_v1 = vrot.slane %v710_v58, 4  ;;  %v723_v2 = vshrl.u32 %v183_v45, 16  ;;  %v190_v56 = vld [vmem:[%s11226_s25 + $0xdc] sm:$0xf] }
  0x5c   : > { %10303 = vmatmul.mubr.msk.bf16.gmra.mrb[36].mxu0 %vm1929_vm2, %v10945_v37  ;;  %v688_v63 = vsel %vm11257_vm3, %v683_v55, %v687_v41  ;;  %v703_v6 = vrot.slane %v702_v59, 4  ;;  %v715_v7 = vrot.slane %v713_v61, 5  ;;  %v721_v8 = vrot.slane %v719_v62, 5  ;;  %v10949_v59 = vld [vmem:[%s11226_s25 + $0xf8] sm:$0xff]   ;;  %v191_v62 = vld [vmem:[%s11226_s25 + $0xe0] sm:$0xf] }
  0x5d   : > { %10306 = vmatprep.mubr.msk.bf16.mxu0 %vm1929_vm2, %v10946_v44  ;;  %v8684_v5 = vcombine.low %v678_v54, %v688_v63  ;;  %v698_v10 = vsel %vm11257_vm3, %v693_v0, %v697_v51  ;;  %v725_v13 = vrot.slane %v723_v2, 4  ;;  %v729_v14 = vshll.u32 %v184_v57, 16 }
  0x5e   : > { %v733_v16 = vshrl.u32 %v184_v57, 16  ;;  %v708_v18 = vsel %vm11257_vm3, %v703_v6, %v707_v60  ;;  %v716_v20 = vor.u32 %v715_v7, %v712_v1  ;;  %v739_v21 = vshll.u32 %v185_v3, 16 }
  0x5f   : > { %10034 = vmatprep.mubr.msk.bf16.mxu1 %vm1929_vm2, %v8684_v5  ;;  %v743_v22 = vshrl.u32 %v185_v3, 16  ;;  %v8685_v23 = vcombine.low %v698_v10, %v708_v18  ;;  %v726_v24 = vor.u32 %v725_v13, %v721_v8  ;;  %v731_v25 = vrot.slane %v729_v14, 5  ;;  %v10950_v3 = vld [vmem:[%s11226_s25 + $0x104] sm:$0xff]  }
  0x60   : > { %v735_v26 = vrot.slane %v733_v16, 4  ;;  %v717_v29 = vrot.slane %v716_v20, 4  ;;  %v741_v30 = vrot.slane %v739_v21, 5  ;;  %v749_v4 = vshll.u32 %v287_v9, 16  ;;  %v192_v13 = vld [vmem:[%s11226_s25 + $0xe4] sm:$0xf] }
  0x61   : > { %v745_v31 = vrot.slane %v743_v22, 4  ;;  %v727_v32 = vrot.slane %v726_v24, 4  ;;  %v754_v35 = vshrl.u32 %v186_v17, 16  ;;  %v757_v36 = vshll.u32 %v186_v17, 16  ;;  %v193_v21 = vld [vmem:[%s11226_s25 + $0xe8] sm:$0xf] }
  0x62   : > { %v736_v33 = vor.u32 %v735_v26, %v731_v25  ;;  %10035 = vmatmul.mubr.msk.bf16.gmra.mrb[32].mxu1 %vm1929_vm2, %v8685_v23  ;;  %v722_v37 = vsel %vm11257_vm3, %v717_v29, %v721_v8  ;;  %v751_v39 = vrot.slane %v749_v4, 5  ;;  %v763_v41 = vshll.u32 %v187_v28, 16 }
  0x63   : > { %v746_v38 = vor.u32 %v745_v31, %v741_v30  ;;  %v732_v43 = vsel %vm11257_vm3, %v727_v32, %v731_v25  ;;  %v756_v45 = vrot.slane %v754_v35, 4  ;;  %v759_v46 = vrot.slane %v757_v36, 5  ;;  %v289_v35 = vld [vmem:[%s11226_s25 + $0xec] sm:$0x1]  ;;  %v194_v36 = vld [vmem:[%s11226_s25 + $0xf0] sm:$0xf] }
  0x64   : > { %10307 = vmatmul.mubr.msk.bf16.gmra.mrb[40].mxu0 %vm1929_vm2, %v10947_v15  ;;  %v737_v44 = vrot.slane %v736_v33, 4  ;;  %v8686_v48 = vcombine.low %v722_v37, %v732_v43  ;;  %v765_v50 = vrot.slane %v763_v41, 5  ;;  %v767_v51 = vshrl.u32 %v187_v28, 16  ;;  %v10951_v33 = vld [vmem:[%s11226_s25 + $0x10c] sm:$0xff]   ;;  %v10952_v41 = vld [vmem:[%s11226_s25 + $0x118] sm:$0xff]  }
  0x65   : > { %10310 = vmatprep.mubr.msk.bf16.mxu0 %vm1929_vm2, %v10948_v27  ;;  %v747_v49 = vrot.slane %v746_v38, 4  ;;  %v760_v53 = vor.u32 %v759_v46, %v756_v45  ;;  %v773_v54 = vshll.u32 %v188_v40, 16  ;;  %v777_v55 = vshrl.u32 %v188_v40, 16  ;;  %v195_v46 = vld [vmem:[%s11226_s25 + $0xf4] sm:$0xf] }
  0x66   : > { %v742_v52 = vsel %vm11257_vm3, %v737_v44, %v741_v30  ;;  %10038 = vmatprep.mubr.msk.bf16.mxu1 %vm1929_vm2, %v8686_v48  ;;  %v769_v58 = vrot.slane %v767_v51, 4  ;;  %v783_v60 = vshll.u32 %v189_v42, 16  ;;  %v787_v61 = vshrl.u32 %v189_v42, 16 }
  0x67   : > { %v752_v57 = vsel %vm11257_vm3, %v747_v49, %v751_v39  ;;  %v761_v0 = vrot.slane %v760_v53, 4  ;;  %v775_v1 = vrot.slane %v773_v54, 5  ;;  %v779_v2 = vrot.slane %v777_v55, 4 }
  0x68   : > { %v8687_v63 = vcombine.low %v742_v52, %v752_v57  ;;  %v770_v5 = vor.u32 %v769_v58, %v765_v50  ;;  %v785_v6 = vrot.slane %v783_v60, 5  ;;  %v789_v7 = vrot.slane %v787_v61, 4 }
  0x69   : > { %v793_v8 = vshll.u32 %v288_v47, 16  ;;  %v766_v9 = vsel %vm11257_vm3, %v761_v0, %v765_v50  ;;  %v780_v10 = vor.u32 %v779_v2, %v775_v1  ;;  %v798_v14 = vshrl.u32 %v190_v56, 16  ;;  %v196_v50 = vld [vmem:[%s11226_s25 + $0xf8] sm:$0xf] }
  0x6a   : > { %v801_v15 = vshll.u32 %v190_v56, 16  ;;  %10039 = vmatmul.mubr.msk.bf16.gmra.mrb[36].mxu1 %vm1929_vm2, %v8687_v63  ;;  %v771_v16 = vrot.slane %v770_v5, 4  ;;  %v790_v17 = vor.u32 %v789_v7, %v785_v6  ;;  %v807_v20 = vshll.u32 %v191_v62, 16  ;;  %v197_v56 = vld [vmem:[%s11226_s25 + $0xfc] sm:$0xf] }
  0x6b   : > { %v795_v18 = vrot.slane %v793_v8, 5  ;;  %v781_v22 = vrot.slane %v780_v10, 4  ;;  %v800_v23 = vrot.slane %v798_v14, 4  ;;  %v811_v25 = vshrl.u32 %v191_v62, 16  ;;  %v198_v7 = vld [vmem:[%s11226_s25 + $0x104] sm:$0xf] }
  0x6c   : > { %10311 = vmatmul.mubr.msk.bf16.gmra.mrb[44].mxu0 %vm1929_vm2, %v10949_v59  ;;  %v803_v24 = vrot.slane %v801_v15, 5  ;;  %v776_v26 = vsel %vm11257_vm3, %v771_v16, %v775_v1  ;;  %v791_v27 = vrot.slane %v790_v17, 4  ;;  %v809_v28 = vrot.slane %v807_v20, 5  ;;  %v290_v1 = vld [vmem:[%s11226_s25 + $0x100] sm:$0x1] }
  0x6d   : > { %10314 = vmatprep.mubr.msk.bf16.mxu0 %vm1929_vm2, %v10950_v3  ;;  %v817_v29 = vshll.u32 %v192_v13, 16  ;;  %v8688_v30 = vcombine.low %v766_v9, %v776_v26  ;;  %v786_v31 = vsel %vm11257_vm3, %v781_v22, %v785_v6  ;;  %v813_v32 = vrot.slane %v811_v25, 4  ;;  %v10953_v16 = vld [vmem:[%s11226_s25 + $0x120] sm:$0xff]   ;;  %v199_v25 = vld [vmem:[%s11226_s25 + $0x108] sm:$0xf] }
  0x6e   : > { %v804_v4 = vor.u32 %v803_v24, %v800_v23  ;;  %v796_v37 = vsel %vm11257_vm3, %v791_v27, %v795_v18  ;;  %v821_v39 = vshrl.u32 %v192_v13, 16  ;;  %v827_v40 = vshll.u32 %v193_v21, 16  ;;  %v10954_v24 = vld [vmem:[%s11226_s25 + $0x12c] sm:$0xff]  }
  0x6f   : > { %v819_v38 = vrot.slane %v817_v29, 5  ;;  %10042 = vmatprep.mubr.msk.bf16.mxu1 %vm1929_vm2, %v8688_v30  ;;  %v8689_v42 = vcombine.low %v786_v31, %v796_v37  ;;  %v814_v44 = vor.u32 %v813_v32, %v809_v28  ;;  %v831_v45 = vshrl.u32 %v193_v21, 16  ;;  %v200_v30 = vld [vmem:[%s11226_s25 + $0x10c] sm:$0xf] }
  0x70   : > { %v805_v43 = vrot.slane %v804_v4, 4  ;;  %v823_v47 = vrot.slane %v821_v39, 4  ;;  %v829_v48 = vrot.slane %v827_v40, 5  ;;  %v837_v49 = vshll.u32 %v289_v35, 16  ;;  %v201_v39 = vld [vmem:[%s11226_s25 + $0x110] sm:$0xf] }
  0x71   : > { %v842_v51 = vshrl.u32 %v194_v36, 16  ;;  %v815_v53 = vrot.slane %v814_v44, 4  ;;  %v833_v54 = vrot.slane %v831_v45, 4  ;;  %v845_v55 = vshll.u32 %v194_v36, 16  ;;  %v291_v44 = vld [vmem:[%s11226_s25 + $0x114] sm:$0x1] }
  0x72   : > { %v810_v52 = vsel %vm11257_vm3, %v805_v43, %v809_v28  ;;  %10043 = vmatmul.mubr.msk.bf16.gmra.mrb[40].mxu1 %vm1929_vm2, %v8689_v42  ;;  %v824_v57 = vor.u32 %v823_v47, %v819_v38  ;;  %v839_v58 = vrot.slane %v837_v49, 5  ;;  %v851_v60 = vshll.u32 %v195_v46, 16 }
  0x73   : > { %v844_v59 = vrot.slane %v842_v51, 4  ;;  %v820_v61 = vsel %vm11257_vm3, %v815_v53, %v819_v38  ;;  %v834_v62 = vor.u32 %v833_v54, %v829_v48  ;;  %v847_v63 = vrot.slane %v845_v55, 5  ;;  %v10955_v55 = vld [vmem:[%s11226_s25 + $0x134] sm:$0xff]  }
  0x74   : > { %10315 = vmatmul.mubr.msk.bf16.gmra.mrb[48].mxu0 %vm1929_vm2, %v10951_v33  ;;  %v855_v0 = vshrl.u32 %v195_v46, 16  ;;  %v8690_v2 = vcombine.low %v810_v52, %v820_v61  ;;  %v825_v3 = vrot.slane %v824_v57, 4  ;;  %v853_v5 = vrot.slane %v851_v60, 5 }
  0x75   : > { %10318 = vmatprep.mubr.msk.bf16.mxu0 %vm1929_vm2, %v10952_v41  ;;  %v861_v6 = vshll.u32 %v196_v50, 16  ;;  %v835_v8 = vrot.slane %v834_v62, 4  ;;  %v848_v9 = vor.u32 %v847_v63, %v844_v59  ;;  %v865_v13 = vshrl.u32 %v196_v50, 16  ;;  %v202_v59 = vld [vmem:[%s11226_s25 + $0x118] sm:$0xf] }
  0x76   : > { %v857_v10 = vrot.slane %v855_v0, 4  ;;  %10046 = vmatprep.mubr.msk.bf16.mxu1 %vm1929_vm2, %v8690_v2  ;;  %v830_v14 = vsel %vm11257_vm3, %v825_v3, %v829_v48  ;;  %v871_v17 = vshll.u32 %v197_v56, 16  ;;  %v875_v18 = vshrl.u32 %v197_v56, 16  ;;  %v203_v0 = vld [vmem:[%s11226_s25 + $0x11c] sm:$0xf] }
  0x77   : > { %v863_v15 = vrot.slane %v861_v6, 5  ;;  %v840_v20 = vsel %vm11257_vm3, %v835_v8, %v839_v58  ;;  %v849_v21 = vrot.slane %v848_v9, 4  ;;  %v867_v23 = vrot.slane %v865_v13, 4  ;;  %v10956_v58 = vld [vmem:[%s11226_s25 + $0x140] sm:$0xff]  }
  0x78   : > { %v858_v22 = vor.u32 %v857_v10, %v853_v5  ;;  %v8691_v26 = vcombine.low %v830_v14, %v840_v20  ;;  %v873_v27 = vrot.slane %v871_v17, 5  ;;  %v877_v28 = vrot.slane %v875_v18, 4  ;;  %v204_v6 = vld [vmem:[%s11226_s25 + $0x120] sm:$0xf]  ;;  %v205_v13 = vld [vmem:[%s11226_s25 + $0x124] sm:$0xf] }
  0x79   : > { %v881_v29 = vshll.u32 %v290_v1, 16  ;;  %v854_v31 = vsel %vm11257_vm3, %v849_v21, %v853_v5  ;;  %v868_v32 = vor.u32 %v867_v23, %v863_v15  ;;  %v886_v33 = vshrl.u32 %v198_v7, 16 }
  0x7a   : > { %v859_v4 = vrot.slane %v858_v22, 4  ;;  %10047 = vmatmul.mubr.msk.bf16.gmra.mrb[44].mxu1 %vm1929_vm2, %v8691_v26  ;;  %v878_v35 = vor.u32 %v877_v28, %v873_v27  ;;  %v889_v37 = vshll.u32 %v198_v7, 16  ;;  %v895_v38 = vshll.u32 %v199_v25, 16 }
  0x7b   : > { %v883_v36 = vrot.slane %v881_v29, 5  ;;  %v869_v41 = vrot.slane %v868_v32, 4  ;;  %v888_v42 = vrot.slane %v886_v33, 4  ;;  %v899_v43 = vshrl.u32 %v199_v25, 16 }
  0x7c   : > { %10319 = vmatmul.mubr.msk.bf16.gmra.mrb[52].mxu0 %vm1929_vm2, %v10953_v16  ;;  %v864_v40 = vsel %vm11257_vm3, %v859_v4, %v863_v15  ;;  %v879_v46 = vrot.slane %v878_v35, 4  ;;  %v891_v47 = vrot.slane %v889_v37, 5  ;;  %v897_v48 = vrot.slane %v895_v38, 5  ;;  %v206_v4 = vld [vmem:[%s11226_s25 + $0x12c] sm:$0xf] }
  0x7d   : > { %10322 = vmatprep.mubr.msk.bf16.mxu0 %vm1929_vm2, %v10954_v24  ;;  %v8692_v45 = vcombine.low %v854_v31, %v864_v40  ;;  %v874_v49 = vsel %vm11257_vm3, %v869_v41, %v873_v27  ;;  %v901_v50 = vrot.slane %v899_v43, 4  ;;  %v905_v51 = vshll.u32 %v200_v30, 16  ;;  %v292_v27 = vld [vmem:[%s11226_s25 + $0x128] sm:$0x1]  ;;  %v207_v43 = vld [vmem:[%s11226_s25 + $0x130] sm:$0xf] }
  0x7e   : > { %v909_v52 = vshrl.u32 %v200_v30, 16  ;;  %v884_v53 = vsel %vm11257_vm3, %v879_v46, %v883_v36  ;;  %v892_v54 = vor.u32 %v891_v47, %v888_v42  ;;  %v915_v56 = vshll.u32 %v201_v39, 16  ;;  %v10957_v35 = vld [vmem:[%s11226_s25 + $0x148] sm:$0xff]   ;;  %v10958_v42 = vld [vmem:[%s11226_s25 + $0x154] sm:$0xff]  }
  0x7f   : > { %10050 = vmatprep.mubr.msk.bf16.mxu1 %vm1929_vm2, %v8692_v45  ;;  %v919_v57 = vshrl.u32 %v201_v39, 16  ;;  %v8693_v60 = vcombine.low %v874_v49, %v884_v53  ;;  %v902_v61 = vor.u32 %v901_v50, %v897_v48  ;;  %v907_v62 = vrot.slane %v905_v51, 5  ;;  %v209_v53 = vld [vmem:[%s11226_s25 + $0x138] sm:$0xf] }
  0x80   : > { %v911_v63 = vrot.slane %v909_v52, 4  ;;  %v893_v1 = vrot.slane %v892_v54, 4  ;;  %v917_v2 = vrot.slane %v915_v56, 5  ;;  %v925_v5 = vshll.u32 %v291_v44, 16 }
  0x81   : > { %v921_v3 = vrot.slane %v919_v57, 4  ;;  %v903_v7 = vrot.slane %v902_v61, 4  ;;  %v930_v9 = vshrl.u32 %v202_v59, 16  ;;  %v933_v10 = vshll.u32 %v202_v59, 16 }
  0x82   : > { %v912_v8 = vor.u32 %v911_v63, %v907_v62  ;;  %10051 = vmatmul.mubr.msk.bf16.gmra.mrb[48].mxu1 %vm1929_vm2, %v8693_v60  ;;  %v898_v14 = vsel %vm11257_vm3, %v893_v1, %v897_v48  ;;  %v927_v16 = vrot.slane %v925_v5, 5  ;;  %v939_v17 = vshll.u32 %v203_v0, 16  ;;  %v208_v48 = vld [vmem:[%s11226_s25 + $0x134] sm:$0xf] }
  0x83   : > { %v922_v15 = vor.u32 %v921_v3, %v917_v2  ;;  %v908_v18 = vsel %vm11257_vm3, %v903_v7, %v907_v62  ;;  %v932_v21 = vrot.slane %v930_v9, 4  ;;  %v935_v22 = vrot.slane %v933_v10, 5  ;;  %v293_v62 = vld [vmem:[%s11226_s25 + $0x13c] sm:$0x1]  ;;  %v210_v3 = vld [vmem:[%s11226_s25 + $0x140] sm:$0xf] }
  0x84   : > { %10323 = vmatmul.mubr.msk.bf16.gmra.mrb[56].mxu0 %vm1929_vm2, %v10955_v55  ;;  %v913_v20 = vrot.slane %v912_v8, 4  ;;  %v8694_v23 = vcombine.low %v898_v14, %v908_v18  ;;  %v941_v25 = vrot.slane %v939_v17, 5  ;;  %v943_v26 = vshrl.u32 %v203_v0, 16 }
  0x85   : > { %10326 = vmatprep.mubr.msk.bf16.mxu0 %vm1929_vm2, %v10956_v58  ;;  %v923_v24 = vrot.slane %v922_v15, 4  ;;  %v936_v29 = vor.u32 %v935_v22, %v932_v21  ;;  %v949_v30 = vshll.u32 %v204_v6, 16  ;;  %v953_v31 = vshrl.u32 %v204_v6, 16  ;;  %v211_v22 = vld [vmem:[%s11226_s25 + $0x144] sm:$0xf] }
  0x86   : > { %v918_v28 = vsel %vm11257_vm3, %v913_v20, %v917_v2  ;;  %10054 = vmatprep.mubr.msk.bf16.mxu1 %vm1929_vm2, %v8694_v23  ;;  %v945_v33 = vrot.slane %v943_v26, 4  ;;  %v959_v36 = vshll.u32 %v205_v13, 16  ;;  %v963_v37 = vshrl.u32 %v205_v13, 16  ;;  %v10959_v13 = vld [vmem:[%s11226_s25 + $0x15c] sm:$0xff]   ;;  %v212_v23 = vld [vmem:[%s11226_s25 + $0x148] sm:$0xf] }
  0x87   : > { %v928_v32 = vsel %vm11257_vm3, %v923_v24, %v927_v16  ;;  %v937_v39 = vrot.slane %v936_v29, 4  ;;  %v951_v40 = vrot.slane %v949_v30, 5  ;;  %v955_v41 = vrot.slane %v953_v31, 4  ;;  %v10960_v16 = vld [vmem:[%s11226_s25 + $0x168] sm:$0xff]  }
  0x88   : > { %v8695_v38 = vcombine.low %v918_v28, %v928_v32  ;;  %v946_v44 = vor.u32 %v945_v33, %v941_v25  ;;  %v961_v45 = vrot.slane %v959_v36, 5  ;;  %v965_v46 = vrot.slane %v963_v37, 4 }
  0x89   : > { %v969_v47 = vshll.u32 %v292_v27, 16  ;;  %v942_v49 = vsel %vm11257_vm3, %v937_v39, %v941_v25  ;;  %v956_v50 = vor.u32 %v955_v41, %v951_v40  ;;  %v974_v51 = vshrl.u32 %v206_v4, 16 }
  0x8a   : > { %v977_v52 = vshll.u32 %v206_v4, 16  ;;  %10055 = vmatmul.mubr.msk.bf16.gmra.mrb[52].mxu1 %vm1929_vm2, %v8695_v38  ;;  %v947_v54 = vrot.slane %v946_v44, 4  ;;  %v966_v55 = vor.u32 %v965_v46, %v961_v45  ;;  %v983_v57 = vshll.u32 %v207_v43, 16 }
  0x8b   : > { %v971_v56 = vrot.slane %v969_v47, 5  ;;  %v957_v58 = vrot.slane %v956_v50, 4  ;;  %v976_v59 = vrot.slane %v974_v51, 4  ;;  %v987_v61 = vshrl.u32 %v207_v43, 16 }
  0x8c   : > { %10327 = vmatmul.mubr.msk.bf16.gmra.mrb[60].mxu0 %vm1929_vm2, %v10957_v35  ;;  %v979_v60 = vrot.slane %v977_v52, 5  ;;  %v952_v63 = vsel %vm11257_vm3, %v947_v54, %v951_v40  ;;  %v967_v0 = vrot.slane %v966_v55, 4  ;;  %v985_v1 = vrot.slane %v983_v57, 5  ;;  %v213_v40 = vld [vmem:[%s11226_s25 + $0x14c] sm:$0xf]  ;;  %v10964_v55 = vld [vmem:[%s11226_s25 + $0x17c] sm:$0xff]  }
  0x8d   : > { %10330 = vmatprep.mubr.msk.bf16.mxu0 %vm1929_vm2, %v10958_v42  ;;  %v993_v2 = vshll.u32 %v208_v48, 16  ;;  %v8696_v5 = vcombine.low %v942_v49, %v952_v63  ;;  %v962_v6 = vsel %vm11257_vm3, %v957_v58, %v961_v45  ;;  %v989_v8 = vrot.slane %v987_v61, 4  ;;  %v294_v49 = vld [vmem:[%s11226_s25 + $0x150] sm:$0x1]  ;;  %v215_v61 = vld [vmem:[%s11226_s25 + $0x158] sm:$0xf] }
  0x8e   : > { %v980_v7 = vor.u32 %v979_v60, %v976_v59  ;;  %v972_v9 = vsel %vm11257_vm3, %v967_v0, %v971_v56  ;;  %v997_v14 = vshrl.u32 %v208_v48, 16  ;;  %v1003_v15 = vshll.u32 %v209_v53, 16  ;;  %v10962_v48 = vld [vmem:[%s11226_s25 + $0x170] sm:$0xff]  }
  0x8f   : > { %v995_v10 = vrot.slane %v993_v2, 5  ;;  %10058 = vmatprep.mubr.msk.bf16.mxu1 %vm1929_vm2, %v8696_v5  ;;  %v8697_v17 = vcombine.low %v962_v6, %v972_v9  ;;  %v990_v20 = vor.u32 %v989_v8, %v985_v1  ;;  %v1007_v21 = vshrl.u32 %v209_v53, 16  ;;  %v214_v56 = vld [vmem:[%s11226_s25 + $0x154] sm:$0xf]  ;;  %v216_v6 = vld [vmem:[%s11226_s25 + $0x15c] sm:$0xf] }
  0x90   : > { %v981_v18 = vrot.slane %v980_v7, 4  ;;  %v999_v24 = vrot.slane %v997_v14, 4  ;;  %v1005_v25 = vrot.slane %v1003_v15, 5  ;;  %v1013_v26 = vshll.u32 %v293_v62, 16  ;;  %v217_v8 = vld [vmem:[%s11226_s25 + $0x160] sm:$0xf] }
  0x91   : > { %v1018_v27 = vshrl.u32 %v210_v3, 16  ;;  %v991_v29 = vrot.slane %v990_v20, 4  ;;  %v1009_v30 = vrot.slane %v1007_v21, 4  ;;  %v1021_v31 = vshll.u32 %v210_v3, 16 }
  0x92   : > { %v986_v28 = vsel %vm11257_vm3, %v981_v18, %v985_v1  ;;  %10059 = vmatmul.mubr.msk.bf16.gmra.mrb[56].mxu1 %vm1929_vm2, %v8697_v17  ;;  %v1000_v4 = vor.u32 %v999_v24, %v995_v10  ;;  %v1015_v32 = vrot.slane %v1013_v26, 5  ;;  %v1027_v35 = vshll.u32 %v211_v22, 16  ;;  %v10965_v24 = vld [vmem:[%s11226_s25 + $0x184] sm:$0xff]  }
  0x93   : > { %v1020_v33 = vrot.slane %v1018_v27, 4  ;;  %v996_v36 = vsel %vm11257_vm3, %v991_v29, %v995_v10  ;;  %v1010_v37 = vor.u32 %v1009_v30, %v1005_v25  ;;  %v1023_v38 = vrot.slane %v1021_v31, 5  ;;  %v10966_v30 = vld [vmem:[%s11226_s25 + $0x190] sm:$0xff]  }
  0x94   : > { %10331 = vmatmul.mubr.msk.bf16.gmra.mrb[64].mxu0 %vm1929_vm2, %v10959_v13  ;;  %v1031_v39 = vshrl.u32 %v211_v22, 16  ;;  %v8698_v41 = vcombine.low %v986_v28, %v996_v36  ;;  %v1001_v42 = vrot.slane %v1000_v4, 4  ;;  %v1029_v43 = vrot.slane %v1027_v35, 5  ;;  %v295_v28 = vld [vmem:[%s11226_s25 + $0x164] sm:$0x1] }
  0x95   : > { %10334 = vmatprep.mubr.msk.bf16.mxu0 %vm1929_vm2, %v10960_v16  ;;  %v1037_v44 = vshll.u32 %v212_v23, 16  ;;  %v1011_v45 = vrot.slane %v1010_v37, 4  ;;  %v1024_v46 = vor.u32 %v1023_v38, %v1020_v33  ;;  %v1041_v50 = vshrl.u32 %v212_v23, 16  ;;  %v218_v35 = vld [vmem:[%s11226_s25 + $0x168] sm:$0xf] }
  0x96   : > { %v1033_v47 = vrot.slane %v1031_v39, 4  ;;  %10062 = vmatprep.mubr.msk.bf16.mxu1 %vm1929_vm2, %v8698_v41  ;;  %v1006_v51 = vsel %vm11257_vm3, %v1001_v42, %v1005_v25  ;;  %v1047_v53 = vshll.u32 %v213_v40, 16  ;;  %v1051_v54 = vshrl.u32 %v213_v40, 16  ;;  %v219_v40 = vld [vmem:[%s11226_s25 + $0x16c] sm:$0xf] }
  0x97   : > { %v1039_v52 = vrot.slane %v1037_v44, 5  ;;  %v1016_v57 = vsel %vm11257_vm3, %v1011_v45, %v1015_v32  ;;  %v1025_v58 = vrot.slane %v1024_v46, 4  ;;  %v1043_v60 = vrot.slane %v1041_v50, 4 }
  0x98   : > { %v1034_v59 = vor.u32 %v1033_v47, %v1029_v43  ;;  %v8699_v62 = vcombine.low %v1006_v51, %v1016_v57  ;;  %v1049_v63 = vrot.slane %v1047_v53, 5  ;;  %v1053_v0 = vrot.slane %v1051_v54, 4 }
  0x99   : > { %v1057_v1 = vshll.u32 %v294_v49, 16  ;;  %v1030_v2 = vsel %vm11257_vm3, %v1025_v58, %v1029_v43  ;;  %v1044_v5 = vor.u32 %v1043_v60, %v1039_v52  ;;  %v1062_v7 = vshrl.u32 %v214_v56, 16  ;;  %v221_v58 = vld [vmem:[%s11226_s25 + $0x174] sm:$0xf] }
  0x9a   : > { %v1035_v3 = vrot.slane %v1034_v59, 4  ;;  %10063 = vmatmul.mubr.msk.bf16.gmra.mrb[60].mxu1 %vm1929_vm2, %v8699_v62  ;;  %v1054_v9 = vor.u32 %v1053_v0, %v1049_v63  ;;  %v1065_v13 = vshll.u32 %v214_v56, 16  ;;  %v1071_v14 = vshll.u32 %v215_v61, 16 }
  0x9b   : > { %v1059_v10 = vrot.slane %v1057_v1, 5  ;;  %v1045_v16 = vrot.slane %v1044_v5, 4  ;;  %v1064_v17 = vrot.slane %v1062_v7, 4  ;;  %v1075_v18 = vshrl.u32 %v215_v61, 16  ;;  %v10967_v7 = vld [vmem:[%s11226_s25 + $0x198] sm:$0xff]  }
  0x9c   : > { %10335 = vmatmul.mubr.msk.bf16.gmra.mrb[68].mxu0 %vm1929_vm2, %v10962_v48  ;;  %v1040_v15 = vsel %vm11257_vm3, %v1035_v3, %v1039_v52  ;;  %v1055_v21 = vrot.slane %v1054_v9, 4  ;;  %v1067_v22 = vrot.slane %v1065_v13, 5  ;;  %v1073_v23 = vrot.slane %v1071_v14, 5  ;;  %v220_v52 = vld [vmem:[%s11226_s25 + $0x170] sm:$0xf] }
  0x9d   : > { %10338 = vmatprep.mubr.msk.bf16.mxu0 %vm1929_vm2, %v10964_v55  ;;  %v8700_v20 = vcombine.low %v1030_v2, %v1040_v15  ;;  %v1050_v25 = vsel %vm11257_vm3, %v1045_v16, %v1049_v63  ;;  %v1077_v26 = vrot.slane %v1075_v18, 4  ;;  %v1081_v27 = vshll.u32 %v216_v6, 16  ;;  %v296_v63 = vld [vmem:[%s11226_s25 + $0x178] sm:$0x1]  ;;  %v223_v18 = vld [vmem:[%s11226_s25 + $0x180] sm:$0xf] }
  0x9e   : > { %v1085_v29 = vshrl.u32 %v216_v6, 16  ;;  %v1060_v31 = vsel %vm11257_vm3, %v1055_v21, %v1059_v10  ;;  %v1068_v4 = vor.u32 %v1067_v22, %v1064_v17  ;;  %v1091_v32 = vshll.u32 %v217_v8, 16  ;;  %v222_v10 = vld [vmem:[%s11226_s25 + $0x17c] sm:$0xf]  ;;  %v10968_v17 = vld [vmem:[%s11226_s25 + $0x1a4] sm:$0xff]  }
  0x9f   : > { %10066 = vmatprep.mubr.msk.bf16.mxu1 %vm1929_vm2, %v8700_v20  ;;  %v1095_v33 = vshrl.u32 %v217_v8, 16  ;;  %v8701_v36 = vcombine.low %v1050_v25, %v1060_v31  ;;  %v1078_v37 = vor.u32 %v1077_v26, %v1073_v23  ;;  %v1083_v38 = vrot.slane %v1081_v27, 5  ;;  %v224_v26 = vld [vmem:[%s11226_s25 + $0x184] sm:$0xf] }
  0xa0   : > { %v1087_v39 = vrot.slane %v1085_v29, 4  ;;  %v1069_v41 = vrot.slane %v1068_v4, 4  ;;  %v1093_v42 = vrot.slane %v1091_v32, 5  ;;  %v1101_v44 = vshll.u32 %v295_v28, 16  ;;  %v225_v32 = vld [vmem:[%s11226_s25 + $0x188] sm:$0xf] }
  0xa1   : > { %v1097_v43 = vrot.slane %v1095_v33, 4  ;;  %v1079_v45 = vrot.slane %v1078_v37, 4  ;;  %v1106_v47 = vshrl.u32 %v218_v35, 16  ;;  %v1109_v48 = vshll.u32 %v218_v35, 16 }
  0xa2   : > { %v1088_v46 = vor.u32 %v1087_v39, %v1083_v38  ;;  %10067 = vmatmul.mubr.msk.bf16.gmra.mrb[64].mxu1 %vm1929_vm2, %v8701_v36  ;;  %v1074_v49 = vsel %vm11257_vm3, %v1069_v41, %v1073_v23  ;;  %v1103_v51 = vrot.slane %v1101_v44, 5  ;;  %v1115_v53 = vshll.u32 %v219_v40, 16 }
  0xa3   : > { %v1098_v50 = vor.u32 %v1097_v43, %v1093_v42  ;;  %v1084_v54 = vsel %vm11257_vm3, %v1079_v45, %v1083_v38  ;;  %v1108_v56 = vrot.slane %v1106_v47, 4  ;;  %v1111_v57 = vrot.slane %v1109_v48, 5  ;;  %v297_v38 = vld [vmem:[%s11226_s25 + $0x18c] sm:$0x1]  ;;  %v226_v48 = vld [vmem:[%s11226_s25 + $0x190] sm:$0xf] }
  0xa4   : > { %10339 = vmatmul.mubr.msk.bf16.gmra.mrb[72].mxu0 %vm1929_vm2, %v10965_v24  ;;  %v1089_v55 = vrot.slane %v1088_v46, 4  ;;  %v8702_v59 = vcombine.low %v1074_v49, %v1084_v54  ;;  %v1117_v61 = vrot.slane %v1115_v53, 5  ;;  %v1119_v62 = vshrl.u32 %v219_v40, 16  ;;  %v10969_v47 = vld [vmem:[%s11226_s25 + $0x1ac] sm:$0xff]   ;;  %v10970_v53 = vld [vmem:[%s11226_s25 + $0x1b8] sm:$0xff]  }
  0xa5   : > { %10342 = vmatprep.mubr.msk.bf16.mxu0 %vm1929_vm2, %v10966_v30  ;;  %v1099_v60 = vrot.slane %v1098_v50, 4  ;;  %v1112_v1 = vor.u32 %v1111_v57, %v1108_v56  ;;  %v1125_v2 = vshll.u32 %v220_v52, 16  ;;  %v1129_v3 = vshrl.u32 %v220_v52, 16  ;;  %v227_v54 = vld [vmem:[%s11226_s25 + $0x194] sm:$0xf] }
  0xa6   : > { %v1094_v0 = vsel %vm11257_vm3, %v1089_v55, %v1093_v42  ;;  %10070 = vmatprep.mubr.msk.bf16.mxu1 %vm1929_vm2, %v8702_v59  ;;  %v1121_v6 = vrot.slane %v1119_v62, 4  ;;  %v1135_v8 = vshll.u32 %v221_v58, 16  ;;  %v1139_v9 = vshrl.u32 %v221_v58, 16 }
  0xa7   : > { %v1104_v5 = vsel %vm11257_vm3, %v1099_v60, %v1103_v51  ;;  %v1113_v14 = vrot.slane %v1112_v1, 4  ;;  %v1127_v15 = vrot.slane %v1125_v2, 5  ;;  %v1131_v16 = vrot.slane %v1129_v3, 4  ;;  %v228_v2 = vld [vmem:[%s11226_s25 + $0x198] sm:$0xf] }
  0xa8   : > { %v8703_v13 = vcombine.low %v1094_v0, %v1104_v5  ;;  %v1122_v20 = vor.u32 %v1121_v6, %v1117_v61  ;;  %v1137_v21 = vrot.slane %v1135_v8, 5  ;;  %v1141_v22 = vrot.slane %v1139_v9, 4  ;;  %v229_v9 = vld [vmem:[%s11226_s25 + $0x19c] sm:$0xf] }
  0xa9   : > { %v1145_v23 = vshll.u32 %v296_v63, 16  ;;  %v1118_v24 = vsel %vm11257_vm3, %v1113_v14, %v1117_v61  ;;  %v1132_v25 = vor.u32 %v1131_v16, %v1127_v15  ;;  %v1150_v27 = vshrl.u32 %v222_v10, 16 }
  0xaa   : > { %v1153_v28 = vshll.u32 %v222_v10, 16  ;;  %10071 = vmatmul.mubr.msk.bf16.gmra.mrb[68].mxu1 %vm1929_vm2, %v8703_v13  ;;  %v1123_v29 = vrot.slane %v1122_v20, 4  ;;  %v1142_v30 = vor.u32 %v1141_v22, %v1137_v21  ;;  %v1159_v4 = vshll.u32 %v223_v18, 16 }
  0xab   : > { %v1147_v31 = vrot.slane %v1145_v23, 5  ;;  %v1133_v33 = vrot.slane %v1132_v25, 4  ;;  %v1152_v35 = vrot.slane %v1150_v27, 4  ;;  %v1163_v37 = vshrl.u32 %v223_v18, 16  ;;  %v10971_v25 = vld [vmem:[%s11226_s25 + $0x1c0] sm:$0xff]  }
  0xac   : > { %10343 = vmatmul.mubr.msk.bf16.gmra.mrb[76].mxu0 %vm1929_vm2, %v10967_v7  ;;  %v1155_v36 = vrot.slane %v1153_v28, 5  ;;  %v1128_v39 = vsel %vm11257_vm3, %v1123_v29, %v1127_v15  ;;  %v1143_v40 = vrot.slane %v1142_v30, 4  ;;  %v1161_v41 = vrot.slane %v1159_v4, 5  ;;  %v230_v27 = vld [vmem:[%s11226_s25 + $0x1a4] sm:$0xf]  ;;  %v10972_v4 = vld [vmem:[%s11226_s25 + $0x1cc] sm:$0xff]  }
  0xad   : > { %10346 = vmatprep.mubr.msk.bf16.mxu0 %vm1929_vm2, %v10968_v17  ;;  %v1169_v42 = vshll.u32 %v224_v26, 16  ;;  %v8704_v43 = vcombine.low %v1118_v24, %v1128_v39  ;;  %v1138_v44 = vsel %vm11257_vm3, %v1133_v33, %v1137_v21  ;;  %v1165_v46 = vrot.slane %v1163_v37, 4  ;;  %v298_v21 = vld [vmem:[%s11226_s25 + $0x1a0] sm:$0x1]  ;;  %v231_v37 = vld [vmem:[%s11226_s25 + $0x1a8] sm:$0xf] }
  0xae   : > { %v1156_v45 = vor.u32 %v1155_v36, %v1152_v35  ;;  %v1148_v49 = vsel %vm11257_vm3, %v1143_v40, %v1147_v31  ;;  %v1173_v51 = vshrl.u32 %v224_v26, 16  ;;  %v1179_v52 = vshll.u32 %v225_v32, 16 }
  0xaf   : > { %v1171_v50 = vrot.slane %v1169_v42, 5  ;;  %10074 = vmatprep.mubr.msk.bf16.mxu1 %vm1929_vm2, %v8704_v43  ;;  %v8705_v55 = vcombine.low %v1138_v44, %v1148_v49  ;;  %v1166_v57 = vor.u32 %v1165_v46, %v1161_v41  ;;  %v1183_v58 = vshrl.u32 %v225_v32, 16 }
  0xb0   : > { %v1157_v56 = vrot.slane %v1156_v45, 4  ;;  %v1175_v59 = vrot.slane %v1173_v51, 4  ;;  %v1181_v60 = vrot.slane %v1179_v52, 5  ;;  %v1189_v61 = vshll.u32 %v297_v38, 16  ;;  %v232_v45 = vld [vmem:[%s11226_s25 + $0x1ac] sm:$0xf] }
  0xb1   : > { %v1194_v62 = vshrl.u32 %v226_v48, 16  ;;  %v1167_v0 = vrot.slane %v1166_v57, 4  ;;  %v1185_v1 = vrot.slane %v1183_v58, 4  ;;  %v1197_v3 = vshll.u32 %v226_v48, 16 }
  0xb2   : > { %v1162_v63 = vsel %vm11257_vm3, %v1157_v56, %v1161_v41  ;;  %10075 = vmatmul.mubr.msk.bf16.gmra.mrb[72].mxu1 %vm1929_vm2, %v8705_v55  ;;  %v1176_v5 = vor.u32 %v1175_v59, %v1171_v50  ;;  %v1191_v6 = vrot.slane %v1189_v61, 5  ;;  %v1203_v8 = vshll.u32 %v227_v54, 16  ;;  %v233_v55 = vld [vmem:[%s11226_s25 + $0x1b0] sm:$0xf] }
  0xb3   : > { %v1196_v7 = vrot.slane %v1194_v62, 4  ;;  %v1172_v10 = vsel %vm11257_vm3, %v1167_v0, %v1171_v50  ;;  %v1186_v13 = vor.u32 %v1185_v1, %v1181_v60  ;;  %v1199_v14 = vrot.slane %v1197_v3, 5  ;;  %v10973_v0 = vld [vmem:[%s11226_s25 + $0x1d4] sm:$0xff]  }
  0xb4   : > { %10347 = vmatmul.mubr.msk.bf16.gmra.mrb[80].mxu0 %vm1929_vm2, %v10969_v47  ;;  %v1207_v15 = vshrl.u32 %v227_v54, 16  ;;  %v8706_v16 = vcombine.low %v1162_v63, %v1172_v10  ;;  %v1177_v17 = vrot.slane %v1176_v5, 4  ;;  %v1205_v18 = vrot.slane %v1203_v8, 5 }
  0xb5   : > { %10350 = vmatprep.mubr.msk.bf16.mxu0 %vm1929_vm2, %v10970_v53  ;;  %v1213_v20 = vshll.u32 %v228_v2, 16  ;;  %v1187_v22 = vrot.slane %v1186_v13, 4  ;;  %v1200_v23 = vor.u32 %v1199_v14, %v1196_v7  ;;  %v1217_v26 = vshrl.u32 %v228_v2, 16  ;;  %v234_v7 = vld [vmem:[%s11226_s25 + $0x1b8] sm:$0xf]  ;;  %v10974_v14 = vld [vmem:[%s11226_s25 + $0x1e0] sm:$0xff]  }
  0xb6   : > { %v1209_v24 = vrot.slane %v1207_v15, 4  ;;  %10078 = vmatprep.mubr.msk.bf16.mxu1 %vm1929_vm2, %v8706_v16  ;;  %v1182_v28 = vsel %vm11257_vm3, %v1177_v17, %v1181_v60  ;;  %v1223_v30 = vshll.u32 %v229_v9, 16  ;;  %v1227_v31 = vshrl.u32 %v229_v9, 16  ;;  %v299_v60 = vld [vmem:[%s11226_s25 + $0x1b4] sm:$0x1] }
  0xb7   : > { %v1215_v29 = vrot.slane %v1213_v20, 5  ;;  %v1192_v32 = vsel %vm11257_vm3, %v1187_v22, %v1191_v6  ;;  %v1201_v33 = vrot.slane %v1200_v23, 4  ;;  %v1219_v36 = vrot.slane %v1217_v26, 4  ;;  %v235_v15 = vld [vmem:[%s11226_s25 + $0x1bc] sm:$0xf] }
  0xb8   : > { %v1210_v35 = vor.u32 %v1209_v24, %v1205_v18  ;;  %v8707_v38 = vcombine.low %v1182_v28, %v1192_v32  ;;  %v1225_v39 = vrot.slane %v1223_v30, 5  ;;  %v1229_v40 = vrot.slane %v1227_v31, 4  ;;  %v236_v28 = vld [vmem:[%s11226_s25 + $0x1c0] sm:$0xf]  ;;  %v237_v30 = vld [vmem:[%s11226_s25 + $0x1c4] sm:$0xf] }
  0xb9   : > { %v1233_v41 = vshll.u32 %v298_v21, 16  ;;  %v1206_v42 = vsel %vm11257_vm3, %v1201_v33, %v1205_v18  ;;  %v1220_v44 = vor.u32 %v1219_v36, %v1215_v29  ;;  %v1238_v46 = vshrl.u32 %v230_v27, 16 }
  0xba   : > { %v1211_v43 = vrot.slane %v1210_v35, 4  ;;  %10079 = vmatmul.mubr.msk.bf16.gmra.mrb[76].mxu1 %vm1929_vm2, %v8707_v38  ;;  %v1230_v47 = vor.u32 %v1229_v40, %v1225_v39  ;;  %v1241_v49 = vshll.u32 %v230_v27, 16  ;;  %v1247_v50 = vshll.u32 %v231_v37, 16 }
  0xbb   : > { %v1235_v48 = vrot.slane %v1233_v41, 5  ;;  %v1221_v52 = vrot.slane %v1220_v44, 4  ;;  %v1240_v53 = vrot.slane %v1238_v46, 4  ;;  %v1251_v54 = vshrl.u32 %v231_v37, 16  ;;  %v238_v44 = vld [vmem:[%s11226_s25 + $0x1cc] sm:$0xf] }
  0xbc   : > { %10351 = vmatmul.mubr.msk.bf16.gmra.mrb[84].mxu0 %vm1929_vm2, %v10971_v25  ;;  %v1216_v51 = vsel %vm11257_vm3, %v1211_v43, %v1215_v29  ;;  %v1231_v57 = vrot.slane %v1230_v47, 4  ;;  %v1243_v58 = vrot.slane %v1241_v49, 5  ;;  %v1249_v59 = vrot.slane %v1247_v50, 5  ;;  %v10975_v47 = vld [vmem:[%s11226_s25 + $0x1e8] sm:$0xff]   ;;  %v239_v50 = vld [vmem:[%s11226_s25 + $0x1d0] sm:$0xf] }
  0xbd   : > { %10354 = vmatprep.mubr.msk.bf16.mxu0 %vm1929_vm2, %v10972_v4  ;;  %v8708_v56 = vcombine.low %v1206_v42, %v1216_v51  ;;  %v1226_v61 = vsel %vm11257_vm3, %v1221_v52, %v1225_v39  ;;  %v1253_v62 = vrot.slane %v1251_v54, 4  ;;  %v1257_v63 = vshll.u32 %v232_v45, 16  ;;  %v300_v42 = vld [vmem:[%s11226_s25 + $0x1c8] sm:$0x1] }
  0xbe   : > { %v1261_v1 = vshrl.u32 %v232_v45, 16  ;;  %v1236_v2 = vsel %vm11257_vm3, %v1231_v57, %v1235_v48  ;;  %v1244_v3 = vor.u32 %v1243_v58, %v1240_v53  ;;  %v1267_v5 = vshll.u32 %v233_v55, 16 }
  0xbf   : > { %10082 = vmatprep.mubr.msk.bf16.mxu1 %vm1929_vm2, %v8708_v56  ;;  %v1271_v6 = vshrl.u32 %v233_v55, 16  ;;  %v8709_v8 = vcombine.low %v1226_v61, %v1236_v2  ;;  %v1254_v9 = vor.u32 %v1253_v62, %v1249_v59  ;;  %v1259_v10 = vrot.slane %v1257_v63, 5  ;;  %v10976_v55 = vld [vmem:[%s11226_s25 + $0x1f4] sm:$0xff]  }
  0xc0   : > { %v1263_v13 = vrot.slane %v1261_v1, 4  ;;  %v1245_v16 = vrot.slane %v1244_v3, 4  ;;  %v1269_v17 = vrot.slane %v1267_v5, 5  ;;  %v1277_v20 = vshll.u32 %v299_v60, 16  ;;  %v240_v62 = vld [vmem:[%s11226_s25 + $0x1d4] sm:$0xf] }
  0xc1   : > { %v1273_v18 = vrot.slane %v1271_v6, 4  ;;  %v1255_v21 = vrot.slane %v1254_v9, 4  ;;  %v1282_v23 = vshrl.u32 %v234_v7, 16  ;;  %v1285_v24 = vshll.u32 %v234_v7, 16  ;;  %v241_v1 = vld [vmem:[%s11226_s25 + $0x1d8] sm:$0xf] }
  0xc2   : > { %v1264_v22 = vor.u32 %v1263_v13, %v1259_v10  ;;  %10083 = vmatmul.mubr.msk.bf16.gmra.mrb[80].mxu1 %vm1929_vm2, %v8709_v8  ;;  %v1250_v25 = vsel %vm11257_vm3, %v1245_v16, %v1249_v59  ;;  %v1279_v27 = vrot.slane %v1277_v20, 5  ;;  %v1291_v29 = vshll.u32 %v235_v15, 16 }
  0xc3   : > { %v1274_v26 = vor.u32 %v1273_v18, %v1269_v17  ;;  %v1260_v31 = vsel %vm11257_vm3, %v1255_v21, %v1259_v10  ;;  %v1284_v32 = vrot.slane %v1282_v23, 4  ;;  %v1287_v33 = vrot.slane %v1285_v24, 5  ;;  %v301_v23 = vld [vmem:[%s11226_s25 + $0x1dc] sm:$0x1]  ;;  %v242_v24 = vld [vmem:[%s11226_s25 + $0x1e0] sm:$0xf] }
  0xc4   : > { %10355 = vmatmul.mubr.msk.bf16.gmra.mrb[88].mxu0 %vm1929_vm2, %v10973_v0  ;;  %v1265_v4 = vrot.slane %v1264_v22, 4  ;;  %v8710_v35 = vcombine.low %v1250_v25, %v1260_v31  ;;  %v1293_v37 = vrot.slane %v1291_v29, 5  ;;  %v1295_v38 = vshrl.u32 %v235_v15, 16  ;;  %v10977_v22 = vld [vmem:[%s11226_s25 + $0x1fc] sm:$0xff]   ;;  %v10978_v29 = vld [vmem:[%s11226_s25 + $0x208] sm:$0xff]  }
  0xc5   : > { %10358 = vmatprep.mubr.msk.bf16.mxu0 %vm1929_vm2, %v10974_v14  ;;  %v1275_v36 = vrot.slane %v1274_v26, 4  ;;  %v1288_v40 = vor.u32 %v1287_v33, %v1284_v32  ;;  %v1301_v41 = vshll.u32 %v236_v28, 16  ;;  %v1305_v43 = vshrl.u32 %v236_v28, 16  ;;  %v243_v33 = vld [vmem:[%s11226_s25 + $0x1e4] sm:$0xf] }
  0xc6   : > { %v1270_v39 = vsel %vm11257_vm3, %v1265_v4, %v1269_v17  ;;  %10086 = vmatprep.mubr.msk.bf16.mxu1 %vm1929_vm2, %v8710_v35  ;;  %v1297_v46 = vrot.slane %v1295_v38, 4  ;;  %v1311_v48 = vshll.u32 %v237_v30, 16  ;;  %v1315_v49 = vshrl.u32 %v237_v30, 16  ;;  %v244_v38 = vld [vmem:[%s11226_s25 + $0x1e8] sm:$0xf] }
  0xc7   : > { %v1280_v45 = vsel %vm11257_vm3, %v1275_v36, %v1279_v27  ;;  %v1289_v52 = vrot.slane %v1288_v40, 4  ;;  %v1303_v53 = vrot.slane %v1301_v41, 5  ;;  %v1307_v54 = vrot.slane %v1305_v43, 4 }
  0xc8   : > { %v8711_v51 = vcombine.low %v1270_v39, %v1280_v45  ;;  %v1298_v56 = vor.u32 %v1297_v46, %v1293_v37  ;;  %v1313_v57 = vrot.slane %v1311_v48, 5  ;;  %v1317_v58 = vrot.slane %v1315_v49, 4 }
  0xc9   : > { %v1321_v59 = vshll.u32 %v300_v42, 16  ;;  %v1294_v60 = vsel %vm11257_vm3, %v1289_v52, %v1293_v37  ;;  %v1308_v61 = vor.u32 %v1307_v54, %v1303_v53  ;;  %v1326_v63 = vshrl.u32 %v238_v44, 16  ;;  %v245_v52 = vld [vmem:[%s11226_s25 + $0x1ec] sm:$0xf] }
  0xca   : > { %v1329_v0 = vshll.u32 %v238_v44, 16  ;;  %10087 = vmatmul.mubr.msk.bf16.gmra.mrb[84].mxu1 %vm1929_vm2, %v8711_v51  ;;  %v1299_v2 = vrot.slane %v1298_v56, 4  ;;  %v1318_v3 = vor.u32 %v1317_v58, %v1313_v57  ;;  %v1335_v6 = vshll.u32 %v239_v50, 16  ;;  %v246_v58 = vld [vmem:[%s11226_s25 + $0x1f4] sm:$0xf] }
  0xcb   : > { %v1323_v5 = vrot.slane %v1321_v59, 5  ;;  %v1309_v7 = vrot.slane %v1308_v61, 4  ;;  %v1328_v8 = vrot.slane %v1326_v63, 4  ;;  %v1339_v10 = vshrl.u32 %v239_v50, 16 }
  0xcc   : > { %10359 = vmatmul.mubr.msk.bf16.gmra.mrb[92].mxu0 %vm1929_vm2, %v10975_v47  ;;  %v1331_v9 = vrot.slane %v1329_v0, 5  ;;  %v1304_v13 = vsel %vm11257_vm3, %v1299_v2, %v1303_v53  ;;  %v1319_v14 = vrot.slane %v1318_v3, 4  ;;  %v1337_v15 = vrot.slane %v1335_v6, 5  ;;  %v302_v53 = vld [vmem:[%s11226_s25 + $0x1f0] sm:$0x1] }
  0xcd   : > { %10362 = vmatprep.mubr.msk.bf16.mxu0 %vm1929_vm2, %v10976_v55  ;;  %v1345_v16 = vshll.u32 %v240_v62, 16  ;;  %v8712_v17 = vcombine.low %v1294_v60, %v1304_v13  ;;  %v1314_v18 = vsel %vm11257_vm3, %v1309_v7, %v1313_v57  ;;  %v1341_v21 = vrot.slane %v1339_v10, 4  ;;  %v247_v10 = vld [vmem:[%s11226_s25 + $0x1f8] sm:$0xf] }
  0xce   : > { %v1332_v20 = vor.u32 %v1331_v9, %v1328_v8  ;;  %v1324_v25 = vsel %vm11257_vm3, %v1319_v14, %v1323_v5  ;;  %v1349_v27 = vshrl.u32 %v240_v62, 16  ;;  %v1355_v28 = vshll.u32 %v241_v1, 16  ;;  %v10980_v9 = vld [vmem:[%s11226_s25 + $0x21c] sm:$0xff]  }
  0xcf   : > { %v1347_v26 = vrot.slane %v1345_v16, 5  ;;  %10090 = vmatprep.mubr.msk.bf16.mxu1 %vm1929_vm2, %v8712_v17  ;;  %v8713_v30 = vcombine.low %v1314_v18, %v1324_v25  ;;  %v1342_v4 = vor.u32 %v1341_v21, %v1337_v15  ;;  %v1359_v32 = vshrl.u32 %v241_v1, 16  ;;  %v10979_v1 = vld [vmem:[%s11226_s25 + $0x210] sm:$0xff]   ;;  %v248_v21 = vld [vmem:[%s11226_s25 + $0x1fc] sm:$0xf] }
  0xd0   : > { %v1333_v31 = vrot.slane %v1332_v20, 4  ;;  %v1351_v35 = vrot.slane %v1349_v27, 4  ;;  %v1357_v36 = vrot.slane %v1355_v28, 5  ;;  %v1365_v37 = vshll.u32 %v301_v23, 16  ;;  %v249_v27 = vld [vmem:[%s11226_s25 + $0x200] sm:$0xf] }
  0xd1   : > { %v1370_v39 = vshrl.u32 %v242_v24, 16  ;;  %v1343_v41 = vrot.slane %v1342_v4, 4  ;;  %v1361_v42 = vrot.slane %v1359_v32, 4  ;;  %v1373_v43 = vshll.u32 %v242_v24, 16  ;;  %v303_v4 = vld [vmem:[%s11226_s25 + $0x204] sm:$0x1] }
  0xd2   : > { %v1338_v40 = vsel %vm11257_vm3, %v1333_v31, %v1337_v15  ;;  %10091 = vmatmul.mubr.msk.bf16.gmra.mrb[88].mxu1 %vm1929_vm2, %v8713_v30  ;;  %v1352_v44 = vor.u32 %v1351_v35, %v1347_v26  ;;  %v1367_v45 = vrot.slane %v1365_v37, 5  ;;  %v1379_v47 = vshll.u32 %v243_v33, 16  ;;  %v10981_v37 = vld [vmem:[%s11226_s25 + $0x224] sm:$0xff]  }
  0xd3   : > { %v1372_v46 = vrot.slane %v1370_v39, 4  ;;  %v1348_v48 = vsel %vm11257_vm3, %v1343_v41, %v1347_v26  ;;  %v1362_v49 = vor.u32 %v1361_v42, %v1357_v36  ;;  %v1375_v50 = vrot.slane %v1373_v43, 5  ;;  %v10982_v42 = vld [vmem:[%s11226_s25 + $0x230] sm:$0xff]  }
  0xd4   : > { %10363 = vmatmul.mubr.msk.bf16.gmra.mrb[96].mxu0 %vm1929_vm2, %v10977_v22  ;;  %v1383_v51 = vshrl.u32 %v243_v33, 16  ;;  %v8714_v54 = vcombine.low %v1338_v40, %v1348_v48  ;;  %v1353_v55 = vrot.slane %v1352_v44, 4  ;;  %v1381_v56 = vrot.slane %v1379_v47, 5  ;;  %v250_v47 = vld [vmem:[%s11226_s25 + $0x208] sm:$0xf] }
  0xd5   : > { %10366 = vmatprep.mubr.msk.bf16.mxu0 %vm1929_vm2, %v10978_v29  ;;  %v1389_v57 = vshll.u32 %v244_v38, 16  ;;  %v1363_v59 = vrot.slane %v1362_v49, 4  ;;  %v1376_v60 = vor.u32 %v1375_v50, %v1372_v46  ;;  %v1393_v62 = vshrl.u32 %v244_v38, 16  ;;  %v251_v48 = vld [vmem:[%s11226_s25 + $0x20c] sm:$0xf] }
  0xd6   : > { %v1385_v61 = vrot.slane %v1383_v51, 4  ;;  %10094 = vmatprep.mubr.msk.bf16.mxu1 %vm1929_vm2, %v8714_v54  ;;  %v1358_v63 = vsel %vm11257_vm3, %v1353_v55, %v1357_v36  ;;  %v1399_v2 = vshll.u32 %v245_v52, 16  ;;  %v1403_v3 = vshrl.u32 %v245_v52, 16 }
  0xd7   : > { %v1391_v0 = vrot.slane %v1389_v57, 5  ;;  %v1368_v5 = vsel %vm11257_vm3, %v1363_v59, %v1367_v45  ;;  %v1377_v6 = vrot.slane %v1376_v60, 4  ;;  %v1395_v8 = vrot.slane %v1393_v62, 4  ;;  %v252_v59 = vld [vmem:[%s11226_s25 + $0x210] sm:$0xf] }
  0xd8   : > { %v1386_v7 = vor.u32 %v1385_v61, %v1381_v56  ;;  %v8715_v13 = vcombine.low %v1358_v63, %v1368_v5  ;;  %v1401_v14 = vrot.slane %v1399_v2, 5  ;;  %v1405_v15 = vrot.slane %v1403_v3, 4  ;;  %v253_v2 = vld [vmem:[%s11226_s25 + $0x214] sm:$0xf] }
  0xd9   : > { %v1409_v16 = vshll.u32 %v302_v53, 16  ;;  %v1382_v17 = vsel %vm11257_vm3, %v1377_v6, %v1381_v56  ;;  %v1396_v20 = vor.u32 %v1395_v8, %v1391_v0  ;;  %v1414_v22 = vshrl.u32 %v246_v58, 16 }
  0xda   : > { %v1387_v18 = vrot.slane %v1386_v7, 4  ;;  %10095 = vmatmul.mubr.msk.bf16.gmra.mrb[92].mxu1 %vm1929_vm2, %v8715_v13  ;;  %v1406_v23 = vor.u32 %v1405_v15, %v1401_v14  ;;  %v1417_v25 = vshll.u32 %v246_v58, 16  ;;  %v1423_v26 = vshll.u32 %v247_v10, 16 }
  0xdb   : > { %v1411_v24 = vrot.slane %v1409_v16, 5  ;;  %v1397_v29 = vrot.slane %v1396_v20, 4  ;;  %v1416_v30 = vrot.slane %v1414_v22, 4  ;;  %v1427_v31 = vshrl.u32 %v247_v10, 16  ;;  %v10983_v22 = vld [vmem:[%s11226_s25 + $0x238] sm:$0xff]  }
  0xdc   : > { %10367 = vmatmul.mubr.msk.bf16.gmra.mrb[100].mxu0 %vm1929_vm2, %v10979_v1  ;;  %v1392_v28 = vsel %vm11257_vm3, %v1387_v18, %v1391_v0  ;;  %v1407_v33 = vrot.slane %v1406_v23, 4  ;;  %v1419_v35 = vrot.slane %v1417_v25, 5  ;;  %v1425_v36 = vrot.slane %v1423_v26, 5  ;;  %v254_v25 = vld [vmem:[%s11226_s25 + $0x21c] sm:$0xf] }
  0xdd   : > { %10370 = vmatprep.mubr.msk.bf16.mxu0 %vm1929_vm2, %v10980_v9  ;;  %v8716_v32 = vcombine.low %v1382_v17, %v1392_v28  ;;  %v1402_v38 = vsel %vm11257_vm3, %v1397_v29, %v1401_v14  ;;  %v1429_v39 = vrot.slane %v1427_v31, 4  ;;  %v1433_v40 = vshll.u32 %v248_v21, 16  ;;  %v304_v17 = vld [vmem:[%s11226_s25 + $0x218] sm:$0x1]  ;;  %v255_v31 = vld [vmem:[%s11226_s25 + $0x220] sm:$0xf] }
  0xde   : > { %v1437_v41 = vshrl.u32 %v248_v21, 16  ;;  %v1412_v43 = vsel %vm11257_vm3, %v1407_v33, %v1411_v24  ;;  %v1420_v44 = vor.u32 %v1419_v35, %v1416_v30  ;;  %v1443_v45 = vshll.u32 %v249_v27, 16  ;;  %v10984_v30 = vld [vmem:[%s11226_s25 + $0x244] sm:$0xff]  }
  0xdf   : > { %10098 = vmatprep.mubr.msk.bf16.mxu1 %vm1929_vm2, %v8716_v32  ;;  %v1447_v46 = vshrl.u32 %v249_v27, 16  ;;  %v8717_v49 = vcombine.low %v1402_v38, %v1412_v43  ;;  %v1430_v50 = vor.u32 %v1429_v39, %v1425_v36  ;;  %v1435_v51 = vrot.slane %v1433_v40, 5  ;;  %v256_v38 = vld [vmem:[%s11226_s25 + $0x224] sm:$0xf] }
  0xe0   : > { %v1439_v52 = vrot.slane %v1437_v41, 4  ;;  %v1421_v53 = vrot.slane %v1420_v44, 4  ;;  %v1445_v54 = vrot.slane %v1443_v45, 5  ;;  %v1453_v56 = vshll.u32 %v303_v4, 16 }
  0xe1   : > { %v1449_v55 = vrot.slane %v1447_v46, 4  ;;  %v1431_v57 = vrot.slane %v1430_v50, 4  ;;  %v1458_v60 = vshrl.u32 %v250_v47, 16  ;;  %v1461_v61 = vshll.u32 %v250_v47, 16 }
  0xe2   : > { %v1440_v58 = vor.u32 %v1439_v52, %v1435_v51  ;;  %10099 = vmatmul.mubr.msk.bf16.gmra.mrb[96].mxu1 %vm1929_vm2, %v8717_v49  ;;  %v1426_v62 = vsel %vm11257_vm3, %v1421_v53, %v1425_v36  ;;  %v1455_v0 = vrot.slane %v1453_v56, 5  ;;  %v1467_v1 = vshll.u32 %v251_v48, 16  ;;  %v257_v49 = vld [vmem:[%s11226_s25 + $0x228] sm:$0xf] }
  0xe3   : > { %v1450_v63 = vor.u32 %v1449_v55, %v1445_v54  ;;  %v1436_v3 = vsel %vm11257_vm3, %v1431_v57, %v1435_v51  ;;  %v1460_v6 = vrot.slane %v1458_v60, 4  ;;  %v1463_v7 = vrot.slane %v1461_v61, 5 }
  0xe4   : > { %10371 = vmatmul.mubr.msk.bf16.gmra.mrb[104].mxu0 %vm1929_vm2, %v10981_v37  ;;  %v1441_v5 = vrot.slane %v1440_v58, 4  ;;  %v8718_v8 = vcombine.low %v1426_v62, %v1436_v3  ;;  %v1469_v10 = vrot.slane %v1467_v1, 5  ;;  %v1471_v13 = vshrl.u32 %v251_v48, 16  ;;  %v305_v58 = vld [vmem:[%s11226_s25 + $0x22c] sm:$0x1] }
  0xe5   : > { %10374 = vmatprep.mubr.msk.bf16.mxu0 %vm1929_vm2, %v10982_v42  ;;  %v1451_v9 = vrot.slane %v1450_v63, 4  ;;  %v1464_v15 = vor.u32 %v1463_v7, %v1460_v6  ;;  %v1477_v16 = vshll.u32 %v252_v59, 16  ;;  %v1481_v18 = vshrl.u32 %v252_v59, 16  ;;  %v258_v59 = vld [vmem:[%s11226_s25 + $0x230] sm:$0xf]  ;;  %v10986_v6 = vld [vmem:[%s11226_s25 + $0x258] sm:$0xff]  }
  0xe6   : > { %v1446_v14 = vsel %vm11257_vm3, %v1441_v5, %v1445_v54  ;;  %10102 = vmatprep.mubr.msk.bf16.mxu1 %vm1929_vm2, %v8718_v8  ;;  %v1473_v21 = vrot.slane %v1471_v13, 4  ;;  %v1487_v23 = vshll.u32 %v253_v2, 16  ;;  %v1491_v24 = vshrl.u32 %v253_v2, 16  ;;  %v10985_v62 = vld [vmem:[%s11226_s25 + $0x24c] sm:$0xff]   ;;  %v259_v7 = vld [vmem:[%s11226_s25 + $0x234] sm:$0xf] }
  0xe7   : > { %v1456_v20 = vsel %vm11257_vm3, %v1451_v9, %v1455_v0  ;;  %v1465_v27 = vrot.slane %v1464_v15, 4  ;;  %v1479_v28 = vrot.slane %v1477_v16, 5  ;;  %v1483_v29 = vrot.slane %v1481_v18, 4 }
  0xe8   : > { %v8719_v26 = vcombine.low %v1446_v14, %v1456_v20  ;;  %v1474_v4 = vor.u32 %v1473_v21, %v1469_v10  ;;  %v1489_v32 = vrot.slane %v1487_v23, 5  ;;  %v1493_v33 = vrot.slane %v1491_v24, 4 }
  0xe9   : > { %v1497_v35 = vshll.u32 %v304_v17, 16  ;;  %v1470_v36 = vsel %vm11257_vm3, %v1465_v27, %v1469_v10  ;;  %v1484_v37 = vor.u32 %v1483_v29, %v1479_v28  ;;  %v1502_v39 = vshrl.u32 %v254_v25, 16  ;;  %v260_v17 = vld [vmem:[%s11226_s25 + $0x238] sm:$0xf] }
  0xea   : > { %v1505_v40 = vshll.u32 %v254_v25, 16  ;;  %10103 = vmatmul.mubr.msk.bf16.gmra.mrb[100].mxu1 %vm1929_vm2, %v8719_v26  ;;  %v1475_v41 = vrot.slane %v1474_v4, 4  ;;  %v1494_v42 = vor.u32 %v1493_v33, %v1489_v32  ;;  %v1511_v44 = vshll.u32 %v255_v31, 16 }
  0xeb   : > { %v1499_v43 = vrot.slane %v1497_v35, 5  ;;  %v1485_v45 = vrot.slane %v1484_v37, 4  ;;  %v1504_v46 = vrot.slane %v1502_v39, 4  ;;  %v1515_v48 = vshrl.u32 %v255_v31, 16 }
  0xec   : > { %10375 = vmatmul.mubr.msk.bf16.gmra.mrb[108].mxu0 %vm1929_vm2, %v10983_v22  ;;  %v1507_v47 = vrot.slane %v1505_v40, 5  ;;  %v1480_v50 = vsel %vm11257_vm3, %v1475_v41, %v1479_v28  ;;  %v1495_v51 = vrot.slane %v1494_v42, 4  ;;  %v1513_v52 = vrot.slane %v1511_v44, 5  ;;  %v261_v28 = vld [vmem:[%s11226_s25 + $0x23c] sm:$0xf]  ;;  %v10987_v40 = vld [vmem:[%s11226_s25 + $0x260] sm:$0xff]  }
  0xed   : > { %10378 = vmatprep.mubr.msk.bf16.mxu0 %vm1929_vm2, %v10984_v30  ;;  %v1521_v53 = vshll.u32 %v256_v38, 16  ;;  %v8720_v54 = vcombine.low %v1470_v36, %v1480_v50  ;;  %v1490_v55 = vsel %vm11257_vm3, %v1485_v45, %v1489_v32  ;;  %v1517_v57 = vrot.slane %v1515_v48, 4  ;;  %v306_v36 = vld [vmem:[%s11226_s25 + $0x240] sm:$0x1]  ;;  %v10988_v48 = vld [vmem:[%s11226_s25 + $0x26c] sm:$0xff]  }
  0xee   : > { %v1508_v56 = vor.u32 %v1507_v47, %v1504_v46  ;;  %v1500_v60 = vsel %vm11257_vm3, %v1495_v51, %v1499_v43  ;;  %v1525_v63 = vshrl.u32 %v256_v38, 16  ;;  %v1531_v0 = vshll.u32 %v257_v49, 16  ;;  %v262_v43 = vld [vmem:[%s11226_s25 + $0x244] sm:$0xf] }
  0xef   : > { %v1523_v61 = vrot.slane %v1521_v53, 5  ;;  %10106 = vmatprep.mubr.msk.bf16.mxu1 %vm1929_vm2, %v8720_v54  ;;  %v8721_v1 = vcombine.low %v1490_v55, %v1500_v60  ;;  %v1518_v3 = vor.u32 %v1517_v57, %v1513_v52  ;;  %v1535_v5 = vshrl.u32 %v257_v49, 16  ;;  %v263_v49 = vld [vmem:[%s11226_s25 + $0x248] sm:$0xf]  ;;  %v264_v60 = vld [vmem:[%s11226_s25 + $0x24c] sm:$0xf] }
  0xf0   : > { %v1509_v2 = vrot.slane %v1508_v56, 4  ;;  %v1527_v8 = vrot.slane %v1525_v63, 4  ;;  %v1533_v9 = vrot.slane %v1531_v0, 5  ;;  %v1541_v10 = vshll.u32 %v305_v58, 16 }
  0xf1   : > { %v1546_v13 = vshrl.u32 %v258_v59, 16  ;;  %v1519_v15 = vrot.slane %v1518_v3, 4  ;;  %v1537_v16 = vrot.slane %v1535_v5, 4  ;;  %v1549_v18 = vshll.u32 %v258_v59, 16  ;;  %v265_v3 = vld [vmem:[%s11226_s25 + $0x250] sm:$0xf] }
  0xf2   : > { %v1514_v14 = vsel %vm11257_vm3, %v1509_v2, %v1513_v52  ;;  %10107 = vmatmul.mubr.msk.bf16.gmra.mrb[104].mxu1 %vm1929_vm2, %v8721_v1  ;;  %v1528_v20 = vor.u32 %v1527_v8, %v1523_v61  ;;  %v1543_v21 = vrot.slane %v1541_v10, 5  ;;  %v1555_v23 = vshll.u32 %v259_v7, 16 }
  0xf3   : > { %v1548_v22 = vrot.slane %v1546_v13, 4  ;;  %v1524_v24 = vsel %vm11257_vm3, %v1519_v15, %v1523_v61  ;;  %v1538_v25 = vor.u32 %v1537_v16, %v1533_v9  ;;  %v1551_v26 = vrot.slane %v1549_v18, 5  ;;  %v10989_v18 = vld [vmem:[%s11226_s25 + $0x274] sm:$0xff]  }
  0xf4   : > { %10379 = vmatmul.mubr.msk.bf16.gmra.mrb[112].mxu0 %vm1929_vm2, %v10985_v62  ;;  %v1559_v27 = vshrl.u32 %v259_v7, 16  ;;  %v8722_v29 = vcombine.low %v1514_v14, %v1524_v24  ;;  %v1529_v30 = vrot.slane %v1528_v20, 4  ;;  %v1557_v31 = vrot.slane %v1555_v23, 5  ;;  %v307_v14 = vld [vmem:[%s11226_s25 + $0x254] sm:$0x1] }
  0xf5   : > { %10382 = vmatprep.mubr.msk.bf16.mxu0 %vm1929_vm2, %v10986_v6  ;;  %v1565_v4 = vshll.u32 %v260_v17, 16  ;;  %v1539_v32 = vrot.slane %v1538_v25, 4  ;;  %v1552_v33 = vor.u32 %v1551_v26, %v1548_v22  ;;  %v1569_v37 = vshrl.u32 %v260_v17, 16  ;;  %v266_v22 = vld [vmem:[%s11226_s25 + $0x258] sm:$0xf] }
  0xf6   : > { %v1561_v35 = vrot.slane %v1559_v27, 4  ;;  %10110 = vmatprep.mubr.msk.bf16.mxu1 %vm1929_vm2, %v8722_v29  ;;  %v1534_v38 = vsel %vm11257_vm3, %v1529_v30, %v1533_v9  ;;  %v1575_v41 = vshll.u32 %v261_v28, 16  ;;  %v1579_v42 = vshrl.u32 %v261_v28, 16  ;;  %v10990_v27 = vld [vmem:[%s11226_s25 + $0x280] sm:$0xff]   ;;  %v267_v28 = vld [vmem:[%s11226_s25 + $0x25c] sm:$0xf] }
  0xf7   : > { %v1567_v39 = vrot.slane %v1565_v4, 5  ;;  %v1544_v44 = vsel %vm11257_vm3, %v1539_v32, %v1543_v21  ;;  %v1553_v45 = vrot.slane %v1552_v33, 4  ;;  %v1571_v47 = vrot.slane %v1569_v37, 4 }
  0xf8   : > { %v1562_v46 = vor.u32 %v1561_v35, %v1557_v31  ;;  %v8723_v50 = vcombine.low %v1534_v38, %v1544_v44  ;;  %v1577_v51 = vrot.slane %v1575_v41, 5  ;;  %v1581_v52 = vrot.slane %v1579_v42, 4 }
  0xf9   : > { %v1585_v53 = vshll.u32 %v306_v36, 16  ;;  %v1558_v54 = vsel %vm11257_vm3, %v1553_v45, %v1557_v31  ;;  %v1572_v56 = vor.u32 %v1571_v47, %v1567_v39  ;;  %v1590_v57 = vshrl.u32 %v262_v43, 16 }
  0xfa   : > { %v1563_v55 = vrot.slane %v1562_v46, 4  ;;  %10111 = vmatmul.mubr.msk.bf16.gmra.mrb[108].mxu1 %vm1929_vm2, %v8723_v50  ;;  %v1582_v58 = vor.u32 %v1581_v52, %v1577_v51  ;;  %v1593_v61 = vshll.u32 %v262_v43, 16  ;;  %v1599_v62 = vshll.u32 %v263_v49, 16  ;;  %v269_v46 = vld [vmem:[%s11226_s25 + $0x264] sm:$0xf] }
  0xfb   : > { %v1587_v59 = vrot.slane %v1585_v53, 5  ;;  %v1573_v0 = vrot.slane %v1572_v56, 4  ;;  %v1592_v1 = vrot.slane %v1590_v57, 4  ;;  %v1603_v2 = vshrl.u32 %v263_v49, 16 }
  0xfc   : > { %10383 = vmatmul.mubr.msk.bf16.gmra.mrb[116].mxu0 %vm1929_vm2, %v10987_v40  ;;  %v1568_v63 = vsel %vm11257_vm3, %v1563_v55, %v1567_v39  ;;  %v1583_v6 = vrot.slane %v1582_v58, 4  ;;  %v1595_v7 = vrot.slane %v1593_v61, 5  ;;  %v1601_v8 = vrot.slane %v1599_v62, 5  ;;  %v268_v40 = vld [vmem:[%s11226_s25 + $0x260] sm:$0xf]  ;;  %v10991_v58 = vld [vmem:[%s11226_s25 + $0x288] sm:$0xff]  }
  0xfd   : > { %10386 = vmatprep.mubr.msk.bf16.mxu0 %vm1929_vm2, %v10988_v48  ;;  %v8724_v5 = vcombine.low %v1558_v54, %v1568_v63  ;;  %v1578_v9 = vsel %vm11257_vm3, %v1573_v0, %v1577_v51  ;;  %v1605_v10 = vrot.slane %v1603_v2, 4  ;;  %v1609_v13 = vshll.u32 %v264_v60, 16  ;;  %v308_v54 = vld [vmem:[%s11226_s25 + $0x268] sm:$0x1]  ;;  %v9186_v61 = vld [vmem:[%s11226_s25 + $0x14] sm:$0xf] }
  0xfe   : > { %v1613_v15 = vshrl.u32 %v264_v60, 16  ;;  %v1588_v16 = vsel %vm11257_vm3, %v1583_v6, %v1587_v59  ;;  %v1596_v17 = vor.u32 %v1595_v7, %v1592_v1  ;;  %v1619_v20 = vshll.u32 %v265_v3, 16  ;;  %v9187_v2 = vld [vmem:[%s11226_s25 + $0x18] sm:$0xf] }
  0xff   : > { %10114 = vmatprep.mubr.msk.bf16.mxu1 %vm1929_vm2, %v8724_v5  ;;  %v1623_v21 = vshrl.u32 %v265_v3, 16  ;;  %v8725_v23 = vcombine.low %v1578_v9, %v1588_v16  ;;  %v1606_v24 = vor.u32 %v1605_v10, %v1601_v8  ;;  %v1611_v25 = vrot.slane %v1609_v13, 5  ;;  %v9188_v10 = vld [vmem:[%s11226_s25 + $0x1c] sm:$0xf] }
 0x100   : > { %v1615_v26 = vrot.slane %v1613_v15, 4  ;;  %v1597_v29 = vrot.slane %v1596_v17, 4  ;;  %v1621_v30 = vrot.slane %v1619_v20, 5  ;;  %v1629_v4 = vshll.u32 %v307_v14, 16 }
 0x101   : > { %v1625_v31 = vrot.slane %v1623_v21, 4  ;;  %v1607_v32 = vrot.slane %v1606_v24, 4  ;;  %v1634_v35 = vshrl.u32 %v266_v22, 16  ;;  %v1637_v36 = vshll.u32 %v266_v22, 16  ;;  %v270_v24 = vld [vmem:[%s11226_s25 + $0x26c] sm:$0xf] }
 0x102   : > { %v1616_v33 = vor.u32 %v1615_v26, %v1611_v25  ;;  %10115 = vmatmul.mubr.msk.bf16.gmra.mrb[112].mxu1 %vm1929_vm2, %v8725_v23  ;;  %v1602_v37 = vsel %vm11257_vm3, %v1597_v29, %v1601_v8  ;;  %v1631_v39 = vrot.slane %v1629_v4, 5  ;;  %v1643_v41 = vshll.u32 %v267_v28, 16 }
 0x103   : > { %v1626_v38 = vor.u32 %v1625_v31, %v1621_v30  ;;  %v1612_v42 = vsel %vm11257_vm3, %v1607_v32, %v1611_v25  ;;  %v1636_v44 = vrot.slane %v1634_v35, 4  ;;  %v1639_v45 = vrot.slane %v1637_v36, 5  ;;  %v271_v32 = vld [vmem:[%s11226_s25 + $0x270] sm:$0xf] }
 0x104   : > { %10387 = vmatmul.mubr.msk.bf16.gmra.mrb[120].mxu0 %vm1929_vm2, %v10989_v18  ;;  %v1617_v43 = vrot.slane %v1616_v33, 4  ;;  %v8726_v47 = vcombine.low %v1602_v37, %v1612_v42  ;;  %v1645_v49 = vrot.slane %v1643_v41, 5  ;;  %v1647_v50 = vshrl.u32 %v267_v28, 16  ;;  %v272_v37 = vld [vmem:[%s11226_s25 + $0x274] sm:$0xf] }
 0x105   : > { %10390 = vmatprep.mubr.msk.bf16.mxu0 %vm1929_vm2, %v10990_v27  ;;  %v1627_v48 = vrot.slane %v1626_v38, 4  ;;  %v1640_v52 = vor.u32 %v1639_v45, %v1636_v44  ;;  %v1653_v53 = vshll.u32 %v268_v40, 16  ;;  %v1657_v55 = vshrl.u32 %v268_v40, 16 }
 0x106   : > { %v1622_v51 = vsel %vm11257_vm3, %v1617_v43, %v1621_v30  ;;  %10118 = vmatprep.mubr.msk.bf16.mxu1 %vm1929_vm2, %v8726_v47  ;;  %v1649_v57 = vrot.slane %v1647_v50, 4  ;;  %v1663_v59 = vshll.u32 %v269_v46, 16  ;;  %v1667_v60 = vshrl.u32 %v269_v46, 16  ;;  %v9189_v43 = vld [vmem:[%s11226_s25 + $0x20] sm:$0xf] }
 0x107   : > { %v1632_v56 = vsel %vm11257_vm3, %v1627_v48, %v1631_v39  ;;  %v1641_v63 = vrot.slane %v1640_v52, 4  ;;  %v1655_v0 = vrot.slane %v1653_v53, 5  ;;  %v1659_v1 = vrot.slane %v1657_v55, 4  ;;  %v9190_v55 = vld [vmem:[%s11226_s25 + $0x24] sm:$0x1] }
 0x108   : > { %v8727_v62 = vcombine.low %v1622_v51, %v1632_v56  ;;  %v1650_v3 = vor.u32 %v1649_v57, %v1645_v49  ;;  %v1665_v5 = vrot.slane %v1663_v59, 5  ;;  %v1669_v6 = vrot.slane %v1667_v60, 4 }
 0x109   : > { %v1673_v7 = vshll.u32 %v308_v54, 16  ;;  %v1646_v8 = vsel %vm11257_vm3, %v1641_v63, %v1645_v49  ;;  %v1660_v9 = vor.u32 %v1659_v1, %v1655_v0  ;;  %v5227_v13 = vshrl.u32 %v9186_v61, 16 }
 0x10a   : > { %v5230_v14 = vshll.u32 %v9186_v61, 16  ;;  %10119 = vmatmul.mubr.msk.bf16.gmra.mrb[116].mxu1 %vm1929_vm2, %v8727_v62  ;;  %v1651_v15 = vrot.slane %v1650_v3, 4  ;;  %v1670_v16 = vor.u32 %v1669_v6, %v1665_v5  ;;  %v5236_v18 = vshll.u32 %v9187_v2, 16  ;;  %v273_v61 = vld [vmem:[%s11226_s25 + $0x278] sm:$0xf] }
 0x10b   : > { %v1675_v17 = vrot.slane %v1673_v7, 5  ;;  %v1661_v20 = vrot.slane %v1660_v9, 4  ;;  %v5229_v21 = vrot.slane %v5227_v13, 4  ;;  %v5240_v23 = vshrl.u32 %v9187_v2, 16  ;;  %v309_v6 = vld [vmem:[%s11226_s25 + $0x27c] sm:$0x1] }
 0x10c   : > { %10391 = vmatmul.mubr.msk.bf16.gmra.mrb[124].mxu0 %vm1929_vm2, %v10991_v58  ;;  %v5232_v22 = vrot.slane %v5230_v14, 5  ;;  %v1656_v25 = vsel %vm11257_vm3, %v1651_v15, %v1655_v0  ;;  %v1671_v26 = vrot.slane %v1670_v16, 4  ;;  %v5238_v27 = vrot.slane %v5236_v18, 5  ;;  %v9191_v14 = vld [vmem:[%s11226_s25 + $0x28] sm:$0xf] }
 0x10d   : > { %v5246_v28 = vshll.u32 %v9188_v10, 16  ;;  %v8728_v29 = vcombine.low %v1646_v8, %v1656_v25  ;;  %v1666_v30 = vsel %vm11257_vm3, %v1661_v20, %v1665_v5  ;;  %v5242_v4 = vrot.slane %v5240_v23, 4  ;;  %v9192_v20 = vld [vmem:[%s11226_s25 + $0x2c] sm:$0xf] }
 0x10e   : > { %v5233_v31 = vor.u32 %v5232_v22, %v5229_v21  ;;  %v1676_v33 = vsel %vm11257_vm3, %v1671_v26, %v1675_v17  ;;  %v5250_v36 = vshrl.u32 %v9188_v10, 16  ;;  %v1678_v38 = vshrl.u32 %v270_v24, 16 }
 0x10f   : > { %v5248_v35 = vrot.slane %v5246_v28, 5  ;;  %10122 = vmatprep.mubr.msk.bf16.mxu1 %vm1929_vm2, %v8728_v29  ;;  %v8729_v39 = vcombine.low %v1666_v30, %v1676_v33  ;;  %v5243_v41 = vor.u32 %v5242_v4, %v5238_v27  ;;  %v1681_v42 = vshll.u32 %v270_v24, 16 }
 0x110   : > { %v5234_v40 = vrot.slane %v5233_v31, 4  ;;  %v5252_v44 = vrot.slane %v5250_v36, 4  ;;  %v1680_v45 = vrot.slane %v1678_v38, 4  ;;  %v1687_v46 = vshll.u32 %v271_v32, 16  ;;  %v9193_v31 = vld [vmem:[%s11226_s25 + $0x30] sm:$0xf] }
 0x111   : > { %v1691_v47 = vshrl.u32 %v271_v32, 16  ;;  %v5244_v49 = vrot.slane %v5243_v41, 4  ;;  %v1683_v50 = vrot.slane %v1681_v42, 5  ;;  %v1697_v51 = vshll.u32 %v272_v37, 16  ;;  %v9194_v38 = vld [vmem:[%s11226_s25 + $0x34] sm:$0xf] }
 0x112   : > { %v5239_v48 = vsel %vm11257_vm3, %v5234_v40, %v5238_v27  ;;  %10123 = vmatmul.mubr.msk.bf16.gmra.mrb[120].mxu1 %vm1929_vm2, %v8729_v39  ;;  %v5253_v52 = vor.u32 %v5252_v44, %v5248_v35  ;;  %v1689_v53 = vrot.slane %v1687_v46, 5  ;;  %v5256_v56 = vshll.u32 %v9189_v43, 16 }
 0x113   : > { %v1693_v54 = vrot.slane %v1691_v47, 4  ;;  %v5249_v57 = vsel %vm11257_vm3, %v5244_v49, %v5248_v35  ;;  %v1684_v58 = vor.u32 %v1683_v50, %v1680_v45  ;;  %v1699_v59 = vrot.slane %v1697_v51, 5  ;;  %v9195_v47 = vld [vmem:[%s11226_s25 + $0x38] sm:$0x1]  ;;  %v11045_v50 = vld [vmem:[%s11226_s25] sm:$0xf] }
 0x114   : > { %v5260_v60 = vshrl.u32 %v9189_v43, 16  ;;  %v5254_v62 = vrot.slane %v5253_v52, 4  ;;  %v9346_v63 = vcombine.low %v5239_v48, %v5249_v57  ;;  %v5258_v1 = vrot.slane %v5256_v56, 5  ;;  %v11046_v51 = vld [vmem:[%s11226_s25 + $0x4] sm:$0xf] }
 0x115   : > { %v1694_v0 = vor.u32 %v1693_v54, %v1689_v53  ;;  %v1685_v2 = vrot.slane %v1684_v58, 4  ;;  %v5266_v5 = vshll.u32 %v9190_v55, 16  ;;  %v1701_v7 = vshrl.u32 %v272_v37, 16  ;;  %v9196_v54 = vld [vmem:[%s11226_s25 + $0x3c] sm:$0xf] }
 0x116   : > { %v5262_v3 = vrot.slane %v5260_v60, 4  ;;  %10398 = vmatprep.mubr.msk.bf16.mxu0 %vm1929_vm2, %v9346_v63  ;;  %v5259_v9 = vsel %vm11257_vm3, %v5254_v62, %v5258_v1  ;;  %v1707_v10 = vshll.u32 %v273_v61, 16  ;;  %v1711_v13 = vshrl.u32 %v273_v61, 16 }
 0x117   : > { %v1695_v8 = vrot.slane %v1694_v0, 4  ;;  %v1690_v15 = vsel %vm11257_vm3, %v1685_v2, %v1689_v53  ;;  %v5268_v17 = vrot.slane %v5266_v5, 5  ;;  %v1703_v18 = vrot.slane %v1701_v7, 4 }
 0x118   : > { %v5263_v16 = vor.u32 %v5262_v3, %v5258_v1  ;;  %v1709_v22 = vrot.slane %v1707_v10, 5  ;;  %v1713_v23 = vrot.slane %v1711_v13, 4  ;;  %v1717_v24 = vshll.u32 %v309_v6, 16 }
 0x119   : > { %v1700_v21 = vsel %vm11257_vm3, %v1695_v8, %v1699_v59  ;;  %v1704_v27 = vor.u32 %v1703_v18, %v1699_v59  ;;  %v5271_v28 = vshrl.u32 %v9191_v14, 16  ;;  %v5274_v4 = vshll.u32 %v9191_v14, 16  ;;  %v9197_v59 = vld [vmem:[%s11226_s25 + $0x40] sm:$0xf]  ;;  %v9198_v8 = vld [vmem:[%s11226_s25 + $0x44] sm:$0xf] }
 0x11a   : > { %v8730_v25 = vcombine.low %v1690_v15, %v1700_v21  ;;  %v5264_v26 = vrot.slane %v5263_v16, 4  ;;  %v1714_v29 = vor.u32 %v1713_v23, %v1709_v22  ;;  %v1719_v30 = vrot.slane %v1717_v24, 5  ;;  %v9199_v16 = vld [vmem:[%s11226_s25 + $0x48] sm:$0xf] }
 0x11b   : > { %v5280_v32 = vshll.u32 %v9192_v20, 16  ;;  %v1705_v35 = vrot.slane %v1704_v27, 4  ;;  %v5273_v36 = vrot.slane %v5271_v28, 4  ;;  %v5284_v37 = vshrl.u32 %v9192_v20, 16 }
 0x11c   : > { %10126 = vmatprep.mubr.msk.bf16.mxu1 %vm1929_vm2, %v8730_v25  ;;  %v5269_v33 = vsel %vm11257_vm3, %v5264_v26, %v5268_v17  ;;  %v1715_v40 = vrot.slane %v1714_v29, 4  ;;  %v5276_v41 = vrot.slane %v5274_v4, 5  ;;  %v5290_v45 = vshll.u32 %v9193_v31, 16  ;;  %v9200_v26 = vld [vmem:[%s11226_s25 + $0x4c] sm:$0x1] }
 0x11d   : > { %v9347_v39 = vcombine.low %v5259_v9, %v5269_v33  ;;  %v5282_v42 = vrot.slane %v5280_v32, 5  ;;  %v1710_v43 = vsel %vm11257_vm3, %v1705_v35, %v1709_v22  ;;  %v5286_v44 = vrot.slane %v5284_v37, 4  ;;  %v11047_v29 = vld [vmem:[%s11226_s25 + $0x14] sm:$0xf]  ;;  %v9201_v37 = vld [vmem:[%s11226_s25 + $0x50] sm:$0xf] }
 0x11e   : > { %v5294_v46 = vshrl.u32 %v9193_v31, 16  ;;  %v1720_v48 = vsel %vm11257_vm3, %v1715_v40, %v1719_v30  ;;  %v5277_v49 = vor.u32 %v5276_v41, %v5273_v36  ;;  %v8798_v52 = vcombine.low %v11045_v50, %v11046_v51  ;;  %v11048_v30 = vld [vmem:[%s11226_s25 + $0x18] sm:$0xf]  ;;  %v11049_v50 = vld [vmem:[%s11226_s25 + $0x1c] sm:$0xf] }
 0x11f   : > { %10399 = vmatmul.mubr.msk.bf16.vlgmr.msra.gmra.mrb[0].mxu0 %vm1929_vm2, %v9347_v39  ;;  %v5300_v53 = vshll.u32 %v9194_v38, 16  ;;  %v8731_v55 = vcombine.low %v1710_v43, %v1720_v48  ;;  %v5287_v56 = vor.u32 %v5286_v44, %v5282_v42  ;;  %v5292_v57 = vrot.slane %v5290_v45, 5  ;;  %v11050_v51 = vld [vmem:[%s11226_s25 + $0x20] sm:$0xf] }
 0x120   : > { %v5296_v58 = vrot.slane %v5294_v46, 4  ;;  %v5278_v60 = vrot.slane %v5277_v49, 4  ;;  %v5304_v62 = vshrl.u32 %v9194_v38, 16  ;;  %v5310_v63 = vshll.u32 %v9195_v47, 16  ;;  %v9203_v47 = vld [vmem:[%s11226_s25 + $0x58] sm:$0xf] }
 0x121   : > { %v5302_v61 = vrot.slane %v5300_v53, 5  ;;  %10127 = vmatmul.mubr.msk.bf16.gmra.mrb[124].mxu1 %vm1929_vm2, %v8731_v55  ;;  %v5288_v0 = vrot.slane %v5287_v56, 4  ;;  %v5315_v2 = vshrl.u32 %v9196_v54, 16  ;;  %v5318_v3 = vshll.u32 %v9196_v54, 16 }
 0x122   : > { %v5297_v1 = vor.u32 %v5296_v58, %v5292_v57  ;;  %v5283_v5 = vsel %vm11257_vm3, %v5278_v60, %v5282_v42  ;;  %10134 = vmatprep.mubr.msk.bf16.mxu1 %vm1929_vm2, %v8798_v52  ;;  %v5306_v6 = vrot.slane %v5304_v62, 4  ;;  %v5312_v7 = vrot.slane %v5310_v63, 5  ;;  %v9202_v42 = vld [vmem:[%s11226_s25 + $0x54] sm:$0xf] }
 0x123   : > { %v5324_v9 = vshll.u32 %v9197_v59, 16  ;;  %v5293_v10 = vsel %vm11257_vm3, %v5288_v0, %v5292_v57  ;;  %v5317_v14 = vrot.slane %v5315_v2, 4  ;;  %v5320_v15 = vrot.slane %v5318_v3, 5 }
 0x124   : > { %v5298_v13 = vrot.slane %v5297_v1, 4  ;;  %v9348_v17 = vcombine.low %v5283_v5, %v5293_v10  ;;  %v5307_v18 = vor.u32 %v5306_v6, %v5302_v61  ;;  %v5328_v21 = vshrl.u32 %v9197_v59, 16  ;;  %v9204_v59 = vld [vmem:[%s11226_s25 + $0x5c] sm:$0xf]  ;;  %v9205_v5 = vld [vmem:[%s11226_s25 + $0x60] sm:$0x1] }
 0x125   : > { %v5326_v20 = vrot.slane %v5324_v9, 5  ;;  %v5321_v23 = vor.u32 %v5320_v15, %v5317_v14  ;;  %v5334_v24 = vshll.u32 %v9198_v8, 16  ;;  %v5338_v25 = vshrl.u32 %v9198_v8, 16  ;;  %v11051_v8 = vld [vmem:[%s11226_s25 + $0x28] sm:$0xf] }
 0x126   : > { %v5303_v22 = vsel %vm11257_vm3, %v5298_v13, %v5302_v61  ;;  %10402 = vmatprep.mubr.msk.bf16.mxu0 %vm1929_vm2, %v9348_v17  ;;  %v5308_v27 = vrot.slane %v5307_v18, 4  ;;  %v5330_v28 = vrot.slane %v5328_v21, 4  ;;  %v8800_v31 = vcombine.low %v11047_v29, %v11048_v30  ;;  %v11052_v9 = vld [vmem:[%s11226_s25 + $0x2c] sm:$0xf]  ;;  %v9206_v14 = vld [vmem:[%s11226_s25 + $0x64] sm:$0xf] }
 0x127   : > { %v5344_v4 = vshll.u32 %v9199_v16, 16  ;;  %v5322_v32 = vrot.slane %v5321_v23, 4  ;;  %v5336_v33 = vrot.slane %v5334_v24, 5  ;;  %v5340_v35 = vrot.slane %v5338_v25, 4  ;;  %v11053_v24 = vld [vmem:[%s11226_s25 + $0x30] sm:$0xf] }
 0x128   : > { %v5348_v36 = vshrl.u32 %v9199_v16, 16  ;;  %v5313_v38 = vsel %vm11257_vm3, %v5308_v27, %v5312_v7  ;;  %v5331_v39 = vor.u32 %v5330_v28, %v5326_v20  ;;  %v5354_v41 = vshll.u32 %v9200_v26, 16  ;;  %v11054_v25 = vld [vmem:[%s11226_s25 + $0x34] sm:$0xf] }
 0x129   : > { %v5346_v40 = vrot.slane %v5344_v4, 5  ;;  %v9349_v43 = vcombine.low %v5303_v22, %v5313_v38  ;;  %10135 = vmatmul.mubr.msk.bf16.vlgmr.msra.gmra.mrb[0].mxu1 %vm1929_vm2, %v8799_v19  ;;  %v5327_v44 = vsel %vm11257_vm3, %v5322_v32, %v5326_v20  ;;  %v5341_v45 = vor.u32 %v5340_v35, %v5336_v33  ;;  %v9207_v20 = vld [vmem:[%s11226_s25 + $0x68] sm:$0xf]  ;;  %v9208_v32 = vld [vmem:[%s11226_s25 + $0x6c] sm:$0xf] }
 0x12a   : > { %v5350_v46 = vrot.slane %v5348_v36, 4  ;;  %v5332_v48 = vrot.slane %v5331_v39, 4  ;;  %10138 = vmatprep.mubr.msk.bf16.mxu1 %vm1929_vm2, %v8800_v31  ;;  %v5356_v49 = vrot.slane %v5354_v41, 5  ;;  %v8801_v52 = vcombine.low %v11049_v50, %v11050_v51  ;;  %v11055_v51 = vld [vmem:[%s11226_s25 + $0x3c] sm:$0xf] }
 0x12b   : > { %v5359_v53 = vshrl.u32 %v9201_v37, 16  ;;  %10403 = vmatmul.mubr.msk.bf16.gmra.mrb[4].mxu0 %vm1929_vm2, %v9349_v43  ;;  %v5342_v11 = vrot.slane %v5341_v45, 4  ;;  %v5362_v19 = vshll.u32 %v9201_v37, 16  ;;  %v5368_v54 = vshll.u32 %v9202_v42, 16 }
 0x12c   : > { %v5351_v12 = vor.u32 %v5350_v46, %v5346_v40  ;;  %v5337_v55 = vsel %vm11257_vm3, %v5332_v48, %v5336_v33  ;;  %v5372_v57 = vshrl.u32 %v9202_v42, 16  ;;  %v5378_v58 = vshll.u32 %v9203_v47, 16 }
 0x12d   : > { %v5361_v56 = vrot.slane %v5359_v53, 4  ;;  %v9350_v60 = vcombine.low %v5327_v44, %v5337_v55  ;;  %v5347_v61 = vsel %vm11257_vm3, %v5342_v11, %v5346_v40  ;;  %v5364_v63 = vrot.slane %v5362_v19, 5  ;;  %v9209_v40 = vld [vmem:[%s11226_s25 + $0x70] sm:$0xf]  ;;  %v9210_v11 = vld [vmem:[%s11226_s25 + $0x74] sm:$0x1] }
 0x12e   : > { %v5352_v62 = vrot.slane %v5351_v12, 4  ;;  %v5370_v0 = vrot.slane %v5368_v54, 5  ;;  %v5374_v1 = vrot.slane %v5372_v57, 4  ;;  %v5380_v2 = vrot.slane %v5378_v58, 5  ;;  %v9211_v57 = vld [vmem:[%s11226_s25 + $0x78] sm:$0xf] }
 0x12f   : > { %v5382_v3 = vshrl.u32 %v9203_v47, 16  ;;  %10406 = vmatprep.mubr.msk.bf16.mxu0 %vm1929_vm2, %v9350_v60  ;;  %v5365_v7 = vor.u32 %v5364_v63, %v5361_v56  ;;  %v8802_v10 = vcombine.low %v11051_v8, %v11052_v9  ;;  %v5388_v13 = vshll.u32 %v9204_v59, 16 }
 0x130   : > { %v5357_v6 = vsel %vm11257_vm3, %v5352_v62, %v5356_v49  ;;  %v5375_v16 = vor.u32 %v5374_v1, %v5370_v0  ;;  %v5392_v18 = vshrl.u32 %v9204_v59, 16  ;;  %v5398_v23 = vshll.u32 %v9205_v5, 16  ;;  %v9212_v62 = vld [vmem:[%s11226_s25 + $0x7c] sm:$0xf] }
 0x131   : > { %v9351_v15 = vcombine.low %v5347_v61, %v5357_v6  ;;  %v5384_v17 = vrot.slane %v5382_v3, 4  ;;  %10139 = vmatmul.mubr.msk.bf16.gmra.mrb[4].mxu1 %vm1929_vm2, %v8801_v52  ;;  %v5366_v21 = vrot.slane %v5365_v7, 4  ;;  %v5390_v22 = vrot.slane %v5388_v13, 5  ;;  %v11056_v52 = vld [vmem:[%s11226_s25 + $0x40] sm:$0xf] }
 0x132   : > { %v8803_v26 = vcombine.low %v11053_v24, %v11054_v25  ;;  %v5376_v27 = vrot.slane %v5375_v16, 4  ;;  %10142 = vmatprep.mubr.msk.bf16.mxu1 %vm1929_vm2, %v8802_v10  ;;  %v5394_v29 = vrot.slane %v5392_v18, 4  ;;  %v5403_v30 = vshrl.u32 %v9206_v14, 16  ;;  %v11058_v3 = vld [vmem:[%s11226_s25 + $0x48] sm:$0xf] }
 0x133   : > { %v5385_v28 = vor.u32 %v5384_v17, %v5380_v2  ;;  %10407 = vmatmul.mubr.msk.bf16.gmra.mrb[8].mxu0 %vm1929_vm2, %v9351_v15  ;;  %v5371_v31 = vsel %vm11257_vm3, %v5366_v21, %v5370_v0  ;;  %v5400_v4 = vrot.slane %v5398_v23, 5  ;;  %v5406_v33 = vshll.u32 %v9206_v14, 16  ;;  %v9213_v15 = vld [vmem:[%s11226_s25 + $0x80] sm:$0xf] }
 0x134   : > { %v5412_v35 = vshll.u32 %v9207_v20, 16  ;;  %v5381_v36 = vsel %vm11257_vm3, %v5376_v27, %v5380_v2  ;;  %v5395_v38 = vor.u32 %v5394_v29, %v5390_v22  ;;  %v5405_v39 = vrot.slane %v5403_v30, 4  ;;  %v11057_v2 = vld [vmem:[%s11226_s25 + $0x44] sm:$0xf] }
 0x135   : > { %v5386_v37 = vrot.slane %v5385_v28, 4  ;;  %v9352_v41 = vcombine.low %v5371_v31, %v5381_v36  ;;  %v5408_v42 = vrot.slane %v5406_v33, 5  ;;  %v5416_v44 = vshrl.u32 %v9207_v20, 16  ;;  %v9215_v31 = vld [vmem:[%s11226_s25 + $0x88] sm:$0x1] }
 0x136   : > { %v5414_v43 = vrot.slane %v5412_v35, 5  ;;  %v5396_v46 = vrot.slane %v5395_v38, 4  ;;  %v5422_v47 = vshll.u32 %v9208_v32, 16  ;;  %v5426_v48 = vshrl.u32 %v9208_v32, 16  ;;  %v11059_v32 = vld [vmem:[%s11226_s25 + $0x50] sm:$0xf] }
 0x137   : > { %v5391_v45 = vsel %vm11257_vm3, %v5386_v37, %v5390_v22  ;;  %10410 = vmatprep.mubr.msk.bf16.mxu0 %vm1929_vm2, %v9352_v41  ;;  %v5409_v49 = vor.u32 %v5408_v42, %v5405_v39  ;;  %v5418_v50 = vrot.slane %v5416_v44, 4  ;;  %v8804_v53 = vcombine.low %v11055_v51, %v11056_v52  ;;  %v9214_v22 = vld [vmem:[%s11226_s25 + $0x84] sm:$0xf]  ;;  %v11060_v33 = vld [vmem:[%s11226_s25 + $0x54] sm:$0xf] }
 0x138   : > { %v5432_v12 = vshll.u32 %v9209_v40, 16  ;;  %v5401_v19 = vsel %vm11257_vm3, %v5396_v46, %v5400_v4  ;;  %v5424_v54 = vrot.slane %v5422_v47, 5  ;;  %v5428_v55 = vrot.slane %v5426_v48, 4  ;;  %v9216_v38 = vld [vmem:[%s11226_s25 + $0x8c] sm:$0xf] }
 0x139   : > { %v5436_v56 = vshrl.u32 %v9209_v40, 16  ;;  %v9353_v58 = vcombine.low %v5391_v45, %v5401_v19  ;;  %10143 = vmatmul.mubr.msk.bf16.gmra.mrb[8].mxu1 %vm1929_vm2, %v8803_v26  ;;  %v5410_v59 = vrot.slane %v5409_v49, 4  ;;  %v5419_v60 = vor.u32 %v5418_v50, %v5414_v43  ;;  %v9217_v47 = vld [vmem:[%s11226_s25 + $0x90] sm:$0xf]  ;;  %v11061_v50 = vld [vmem:[%s11226_s25 + $0x58] sm:$0xf] }
 0x13a   : > { %v5434_v61 = vrot.slane %v5432_v12, 5  ;;  %10146 = vmatprep.mubr.msk.bf16.mxu1 %vm1929_vm2, %v8804_v53  ;;  %v5429_v63 = vor.u32 %v5428_v55, %v5424_v54  ;;  %v5442_v1 = vshll.u32 %v9210_v11, 16  ;;  %v8805_v5 = vcombine.low %v11057_v2, %v11058_v3  ;;  %v11062_v51 = vld [vmem:[%s11226_s25 + $0x5c] sm:$0xf] }
 0x13b   : > { %v5438_v0 = vrot.slane %v5436_v56, 4  ;;  %10411 = vmatmul.mubr.msk.bf16.gmra.mrb[12].mxu0 %vm1929_vm2, %v9353_v58  ;;  %v5415_v6 = vsel %vm11257_vm3, %v5410_v59, %v5414_v43  ;;  %v5420_v7 = vrot.slane %v5419_v60, 4  ;;  %v5447_v8 = vshrl.u32 %v9211_v57, 16 }
 0x13c   : > { %v5450_v9 = vshll.u32 %v9211_v57, 16  ;;  %v5430_v10 = vrot.slane %v5429_v63, 4  ;;  %v5444_v14 = vrot.slane %v5442_v1, 5  ;;  %v5456_v16 = vshll.u32 %v9212_v62, 16 }
 0x13d   : > { %v5439_v13 = vor.u32 %v5438_v0, %v5434_v61  ;;  %v5425_v17 = vsel %vm11257_vm3, %v5420_v7, %v5424_v54  ;;  %v5449_v18 = vrot.slane %v5447_v8, 4  ;;  %v5460_v21 = vshrl.u32 %v9212_v62, 16  ;;  %v9218_v54 = vld [vmem:[%s11226_s25 + $0x94] sm:$0xf]  ;;  %v9219_v0 = vld [vmem:[%s11226_s25 + $0x98] sm:$0xf] }
 0x13e   : > { %v5452_v20 = vrot.slane %v5450_v9, 5  ;;  %v9354_v23 = vcombine.low %v5415_v6, %v5425_v17  ;;  %v5435_v24 = vsel %vm11257_vm3, %v5430_v10, %v5434_v61  ;;  %v5458_v26 = vrot.slane %v5456_v16, 5  ;;  %v9220_v6 = vld [vmem:[%s11226_s25 + $0x9c] sm:$0x1]  ;;  %v11063_v10 = vld [vmem:[%s11226_s25 + $0x64] sm:$0xf] }
 0x13f   : > { %v5440_v25 = vrot.slane %v5439_v13, 4  ;;  %v5462_v28 = vrot.slane %v5460_v21, 4  ;;  %v5466_v29 = vshll.u32 %v9213_v15, 16  ;;  %v5470_v30 = vshrl.u32 %v9213_v15, 16  ;;  %v11064_v13 = vld [vmem:[%s11226_s25 + $0x68] sm:$0xf] }
 0x140   : > { %v5453_v27 = vor.u32 %v5452_v20, %v5449_v18  ;;  %10414 = vmatprep.mubr.msk.bf16.mxu0 %vm1929_vm2, %v9354_v23  ;;  %v8806_v35 = vcombine.low %v11059_v32, %v11060_v33  ;;  %v5476_v36 = vshll.u32 %v9214_v22, 16  ;;  %v5480_v37 = vshrl.u32 %v9214_v22, 16  ;;  %v9221_v15 = vld [vmem:[%s11226_s25 + $0xa0] sm:$0xf] }
 0x141   : > { %v5445_v4 = vsel %vm11257_vm3, %v5440_v25, %v5444_v14  ;;  %10147 = vmatmul.mubr.msk.bf16.gmra.mrb[12].mxu1 %vm1929_vm2, %v8805_v5  ;;  %v5463_v41 = vor.u32 %v5462_v28, %v5458_v26  ;;  %v5468_v42 = vrot.slane %v5466_v29, 5  ;;  %v5472_v43 = vrot.slane %v5470_v30, 4  ;;  %v11066_v28 = vld [vmem:[%s11226_s25 + $0x70] sm:$0xf]  ;;  %v9222_v30 = vld [vmem:[%s11226_s25 + $0xa4] sm:$0xf] }
 0x142   : > { %v9355_v39 = vcombine.low %v5435_v24, %v5445_v4  ;;  %v5454_v40 = vrot.slane %v5453_v27, 4  ;;  %10150 = vmatprep.mubr.msk.bf16.mxu1 %vm1929_vm2, %v8806_v35  ;;  %v5478_v44 = vrot.slane %v5476_v36, 5  ;;  %v5482_v45 = vrot.slane %v5480_v37, 4  ;;  %v11065_v27 = vld [vmem:[%s11226_s25 + $0x6c] sm:$0xf] }
 0x143   : > { %v5486_v46 = vshll.u32 %v9215_v31, 16  ;;  %v5464_v49 = vrot.slane %v5463_v41, 4  ;;  %v8807_v52 = vcombine.low %v11061_v50, %v11062_v51  ;;  %v5491_v53 = vshrl.u32 %v9216_v38, 16  ;;  %v9223_v36 = vld [vmem:[%s11226_s25 + $0xa8] sm:$0xf] }
 0x144   : > { %10415 = vmatmul.mubr.msk.bf16.gmra.mrb[16].mxu0 %vm1929_vm2, %v9355_v39  ;;  %v5459_v48 = vsel %vm11257_vm3, %v5454_v40, %v5458_v26  ;;  %v5473_v11 = vor.u32 %v5472_v43, %v5468_v42  ;;  %v5483_v12 = vor.u32 %v5482_v45, %v5478_v44  ;;  %v5494_v55 = vshll.u32 %v9216_v38, 16  ;;  %v9224_v45 = vld [vmem:[%s11226_s25 + $0xac] sm:$0xf]  ;;  %v9225_v50 = vld [vmem:[%s11226_s25 + $0xb0] sm:$0x1] }
 0x145   : > { %v5488_v19 = vrot.slane %v5486_v46, 5  ;;  %v5469_v56 = vsel %vm11257_vm3, %v5464_v49, %v5468_v42  ;;  %v5493_v57 = vrot.slane %v5491_v53, 4  ;;  %v5500_v58 = vshll.u32 %v9217_v47, 16 }
 0x146   : > { %v5504_v59 = vshrl.u32 %v9217_v47, 16  ;;  %v9356_v60 = vcombine.low %v5459_v48, %v5469_v56  ;;  %v5474_v61 = vrot.slane %v5473_v11, 4  ;;  %v5484_v62 = vrot.slane %v5483_v12, 4  ;;  %v11067_v11 = vld [vmem:[%s11226_s25 + $0x78] sm:$0xf] }
 0x147   : > { %v5496_v63 = vrot.slane %v5494_v55, 5  ;;  %v5502_v1 = vrot.slane %v5500_v58, 5  ;;  %v5510_v3 = vshll.u32 %v9218_v54, 16  ;;  %v5514_v5 = vshrl.u32 %v9218_v54, 16  ;;  %v11068_v12 = vld [vmem:[%s11226_s25 + $0x7c] sm:$0xf] }
 0x148   : > { %v5506_v2 = vrot.slane %v5504_v59, 4  ;;  %10418 = vmatprep.mubr.msk.bf16.mxu0 %vm1929_vm2, %v9356_v60  ;;  %v5479_v7 = vsel %vm11257_vm3, %v5474_v61, %v5478_v44  ;;  %v5489_v8 = vsel %vm11257_vm3, %v5484_v62, %v5488_v19  ;;  %v8808_v14 = vcombine.low %v11063_v10, %v11064_v13  ;;  %v9226_v62 = vld [vmem:[%s11226_s25 + $0xb4] sm:$0xf] }
 0x149   : > { %v5497_v9 = vor.u32 %v5496_v63, %v5493_v57  ;;  %v9357_v16 = vcombine.low %v5479_v7, %v5489_v8  ;;  %10151 = vmatmul.mubr.msk.bf16.gmra.mrb[16].mxu1 %vm1929_vm2, %v8807_v52  ;;  %v5512_v18 = vrot.slane %v5510_v3, 5  ;;  %v5516_v20 = vrot.slane %v5514_v5, 4  ;;  %v9227_v3 = vld [vmem:[%s11226_s25 + $0xb8] sm:$0xf]  ;;  %v11069_v8 = vld [vmem:[%s11226_s25 + $0x80] sm:$0xf] }
 0x14a   : > { %v5507_v17 = vor.u32 %v5506_v2, %v5502_v1  ;;  %10154 = vmatprep.mubr.msk.bf16.mxu1 %vm1929_vm2, %v8808_v14  ;;  %v5520_v22 = vshll.u32 %v9219_v0, 16  ;;  %v5524_v23 = vshrl.u32 %v9219_v0, 16  ;;  %v5530_v24 = vshll.u32 %v9220_v6, 16 }
 0x14b   : > { %v5498_v21 = vrot.slane %v5497_v9, 4  ;;  %v5517_v26 = vor.u32 %v5516_v20, %v5512_v18  ;;  %v8809_v29 = vcombine.low %v11065_v27, %v11066_v28  ;;  %v5535_v31 = vshrl.u32 %v9221_v15, 16  ;;  %v11070_v9 = vld [vmem:[%s11226_s25 + $0x84] sm:$0xf] }
 0x14c   : > { %10419 = vmatmul.mubr.msk.bf16.gmra.mrb[20].mxu0 %vm1929_vm2, %v9357_v16  ;;  %v5508_v25 = vrot.slane %v5507_v17, 4  ;;  %v5522_v32 = vrot.slane %v5520_v22, 5  ;;  %v5526_v33 = vrot.slane %v5524_v23, 4  ;;  %v5532_v35 = vrot.slane %v5530_v24, 5  ;;  %v9229_v23 = vld [vmem:[%s11226_s25 + $0xc0] sm:$0xf] }
 0x14d   : > { %v5503_v4 = vsel %vm11257_vm3, %v5498_v21, %v5502_v1  ;;  %v5518_v38 = vrot.slane %v5517_v26, 4  ;;  %v5537_v39 = vrot.slane %v5535_v31, 4  ;;  %v5538_v40 = vshll.u32 %v9221_v15, 16  ;;  %v9228_v15 = vld [vmem:[%s11226_s25 + $0xbc] sm:$0xf] }
 0x14e   : > { %v5513_v37 = vsel %vm11257_vm3, %v5508_v25, %v5512_v18  ;;  %v5527_v42 = vor.u32 %v5526_v33, %v5522_v32  ;;  %v5544_v43 = vshll.u32 %v9222_v30, 16  ;;  %v5548_v44 = vshrl.u32 %v9222_v30, 16  ;;  %v11071_v33 = vld [vmem:[%s11226_s25 + $0x8c] sm:$0xf] }
 0x14f   : > { %v9358_v41 = vcombine.low %v5503_v4, %v5513_v37  ;;  %v5523_v46 = vsel %vm11257_vm3, %v5518_v38, %v5522_v32  ;;  %v5540_v47 = vrot.slane %v5538_v40, 5  ;;  %v5554_v48 = vshll.u32 %v9223_v36, 16  ;;  %v9230_v37 = vld [vmem:[%s11226_s25 + $0xc4] sm:$0x1] }
 0x150   : > { %v5558_v49 = vshrl.u32 %v9223_v36, 16  ;;  %v5528_v51 = vrot.slane %v5527_v42, 4  ;;  %v5546_v52 = vrot.slane %v5544_v43, 5  ;;  %v5550_v53 = vrot.slane %v5548_v44, 4  ;;  %v9231_v43 = vld [vmem:[%s11226_s25 + $0xc8] sm:$0xf] }
 0x151   : > { %10422 = vmatprep.mubr.msk.bf16.mxu0 %vm1929_vm2, %v9358_v41  ;;  %v8810_v19 = vcombine.low %v11067_v11, %v11068_v12  ;;  %10155 = vmatmul.mubr.msk.bf16.gmra.mrb[20].mxu1 %vm1929_vm2, %v8809_v29  ;;  %v5541_v54 = vor.u32 %v5540_v47, %v5537_v39  ;;  %v5556_v55 = vrot.slane %v5554_v48, 5  ;;  %v5564_v57 = vshll.u32 %v9224_v45, 16  ;;  %v9232_v48 = vld [vmem:[%s11226_s25 + $0xcc] sm:$0xf] }
 0x152   : > { %v5560_v56 = vrot.slane %v5558_v49, 4  ;;  %v5533_v58 = vsel %vm11257_vm3, %v5528_v51, %v5532_v35  ;;  %v5551_v59 = vor.u32 %v5550_v53, %v5546_v52  ;;  %v5568_v60 = vshrl.u32 %v9224_v45, 16  ;;  %v11072_v35 = vld [vmem:[%s11226_s25 + $0x90] sm:$0xf]  ;;  %v11074_v53 = vld [vmem:[%s11226_s25 + $0x98] sm:$0xf] }
 0x153   : > { %10158 = vmatprep.mubr.msk.bf16.mxu1 %vm1929_vm2, %v8810_v19  ;;  %v5574_v61 = vshll.u32 %v9225_v50, 16  ;;  %v9359_v63 = vcombine.low %v5523_v46, %v5533_v58  ;;  %v5542_v0 = vrot.slane %v5541_v54, 4  ;;  %v5566_v2 = vrot.slane %v5564_v57, 5  ;;  %v9233_v54 = vld [vmem:[%s11226_s25 + $0xd0] sm:$0xf] }
 0x154   : > { %v5561_v1 = vor.u32 %v5560_v56, %v5556_v55  ;;  %v5552_v5 = vrot.slane %v5551_v59, 4  ;;  %v5570_v6 = vrot.slane %v5568_v60, 4  ;;  %v8811_v10 = vcombine.low %v11069_v8, %v11070_v9 }
 0x155   : > { %v5576_v7 = vrot.slane %v5574_v61, 5  ;;  %10423 = vmatmul.mubr.msk.bf16.gmra.mrb[24].mxu0 %vm1929_vm2, %v9359_v63  ;;  %v5547_v13 = vsel %vm11257_vm3, %v5542_v0, %v5546_v52  ;;  %v5579_v16 = vshrl.u32 %v9226_v62, 16  ;;  %v5582_v17 = vshll.u32 %v9226_v62, 16  ;;  %v11073_v52 = vld [vmem:[%s11226_s25 + $0x94] sm:$0xf] }
 0x156   : > { %v5562_v14 = vrot.slane %v5561_v1, 4  ;;  %v5557_v18 = vsel %vm11257_vm3, %v5552_v5, %v5556_v55  ;;  %v5571_v20 = vor.u32 %v5570_v6, %v5566_v2  ;;  %v5588_v21 = vshll.u32 %v9227_v3, 16  ;;  %v9234_v1 = vld [vmem:[%s11226_s25 + $0xd4] sm:$0xf] }
 0x157   : > { %v5592_v22 = vshrl.u32 %v9227_v3, 16  ;;  %v9360_v24 = vcombine.low %v5547_v13, %v5557_v18  ;;  %v5581_v26 = vrot.slane %v5579_v16, 4  ;;  %v5584_v27 = vrot.slane %v5582_v17, 5  ;;  %v11076_v13 = vld [vmem:[%s11226_s25 + $0xa4] sm:$0xf] }
 0x158   : > { %v5567_v25 = vsel %vm11257_vm3, %v5562_v14, %v5566_v2  ;;  %v5572_v28 = vrot.slane %v5571_v20, 4  ;;  %v5590_v29 = vrot.slane %v5588_v21, 5  ;;  %v5598_v31 = vshll.u32 %v9228_v15, 16  ;;  %v9236_v21 = vld [vmem:[%s11226_s25 + $0xdc] sm:$0xf] }
 0x159   : > { %v5594_v30 = vrot.slane %v5592_v22, 4  ;;  %10426 = vmatprep.mubr.msk.bf16.mxu0 %vm1929_vm2, %v9360_v24  ;;  %10159 = vmatmul.mubr.msk.bf16.gmra.mrb[24].mxu1 %vm1929_vm2, %v8811_v10  ;;  %v5585_v4 = vor.u32 %v5584_v27, %v5581_v26  ;;  %v5602_v32 = vshrl.u32 %v9228_v15, 16  ;;  %v8812_v36 = vcombine.low %v11071_v33, %v11072_v35  ;;  %v11075_v10 = vld [vmem:[%s11226_s25 + $0xa0] sm:$0xf]  ;;  %v9235_v15 = vld [vmem:[%s11226_s25 + $0xd8] sm:$0x1] }
 0x15a   : > { %v5608_v38 = vshll.u32 %v9229_v23, 16  ;;  %v5577_v39 = vsel %vm11257_vm3, %v5572_v28, %v5576_v7  ;;  %v5600_v41 = vrot.slane %v5598_v31, 5  ;;  %v5612_v42 = vshrl.u32 %v9229_v23, 16  ;;  %v9237_v26 = vld [vmem:[%s11226_s25 + $0xe0] sm:$0xf] }
 0x15b   : > { %v5595_v40 = vor.u32 %v5594_v30, %v5590_v29  ;;  %v9361_v44 = vcombine.low %v5567_v25, %v5577_v39  ;;  %v5586_v45 = vrot.slane %v5585_v4, 4  ;;  %10162 = vmatprep.mubr.msk.bf16.mxu1 %vm1929_vm2, %v8812_v36  ;;  %v5604_v46 = vrot.slane %v5602_v32, 4  ;;  %v11077_v30 = vld [vmem:[%s11226_s25 + $0xa8] sm:$0xf]  ;;  %v11078_v31 = vld [vmem:[%s11226_s25 + $0xac] sm:$0xf] }
 0x15c   : > { %v5610_v47 = vrot.slane %v5608_v38, 5  ;;  %v5614_v50 = vrot.slane %v5612_v42, 4  ;;  %v5618_v51 = vshll.u32 %v9230_v37, 16  ;;  %v8813_v11 = vcombine.low %v11073_v52, %v11074_v53  ;;  %v9238_v36 = vld [vmem:[%s11226_s25 + $0xe4] sm:$0xf] }
 0x15d   : > { %v5596_v49 = vrot.slane %v5595_v40, 4  ;;  %10427 = vmatmul.mubr.msk.bf16.gmra.mrb[28].mxu0 %vm1929_vm2, %v9361_v44  ;;  %v5591_v12 = vsel %vm11257_vm3, %v5586_v45, %v5590_v29  ;;  %v5605_v19 = vor.u32 %v5604_v46, %v5600_v41  ;;  %v5623_v55 = vshrl.u32 %v9231_v43, 16 }
 0x15e   : > { %v5626_v56 = vshll.u32 %v9231_v43, 16  ;;  %v5615_v58 = vor.u32 %v5614_v50, %v5610_v47  ;;  %v5620_v59 = vrot.slane %v5618_v51, 5  ;;  %v5632_v60 = vshll.u32 %v9232_v48, 16  ;;  %v9239_v50 = vld [vmem:[%s11226_s25 + $0xe8] sm:$0xf] }
 0x15f   : > { %v5601_v57 = vsel %vm11257_vm3, %v5596_v49, %v5600_v41  ;;  %v5606_v62 = vrot.slane %v5605_v19, 4  ;;  %v5625_v63 = vrot.slane %v5623_v55, 4  ;;  %v5636_v5 = vshrl.u32 %v9232_v48, 16 }
 0x160   : > { %v9362_v61 = vcombine.low %v5591_v12, %v5601_v57  ;;  %v5628_v0 = vrot.slane %v5626_v56, 5  ;;  %v5616_v2 = vrot.slane %v5615_v58, 4  ;;  %v5634_v3 = vrot.slane %v5632_v60, 5  ;;  %v9240_v12 = vld [vmem:[%s11226_s25 + $0xec] sm:$0x1] }
 0x161   : > { %v5642_v6 = vshll.u32 %v9233_v54, 16  ;;  %v5611_v7 = vsel %vm11257_vm3, %v5606_v62, %v5610_v47  ;;  %10163 = vmatmul.mubr.msk.bf16.gmra.mrb[28].mxu1 %vm1929_vm2, %v8813_v11  ;;  %v5646_v9 = vshrl.u32 %v9233_v54, 16  ;;  %v8814_v14 = vcombine.low %v11075_v10, %v11076_v13  ;;  %v11079_v56 = vld [vmem:[%s11226_s25 + $0xb4] sm:$0xf]  ;;  %v11080_v57 = vld [vmem:[%s11226_s25 + $0xb8] sm:$0xf] }
 0x162   : > { %10430 = vmatprep.mubr.msk.bf16.mxu0 %vm1929_vm2, %v9362_v61  ;;  %v5629_v8 = vor.u32 %v5628_v0, %v5625_v63  ;;  %v5621_v16 = vsel %vm11257_vm3, %v5616_v2, %v5620_v59  ;;  %v5638_v17 = vrot.slane %v5636_v5, 4  ;;  %v5652_v20 = vshll.u32 %v9234_v1, 16  ;;  %v9241_v63 = vld [vmem:[%s11226_s25 + $0xf0] sm:$0xf]  ;;  %v9242_v5 = vld [vmem:[%s11226_s25 + $0xf4] sm:$0xf] }
 0x163   : > { %v5644_v18 = vrot.slane %v5642_v6, 5  ;;  %v9363_v22 = vcombine.low %v5611_v7, %v5621_v16  ;;  %10166 = vmatprep.mubr.msk.bf16.mxu1 %vm1929_vm2, %v8814_v14  ;;  %v5648_v24 = vrot.slane %v5646_v9, 4  ;;  %v5656_v25 = vshrl.u32 %v9234_v1, 16  ;;  %v11081_v9 = vld [vmem:[%s11226_s25 + $0xbc] sm:$0xf] }
 0x164   : > { %v5630_v23 = vrot.slane %v5629_v8, 4  ;;  %v5639_v27 = vor.u32 %v5638_v17, %v5634_v3  ;;  %v5654_v28 = vrot.slane %v5652_v20, 5  ;;  %v5662_v29 = vshll.u32 %v9235_v15, 16  ;;  %v11082_v10 = vld [vmem:[%s11226_s25 + $0xc0] sm:$0xf] }
 0x165   : > { %v8815_v4 = vcombine.low %v11077_v30, %v11078_v31  ;;  %10431 = vmatmul.mubr.msk.bf16.gmra.mrb[32].mxu0 %vm1929_vm2, %v9363_v22  ;;  %v5649_v33 = vor.u32 %v5648_v24, %v5644_v18  ;;  %v5658_v35 = vrot.slane %v5656_v25, 4  ;;  %v5667_v37 = vshrl.u32 %v9236_v21, 16  ;;  %v9243_v17 = vld [vmem:[%s11226_s25 + $0xf8] sm:$0xf] }
 0x166   : > { %v5635_v32 = vsel %vm11257_vm3, %v5630_v23, %v5634_v3  ;;  %v5640_v38 = vrot.slane %v5639_v27, 4  ;;  %v5664_v39 = vrot.slane %v5662_v29, 5  ;;  %v5670_v40 = vshll.u32 %v9236_v21, 16 }
 0x167   : > { %v5676_v41 = vshll.u32 %v9237_v26, 16  ;;  %v5650_v42 = vrot.slane %v5649_v33, 4  ;;  %v5659_v43 = vor.u32 %v5658_v35, %v5654_v28  ;;  %v5669_v44 = vrot.slane %v5667_v37, 4  ;;  %v11084_v37 = vld [vmem:[%s11226_s25 + $0xcc] sm:$0xf] }
 0x168   : > { %v5680_v45 = vshrl.u32 %v9237_v26, 16  ;;  %v5645_v46 = vsel %vm11257_vm3, %v5640_v38, %v5644_v18  ;;  %v5672_v47 = vrot.slane %v5670_v40, 5  ;;  %v5686_v49 = vshll.u32 %v9238_v36, 16 }
 0x169   : > { %v5678_v48 = vrot.slane %v5676_v41, 5  ;;  %v9364_v51 = vcombine.low %v5635_v32, %v5645_v46  ;;  %v5655_v52 = vsel %vm11257_vm3, %v5650_v42, %v5654_v28  ;;  %v5660_v53 = vrot.slane %v5659_v43, 4  ;;  %10167 = vmatmul.mubr.msk.bf16.gmra.mrb[32].mxu1 %vm1929_vm2, %v8815_v4  ;;  %v9244_v28 = vld [vmem:[%s11226_s25 + $0xfc] sm:$0xf] }
 0x16a   : > { %v5682_v11 = vrot.slane %v5680_v45, 4  ;;  %v5673_v19 = vor.u32 %v5672_v47, %v5669_v44  ;;  %v5688_v54 = vrot.slane %v5686_v49, 5  ;;  %v5690_v55 = vshrl.u32 %v9238_v36, 16  ;;  %v11083_v36 = vld [vmem:[%s11226_s25 + $0xc8] sm:$0xf] }
 0x16b   : > { %v8816_v58 = vcombine.low %v11079_v56, %v11080_v57  ;;  %10434 = vmatprep.mubr.msk.bf16.mxu0 %vm1929_vm2, %v9364_v51  ;;  %v5665_v59 = vsel %vm11257_vm3, %v5660_v53, %v5664_v39  ;;  %v5696_v61 = vshll.u32 %v9239_v50, 16  ;;  %v5700_v62 = vshrl.u32 %v9239_v50, 16  ;;  %v9245_v39 = vld [vmem:[%s11226_s25 + $0x100] sm:$0x1]  ;;  %v9246_v44 = vld [vmem:[%s11226_s25 + $0x104] sm:$0xf] }
 0x16c   : > { %v5683_v60 = vor.u32 %v5682_v11, %v5678_v48  ;;  %v9365_v0 = vcombine.low %v5655_v52, %v5665_v59  ;;  %v5674_v1 = vrot.slane %v5673_v19, 4  ;;  %v5692_v2 = vrot.slane %v5690_v55, 4  ;;  %v9247_v49 = vld [vmem:[%s11226_s25 + $0x108] sm:$0xf]  ;;  %v11085_v53 = vld [vmem:[%s11226_s25 + $0xd0] sm:$0xf] }
 0x16d   : > { %10170 = vmatprep.mubr.msk.bf16.mxu1 %vm1929_vm2, %v8816_v58  ;;  %v5706_v3 = vshll.u32 %v9240_v12, 16  ;;  %v5698_v7 = vrot.slane %v5696_v61, 5  ;;  %v5702_v8 = vrot.slane %v5700_v62, 4  ;;  %v8817_v13 = vcombine.low %v11081_v9, %v11082_v10  ;;  %v11086_v11 = vld [vmem:[%s11226_s25 + $0xd4] sm:$0xf] }
 0x16e   : > { %v5684_v6 = vrot.slane %v5683_v60, 4  ;;  %10435 = vmatmul.mubr.msk.bf16.gmra.mrb[36].mxu0 %vm1929_vm2, %v9365_v0  ;;  %v5679_v14 = vsel %vm11257_vm3, %v5674_v1, %v5678_v48  ;;  %v5693_v15 = vor.u32 %v5692_v2, %v5688_v54  ;;  %v5711_v18 = vshrl.u32 %v9241_v63, 16  ;;  %v9248_v59 = vld [vmem:[%s11226_s25 + $0x10c] sm:$0xf]  ;;  %v9249_v2 = vld [vmem:[%s11226_s25 + $0x110] sm:$0xf] }
 0x16f   : > { %v5708_v16 = vrot.slane %v5706_v3, 5  ;;  %v5703_v21 = vor.u32 %v5702_v8, %v5698_v7  ;;  %v5714_v22 = vshll.u32 %v9241_v63, 16  ;;  %v5720_v23 = vshll.u32 %v9242_v5, 16 }
 0x170   : > { %v5689_v20 = vsel %vm11257_vm3, %v5684_v6, %v5688_v54  ;;  %v5694_v25 = vrot.slane %v5693_v15, 4  ;;  %v5713_v26 = vrot.slane %v5711_v18, 4  ;;  %v5724_v27 = vshrl.u32 %v9242_v5, 16 }
 0x171   : > { %v9366_v24 = vcombine.low %v5679_v14, %v5689_v20  ;;  %v5704_v29 = vrot.slane %v5703_v21, 4  ;;  %10171 = vmatmul.mubr.msk.bf16.gmra.mrb[36].mxu1 %vm1929_vm2, %v8817_v13  ;;  %v5716_v30 = vrot.slane %v5714_v22, 5  ;;  %v5722_v31 = vrot.slane %v5720_v23, 5  ;;  %v9250_v20 = vld [vmem:[%s11226_s25 + $0x114] sm:$0x1] }
 0x172   : > { %v5730_v4 = vshll.u32 %v9243_v17, 16  ;;  %v5699_v32 = vsel %vm11257_vm3, %v5694_v25, %v5698_v7  ;;  %v5726_v33 = vrot.slane %v5724_v27, 4  ;;  %v5734_v35 = vshrl.u32 %v9243_v17, 16  ;;  %v11088_v17 = vld [vmem:[%s11226_s25 + $0xe0] sm:$0xf] }
 0x173   : > { %10438 = vmatprep.mubr.msk.bf16.mxu0 %vm1929_vm2, %v9366_v24  ;;  %v8818_v38 = vcombine.low %v11083_v36, %v11084_v37  ;;  %v5709_v40 = vsel %vm11257_vm3, %v5704_v29, %v5708_v16  ;;  %v5717_v41 = vor.u32 %v5716_v30, %v5713_v26  ;;  %v5740_v43 = vshll.u32 %v9244_v28, 16  ;;  %v11087_v16 = vld [vmem:[%s11226_s25 + $0xdc] sm:$0xf]  ;;  %v9251_v26 = vld [vmem:[%s11226_s25 + $0x118] sm:$0xf] }
 0x174   : > { %v5732_v42 = vrot.slane %v5730_v4, 5  ;;  %v9367_v45 = vcombine.low %v5699_v32, %v5709_v40  ;;  %v5727_v46 = vor.u32 %v5726_v33, %v5722_v31  ;;  %v5736_v47 = vrot.slane %v5734_v35, 4  ;;  %v11089_v35 = vld [vmem:[%s11226_s25 + $0xe4] sm:$0xf]  ;;  %v11090_v36 = vld [vmem:[%s11226_s25 + $0xe8] sm:$0xf] }
 0x175   : > { %10174 = vmatprep.mubr.msk.bf16.mxu1 %vm1929_vm2, %v8818_v38  ;;  %v5744_v48 = vshrl.u32 %v9244_v28, 16  ;;  %v5718_v50 = vrot.slane %v5717_v41, 4  ;;  %v5742_v51 = vrot.slane %v5740_v43, 5  ;;  %v5750_v52 = vshll.u32 %v9245_v39, 16 }
 0x176   : > { %v8819_v12 = vcombine.low %v11085_v53, %v11086_v11  ;;  %10439 = vmatmul.mubr.msk.bf16.gmra.mrb[40].mxu0 %vm1929_vm2, %v9367_v45  ;;  %v5728_v19 = vrot.slane %v5727_v46, 4  ;;  %v5737_v54 = vor.u32 %v5736_v47, %v5732_v42  ;;  %v5755_v56 = vshrl.u32 %v9246_v44, 16  ;;  %v9253_v45 = vld [vmem:[%s11226_s25 + $0x120] sm:$0xf] }
 0x177   : > { %v5746_v55 = vrot.slane %v5744_v48, 4  ;;  %v5723_v57 = vsel %vm11257_vm3, %v5718_v50, %v5722_v31  ;;  %v5752_v58 = vrot.slane %v5750_v52, 5  ;;  %v5758_v60 = vshll.u32 %v9246_v44, 16  ;;  %v9252_v31 = vld [vmem:[%s11226_s25 + $0x11c] sm:$0xf] }
 0x178   : > { %v5764_v61 = vshll.u32 %v9247_v49, 16  ;;  %v5733_v62 = vsel %vm11257_vm3, %v5728_v19, %v5732_v42  ;;  %v5738_v63 = vrot.slane %v5737_v54, 4  ;;  %v5757_v1 = vrot.slane %v5755_v56, 4 }
 0x179   : > { %v5747_v0 = vor.u32 %v5746_v55, %v5742_v51  ;;  %v9368_v3 = vcombine.low %v5723_v57, %v5733_v62  ;;  %10175 = vmatmul.mubr.msk.bf16.gmra.mrb[40].mxu1 %vm1929_vm2, %v8819_v12  ;;  %v5760_v5 = vrot.slane %v5758_v60, 5  ;;  %v5768_v7 = vshrl.u32 %v9247_v49, 16  ;;  %v9255_v57 = vld [vmem:[%s11226_s25 + $0x128] sm:$0x1]  ;;  %v11092_v60 = vld [vmem:[%s11226_s25 + $0xf4] sm:$0xf] }
 0x17a   : > { %v5766_v6 = vrot.slane %v5764_v61, 5  ;;  %v5743_v8 = vsel %vm11257_vm3, %v5738_v63, %v5742_v51  ;;  %v5774_v10 = vshll.u32 %v9248_v59, 16  ;;  %v5778_v13 = vshrl.u32 %v9248_v59, 16  ;;  %v9254_v51 = vld [vmem:[%s11226_s25 + $0x124] sm:$0xf] }
 0x17b   : > { %v5748_v9 = vrot.slane %v5747_v0, 4  ;;  %10442 = vmatprep.mubr.msk.bf16.mxu0 %vm1929_vm2, %v9368_v3  ;;  %v5761_v14 = vor.u32 %v5760_v5, %v5757_v1  ;;  %v5770_v15 = vrot.slane %v5768_v7, 4  ;;  %v8820_v18 = vcombine.low %v11087_v16, %v11088_v17  ;;  %v11091_v59 = vld [vmem:[%s11226_s25 + $0xf0] sm:$0xf]  ;;  %v9256_v0 = vld [vmem:[%s11226_s25 + $0x12c] sm:$0xf] }
 0x17c   : > { %v5784_v21 = vshll.u32 %v9249_v2, 16  ;;  %v5776_v23 = vrot.slane %v5774_v10, 5  ;;  %v5780_v24 = vrot.slane %v5778_v13, 4  ;;  %v5788_v25 = vshrl.u32 %v9249_v2, 16  ;;  %v9257_v10 = vld [vmem:[%s11226_s25 + $0x130] sm:$0xf] }
 0x17d   : > { %v5753_v22 = vsel %vm11257_vm3, %v5748_v9, %v5752_v58  ;;  %v5762_v28 = vrot.slane %v5761_v14, 4  ;;  %v5771_v29 = vor.u32 %v5770_v15, %v5766_v6  ;;  %10178 = vmatprep.mubr.msk.bf16.mxu1 %vm1929_vm2, %v8820_v18  ;;  %v5794_v33 = vshll.u32 %v9250_v20, 16  ;;  %v11093_v15 = vld [vmem:[%s11226_s25 + $0xf8] sm:$0xf]  ;;  %v11094_v16 = vld [vmem:[%s11226_s25 + $0xfc] sm:$0xf] }
 0x17e   : > { %v9369_v27 = vcombine.low %v5743_v8, %v5753_v22  ;;  %v5786_v30 = vrot.slane %v5784_v21, 5  ;;  %v5781_v4 = vor.u32 %v5780_v24, %v5776_v23  ;;  %v5790_v32 = vrot.slane %v5788_v25, 4 }
 0x17f   : > { %v8821_v37 = vcombine.low %v11089_v35, %v11090_v36  ;;  %v5767_v38 = vsel %vm11257_vm3, %v5762_v28, %v5766_v6  ;;  %v5772_v39 = vrot.slane %v5771_v29, 4  ;;  %v5799_v40 = vshrl.u32 %v9251_v26, 16 }
 0x180   : > { %10443 = vmatmul.mubr.msk.bf16.gmra.mrb[44].mxu0 %vm1929_vm2, %v9369_v27  ;;  %v5802_v41 = vshll.u32 %v9251_v26, 16  ;;  %v5782_v42 = vrot.slane %v5781_v4, 4  ;;  %v5791_v43 = vor.u32 %v5790_v32, %v5786_v30  ;;  %v5796_v44 = vrot.slane %v5794_v33, 5  ;;  %v9259_v32 = vld [vmem:[%s11226_s25 + $0x138] sm:$0xf] }
 0x181   : > { %v5808_v46 = vshll.u32 %v9252_v31, 16  ;;  %v5777_v47 = vsel %vm11257_vm3, %v5772_v39, %v5776_v23  ;;  %10179 = vmatmul.mubr.msk.bf16.gmra.mrb[44].mxu1 %vm1929_vm2, %v8821_v37  ;;  %v5801_v48 = vrot.slane %v5799_v40, 4  ;;  %v5812_v50 = vshrl.u32 %v9252_v31, 16  ;;  %v9258_v23 = vld [vmem:[%s11226_s25 + $0x134] sm:$0xf] }
 0x182   : > { %v5804_v49 = vrot.slane %v5802_v41, 5  ;;  %v9370_v52 = vcombine.low %v5767_v38, %v5777_v47  ;;  %v5787_v53 = vsel %vm11257_vm3, %v5782_v42, %v5786_v30  ;;  %v5792_v11 = vrot.slane %v5791_v43, 4  ;;  %v9260_v38 = vld [vmem:[%s11226_s25 + $0x13c] sm:$0x1]  ;;  %v11095_v42 = vld [vmem:[%s11226_s25 + $0x104] sm:$0xf] }
 0x183   : > { %v5810_v12 = vrot.slane %v5808_v46, 5  ;;  %v5814_v54 = vrot.slane %v5812_v50, 4  ;;  %v5818_v55 = vshll.u32 %v9253_v45, 16  ;;  %v5822_v56 = vshrl.u32 %v9253_v45, 16  ;;  %v11096_v43 = vld [vmem:[%s11226_s25 + $0x108] sm:$0xf] }
 0x184   : > { %v5805_v19 = vor.u32 %v5804_v49, %v5801_v48  ;;  %10446 = vmatprep.mubr.msk.bf16.mxu0 %vm1929_vm2, %v9370_v52  ;;  %v5797_v58 = vsel %vm11257_vm3, %v5792_v11, %v5796_v44  ;;  %v8822_v61 = vcombine.low %v11091_v59, %v11092_v60  ;;  %v5828_v62 = vshll.u32 %v9254_v51, 16  ;;  %v9261_v45 = vld [vmem:[%s11226_s25 + $0x140] sm:$0xf] }
 0x185   : > { %v5832_v63 = vshrl.u32 %v9254_v51, 16  ;;  %v9371_v1 = vcombine.low %v5787_v53, %v5797_v58  ;;  %v5815_v3 = vor.u32 %v5814_v54, %v5810_v12  ;;  %v5820_v5 = vrot.slane %v5818_v55, 5  ;;  %v11098_v54 = vld [vmem:[%s11226_s25 + $0x110] sm:$0xf] }
 0x186   : > { %v5806_v2 = vrot.slane %v5805_v19, 4  ;;  %10182 = vmatprep.mubr.msk.bf16.mxu1 %vm1929_vm2, %v8822_v61  ;;  %v5824_v6 = vrot.slane %v5822_v56, 4  ;;  %v5830_v7 = vrot.slane %v5828_v62, 5  ;;  %v5838_v9 = vshll.u32 %v9255_v57, 16  ;;  %v11097_v19 = vld [vmem:[%s11226_s25 + $0x10c] sm:$0xf] }
 0x187   : > { %v5834_v8 = vrot.slane %v5832_v63, 4  ;;  %v5816_v14 = vrot.slane %v5815_v3, 4  ;;  %v8823_v17 = vcombine.low %v11093_v15, %v11094_v16  ;;  %v5843_v18 = vshrl.u32 %v9256_v0, 16  ;;  %v9262_v56 = vld [vmem:[%s11226_s25 + $0x144] sm:$0xf] }
 0x188   : > { %10447 = vmatmul.mubr.msk.bf16.gmra.mrb[48].mxu0 %vm1929_vm2, %v9371_v1  ;;  %v5811_v13 = vsel %vm11257_vm3, %v5806_v2, %v5810_v12  ;;  %v5825_v20 = vor.u32 %v5824_v6, %v5820_v5  ;;  %v5840_v22 = vrot.slane %v5838_v9, 5  ;;  %v5846_v24 = vshll.u32 %v9256_v0, 16  ;;  %v9263_v62 = vld [vmem:[%s11226_s25 + $0x148] sm:$0xf]  ;;  %v9265_v15 = vld [vmem:[%s11226_s25 + $0x150] sm:$0x1] }
 0x189   : > { %v5835_v21 = vor.u32 %v5834_v8, %v5830_v7  ;;  %v5821_v25 = vsel %vm11257_vm3, %v5816_v14, %v5820_v5  ;;  %10183 = vmatmul.mubr.msk.bf16.gmra.mrb[48].mxu1 %vm1929_vm2, %v8823_v17  ;;  %v5845_v26 = vrot.slane %v5843_v18, 4  ;;  %v5852_v27 = vshll.u32 %v9257_v10, 16  ;;  %v9264_v8 = vld [vmem:[%s11226_s25 + $0x14c] sm:$0xf] }
 0x18a   : > { %v5856_v28 = vshrl.u32 %v9257_v10, 16  ;;  %v9372_v29 = vcombine.low %v5811_v13, %v5821_v25  ;;  %v5826_v30 = vrot.slane %v5825_v20, 4  ;;  %v5848_v4 = vrot.slane %v5846_v24, 5  ;;  %v11099_v20 = vld [vmem:[%s11226_s25 + $0x118] sm:$0xf] }
 0x18b   : > { %v5836_v31 = vrot.slane %v5835_v21, 4  ;;  %v5854_v33 = vrot.slane %v5852_v27, 5  ;;  %v5862_v36 = vshll.u32 %v9258_v23, 16  ;;  %v5866_v37 = vshrl.u32 %v9258_v23, 16  ;;  %v11100_v21 = vld [vmem:[%s11226_s25 + $0x11c] sm:$0xf] }
 0x18c   : > { %v5858_v35 = vrot.slane %v5856_v28, 4  ;;  %10450 = vmatprep.mubr.msk.bf16.mxu0 %vm1929_vm2, %v9372_v29  ;;  %v5831_v39 = vsel %vm11257_vm3, %v5826_v30, %v5830_v7  ;;  %v5849_v41 = vor.u32 %v5848_v4, %v5845_v26  ;;  %v8824_v44 = vcombine.low %v11095_v42, %v11096_v43 }
 0x18d   : > { %v5841_v40 = vsel %vm11257_vm3, %v5836_v31, %v5840_v22  ;;  %v5864_v48 = vrot.slane %v5862_v36, 5  ;;  %v5868_v49 = vrot.slane %v5866_v37, 4  ;;  %v5872_v51 = vshll.u32 %v9259_v32, 16  ;;  %v9266_v31 = vld [vmem:[%s11226_s25 + $0x154] sm:$0xf] }
 0x18e   : > { %v9373_v46 = vcombine.low %v5831_v39, %v5841_v40  ;;  %v5859_v47 = vor.u32 %v5858_v35, %v5854_v33  ;;  %v5850_v50 = vrot.slane %v5849_v41, 4  ;;  %10186 = vmatprep.mubr.msk.bf16.mxu1 %vm1929_vm2, %v8824_v44  ;;  %v5876_v52 = vshrl.u32 %v9259_v32, 16  ;;  %v9267_v36 = vld [vmem:[%s11226_s25 + $0x158] sm:$0xf]  ;;  %v11101_v40 = vld [vmem:[%s11226_s25 + $0x120] sm:$0xf] }
 0x18f   : > { %v5882_v53 = vshll.u32 %v9260_v38, 16  ;;  %v5869_v12 = vor.u32 %v5868_v49, %v5864_v48  ;;  %v8825_v55 = vcombine.low %v11097_v19, %v11098_v54  ;;  %v5887_v57 = vshrl.u32 %v9261_v45, 16  ;;  %v11102_v41 = vld [vmem:[%s11226_s25 + $0x124] sm:$0xf] }
 0x190   : > { %10451 = vmatmul.mubr.msk.bf16.gmra.mrb[52].mxu0 %vm1929_vm2, %v9373_v46  ;;  %v5860_v11 = vrot.slane %v5859_v47, 4  ;;  %v5855_v58 = vsel %vm11257_vm3, %v5850_v50, %v5854_v33  ;;  %v5874_v59 = vrot.slane %v5872_v51, 5  ;;  %v5878_v60 = vrot.slane %v5876_v52, 4  ;;  %v9269_v52 = vld [vmem:[%s11226_s25 + $0x160] sm:$0xf] }
 0x191   : > { %v5884_v61 = vrot.slane %v5882_v53, 5  ;;  %v5870_v0 = vrot.slane %v5869_v12, 4  ;;  %10187 = vmatmul.mubr.msk.bf16.gmra.mrb[52].mxu1 %vm1929_vm2, %v8825_v55  ;;  %v5889_v1 = vrot.slane %v5887_v57, 4  ;;  %v5890_v2 = vshll.u32 %v9261_v45, 16  ;;  %v9268_v45 = vld [vmem:[%s11226_s25 + $0x15c] sm:$0xf] }
 0x192   : > { %v5865_v63 = vsel %vm11257_vm3, %v5860_v11, %v5864_v48  ;;  %v5879_v5 = vor.u32 %v5878_v60, %v5874_v59  ;;  %v5896_v6 = vshll.u32 %v9262_v56, 16  ;;  %v5900_v7 = vshrl.u32 %v9262_v56, 16  ;;  %v11103_v60 = vld [vmem:[%s11226_s25 + $0x12c] sm:$0xf] }
 0x193   : > { %v9374_v3 = vcombine.low %v5855_v58, %v5865_v63  ;;  %v5875_v9 = vsel %vm11257_vm3, %v5870_v0, %v5874_v59  ;;  %v5892_v10 = vrot.slane %v5890_v2, 5  ;;  %v5906_v13 = vshll.u32 %v9263_v62, 16  ;;  %v9270_v63 = vld [vmem:[%s11226_s25 + $0x164] sm:$0x1] }
 0x194   : > { %v5910_v14 = vshrl.u32 %v9263_v62, 16  ;;  %v5880_v16 = vrot.slane %v5879_v5, 4  ;;  %v5898_v17 = vrot.slane %v5896_v6, 5  ;;  %v5902_v18 = vrot.slane %v5900_v7, 4  ;;  %v9271_v6 = vld [vmem:[%s11226_s25 + $0x168] sm:$0xf] }
 0x195   : > { %10454 = vmatprep.mubr.msk.bf16.mxu0 %vm1929_vm2, %v9374_v3  ;;  %v8826_v22 = vcombine.low %v11099_v20, %v11100_v21  ;;  %v5893_v23 = vor.u32 %v5892_v10, %v5889_v1  ;;  %v5908_v24 = vrot.slane %v5906_v13, 5  ;;  %v5916_v26 = vshll.u32 %v9264_v8, 16  ;;  %v9272_v13 = vld [vmem:[%s11226_s25 + $0x16c] sm:$0xf] }
 0x196   : > { %v5912_v25 = vrot.slane %v5910_v14, 4  ;;  %v5885_v27 = vsel %vm11257_vm3, %v5880_v16, %v5884_v61  ;;  %v5903_v28 = vor.u32 %v5902_v18, %v5898_v17  ;;  %v5920_v29 = vshrl.u32 %v9264_v8, 16  ;;  %v11104_v61 = vld [vmem:[%s11226_s25 + $0x130] sm:$0xf]  ;;  %v11106_v18 = vld [vmem:[%s11226_s25 + $0x138] sm:$0xf] }
 0x197   : > { %10190 = vmatprep.mubr.msk.bf16.mxu1 %vm1929_vm2, %v8826_v22  ;;  %v5926_v30 = vshll.u32 %v9265_v15, 16  ;;  %v9375_v4 = vcombine.low %v5875_v9, %v5885_v27  ;;  %v5894_v32 = vrot.slane %v5893_v23, 4  ;;  %v5918_v35 = vrot.slane %v5916_v26, 5  ;;  %v9273_v23 = vld [vmem:[%s11226_s25 + $0x170] sm:$0xf] }
 0x198   : > { %v5913_v33 = vor.u32 %v5912_v25, %v5908_v24  ;;  %v5904_v37 = vrot.slane %v5903_v28, 4  ;;  %v5922_v38 = vrot.slane %v5920_v29, 4  ;;  %v8827_v42 = vcombine.low %v11101_v40, %v11102_v41 }
 0x199   : > { %v5928_v39 = vrot.slane %v5926_v30, 5  ;;  %10455 = vmatmul.mubr.msk.bf16.gmra.mrb[56].mxu0 %vm1929_vm2, %v9375_v4  ;;  %v5899_v43 = vsel %vm11257_vm3, %v5894_v32, %v5898_v17  ;;  %v5931_v46 = vshrl.u32 %v9266_v31, 16  ;;  %v5934_v47 = vshll.u32 %v9266_v31, 16  ;;  %v11105_v17 = vld [vmem:[%s11226_s25 + $0x134] sm:$0xf] }
 0x19a   : > { %v5914_v44 = vrot.slane %v5913_v33, 4  ;;  %v5909_v48 = vsel %vm11257_vm3, %v5904_v37, %v5908_v24  ;;  %v5923_v49 = vor.u32 %v5922_v38, %v5918_v35  ;;  %10191 = vmatmul.mubr.msk.bf16.gmra.mrb[56].mxu1 %vm1929_vm2, %v8827_v42  ;;  %v5940_v50 = vshll.u32 %v9267_v36, 16  ;;  %v9274_v33 = vld [vmem:[%s11226_s25 + $0x174] sm:$0xf]  ;;  %v11107_v42 = vld [vmem:[%s11226_s25 + $0x140] sm:$0xf] }
 0x19b   : > { %v5944_v51 = vshrl.u32 %v9267_v36, 16  ;;  %v9376_v53 = vcombine.low %v5899_v43, %v5909_v48  ;;  %v5933_v12 = vrot.slane %v5931_v46, 4  ;;  %v5936_v19 = vrot.slane %v5934_v47, 5  ;;  %v11108_v43 = vld [vmem:[%s11226_s25 + $0x144] sm:$0xf] }
 0x19c   : > { %v5919_v11 = vsel %vm11257_vm3, %v5914_v44, %v5918_v35  ;;  %v5924_v54 = vrot.slane %v5923_v49, 4  ;;  %v5942_v55 = vrot.slane %v5940_v50, 5  ;;  %v5950_v57 = vshll.u32 %v9268_v45, 16  ;;  %v9276_v50 = vld [vmem:[%s11226_s25 + $0x17c] sm:$0xf] }
 0x19d   : > { %v5946_v56 = vrot.slane %v5944_v51, 4  ;;  %10458 = vmatprep.mubr.msk.bf16.mxu0 %vm1929_vm2, %v9376_v53  ;;  %v5937_v58 = vor.u32 %v5936_v19, %v5933_v12  ;;  %v5954_v59 = vshrl.u32 %v9268_v45, 16  ;;  %v8828_v62 = vcombine.low %v11103_v60, %v11104_v61  ;;  %v9275_v45 = vld [vmem:[%s11226_s25 + $0x178] sm:$0x1]  ;;  %v9277_v12 = vld [vmem:[%s11226_s25 + $0x180] sm:$0xf] }
 0x19e   : > { %v5960_v0 = vshll.u32 %v9269_v52, 16  ;;  %v5929_v1 = vsel %vm11257_vm3, %v5924_v54, %v5928_v39  ;;  %v5952_v3 = vrot.slane %v5950_v57, 5  ;;  %v5964_v5 = vshrl.u32 %v9269_v52, 16  ;;  %v11110_v57 = vld [vmem:[%s11226_s25 + $0x14c] sm:$0xf] }
 0x19f   : > { %v5947_v2 = vor.u32 %v5946_v56, %v5942_v55  ;;  %v9377_v7 = vcombine.low %v5919_v11, %v5929_v1  ;;  %v5938_v8 = vrot.slane %v5937_v58, 4  ;;  %10194 = vmatprep.mubr.msk.bf16.mxu1 %vm1929_vm2, %v8828_v62  ;;  %v5956_v9 = vrot.slane %v5954_v59, 4  ;;  %v11109_v56 = vld [vmem:[%s11226_s25 + $0x148] sm:$0xf]  ;;  %v9278_v62 = vld [vmem:[%s11226_s25 + $0x184] sm:$0xf] }
 0x1a0   : > { %v5962_v10 = vrot.slane %v5960_v0, 5  ;;  %v5966_v15 = vrot.slane %v5964_v5, 4  ;;  %v5970_v16 = vshll.u32 %v9270_v63, 16  ;;  %v8829_v20 = vcombine.low %v11105_v17, %v11106_v18 }
 0x1a1   : > { %v5948_v14 = vrot.slane %v5947_v2, 4  ;;  %10459 = vmatmul.mubr.msk.bf16.gmra.mrb[60].mxu0 %vm1929_vm2, %v9377_v7  ;;  %v5943_v21 = vsel %vm11257_vm3, %v5938_v8, %v5942_v55  ;;  %v5957_v22 = vor.u32 %v5956_v9, %v5952_v3  ;;  %v5975_v24 = vshrl.u32 %v9271_v6, 16 }
 0x1a2   : > { %v5978_v25 = vshll.u32 %v9271_v6, 16  ;;  %v5967_v27 = vor.u32 %v5966_v15, %v5962_v10  ;;  %v5972_v28 = vrot.slane %v5970_v16, 5  ;;  %10195 = vmatmul.mubr.msk.bf16.gmra.mrb[60].mxu1 %vm1929_vm2, %v8829_v20  ;;  %v5984_v29 = vshll.u32 %v9272_v13, 16  ;;  %v9279_v15 = vld [vmem:[%s11226_s25 + $0x188] sm:$0xf] }
 0x1a3   : > { %v5953_v26 = vsel %vm11257_vm3, %v5948_v14, %v5952_v3  ;;  %v5958_v31 = vrot.slane %v5957_v22, 4  ;;  %v5977_v4 = vrot.slane %v5975_v24, 4  ;;  %v5988_v37 = vshrl.u32 %v9272_v13, 16 }
 0x1a4   : > { %v9378_v30 = vcombine.low %v5943_v21, %v5953_v26  ;;  %v5980_v32 = vrot.slane %v5978_v25, 5  ;;  %v5968_v35 = vrot.slane %v5967_v27, 4  ;;  %v5986_v36 = vrot.slane %v5984_v29, 5  ;;  %v9280_v21 = vld [vmem:[%s11226_s25 + $0x18c] sm:$0x1] }
 0x1a5   : > { %v5994_v38 = vshll.u32 %v9273_v23, 16  ;;  %v5963_v39 = vsel %vm11257_vm3, %v5958_v31, %v5962_v10  ;;  %v5998_v41 = vshrl.u32 %v9273_v23, 16  ;;  %v8830_v44 = vcombine.low %v11107_v42, %v11108_v43  ;;  %v11111_v25 = vld [vmem:[%s11226_s25 + $0x154] sm:$0xf]  ;;  %v11112_v26 = vld [vmem:[%s11226_s25 + $0x158] sm:$0xf] }
 0x1a6   : > { %10462 = vmatprep.mubr.msk.bf16.mxu0 %vm1929_vm2, %v9378_v30  ;;  %v5981_v40 = vor.u32 %v5980_v32, %v5977_v4  ;;  %v5973_v46 = vsel %vm11257_vm3, %v5968_v35, %v5972_v28  ;;  %v5990_v47 = vrot.slane %v5988_v37, 4  ;;  %v6004_v49 = vshll.u32 %v9274_v33, 16  ;;  %v9281_v4 = vld [vmem:[%s11226_s25 + $0x190] sm:$0xf]  ;;  %v9282_v37 = vld [vmem:[%s11226_s25 + $0x194] sm:$0xf] }
 0x1a7   : > { %v5996_v48 = vrot.slane %v5994_v38, 5  ;;  %v9379_v51 = vcombine.low %v5963_v39, %v5973_v46  ;;  %10198 = vmatprep.mubr.msk.bf16.mxu1 %vm1929_vm2, %v8830_v44  ;;  %v6000_v53 = vrot.slane %v5998_v41, 4  ;;  %v6008_v11 = vshrl.u32 %v9274_v33, 16  ;;  %v11113_v41 = vld [vmem:[%s11226_s25 + $0x15c] sm:$0xf] }
 0x1a8   : > { %v5982_v52 = vrot.slane %v5981_v40, 4  ;;  %v5991_v19 = vor.u32 %v5990_v47, %v5986_v36  ;;  %v6006_v54 = vrot.slane %v6004_v49, 5  ;;  %v6014_v55 = vshll.u32 %v9275_v45, 16  ;;  %v11114_v42 = vld [vmem:[%s11226_s25 + $0x160] sm:$0xf] }
 0x1a9   : > { %v8831_v58 = vcombine.low %v11109_v56, %v11110_v57  ;;  %10463 = vmatmul.mubr.msk.bf16.gmra.mrb[64].mxu0 %vm1929_vm2, %v9379_v51  ;;  %v6001_v60 = vor.u32 %v6000_v53, %v5996_v48  ;;  %v6010_v61 = vrot.slane %v6008_v11, 4  ;;  %v6019_v63 = vshrl.u32 %v9276_v50, 16  ;;  %v9283_v47 = vld [vmem:[%s11226_s25 + $0x198] sm:$0xf] }
 0x1aa   : > { %v5987_v59 = vsel %vm11257_vm3, %v5982_v52, %v5986_v36  ;;  %v5992_v0 = vrot.slane %v5991_v19, 4  ;;  %v6016_v1 = vrot.slane %v6014_v55, 5  ;;  %v6022_v2 = vshll.u32 %v9276_v50, 16 }
 0x1ab   : > { %10199 = vmatmul.mubr.msk.bf16.gmra.mrb[64].mxu1 %vm1929_vm2, %v8831_v58  ;;  %v6028_v3 = vshll.u32 %v9277_v12, 16  ;;  %v6002_v5 = vrot.slane %v6001_v60, 4  ;;  %v6011_v6 = vor.u32 %v6010_v61, %v6006_v54  ;;  %v6021_v7 = vrot.slane %v6019_v63, 4  ;;  %v11116_v63 = vld [vmem:[%s11226_s25 + $0x16c] sm:$0xf] }
 0x1ac   : > { %v6032_v8 = vshrl.u32 %v9277_v12, 16  ;;  %v5997_v9 = vsel %vm11257_vm3, %v5992_v0, %v5996_v48  ;;  %v6024_v10 = vrot.slane %v6022_v2, 5  ;;  %v6038_v14 = vshll.u32 %v9278_v62, 16 }
 0x1ad   : > { %v6030_v13 = vrot.slane %v6028_v3, 5  ;;  %v9380_v16 = vcombine.low %v5987_v59, %v5997_v9  ;;  %v6007_v17 = vsel %vm11257_vm3, %v6002_v5, %v6006_v54  ;;  %v6012_v18 = vrot.slane %v6011_v6, 4  ;;  %v9284_v54 = vld [vmem:[%s11226_s25 + $0x19c] sm:$0xf] }
 0x1ae   : > { %v6034_v20 = vrot.slane %v6032_v8, 4  ;;  %v6025_v22 = vor.u32 %v6024_v10, %v6021_v7  ;;  %v6040_v23 = vrot.slane %v6038_v14, 5  ;;  %v6042_v24 = vshrl.u32 %v9278_v62, 16  ;;  %v11115_v62 = vld [vmem:[%s11226_s25 + $0x168] sm:$0xf] }
 0x1af   : > { %v8832_v27 = vcombine.low %v11111_v25, %v11112_v26  ;;  %10466 = vmatprep.mubr.msk.bf16.mxu0 %vm1929_vm2, %v9380_v16  ;;  %v6017_v28 = vsel %vm11257_vm3, %v6012_v18, %v6016_v1  ;;  %v6048_v30 = vshll.u32 %v9279_v15, 16  ;;  %v6052_v31 = vshrl.u32 %v9279_v15, 16  ;;  %v9285_v1 = vld [vmem:[%s11226_s25 + $0x1a0] sm:$0x1]  ;;  %v9286_v7 = vld [vmem:[%s11226_s25 + $0x1a4] sm:$0xf] }
 0x1b0   : > { %v6035_v29 = vor.u32 %v6034_v20, %v6030_v13  ;;  %v9381_v32 = vcombine.low %v6007_v17, %v6017_v28  ;;  %v6026_v33 = vrot.slane %v6025_v22, 4  ;;  %v6044_v35 = vrot.slane %v6042_v24, 4  ;;  %v9287_v14 = vld [vmem:[%s11226_s25 + $0x1a8] sm:$0xf]  ;;  %v11117_v18 = vld [vmem:[%s11226_s25 + $0x170] sm:$0xf] }
 0x1b1   : > { %10202 = vmatprep.mubr.msk.bf16.mxu1 %vm1929_vm2, %v8832_v27  ;;  %v6058_v36 = vshll.u32 %v9280_v21, 16  ;;  %v6050_v39 = vrot.slane %v6048_v30, 5  ;;  %v6054_v40 = vrot.slane %v6052_v31, 4  ;;  %v8833_v43 = vcombine.low %v11113_v41, %v11114_v42  ;;  %v11118_v20 = vld [vmem:[%s11226_s25 + $0x174] sm:$0xf] }
 0x1b2   : > { %v6036_v38 = vrot.slane %v6035_v29, 4  ;;  %10467 = vmatmul.mubr.msk.bf16.gmra.mrb[68].mxu0 %vm1929_vm2, %v9381_v32  ;;  %v6031_v44 = vsel %vm11257_vm3, %v6026_v33, %v6030_v13  ;;  %v6045_v45 = vor.u32 %v6044_v35, %v6040_v23  ;;  %v6063_v48 = vshrl.u32 %v9281_v4, 16  ;;  %v9288_v28 = vld [vmem:[%s11226_s25 + $0x1ac] sm:$0xf]  ;;  %v9289_v35 = vld [vmem:[%s11226_s25 + $0x1b0] sm:$0xf] }
 0x1b3   : > { %v6060_v46 = vrot.slane %v6058_v36, 5  ;;  %v6055_v50 = vor.u32 %v6054_v40, %v6050_v39  ;;  %10203 = vmatmul.mubr.msk.bf16.gmra.mrb[68].mxu1 %vm1929_vm2, %v8833_v43  ;;  %v6066_v51 = vshll.u32 %v9281_v4, 16  ;;  %v6072_v52 = vshll.u32 %v9282_v37, 16 }
 0x1b4   : > { %v6041_v49 = vsel %vm11257_vm3, %v6036_v38, %v6040_v23  ;;  %v6046_v11 = vrot.slane %v6045_v45, 4  ;;  %v6065_v12 = vrot.slane %v6063_v48, 4  ;;  %v6076_v19 = vshrl.u32 %v9282_v37, 16 }
 0x1b5   : > { %v9382_v53 = vcombine.low %v6031_v44, %v6041_v49  ;;  %v6056_v55 = vrot.slane %v6055_v50, 4  ;;  %v6068_v56 = vrot.slane %v6066_v51, 5  ;;  %v6074_v57 = vrot.slane %v6072_v52, 5  ;;  %v9290_v49 = vld [vmem:[%s11226_s25 + $0x1b4] sm:$0x1] }
 0x1b6   : > { %v6082_v58 = vshll.u32 %v9283_v47, 16  ;;  %v6051_v59 = vsel %vm11257_vm3, %v6046_v11, %v6050_v39  ;;  %v6078_v60 = vrot.slane %v6076_v19, 4  ;;  %v6086_v61 = vshrl.u32 %v9283_v47, 16  ;;  %v11120_v47 = vld [vmem:[%s11226_s25 + $0x180] sm:$0xf] }
 0x1b7   : > { %10470 = vmatprep.mubr.msk.bf16.mxu0 %vm1929_vm2, %v9382_v53  ;;  %v8834_v0 = vcombine.low %v11115_v62, %v11116_v63  ;;  %v6061_v2 = vsel %vm11257_vm3, %v6056_v55, %v6060_v46  ;;  %v6069_v3 = vor.u32 %v6068_v56, %v6065_v12  ;;  %v6092_v6 = vshll.u32 %v9284_v54, 16  ;;  %v11119_v46 = vld [vmem:[%s11226_s25 + $0x17c] sm:$0xf]  ;;  %v9291_v12 = vld [vmem:[%s11226_s25 + $0x1b8] sm:$0xf] }
 0x1b8   : > { %v6084_v5 = vrot.slane %v6082_v58, 5  ;;  %v9383_v8 = vcombine.low %v6051_v59, %v6061_v2  ;;  %v6079_v9 = vor.u32 %v6078_v60, %v6074_v57  ;;  %v6088_v10 = vrot.slane %v6086_v61, 4  ;;  %v11121_v61 = vld [vmem:[%s11226_s25 + $0x184] sm:$0xf]  ;;  %v11122_v62 = vld [vmem:[%s11226_s25 + $0x188] sm:$0xf] }
 0x1b9   : > { %10206 = vmatprep.mubr.msk.bf16.mxu1 %vm1929_vm2, %v8834_v0  ;;  %v6096_v13 = vshrl.u32 %v9284_v54, 16  ;;  %v6070_v15 = vrot.slane %v6069_v3, 4  ;;  %v6094_v16 = vrot.slane %v6092_v6, 5  ;;  %v6102_v17 = vshll.u32 %v9285_v1, 16 }
 0x1ba   : > { %v8835_v21 = vcombine.low %v11117_v18, %v11118_v20  ;;  %10471 = vmatmul.mubr.msk.bf16.gmra.mrb[72].mxu0 %vm1929_vm2, %v9383_v8  ;;  %v6080_v22 = vrot.slane %v6079_v9, 4  ;;  %v6089_v23 = vor.u32 %v6088_v10, %v6084_v5  ;;  %v6107_v25 = vshrl.u32 %v9286_v7, 16  ;;  %v9293_v8 = vld [vmem:[%s11226_s25 + $0x1c0] sm:$0xf] }
 0x1bb   : > { %v6098_v24 = vrot.slane %v6096_v13, 4  ;;  %v6075_v26 = vsel %vm11257_vm3, %v6070_v15, %v6074_v57  ;;  %v6104_v27 = vrot.slane %v6102_v17, 5  ;;  %v6110_v29 = vshll.u32 %v9286_v7, 16  ;;  %v9292_v57 = vld [vmem:[%s11226_s25 + $0x1bc] sm:$0xf] }
 0x1bc   : > { %10207 = vmatmul.mubr.msk.bf16.gmra.mrb[72].mxu1 %vm1929_vm2, %v8835_v21  ;;  %v6116_v30 = vshll.u32 %v9287_v14, 16  ;;  %v6085_v31 = vsel %vm11257_vm3, %v6080_v22, %v6084_v5  ;;  %v6090_v4 = vrot.slane %v6089_v23, 4  ;;  %v6109_v33 = vrot.slane %v6107_v25, 4 }
 0x1bd   : > { %v6099_v32 = vor.u32 %v6098_v24, %v6094_v16  ;;  %v9384_v36 = vcombine.low %v6075_v26, %v6085_v31  ;;  %v6112_v37 = vrot.slane %v6110_v29, 5  ;;  %v6120_v39 = vshrl.u32 %v9287_v14, 16  ;;  %v9295_v26 = vld [vmem:[%s11226_s25 + $0x1c8] sm:$0x1]  ;;  %v11124_v29 = vld [vmem:[%s11226_s25 + $0x194] sm:$0xf] }
 0x1be   : > { %v6118_v38 = vrot.slane %v6116_v30, 5  ;;  %v6095_v40 = vsel %vm11257_vm3, %v6090_v4, %v6094_v16  ;;  %v6126_v42 = vshll.u32 %v9288_v28, 16  ;;  %v6130_v43 = vshrl.u32 %v9288_v28, 16  ;;  %v9294_v16 = vld [vmem:[%s11226_s25 + $0x1c4] sm:$0xf] }
 0x1bf   : > { %v6100_v41 = vrot.slane %v6099_v32, 4  ;;  %10474 = vmatprep.mubr.msk.bf16.mxu0 %vm1929_vm2, %v9384_v36  ;;  %v6113_v44 = vor.u32 %v6112_v37, %v6109_v33  ;;  %v6122_v45 = vrot.slane %v6120_v39, 4  ;;  %v8836_v48 = vcombine.low %v11119_v46, %v11120_v47  ;;  %v11123_v28 = vld [vmem:[%s11226_s25 + $0x190] sm:$0xf]  ;;  %v9296_v32 = vld [vmem:[%s11226_s25 + $0x1cc] sm:$0xf] }
 0x1c0   : > { %v6136_v50 = vshll.u32 %v9289_v35, 16  ;;  %v6128_v52 = vrot.slane %v6126_v42, 5  ;;  %v6132_v53 = vrot.slane %v6130_v43, 4  ;;  %v6140_v11 = vshrl.u32 %v9289_v35, 16  ;;  %v9297_v42 = vld [vmem:[%s11226_s25 + $0x1d0] sm:$0xf] }
 0x1c1   : > { %v6105_v51 = vsel %vm11257_vm3, %v6100_v41, %v6104_v27  ;;  %v6114_v54 = vrot.slane %v6113_v44, 4  ;;  %v6123_v55 = vor.u32 %v6122_v45, %v6118_v38  ;;  %10210 = vmatprep.mubr.msk.bf16.mxu1 %vm1929_vm2, %v8836_v48  ;;  %v6146_v60 = vshll.u32 %v9290_v49, 16  ;;  %v11125_v45 = vld [vmem:[%s11226_s25 + $0x198] sm:$0xf]  ;;  %v11126_v46 = vld [vmem:[%s11226_s25 + $0x19c] sm:$0xf] }
 0x1c2   : > { %v9385_v19 = vcombine.low %v6095_v40, %v6105_v51  ;;  %v6138_v56 = vrot.slane %v6136_v50, 5  ;;  %v6133_v58 = vor.u32 %v6132_v53, %v6128_v52  ;;  %v6142_v59 = vrot.slane %v6140_v11, 4 }
 0x1c3   : > { %v8837_v63 = vcombine.low %v11121_v61, %v11122_v62  ;;  %v6119_v0 = vsel %vm11257_vm3, %v6114_v54, %v6118_v38  ;;  %v6124_v1 = vrot.slane %v6123_v55, 4  ;;  %v6151_v2 = vshrl.u32 %v9291_v12, 16 }
 0x1c4   : > { %10475 = vmatmul.mubr.msk.bf16.gmra.mrb[76].mxu0 %vm1929_vm2, %v9385_v19  ;;  %v6154_v3 = vshll.u32 %v9291_v12, 16  ;;  %v6134_v5 = vrot.slane %v6133_v58, 4  ;;  %v6143_v6 = vor.u32 %v6142_v59, %v6138_v56  ;;  %v6148_v7 = vrot.slane %v6146_v60, 5  ;;  %v9299_v59 = vld [vmem:[%s11226_s25 + $0x1d8] sm:$0xf] }
 0x1c5   : > { %10211 = vmatmul.mubr.msk.bf16.gmra.mrb[76].mxu1 %vm1929_vm2, %v8837_v63  ;;  %v6160_v9 = vshll.u32 %v9292_v57, 16  ;;  %v6129_v10 = vsel %vm11257_vm3, %v6124_v1, %v6128_v52  ;;  %v6153_v13 = vrot.slane %v6151_v2, 4  ;;  %v6164_v15 = vshrl.u32 %v9292_v57, 16  ;;  %v9298_v52 = vld [vmem:[%s11226_s25 + $0x1d4] sm:$0xf] }
 0x1c6   : > { %v6156_v14 = vrot.slane %v6154_v3, 5  ;;  %v9386_v17 = vcombine.low %v6119_v0, %v6129_v10  ;;  %v6139_v18 = vsel %vm11257_vm3, %v6134_v5, %v6138_v56  ;;  %v6144_v20 = vrot.slane %v6143_v6, 4  ;;  %v9300_v0 = vld [vmem:[%s11226_s25 + $0x1dc] sm:$0x1]  ;;  %v11127_v5 = vld [vmem:[%s11226_s25 + $0x1a4] sm:$0xf] }
 0x1c7   : > { %v6162_v21 = vrot.slane %v6160_v9, 5  ;;  %v6166_v23 = vrot.slane %v6164_v15, 4  ;;  %v6170_v24 = vshll.u32 %v9293_v8, 16  ;;  %v6174_v25 = vshrl.u32 %v9293_v8, 16  ;;  %v11128_v6 = vld [vmem:[%s11226_s25 + $0x1a8] sm:$0xf] }
 0x1c8   : > { %v6157_v22 = vor.u32 %v6156_v14, %v6153_v13  ;;  %10478 = vmatprep.mubr.msk.bf16.mxu0 %vm1929_vm2, %v9386_v17  ;;  %v6149_v27 = vsel %vm11257_vm3, %v6144_v20, %v6148_v7  ;;  %v8838_v30 = vcombine.low %v11123_v28, %v11124_v29  ;;  %v6180_v31 = vshll.u32 %v9294_v16, 16  ;;  %v9301_v8 = vld [vmem:[%s11226_s25 + $0x1e0] sm:$0xf] }
 0x1c9   : > { %v6184_v4 = vshrl.u32 %v9294_v16, 16  ;;  %v9387_v33 = vcombine.low %v6139_v18, %v6149_v27  ;;  %v6167_v36 = vor.u32 %v6166_v23, %v6162_v21  ;;  %v6172_v37 = vrot.slane %v6170_v24, 5  ;;  %v11130_v23 = vld [vmem:[%s11226_s25 + $0x1b0] sm:$0xf] }
 0x1ca   : > { %v6158_v35 = vrot.slane %v6157_v22, 4  ;;  %10214 = vmatprep.mubr.msk.bf16.mxu1 %vm1929_vm2, %v8838_v30  ;;  %v6176_v38 = vrot.slane %v6174_v25, 4  ;;  %v6182_v39 = vrot.slane %v6180_v31, 5  ;;  %v6190_v41 = vshll.u32 %v9295_v26, 16  ;;  %v11129_v22 = vld [vmem:[%s11226_s25 + $0x1ac] sm:$0xf] }
 0x1cb   : > { %v6186_v40 = vrot.slane %v6184_v4, 4  ;;  %v6168_v44 = vrot.slane %v6167_v36, 4  ;;  %v8839_v47 = vcombine.low %v11125_v45, %v11126_v46  ;;  %v6195_v48 = vshrl.u32 %v9296_v32, 16  ;;  %v9302_v25 = vld [vmem:[%s11226_s25 + $0x1e4] sm:$0xf] }
 0x1cc   : > { %10479 = vmatmul.mubr.msk.bf16.gmra.mrb[80].mxu0 %vm1929_vm2, %v9387_v33  ;;  %v6163_v43 = vsel %vm11257_vm3, %v6158_v35, %v6162_v21  ;;  %v6177_v49 = vor.u32 %v6176_v38, %v6172_v37  ;;  %v6192_v51 = vrot.slane %v6190_v41, 5  ;;  %v6198_v53 = vshll.u32 %v9296_v32, 16  ;;  %v9303_v31 = vld [vmem:[%s11226_s25 + $0x1e8] sm:$0xf]  ;;  %v9305_v45 = vld [vmem:[%s11226_s25 + $0x1f0] sm:$0x1] }
 0x1cd   : > { %v6187_v50 = vor.u32 %v6186_v40, %v6182_v39  ;;  %v6173_v11 = vsel %vm11257_vm3, %v6168_v44, %v6172_v37  ;;  %10215 = vmatmul.mubr.msk.bf16.gmra.mrb[80].mxu1 %vm1929_vm2, %v8839_v47  ;;  %v6197_v12 = vrot.slane %v6195_v48, 4  ;;  %v6204_v19 = vshll.u32 %v9297_v42, 16  ;;  %v9304_v40 = vld [vmem:[%s11226_s25 + $0x1ec] sm:$0xf] }
 0x1ce   : > { %v6208_v54 = vshrl.u32 %v9297_v42, 16  ;;  %v9388_v55 = vcombine.low %v6163_v43, %v6173_v11  ;;  %v6178_v56 = vrot.slane %v6177_v49, 4  ;;  %v6200_v58 = vrot.slane %v6198_v53, 5  ;;  %v11131_v49 = vld [vmem:[%s11226_s25 + $0x1b8] sm:$0xf] }
 0x1cf   : > { %v6188_v57 = vrot.slane %v6187_v50, 4  ;;  %v6206_v60 = vrot.slane %v6204_v19, 5  ;;  %v6214_v62 = vshll.u32 %v9298_v52, 16  ;;  %v6218_v63 = vshrl.u32 %v9298_v52, 16  ;;  %v11132_v50 = vld [vmem:[%s11226_s25 + $0x1bc] sm:$0xf] }
 0x1d0   : > { %v6210_v61 = vrot.slane %v6208_v54, 4  ;;  %10482 = vmatprep.mubr.msk.bf16.mxu0 %vm1929_vm2, %v9388_v55  ;;  %v6183_v1 = vsel %vm11257_vm3, %v6178_v56, %v6182_v39  ;;  %v6201_v3 = vor.u32 %v6200_v58, %v6197_v12  ;;  %v8840_v7 = vcombine.low %v11127_v5, %v11128_v6 }
 0x1d1   : > { %v6193_v2 = vsel %vm11257_vm3, %v6188_v57, %v6192_v51  ;;  %v6216_v13 = vrot.slane %v6214_v62, 5  ;;  %v6220_v14 = vrot.slane %v6218_v63, 4  ;;  %v6224_v16 = vshll.u32 %v9299_v59, 16  ;;  %v9306_v57 = vld [vmem:[%s11226_s25 + $0x1f4] sm:$0xf] }
 0x1d2   : > { %v9389_v9 = vcombine.low %v6183_v1, %v6193_v2  ;;  %v6211_v10 = vor.u32 %v6210_v61, %v6206_v60  ;;  %v6202_v15 = vrot.slane %v6201_v3, 4  ;;  %10218 = vmatprep.mubr.msk.bf16.mxu1 %vm1929_vm2, %v8840_v7  ;;  %v6228_v17 = vshrl.u32 %v9299_v59, 16  ;;  %v9307_v62 = vld [vmem:[%s11226_s25 + $0x1f8] sm:$0xf]  ;;  %v11133_v2 = vld [vmem:[%s11226_s25 + $0x1c0] sm:$0xf] }
 0x1d3   : > { %v6234_v18 = vshll.u32 %v9300_v0, 16  ;;  %v6221_v21 = vor.u32 %v6220_v14, %v6216_v13  ;;  %v8841_v24 = vcombine.low %v11129_v22, %v11130_v23  ;;  %v6239_v26 = vshrl.u32 %v9301_v8, 16  ;;  %v11134_v3 = vld [vmem:[%s11226_s25 + $0x1c4] sm:$0xf] }
 0x1d4   : > { %10483 = vmatmul.mubr.msk.bf16.gmra.mrb[84].mxu0 %vm1929_vm2, %v9389_v9  ;;  %v6212_v20 = vrot.slane %v6211_v10, 4  ;;  %v6207_v27 = vsel %vm11257_vm3, %v6202_v15, %v6206_v60  ;;  %v6226_v28 = vrot.slane %v6224_v16, 5  ;;  %v6230_v29 = vrot.slane %v6228_v17, 4  ;;  %v9309_v17 = vld [vmem:[%s11226_s25 + $0x200] sm:$0xf] }
 0x1d5   : > { %v6236_v30 = vrot.slane %v6234_v18, 5  ;;  %v6222_v32 = vrot.slane %v6221_v21, 4  ;;  %10219 = vmatmul.mubr.msk.bf16.gmra.mrb[84].mxu1 %vm1929_vm2, %v8841_v24  ;;  %v6241_v33 = vrot.slane %v6239_v26, 4  ;;  %v6242_v35 = vshll.u32 %v9301_v8, 16  ;;  %v9308_v8 = vld [vmem:[%s11226_s25 + $0x1fc] sm:$0xf] }
 0x1d6   : > { %v6217_v4 = vsel %vm11257_vm3, %v6212_v20, %v6216_v13  ;;  %v6231_v37 = vor.u32 %v6230_v29, %v6226_v28  ;;  %v6248_v38 = vshll.u32 %v9302_v25, 16  ;;  %v6252_v39 = vshrl.u32 %v9302_v25, 16  ;;  %v11135_v29 = vld [vmem:[%s11226_s25 + $0x1cc] sm:$0xf] }
 0x1d7   : > { %v9390_v36 = vcombine.low %v6207_v27, %v6217_v4  ;;  %v6227_v41 = vsel %vm11257_vm3, %v6222_v32, %v6226_v28  ;;  %v6244_v42 = vrot.slane %v6242_v35, 5  ;;  %v6258_v43 = vshll.u32 %v9303_v31, 16  ;;  %v9310_v4 = vld [vmem:[%s11226_s25 + $0x204] sm:$0x1] }
 0x1d8   : > { %v6262_v44 = vshrl.u32 %v9303_v31, 16  ;;  %v6232_v46 = vrot.slane %v6231_v37, 4  ;;  %v6250_v47 = vrot.slane %v6248_v38, 5  ;;  %v6254_v48 = vrot.slane %v6252_v39, 4  ;;  %v9311_v38 = vld [vmem:[%s11226_s25 + $0x208] sm:$0xf] }
 0x1d9   : > { %10486 = vmatprep.mubr.msk.bf16.mxu0 %vm1929_vm2, %v9390_v36  ;;  %v8842_v51 = vcombine.low %v11131_v49, %v11132_v50  ;;  %v6245_v52 = vor.u32 %v6244_v42, %v6241_v33  ;;  %v6260_v53 = vrot.slane %v6258_v43, 5  ;;  %v6268_v12 = vshll.u32 %v9304_v40, 16  ;;  %v9312_v43 = vld [vmem:[%s11226_s25 + $0x20c] sm:$0xf] }
 0x1da   : > { %v6264_v11 = vrot.slane %v6262_v44, 4  ;;  %v6237_v19 = vsel %vm11257_vm3, %v6232_v46, %v6236_v30  ;;  %v6255_v54 = vor.u32 %v6254_v48, %v6250_v47  ;;  %v6272_v55 = vshrl.u32 %v9304_v40, 16  ;;  %v11136_v30 = vld [vmem:[%s11226_s25 + $0x1d0] sm:$0xf]  ;;  %v11138_v48 = vld [vmem:[%s11226_s25 + $0x1d8] sm:$0xf] }
 0x1db   : > { %10222 = vmatprep.mubr.msk.bf16.mxu1 %vm1929_vm2, %v8842_v51  ;;  %v6278_v56 = vshll.u32 %v9305_v45, 16  ;;  %v9391_v58 = vcombine.low %v6227_v41, %v6237_v19  ;;  %v6246_v59 = vrot.slane %v6245_v52, 4  ;;  %v6270_v61 = vrot.slane %v6268_v12, 5  ;;  %v9313_v52 = vld [vmem:[%s11226_s25 + $0x210] sm:$0xf] }
 0x1dc   : > { %v6265_v60 = vor.u32 %v6264_v11, %v6260_v53  ;;  %v6256_v63 = vrot.slane %v6255_v54, 4  ;;  %v6274_v0 = vrot.slane %v6272_v55, 4  ;;  %v8843_v5 = vcombine.low %v11133_v2, %v11134_v3 }
 0x1dd   : > { %v6280_v1 = vrot.slane %v6278_v56, 5  ;;  %10487 = vmatmul.mubr.msk.bf16.gmra.mrb[88].mxu0 %vm1929_vm2, %v9391_v58  ;;  %v6251_v6 = vsel %vm11257_vm3, %v6246_v59, %v6250_v47  ;;  %v6283_v9 = vshrl.u32 %v9306_v57, 16  ;;  %v6286_v10 = vshll.u32 %v9306_v57, 16  ;;  %v11137_v47 = vld [vmem:[%s11226_s25 + $0x1d4] sm:$0xf] }
 0x1de   : > { %v6266_v7 = vrot.slane %v6265_v60, 4  ;;  %v6261_v13 = vsel %vm11257_vm3, %v6256_v63, %v6260_v53  ;;  %v6275_v14 = vor.u32 %v6274_v0, %v6270_v61  ;;  %10223 = vmatmul.mubr.msk.bf16.gmra.mrb[88].mxu1 %vm1929_vm2, %v8843_v5  ;;  %v6292_v15 = vshll.u32 %v9307_v62, 16  ;;  %v9314_v60 = vld [vmem:[%s11226_s25 + $0x214] sm:$0xf]  ;;  %v11139_v5 = vld [vmem:[%s11226_s25 + $0x1e0] sm:$0xf] }
 0x1df   : > { %v6296_v16 = vshrl.u32 %v9307_v62, 16  ;;  %v9392_v18 = vcombine.low %v6251_v6, %v6261_v13  ;;  %v6285_v21 = vrot.slane %v6283_v9, 4  ;;  %v6288_v22 = vrot.slane %v6286_v10, 5  ;;  %v11140_v6 = vld [vmem:[%s11226_s25 + $0x1e4] sm:$0xf] }
 0x1e0   : > { %v6271_v20 = vsel %vm11257_vm3, %v6266_v7, %v6270_v61  ;;  %v6276_v23 = vrot.slane %v6275_v14, 4  ;;  %v6294_v24 = vrot.slane %v6292_v15, 5  ;;  %v6302_v26 = vshll.u32 %v9308_v8, 16  ;;  %v9316_v15 = vld [vmem:[%s11226_s25 + $0x21c] sm:$0xf] }
 0x1e1   : > { %v6298_v25 = vrot.slane %v6296_v16, 4  ;;  %10490 = vmatprep.mubr.msk.bf16.mxu0 %vm1929_vm2, %v9392_v18  ;;  %v6289_v27 = vor.u32 %v6288_v22, %v6285_v21  ;;  %v6306_v28 = vshrl.u32 %v9308_v8, 16  ;;  %v8844_v31 = vcombine.low %v11135_v29, %v11136_v30  ;;  %v9315_v8 = vld [vmem:[%s11226_s25 + $0x218] sm:$0x1]  ;;  %v9317_v21 = vld [vmem:[%s11226_s25 + $0x220] sm:$0xf] }
 0x1e2   : > { %v6312_v32 = vshll.u32 %v9309_v17, 16  ;;  %v6281_v33 = vsel %vm11257_vm3, %v6276_v23, %v6280_v1  ;;  %v6304_v36 = vrot.slane %v6302_v26, 5  ;;  %v6316_v37 = vshrl.u32 %v9309_v17, 16  ;;  %v11142_v26 = vld [vmem:[%s11226_s25 + $0x1ec] sm:$0xf] }
 0x1e3   : > { %v6299_v35 = vor.u32 %v6298_v25, %v6294_v24  ;;  %v9393_v39 = vcombine.low %v6271_v20, %v6281_v33  ;;  %v6290_v40 = vrot.slane %v6289_v27, 4  ;;  %10226 = vmatprep.mubr.msk.bf16.mxu1 %vm1929_vm2, %v8844_v31  ;;  %v6308_v41 = vrot.slane %v6306_v28, 4  ;;  %v11141_v25 = vld [vmem:[%s11226_s25 + $0x1e8] sm:$0xf]  ;;  %v9318_v31 = vld [vmem:[%s11226_s25 + $0x224] sm:$0xf] }
 0x1e4   : > { %v6314_v42 = vrot.slane %v6312_v32, 5  ;;  %v6318_v45 = vrot.slane %v6316_v37, 4  ;;  %v6322_v46 = vshll.u32 %v9310_v4, 16  ;;  %v8845_v49 = vcombine.low %v11137_v47, %v11138_v48 }
 0x1e5   : > { %v6300_v44 = vrot.slane %v6299_v35, 4  ;;  %10491 = vmatmul.mubr.msk.bf16.gmra.mrb[92].mxu0 %vm1929_vm2, %v9393_v39  ;;  %v6295_v50 = vsel %vm11257_vm3, %v6290_v40, %v6294_v24  ;;  %v6309_v51 = vor.u32 %v6308_v41, %v6304_v36  ;;  %v6327_v53 = vshrl.u32 %v9311_v38, 16 }
 0x1e6   : > { %v6330_v11 = vshll.u32 %v9311_v38, 16  ;;  %v6319_v19 = vor.u32 %v6318_v45, %v6314_v42  ;;  %v6324_v54 = vrot.slane %v6322_v46, 5  ;;  %10227 = vmatmul.mubr.msk.bf16.gmra.mrb[92].mxu1 %vm1929_vm2, %v8845_v49  ;;  %v6336_v55 = vshll.u32 %v9312_v43, 16  ;;  %v9319_v45 = vld [vmem:[%s11226_s25 + $0x228] sm:$0xf] }
 0x1e7   : > { %v6305_v12 = vsel %vm11257_vm3, %v6300_v44, %v6304_v36  ;;  %v6310_v57 = vrot.slane %v6309_v51, 4  ;;  %v6329_v58 = vrot.slane %v6327_v53, 4  ;;  %v6340_v63 = vshrl.u32 %v9312_v43, 16 }
 0x1e8   : > { %v9394_v56 = vcombine.low %v6295_v50, %v6305_v12  ;;  %v6332_v59 = vrot.slane %v6330_v11, 5  ;;  %v6320_v61 = vrot.slane %v6319_v19, 4  ;;  %v6338_v62 = vrot.slane %v6336_v55, 5  ;;  %v9320_v50 = vld [vmem:[%s11226_s25 + $0x22c] sm:$0x1] }
 0x1e9   : > { %v6346_v0 = vshll.u32 %v9313_v52, 16  ;;  %v6315_v1 = vsel %vm11257_vm3, %v6310_v57, %v6314_v42  ;;  %v6350_v3 = vshrl.u32 %v9313_v52, 16  ;;  %v8846_v7 = vcombine.low %v11139_v5, %v11140_v6  ;;  %v11143_v12 = vld [vmem:[%s11226_s25 + $0x1f4] sm:$0xf]  ;;  %v11144_v19 = vld [vmem:[%s11226_s25 + $0x1f8] sm:$0xf] }
 0x1ea   : > { %10494 = vmatprep.mubr.msk.bf16.mxu0 %vm1929_vm2, %v9394_v56  ;;  %v6333_v2 = vor.u32 %v6332_v59, %v6329_v58  ;;  %v6325_v9 = vsel %vm11257_vm3, %v6320_v61, %v6324_v54  ;;  %v6342_v10 = vrot.slane %v6340_v63, 4  ;;  %v6356_v14 = vshll.u32 %v9314_v60, 16  ;;  %v9321_v61 = vld [vmem:[%s11226_s25 + $0x230] sm:$0xf] }
 0x1eb   : > { %v6348_v13 = vrot.slane %v6346_v0, 5  ;;  %v9395_v16 = vcombine.low %v6315_v1, %v6325_v9  ;;  %10230 = vmatprep.mubr.msk.bf16.mxu1 %vm1929_vm2, %v8846_v7  ;;  %v6352_v18 = vrot.slane %v6350_v3, 4  ;;  %v6360_v20 = vshrl.u32 %v9314_v60, 16  ;;  %v9322_v3 = vld [vmem:[%s11226_s25 + $0x234] sm:$0xf] }
 0x1ec   : > { %v6334_v17 = vrot.slane %v6333_v2, 4  ;;  %v6343_v22 = vor.u32 %v6342_v10, %v6338_v62  ;;  %v6358_v23 = vrot.slane %v6356_v14, 5  ;;  %v6366_v24 = vshll.u32 %v9315_v8, 16  ;;  %v11145_v8 = vld [vmem:[%s11226_s25 + $0x1fc] sm:$0xf] }
 0x1ed   : > { %v8847_v27 = vcombine.low %v11141_v25, %v11142_v26  ;;  %10495 = vmatmul.mubr.msk.bf16.gmra.mrb[96].mxu0 %vm1929_vm2, %v9395_v16  ;;  %v6353_v29 = vor.u32 %v6352_v18, %v6348_v13  ;;  %v6362_v30 = vrot.slane %v6360_v20, 4  ;;  %v6371_v4 = vshrl.u32 %v9316_v15, 16  ;;  %v11146_v9 = vld [vmem:[%s11226_s25 + $0x200] sm:$0xf]  ;;  %v9323_v16 = vld [vmem:[%s11226_s25 + $0x238] sm:$0xf] }
 0x1ee   : > { %v6339_v28 = vsel %vm11257_vm3, %v6334_v17, %v6338_v62  ;;  %v6344_v32 = vrot.slane %v6343_v22, 4  ;;  %v6368_v33 = vrot.slane %v6366_v24, 5  ;;  %v6374_v35 = vshll.u32 %v9316_v15, 16 }
 0x1ef   : > { %10231 = vmatmul.mubr.msk.bf16.gmra.mrb[96].mxu1 %vm1929_vm2, %v8847_v27  ;;  %v6380_v36 = vshll.u32 %v9317_v21, 16  ;;  %v6354_v37 = vrot.slane %v6353_v29, 4  ;;  %v6363_v38 = vor.u32 %v6362_v30, %v6358_v23  ;;  %v6373_v39 = vrot.slane %v6371_v4, 4  ;;  %v9324_v27 = vld [vmem:[%s11226_s25 + $0x23c] sm:$0xf] }
 0x1f0   : > { %v6384_v40 = vshrl.u32 %v9317_v21, 16  ;;  %v6349_v41 = vsel %vm11257_vm3, %v6344_v32, %v6348_v13  ;;  %v6376_v42 = vrot.slane %v6374_v35, 5  ;;  %v6390_v44 = vshll.u32 %v9318_v31, 16  ;;  %v11147_v35 = vld [vmem:[%s11226_s25 + $0x208] sm:$0xf] }
 0x1f1   : > { %v6382_v43 = vrot.slane %v6380_v36, 5  ;;  %v9396_v46 = vcombine.low %v6339_v28, %v6349_v41  ;;  %v6359_v47 = vsel %vm11257_vm3, %v6354_v37, %v6358_v23  ;;  %v6364_v48 = vrot.slane %v6363_v38, 4  ;;  %v11148_v36 = vld [vmem:[%s11226_s25 + $0x20c] sm:$0xf]  ;;  %v9325_v38 = vld [vmem:[%s11226_s25 + $0x240] sm:$0x1] }
 0x1f2   : > { %v6386_v49 = vrot.slane %v6384_v40, 4  ;;  %v12405_v51 = vpop.f32.mrb[0].mxu0  ;;  %v6377_v52 = vor.u32 %v6376_v42, %v6373_v39  ;;  %v6392_v53 = vrot.slane %v6390_v44, 5  ;;  %v6394_v11 = vshrl.u32 %v9318_v31, 16 }
 0x1f3   : > { %v8848_v54 = vcombine.low %v11143_v12, %v11144_v19  ;;  %v12409_v55 = vpop.f32.mrb[1].mxu0  ;;  %10498 = vmatprep.mubr.msk.bf16.mxu0 %vm1929_vm2, %v9396_v46  ;;  %v6369_v56 = vsel %vm11257_vm3, %v6364_v48, %v6368_v33  ;;  %v6400_v58 = vshll.u32 %v9319_v45, 16  ;;  %v6404_v59 = vshrl.u32 %v9319_v45, 16 }
 0x1f4   : > { %v6387_v57 = vor.u32 %v6386_v49, %v6382_v43  ;;  %v12414_v60 = vpop.f32.mrb[2].mxu0  ;;  %v9397_v62 = vcombine.low %v6359_v47, %v6369_v56  ;;  %v6378_v63 = vrot.slane %v6377_v52, 4  ;;  %v6396_v0 = vrot.slane %v6394_v11, 4  ;;  %v11149_v52 = vld [vmem:[%s11226_s25 + $0x210] sm:$0xf] }
 0x1f5   : > { %10234 = vmatprep.mubr.msk.bf16.mxu1 %vm1929_vm2, %v8848_v54  ;;  %v6410_v1 = vshll.u32 %v9320_v50, 16  ;;  %v12418_v2 = vpop.f32.mrb[3].mxu0  ;;  %v6402_v6 = vrot.slane %v6400_v58, 5  ;;  %v6406_v7 = vrot.slane %v6404_v59, 4  ;;  %v8849_v10 = vcombine.low %v11145_v8, %v11146_v9 }
 0x1f6   : > { %v6388_v5 = vrot.slane %v6387_v57, 4  ;;  %10499 = vmatmul.mubr.msk.bf16.gmra.mrb[100].mxu0 %vm1929_vm2, %v9397_v62  ;;  %v6383_v13 = vsel %vm11257_vm3, %v6378_v63, %v6382_v43  ;;  %v6397_v14 = vor.u32 %v6396_v0, %v6392_v53  ;;  %v6415_v17 = vshrl.u32 %v9321_v61, 16 }
 0x1f7   : > { %v6412_v15 = vrot.slane %v6410_v1, 5  ;;  %v6407_v20 = vor.u32 %v6406_v7, %v6402_v6  ;;  %10235 = vmatmul.mubr.msk.bf16.gmra.mrb[100].mxu1 %vm1929_vm2, %v8849_v10  ;;  %v6418_v21 = vshll.u32 %v9321_v61, 16  ;;  %v6424_v22 = vshll.u32 %v9322_v3, 16 }
 0x1f8   : > { %v6393_v18 = vsel %vm11257_vm3, %v6388_v5, %v6392_v53  ;;  %v6398_v24 = vrot.slane %v6397_v14, 4  ;;  %v6417_v25 = vrot.slane %v6415_v17, 4  ;;  %v6428_v26 = vshrl.u32 %v9322_v3, 16  ;;  %v11150_v53 = vld [vmem:[%s11226_s25 + $0x214] sm:$0xf] }
 0x1f9   : > { %v9398_v23 = vcombine.low %v6383_v13, %v6393_v18  ;;  %v6408_v28 = vrot.slane %v6407_v20, 4  ;;  %v6420_v29 = vrot.slane %v6418_v21, 5  ;;  %v6426_v30 = vrot.slane %v6424_v22, 5  ;;  %v9326_v3 = vld [vmem:[%s11226_s25 + $0x244] sm:$0xf] }
 0x1fa   : > { %v6434_v31 = vshll.u32 %v9323_v16, 16  ;;  %v6403_v4 = vsel %vm11257_vm3, %v6398_v24, %v6402_v6  ;;  %v6430_v32 = vrot.slane %v6428_v26, 4  ;;  %v6438_v33 = vshrl.u32 %v9323_v16, 16  ;;  %v9328_v20 = vld [vmem:[%s11226_s25 + $0x24c] sm:$0xf] }
 0x1fb   : > { %10502 = vmatprep.mubr.msk.bf16.mxu0 %vm1929_vm2, %v9398_v23  ;;  %v8850_v37 = vcombine.low %v11147_v35, %v11148_v36  ;;  %v6413_v39 = vsel %vm11257_vm3, %v6408_v28, %v6412_v15  ;;  %v6421_v40 = vor.u32 %v6420_v29, %v6417_v25  ;;  %v6444_v42 = vshll.u32 %v9324_v27, 16  ;;  %v9327_v15 = vld [vmem:[%s11226_s25 + $0x248] sm:$0xf] }
 0x1fc   : > { %v6436_v41 = vrot.slane %v6434_v31, 5  ;;  %v9399_v43 = vcombine.low %v6403_v4, %v6413_v39  ;;  %v6431_v44 = vor.u32 %v6430_v32, %v6426_v30  ;;  %v6440_v45 = vrot.slane %v6438_v33, 4  ;;  %v10136_v47 = vpop.f32.mrb[0].mxu1  ;;  %v9329_v32 = vld [vmem:[%s11226_s25 + $0x250] sm:$0xf] }
 0x1fd   : > { %10238 = vmatprep.mubr.msk.bf16.mxu1 %vm1929_vm2, %v8850_v37  ;;  %v6448_v46 = vshrl.u32 %v9324_v27, 16  ;;  %v6422_v48 = vrot.slane %v6421_v40, 4  ;;  %v6446_v49 = vrot.slane %v6444_v42, 5  ;;  %v6454_v50 = vshll.u32 %v9325_v38, 16  ;;  %v3225_v12 = vpop.f32.mrb[1].mxu1 }
 0x1fe   : > { %v8851_v11 = vcombine.low %v11149_v52, %v11150_v53  ;;  %10503 = vmatmul.mubr.msk.bf16.gmra.mrb[104].mxu0 %vm1929_vm2, %v9399_v43  ;;  %v6432_v19 = vrot.slane %v6431_v44, 4  ;;  %v6441_v54 = vor.u32 %v6440_v45, %v6436_v41  ;;  %v12456_v57 = vpop.f32.mrb[4].mxu0  ;;  %v10526_v58 = vadd.f32 %v12405_v51, %v10136_v47  ;;  %v10137_v59 = vpop.f32.mrb[2].mxu1  ;;  %v9330_v33 = vld [vmem:[%s11226_s25 + $0x254] sm:$0x1] }
 0x1ff   : > { %v6450_v56 = vrot.slane %v6448_v46, 4  ;;  %v6427_v61 = vsel %vm11257_vm3, %v6422_v48, %v6426_v30  ;;  %v6456_v62 = vrot.slane %v6454_v50, 5  ;;  %v12462_v63 = vpop.f32.mrb[5].mxu0  ;;  %v10527_v0 = vadd.f32 %v12409_v55, %v3225_v12  ;;  %v3228_v1 = vpop.f32.mrb[3].mxu1  ;;  %v11151_v45 = vld [vmem:[%s11226_s25 + $0x21c] sm:$0xf] }
 0x200   : > { %10239 = vmatmul.mubr.msk.bf16.gmra.mrb[104].mxu1 %vm1929_vm2, %v8851_v11  ;;  %v6437_v5 = vsel %vm11257_vm3, %v6432_v19, %v6436_v41  ;;  %v6442_v51 = vrot.slane %v6441_v54, 4  ;;  %v7709_v7 = vmul.f32 0.2, %v10526_v58  ;;  %v12469_v8 = vpop.f32.mrb[6].mxu0  ;;  %v10528_v13 = vadd.f32 %v12414_v60, %v10137_v59  ;;  %v11152_v46 = vld [vmem:[%s11226_s25 + $0x220] sm:$0xf] }
 0x201   : > { %v6451_v6 = vor.u32 %v6450_v56, %v6446_v49  ;;  %v9400_v9 = vcombine.low %v6427_v61, %v6437_v5  ;;  %v7707_v10 = vmul.f32 0.2, %v10527_v0  ;;  %v12472_v14 = vpop.f32.mrb[7].mxu0  ;;  %v10529_v55 = vadd.f32 %v12418_v2, %v3228_v1  ;;  %v11154_v59 = vld [vmem:[%s11226_s25 + $0x228] sm:$0xf] }
 0x202   : > { %v6447_v16 = vsel %vm11257_vm3, %v6442_v51, %v6446_v49  ;;  %v7837_v18 = vmax.f32 %v10526_v58, %v7709_v7  ;;  %v6459_v21 = vshrl.u32 %v9326_v3, 16  ;;  %v7710_v2 = vmul.f32 0.2, %v10528_v13  ;;  %v11153_v58 = vld [vmem:[%s11226_s25 + $0x224] sm:$0xf] }
 0x203   : > { %v6452_v17 = vrot.slane %v6451_v6, 4  ;;  %10506 = vmatprep.mubr.msk.bf16.mxu0 %vm1929_vm2, %v9400_v9  ;;  %v7835_v60 = vmax.f32 %v10527_v0, %v7707_v10  ;;  %v7708_v22 = vmul.f32 0.2, %v10529_v55  ;;  %v6462_v23 = vshll.u32 %v9326_v3, 16  ;;  %v9331_v10 = vld [vmem:[%s11226_s25 + $0x258] sm:$0xf] }
 0x204   : > { %v9608_v25 = vpack.c.bf16 %v7837_v18, %v7837_v18  ;;  %v6461_v26 = vrot.slane %v6459_v21, 4  ;;  %v6468_v27 = vshll.u32 %v9327_v15, 16  ;;  %v10140_v28 = vpop.f32.mrb[4].mxu1  ;;  %v7838_v31 = vmax.f32 %v10528_v13, %v7710_v2 }
 0x205   : > { %v6457_v24 = vsel %vm11257_vm3, %v6452_v17, %v6456_v62  ;;  %v9606_v30 = vpack.c.bf16 %v7835_v60, %v7835_v60  ;;  %v7836_v4 = vmax.f32 %v10529_v55, %v7708_v22  ;;  %v3241_v35 = vpop.f32.mrb[5].mxu1  ;;  %v6464_v36 = vrot.slane %v6462_v23, 5  ;;  %v9332_v60 = vld [vmem:[%s11226_s25 + $0x25c] sm:$0xf] }
 0x206   : > { %v9401_v29 = vcombine.low %v6447_v16, %v6457_v24  ;;  %8478 = vst.msk [vmem:[%s12483_s10 + $0x8] sm:$0xf] %vm8475_vm4, %v9608_v25  ;;  %v6470_v37 = vrot.slane %v6468_v27, 5  ;;  %v6472_v38 = vshrl.u32 %v9327_v15, 16  ;;  %v6478_v39 = vshll.u32 %v9328_v20, 16  ;;  %v12491_v40 = vpop.f32.mrb[8].mxu0 }
 0x207   : > { %v10141_v41 = vpop.f32.mrb[6].mxu1  ;;  %8476 = vst.msk [vmem:[%s12483_s10] sm:$0xf] %vm8475_vm4, %v9606_v30  ;;  %v9609_v42 = vpack.c.bf16 %v7838_v31, %v7838_v31  ;;  %v9607_v43 = vpack.c.bf16 %v7836_v4, %v7836_v4  ;;  %v6482_v44 = vshrl.u32 %v9328_v20, 16  ;;  %v8852_v47 = vcombine.low %v11151_v45, %v11152_v46  ;;  %v12498_v48 = vpop.f32.mrb[9].mxu0 }
 0x208   : > { %10507 = vmatmul.mubr.msk.bf16.gmra.mrb[108].mxu0 %vm1929_vm2, %v9401_v29  ;;  %v3244_v49 = vpop.f32.mrb[7].mxu1  ;;  %v6465_v50 = vor.u32 %v6464_v36, %v6461_v26  ;;  %v6474_v52 = vrot.slane %v6472_v38, 4  ;;  %v6480_v53 = vrot.slane %v6478_v39, 5  ;;  %v6488_v11 = vshll.u32 %v9329_v32, 16  ;;  %v12500_v12 = vpop.f32.mrb[10].mxu0 }
 0x209   : > { %8479 = vst.msk [vmem:[%s12483_s10 + $0xc] sm:$0xf] %vm8475_vm4, %v9609_v42  ;;  %8477 = vst.msk [vmem:[%s12483_s10 + $0x4] sm:$0xf] %vm8475_vm4, %v9607_v43  ;;  %10242 = vmatprep.mubr.msk.bf16.mxu1 %vm1929_vm2, %v8852_v47  ;;  %v6484_v19 = vrot.slane %v6482_v44, 4  ;;  %v6492_v54 = vshrl.u32 %v9329_v32, 16  ;;  %v8853_v61 = vcombine.low %v11153_v58, %v11154_v59  ;;  %v10530_v5 = vadd.f32 %v12456_v57, %v10140_v28 }
 0x20a   : > { %v6498_v56 = vshll.u32 %v9330_v33, 16  ;;  %v12509_v62 = vpop.f32.mrb[11].mxu0  ;;  %v6466_v0 = vrot.slane %v6465_v50, 4  ;;  %v6475_v1 = vor.u32 %v6474_v52, %v6470_v37  ;;  %v6490_v3 = vrot.slane %v6488_v11, 5  ;;  %v9333_v33 = vld [vmem:[%s11226_s25 + $0x260] sm:$0xf] }
 0x20b   : > { %v6485_v51 = vor.u32 %v6484_v19, %v6480_v53  ;;  %v6494_v6 = vrot.slane %v6492_v54, 4  ;;  %10243 = vmatmul.mubr.msk.bf16.gmra.mrb[108].mxu1 %vm1929_vm2, %v8853_v61  ;;  %v10531_v9 = vadd.f32 %v12462_v63, %v3241_v35  ;;  %v7713_v15 = vmul.f32 0.2, %v10530_v5  ;;  %v9334_v42 = vld [vmem:[%s11226_s25 + $0x264] sm:$0xf] }
 0x20c   : > { %v6500_v7 = vrot.slane %v6498_v56, 5  ;;  %v6471_v13 = vsel %vm11257_vm3, %v6466_v0, %v6470_v37  ;;  %v6476_v55 = vrot.slane %v6475_v1, 4  ;;  %v10532_v16 = vadd.f32 %v12469_v8, %v10141_v41  ;;  %v12518_v17 = vpop.f32.mrb[8].mxu1  ;;  %v9335_v11 = vld [vmem:[%s11226_s25 + $0x268] sm:$0x1] }
 0x20d   : > { %v6486_v18 = vrot.slane %v6485_v51, 4  ;;  %v6495_v57 = vor.u32 %v6494_v6, %v6490_v3  ;;  %v7711_v20 = vmul.f32 0.2, %v10531_v9  ;;  %v10533_v21 = vadd.f32 %v12472_v14, %v3244_v49  ;;  %v12522_v2 = vpop.f32.mrb[9].mxu1  ;;  %v11155_v56 = vld [vmem:[%s11226_s25 + $0x230] sm:$0xf] }
 0x20e   : > { %v6481_v63 = vsel %vm11257_vm3, %v6476_v55, %v6480_v53  ;;  %v7841_v22 = vmax.f32 %v10530_v5, %v7713_v15  ;;  %v7714_v23 = vmul.f32 0.2, %v10532_v16  ;;  %v6503_v24 = vshrl.u32 %v9331_v10, 16  ;;  %v12526_v25 = vpop.f32.mrb[12].mxu0  ;;  %v12528_v8 = vpop.f32.mrb[10].mxu1 }
 0x20f   : > { %v9402_v26 = vcombine.low %v6471_v13, %v6481_v63  ;;  %v6491_v27 = vsel %vm11257_vm3, %v6486_v18, %v6490_v3  ;;  %v6496_v14 = vrot.slane %v6495_v57, 4  ;;  %v7839_v28 = vmax.f32 %v10531_v9, %v7711_v20  ;;  %v12532_v29 = vpop.f32.mrb[13].mxu0  ;;  %v12534_v30 = vpop.f32.mrb[11].mxu1  ;;  %v11156_v58 = vld [vmem:[%s11226_s25 + $0x234] sm:$0xf] }
 0x210   : > { %v9612_v31 = vpack.c.bf16 %v7841_v22, %v7841_v22  ;;  %v7842_v4 = vmax.f32 %v10532_v16, %v7714_v23  ;;  %v7712_v32 = vmul.f32 0.2, %v10533_v21  ;;  %v6505_v35 = vrot.slane %v6503_v24, 4  ;;  %v12537_v36 = vpop.f32.mrb[14].mxu0  ;;  %v11157_v13 = vld [vmem:[%s11226_s25 + $0x238] sm:$0xf] }
 0x211   : > { %10510 = vmatprep.mubr.msk.bf16.mxu0 %vm1929_vm2, %v9402_v26  ;;  %v6501_v37 = vsel %vm11257_vm3, %v6496_v14, %v6500_v7  ;;  %v9610_v38 = vpack.c.bf16 %v7839_v28, %v7839_v28  ;;  %v6506_v39 = vshll.u32 %v9331_v10, 16  ;;  %v6512_v41 = vshll.u32 %v9332_v60, 16  ;;  %v12543_v43 = vpop.f32.mrb[15].mxu0  ;;  %v11158_v55 = vld [vmem:[%s11226_s25 + $0x23c] sm:$0xf] }
 0x212   : > { %v9403_v44 = vcombine.low %v6491_v27, %v6501_v37  ;;  %8482 = vst.msk [vmem:[%s12483_s10 + $0x18] sm:$0xf] %vm8475_vm4, %v9612_v31  ;;  %v9613_v45 = vpack.c.bf16 %v7842_v4, %v7842_v4  ;;  %v7840_v46 = vmax.f32 %v10533_v21, %v7712_v32  ;;  %v6516_v47 = vshrl.u32 %v9332_v60, 16  ;;  %v9336_v4 = vld [vmem:[%s11226_s25 + $0x26c] sm:$0xf] }
 0x213   : > { %8480 = vst.msk [vmem:[%s12483_s10 + $0x10] sm:$0xf] %vm8475_vm4, %v9610_v38  ;;  %v6508_v49 = vrot.slane %v6506_v39, 5  ;;  %v6514_v50 = vrot.slane %v6512_v41, 5  ;;  %v6522_v52 = vshll.u32 %v9333_v33, 16  ;;  %v6526_v53 = vshrl.u32 %v9333_v33, 16 }
 0x214   : > { %10511 = vmatmul.mubr.msk.bf16.gmra.mrb[112].mxu0 %vm1929_vm2, %v9403_v44  ;;  %8483 = vst.msk [vmem:[%s12483_s10 + $0x1c] sm:$0xf] %vm8475_vm4, %v9613_v45  ;;  %v9611_v19 = vpack.c.bf16 %v7840_v46, %v7840_v46  ;;  %v6518_v54 = vrot.slane %v6516_v47, 4  ;;  %v8854_v59 = vcombine.low %v11155_v56, %v11156_v58  ;;  %v6532_v61 = vshll.u32 %v9334_v42, 16  ;;  %v12555_v0 = vpop.f32.mrb[12].mxu1 }
 0x215   : > { %v6509_v1 = vor.u32 %v6508_v49, %v6505_v35  ;;  %v6524_v3 = vrot.slane %v6522_v52, 5  ;;  %v6528_v5 = vrot.slane %v6526_v53, 4  ;;  %v6536_v51 = vshrl.u32 %v9334_v42, 16  ;;  %v12557_v6 = vpop.f32.mrb[13].mxu1  ;;  %v9338_v47 = vld [vmem:[%s11226_s25 + $0x274] sm:$0xf] }
 0x216   : > { %8481 = vst.msk [vmem:[%s12483_s10 + $0x14] sm:$0xf] %vm8475_vm4, %v9611_v19  ;;  %v6519_v7 = vor.u32 %v6518_v54, %v6514_v50  ;;  %10246 = vmatprep.mubr.msk.bf16.mxu1 %vm1929_vm2, %v8854_v59  ;;  %v6534_v9 = vrot.slane %v6532_v61, 5  ;;  %v6542_v10 = vshll.u32 %v9335_v11, 16  ;;  %v8855_v15 = vcombine.low %v11157_v13, %v11158_v55  ;;  %v12566_v18 = vpop.f32.mrb[14].mxu1 }
 0x217   : > { %v12564_v16 = vpop.f32.mrb[16].mxu0  ;;  %v6510_v57 = vrot.slane %v6509_v1, 4  ;;  %v6529_v20 = vor.u32 %v6528_v5, %v6524_v3  ;;  %v6538_v21 = vrot.slane %v6536_v51, 4  ;;  %v10534_v60 = vadd.f32 %v12491_v40, %v12518_v17  ;;  %v12572_v22 = vpop.f32.mrb[15].mxu1  ;;  %v9339_v56 = vld [vmem:[%s11226_s25 + $0x278] sm:$0xf] }
 0x218   : > { %v12570_v63 = vpop.f32.mrb[17].mxu0  ;;  %v6520_v23 = vrot.slane %v6519_v7, 4  ;;  %v6544_v24 = vrot.slane %v6542_v10, 5  ;;  %10247 = vmatmul.mubr.msk.bf16.gmra.mrb[112].mxu1 %vm1929_vm2, %v8855_v15  ;;  %v10535_v26 = vadd.f32 %v12498_v48, %v12522_v2  ;;  %v10536_v27 = vadd.f32 %v12500_v12, %v12528_v8  ;;  %v9337_v2 = vld [vmem:[%s11226_s25 + $0x270] sm:$0xf] }
 0x219   : > { %v12579_v14 = vpop.f32.mrb[18].mxu0  ;;  %v6515_v40 = vsel %vm11257_vm3, %v6510_v57, %v6514_v50  ;;  %v6530_v17 = vrot.slane %v6529_v20, 4  ;;  %v6539_v28 = vor.u32 %v6538_v21, %v6534_v9  ;;  %v7717_v31 = vmul.f32 0.2, %v10534_v60  ;;  %v9340_v58 = vld [vmem:[%s11226_s25 + $0x27c] sm:$0x1] }
 0x21a   : > { %v12584_v32 = vpop.f32.mrb[19].mxu0  ;;  %v6525_v33 = vsel %vm11257_vm3, %v6520_v23, %v6524_v3  ;;  %v7715_v35 = vmul.f32 0.2, %v10535_v26  ;;  %v7718_v48 = vmul.f32 0.2, %v10536_v27  ;;  %v10537_v12 = vadd.f32 %v12509_v62, %v12534_v30 }
 0x21b   : > { %v9404_v8 = vcombine.low %v6515_v40, %v6525_v33  ;;  %v6535_v37 = vsel %vm11257_vm3, %v6530_v17, %v6534_v9  ;;  %v6540_v38 = vrot.slane %v6539_v28, 4  ;;  %v7845_v39 = vmax.f32 %v10534_v60, %v7717_v31  ;;  %v11159_v15 = vld [vmem:[%s11226_s25 + $0x244] sm:$0xf]  ;;  %v11160_v57 = vld [vmem:[%s11226_s25 + $0x248] sm:$0xf] }
 0x21c   : > { %v7843_v41 = vmax.f32 %v10535_v26, %v7715_v35  ;;  %v7846_v42 = vmax.f32 %v10536_v27, %v7718_v48  ;;  %v7716_v44 = vmul.f32 0.2, %v10537_v12  ;;  %v6547_v45 = vshrl.u32 %v9336_v4, 16  ;;  %v12593_v46 = vpop.f32.mrb[16].mxu1  ;;  %v11161_v31 = vld [vmem:[%s11226_s25 + $0x24c] sm:$0xf] }
 0x21d   : > { %10514 = vmatprep.mubr.msk.bf16.mxu0 %vm1929_vm2, %v9404_v8  ;;  %v6545_v62 = vsel %vm11257_vm3, %v6540_v38, %v6544_v24  ;;  %v9616_v30 = vpack.c.bf16 %v7845_v39, %v7845_v39  ;;  %v6550_v49 = vshll.u32 %v9336_v4, 16  ;;  %v6556_v50 = vshll.u32 %v9337_v2, 16  ;;  %v12599_v52 = vpop.f32.mrb[17].mxu1  ;;  %v11162_v4 = vld [vmem:[%s11226_s25 + $0x250] sm:$0xf] }
 0x21e   : > { %v9405_v53 = vcombine.low %v6535_v37, %v6545_v62  ;;  %v9614_v11 = vpack.c.bf16 %v7843_v41, %v7843_v41  ;;  %v9617_v19 = vpack.c.bf16 %v7846_v42, %v7846_v42  ;;  %v7844_v54 = vmax.f32 %v10537_v12, %v7716_v44  ;;  %v12605_v61 = vpop.f32.mrb[18].mxu1  ;;  %v9341_v41 = vld [vmem:[%s11226_s25 + $0x280] sm:$0xf] }
 0x21f   : > { %v12603_v59 = vpop.f32.mrb[20].mxu0  ;;  %8486 = vst.msk [vmem:[%s12483_s10 + $0x28] sm:$0xf] %vm8475_vm4, %v9616_v30  ;;  %v6549_v1 = vrot.slane %v6547_v45, 4  ;;  %v6552_v3 = vrot.slane %v6550_v49, 5  ;;  %v6558_v5 = vrot.slane %v6556_v50, 5  ;;  %v8856_v20 = vcombine.low %v11159_v15, %v11160_v57 }
 0x220   : > { %v6560_v51 = vshrl.u32 %v9337_v2, 16  ;;  %v12609_v7 = vpop.f32.mrb[21].mxu0  ;;  %v12611_v9 = vpop.f32.mrb[19].mxu1  ;;  %10515 = vmatmul.mubr.msk.bf16.gmra.mrb[116].mxu0 %vm1929_vm2, %v9405_v53  ;;  %8484 = vst.msk [vmem:[%s12483_s10 + $0x20] sm:$0xf] %vm8475_vm4, %v9614_v11  ;;  %v9615_v10 = vpack.c.bf16 %v7844_v54, %v7844_v54  ;;  %v6566_v13 = vshll.u32 %v9338_v47, 16  ;;  %v8857_v33 = vcombine.low %v11161_v31, %v11162_v4 }
 0x221   : > { %8487 = vst.msk [vmem:[%s12483_s10 + $0x2c] sm:$0xf] %vm8475_vm4, %v9617_v19  ;;  %v6570_v55 = vshrl.u32 %v9338_v47, 16  ;;  %v12620_v21 = vpop.f32.mrb[22].mxu0  ;;  %v6553_v60 = vor.u32 %v6552_v3, %v6549_v1  ;;  %v6576_v24 = vshll.u32 %v9339_v56, 16  ;;  %v6580_v26 = vshrl.u32 %v9339_v56, 16  ;;  %10250 = vmatprep.mubr.msk.bf16.mxu1 %vm1929_vm2, %v8856_v20 }
 0x222   : > { %v6562_v23 = vrot.slane %v6560_v51, 4  ;;  %v12622_v27 = vpop.f32.mrb[23].mxu0  ;;  %8485 = vst.msk [vmem:[%s12483_s10 + $0x24] sm:$0xf] %vm8475_vm4, %v9615_v10  ;;  %v6568_v40 = vrot.slane %v6566_v13, 5  ;;  %v6586_v28 = vshll.u32 %v9340_v58, 16  ;;  %10251 = vmatmul.mubr.msk.bf16.gmra.mrb[116].mxu1 %vm1929_vm2, %v8857_v33  ;;  %v10538_v38 = vadd.f32 %v12526_v25, %v12555_v0 }
 0x223   : > { %v6572_v17 = vrot.slane %v6570_v55, 4  ;;  %v6554_v35 = vrot.slane %v6553_v60, 4  ;;  %v6578_v12 = vrot.slane %v6576_v24, 5  ;;  %v6582_v2 = vrot.slane %v6580_v26, 4  ;;  %v9342_v1 = vld [vmem:[%s11226_s25 + $0x284] sm:$0xf] }
 0x224   : > { %v6563_v48 = vor.u32 %v6562_v23, %v6558_v5  ;;  %v6588_v37 = vrot.slane %v6586_v28, 5  ;;  %v10539_v39 = vadd.f32 %v12532_v29, %v12557_v6  ;;  %v12635_v42 = vpop.f32.mrb[20].mxu1  ;;  %v10540_v30 = vadd.f32 %v12537_v36, %v12566_v18  ;;  %v9343_v51 = vld [vmem:[%s11226_s25 + $0x288] sm:$0xf]  ;;  %v9344_v60 = vld [vmem:[%s11226_s25 + $0x28c] sm:$0xf] }
 0x225   : > { %v6573_v8 = vor.u32 %v6572_v17, %v6568_v40  ;;  %v6559_v44 = vsel %vm11257_vm3, %v6554_v35, %v6558_v5  ;;  %v6583_v62 = vor.u32 %v6582_v2, %v6578_v12  ;;  %v12641_v47 = vpop.f32.mrb[21].mxu1  ;;  %v7721_v50 = vmul.f32 0.2, %v10538_v38  ;;  %v11163_v35 = vld [vmem:[%s11226_s25 + $0x258] sm:$0xf] }
 0x226   : > { %v6564_v45 = vrot.slane %v6563_v48, 4  ;;  %v7719_v25 = vmul.f32 0.2, %v10539_v39  ;;  %v10541_v29 = vadd.f32 %v12543_v43, %v12572_v22  ;;  %v12645_v0 = vpop.f32.mrb[22].mxu1  ;;  %v7722_v11 = vmul.f32 0.2, %v10540_v30 }
 0x227   : > { %v6574_v49 = vrot.slane %v6573_v8, 4  ;;  %v6584_v53 = vrot.slane %v6583_v62, 4  ;;  %v6591_v19 = vshrl.u32 %v9341_v41, 16  ;;  %v12649_v54 = vpop.f32.mrb[23].mxu1  ;;  %v7849_v56 = vmax.f32 %v10538_v38, %v7721_v50  ;;  %v11164_v48 = vld [vmem:[%s11226_s25 + $0x25c] sm:$0xf] }
 0x228   : > { %v6569_v6 = vsel %vm11257_vm3, %v6564_v45, %v6568_v40  ;;  %v7847_v58 = vmax.f32 %v10539_v39, %v7719_v25  ;;  %v12654_v43 = vpop.f32.mrb[24].mxu0  ;;  %v7850_v3 = vmax.f32 %v10540_v30, %v7722_v11  ;;  %v7720_v5 = vmul.f32 0.2, %v10541_v29  ;;  %v9345_v2 = vld [vmem:[%s11226_s25 + $0x290] sm:$0x1] }
 0x229   : > { %v9406_v36 = vcombine.low %v6559_v44, %v6569_v6  ;;  %v6579_v18 = vsel %vm11257_vm3, %v6574_v49, %v6578_v12  ;;  %v6589_v22 = vsel %vm11257_vm3, %v6584_v53, %v6588_v37  ;;  %v6593_v10 = vrot.slane %v6591_v19, 4  ;;  %v12659_v13 = vpop.f32.mrb[25].mxu0  ;;  %v11165_v53 = vld [vmem:[%s11226_s25 + $0x260] sm:$0xf]  ;;  %v11166_v11 = vld [vmem:[%s11226_s25 + $0x264] sm:$0xf] }
 0x22a   : > { %v9407_v55 = vcombine.low %v6579_v18, %v6589_v22  ;;  %v9620_v15 = vpack.c.bf16 %v7849_v56, %v7849_v56  ;;  %v9618_v57 = vpack.c.bf16 %v7847_v58, %v7847_v58  ;;  %v6594_v20 = vshll.u32 %v9341_v41, 16  ;;  %v12663_v23 = vpop.f32.mrb[26].mxu0 }
 0x22b   : > { %10518 = vmatprep.mubr.msk.bf16.mxu0 %vm1929_vm2, %v9406_v36  ;;  %v9621_v24 = vpack.c.bf16 %v7850_v3, %v7850_v3  ;;  %v7848_v26 = vmax.f32 %v10541_v29, %v7720_v5  ;;  %v6600_v40 = vshll.u32 %v9342_v1, 16  ;;  %v6604_v17 = vshrl.u32 %v9342_v1, 16  ;;  %v12665_v28 = vpop.f32.mrb[27].mxu0 }
 0x22c   : > { %10519 = vmatmul.mubr.msk.bf16.gmra.mrb[120].mxu0 %vm1929_vm2, %v9407_v55  ;;  %8490 = vst.msk [vmem:[%s12483_s10 + $0x38] sm:$0xf] %vm8475_vm4, %v9620_v15  ;;  %8488 = vst.msk [vmem:[%s12483_s10 + $0x30] sm:$0xf] %vm8475_vm4, %v9618_v57  ;;  %v6596_v31 = vrot.slane %v6594_v20, 5  ;;  %v6610_v4 = vshll.u32 %v9343_v51, 16  ;;  %v8858_v12 = vcombine.low %v11163_v35, %v11164_v48  ;;  %v8859_v19 = vcombine.low %v11165_v53, %v11166_v11 }
 0x22d   : > { %v6614_v33 = vshrl.u32 %v9343_v51, 16  ;;  %v12675_v8 = vpop.f32.mrb[24].mxu1  ;;  %8491 = vst.msk [vmem:[%s12483_s10 + $0x3c] sm:$0xf] %vm8475_vm4, %v9621_v24  ;;  %v9619_v37 = vpack.c.bf16 %v7848_v26, %v7848_v26  ;;  %v6602_v38 = vrot.slane %v6600_v40, 5  ;;  %v6606_v39 = vrot.slane %v6604_v17, 4 }
 0x22e   : > { %v6620_v41 = vshll.u32 %v9344_v60, 16  ;;  %v12679_v44 = vpop.f32.mrb[25].mxu1  ;;  %v6597_v45 = vor.u32 %v6596_v31, %v6593_v10  ;;  %v6612_v62 = vrot.slane %v6610_v4, 5  ;;  %10254 = vmatprep.mubr.msk.bf16.mxu1 %vm1929_vm2, %v8858_v12  ;;  %v6624_v49 = vshrl.u32 %v9344_v60, 16  ;;  %v11167_v48 = vld [vmem:[%s11226_s25 + $0x26c] sm:$0xf] }
 0x22f   : > { %v6616_v30 = vrot.slane %v6614_v33, 4  ;;  %v12682_v50 = vpop.f32.mrb[26].mxu1  ;;  %8489 = vst.msk [vmem:[%s12483_s10 + $0x34] sm:$0xf] %vm8475_vm4, %v9619_v37  ;;  %v6607_v25 = vor.u32 %v6606_v39, %v6602_v38  ;;  %v6630_v6 = vshll.u32 %v9345_v2, 16  ;;  %v10542_v1 = vadd.f32 %v12564_v16, %v12593_v46  ;;  %10255 = vmatmul.mubr.msk.bf16.gmra.mrb[120].mxu1 %vm1929_vm2, %v8859_v19 }
 0x230   : > { %v6622_v29 = vrot.slane %v6620_v41, 5  ;;  %v12688_v36 = vpop.f32.mrb[27].mxu1  ;;  %v6598_v18 = vrot.slane %v6597_v45, 4  ;;  %v6626_v58 = vrot.slane %v6624_v49, 4  ;;  %v12692_v22 = vpop.f32.mrb[28].mxu0  ;;  %v10543_v51 = vadd.f32 %v12570_v63, %v12599_v52 }
 0x231   : > { %v6617_v56 = vor.u32 %v6616_v30, %v6612_v62  ;;  %v6608_v3 = vrot.slane %v6607_v25, 4  ;;  %v6632_v5 = vrot.slane %v6630_v6, 5  ;;  %v10544_v10 = vadd.f32 %v12579_v14, %v12605_v61  ;;  %v12699_v55 = vpop.f32.mrb[29].mxu0  ;;  %v11168_v12 = vld [vmem:[%s11226_s25 + $0x270] sm:$0xf] }
 0x232   : > { %v6603_v15 = vsel %vm11257_vm3, %v6598_v18, %v6602_v38  ;;  %v6627_v20 = vor.u32 %v6626_v58, %v6622_v29  ;;  %v7725_v16 = vmul.f32 0.2, %v10542_v1  ;;  %v12703_v46 = vpop.f32.mrb[30].mxu0  ;;  %v7723_v24 = vmul.f32 0.2, %v10543_v51 }
 0x233   : > { %v6618_v57 = vrot.slane %v6617_v56, 4  ;;  %v6613_v60 = vsel %vm11257_vm3, %v6608_v3, %v6612_v62  ;;  %v7726_v63 = vmul.f32 0.2, %v10544_v10  ;;  %v10545_v14 = vadd.f32 %v12584_v32, %v12611_v9  ;;  %v12709_v52 = vpop.f32.mrb[31].mxu0  ;;  %v11169_v38 = vld [vmem:[%s11226_s25 + $0x274] sm:$0xf] }
 0x234   : > { %v9408_v61 = vcombine.low %v6603_v15, %v6613_v60  ;;  %v6628_v40 = vrot.slane %v6627_v20, 4  ;;  %v7853_v17 = vmax.f32 %v10542_v1, %v7725_v16  ;;  %v10164_v31 = vpop.f32.mrb[28].mxu1  ;;  %v7851_v4 = vmax.f32 %v10543_v51, %v7723_v24  ;;  %v11170_v39 = vld [vmem:[%s11226_s25 + $0x278] sm:$0xf] }
 0x235   : > { %v6623_v26 = vsel %vm11257_vm3, %v6618_v57, %v6622_v29  ;;  %v7854_v33 = vmax.f32 %v10544_v10, %v7726_v63  ;;  %v7724_v35 = vmul.f32 0.2, %v10545_v14  ;;  %v8860_v2 = vcombine.low %v11167_v48, %v11168_v12  ;;  %v12715_v37 = vpop.f32.mrb[29].mxu1 }
 0x236   : > { %10522 = vmatprep.mubr.msk.bf16.mxu0 %vm1929_vm2, %v9408_v61  ;;  %v6633_v32 = vsel %vm11257_vm3, %v6628_v40, %v6632_v5  ;;  %v9624_v9 = vpack.c.bf16 %v7853_v17, %v7853_v17  ;;  %v8861_v41 = vcombine.low %v11169_v38, %v11170_v39  ;;  %v10546_v45 = vadd.f32 %v12603_v59, %v12635_v42  ;;  %v10165_v62 = vpop.f32.mrb[30].mxu1 }
 0x237   : > { %v9409_v30 = vcombine.low %v6623_v26, %v6633_v32  ;;  %v9622_v49 = vpack.c.bf16 %v7851_v4, %v7851_v4  ;;  %v9625_v25 = vpack.c.bf16 %v7854_v33, %v7854_v33  ;;  %v7852_v29 = vmax.f32 %v10545_v14, %v7724_v35  ;;  %10258 = vmatprep.mubr.msk.bf16.mxu1 %vm1929_vm2, %v8860_v2  ;;  %v3340_v6 = vpop.f32.mrb[31].mxu1 }
 0x238   : > { %8494 = vst.msk [vmem:[%s12483_s10 + $0x48] sm:$0xf] %vm8475_vm4, %v9624_v9  ;;  %v7729_v34 = vmul.f32 0.2, %v10546_v45  ;;  %v10547_v53 = vadd.f32 %v12609_v7, %v12641_v47  ;;  %v10548_v11 = vadd.f32 %v12620_v21, %v12645_v0  ;;  %v10549_v59 = vadd.f32 %v12622_v27, %v12649_v54  ;;  %v10432_v42 = vpop.f32.mrb[32].mxu0  ;;  %10259 = vmatmul.mubr.msk.bf16.gmra.mrb[124].mxu1 %vm1929_vm2, %v8861_v41 }
 0x239   : > { %10523 = vmatmul.mubr.msk.bf16.gmra.mrb[124].mxu0 %vm1929_vm2, %v9409_v30  ;;  %8492 = vst.msk [vmem:[%s12483_s10 + $0x40] sm:$0xf] %vm8475_vm4, %v9622_v49  ;;  %8495 = vst.msk [vmem:[%s12483_s10 + $0x4c] sm:$0xf] %vm8475_vm4, %v9625_v25  ;;  %v9623_v19 = vpack.c.bf16 %v7852_v29, %v7852_v29  ;;  %v10550_v7 = vadd.f32 %v12654_v43, %v12675_v8  ;;  %v10551_v47 = vadd.f32 %v12659_v13, %v12679_v44  ;;  %v7196_v21 = vpop.f32.mrb[33].mxu0 }
 0x23a   : > { %v7857_v0 = vmax.f32 %v10546_v45, %v7729_v34  ;;  %v7727_v18 = vmul.f32 0.2, %v10547_v53  ;;  %v7730_v27 = vmul.f32 0.2, %v10548_v11  ;;  %v7728_v54 = vmul.f32 0.2, %v10549_v59 }
 0x23b   : > { %8493 = vst.msk [vmem:[%s12483_s10 + $0x44] sm:$0xf] %vm8475_vm4, %v9623_v19  ;;  %v7733_v56 = vmul.f32 0.2, %v10550_v7  ;;  %v7731_v58 = vmul.f32 0.2, %v10551_v47  ;;  %v10552_v1 = vadd.f32 %v12663_v23, %v12682_v50  ;;  %v10553_v3 = vadd.f32 %v12665_v28, %v12688_v36 }
 0x23c   : > { %v10433_v43 = vpop.f32.mrb[34].mxu0  ;;  %v9628_v8 = vpack.c.bf16 %v7857_v0, %v7857_v0  ;;  %v7855_v5 = vmax.f32 %v10547_v53, %v7727_v18  ;;  %v7858_v13 = vmax.f32 %v10548_v11, %v7730_v27  ;;  %v7856_v44 = vmax.f32 %v10549_v59, %v7728_v54  ;;  %v10168_v10 = vpop.f32.mrb[32].mxu1 }
 0x23d   : > { %v7199_v51 = vpop.f32.mrb[35].mxu0  ;;  %v7861_v15 = vmax.f32 %v10550_v7, %v7733_v56  ;;  %v7859_v57 = vmax.f32 %v10551_v47, %v7731_v58  ;;  %v7734_v20 = vmul.f32 0.2, %v10552_v1  ;;  %v7732_v16 = vmul.f32 0.2, %v10553_v3  ;;  %v3353_v60 = vpop.f32.mrb[33].mxu1 }
 0x23e   : > { %8498 = vst.msk [vmem:[%s12483_s10 + $0x58] sm:$0xf] %vm8475_vm4, %v9628_v8  ;;  %v9626_v23 = vpack.c.bf16 %v7855_v5, %v7855_v5  ;;  %v9629_v50 = vpack.c.bf16 %v7858_v13, %v7858_v13  ;;  %v9627_v28 = vpack.c.bf16 %v7856_v44, %v7856_v44  ;;  %v10554_v36 = vadd.f32 %v12692_v22, %v10164_v31  ;;  %v10169_v24 = vpop.f32.mrb[34].mxu1 }
 0x23f   : > { %v9632_v63 = vpack.c.bf16 %v7861_v15, %v7861_v15  ;;  %v9630_v14 = vpack.c.bf16 %v7859_v57, %v7859_v57  ;;  %v7862_v61 = vmax.f32 %v10552_v1, %v7734_v20  ;;  %v7860_v26 = vmax.f32 %v10553_v3, %v7732_v16  ;;  %v3356_v40 = vpop.f32.mrb[35].mxu1 }
 0x240   : > { %8496 = vst.msk [vmem:[%s12483_s10 + $0x50] sm:$0xf] %vm8475_vm4, %v9626_v23  ;;  %8499 = vst.msk [vmem:[%s12483_s10 + $0x5c] sm:$0xf] %vm8475_vm4, %v9629_v50  ;;  %v7737_v17 = vmul.f32 0.2, %v10554_v36  ;;  %v10555_v4 = vadd.f32 %v12699_v55, %v12715_v37  ;;  %v10556_v22 = vadd.f32 %v12703_v46, %v10165_v62  ;;  %v10557_v31 = vadd.f32 %v12709_v52, %v3340_v6 }
 0x241   : > { %8497 = vst.msk [vmem:[%s12483_s10 + $0x54] sm:$0xf] %vm8475_vm4, %v9627_v28  ;;  %8502 = vst.msk [vmem:[%s12483_s10 + $0x68] sm:$0xf] %vm8475_vm4, %v9632_v63  ;;  %v9633_v33 = vpack.c.bf16 %v7862_v61, %v7862_v61  ;;  %v9631_v35 = vpack.c.bf16 %v7860_v26, %v7860_v26  ;;  %v10436_v48 = vpop.f32.mrb[36].mxu0  ;;  %v10558_v12 = vadd.f32 %v10432_v42, %v10168_v10 }
 0x242   : > { %8500 = vst.msk [vmem:[%s12483_s10 + $0x60] sm:$0xf] %vm8475_vm4, %v9630_v14  ;;  %v10559_v2 = vadd.f32 %v7196_v21, %v3353_v60  ;;  %v7865_v32 = vmax.f32 %v10554_v36, %v7737_v17  ;;  %v7735_v9 = vmul.f32 0.2, %v10555_v4  ;;  %v7738_v38 = vmul.f32 0.2, %v10556_v22 }
 0x243   : > { %v7736_v39 = vmul.f32 0.2, %v10557_v31  ;;  %8503 = vst.msk [vmem:[%s12483_s10 + $0x6c] sm:$0xf] %vm8475_vm4, %v9633_v33  ;;  %8501 = vst.msk [vmem:[%s12483_s10 + $0x64] sm:$0xf] %vm8475_vm4, %v9631_v35  ;;  %v10560_v37 = vadd.f32 %v10433_v43, %v10169_v24  ;;  %v10561_v41 = vadd.f32 %v7199_v51, %v3356_v40 }
 0x244   : > { %v7741_v55 = vmul.f32 0.2, %v10558_v12  ;;  %v7212_v46 = vpop.f32.mrb[37].mxu0  ;;  %v7739_v52 = vmul.f32 0.2, %v10559_v2  ;;  %v9636_v45 = vpack.c.bf16 %v7865_v32, %v7865_v32  ;;  %v7863_v62 = vmax.f32 %v10555_v4, %v7735_v9  ;;  %v10172_v29 = vpop.f32.mrb[36].mxu1 }
 0x245   : > { %v7866_v30 = vmax.f32 %v10556_v22, %v7738_v38  ;;  %v7864_v49 = vmax.f32 %v10557_v31, %v7736_v39  ;;  %v10437_v25 = vpop.f32.mrb[38].mxu0  ;;  %v7742_v53 = vmul.f32 0.2, %v10560_v37  ;;  %v7740_v59 = vmul.f32 0.2, %v10561_v41  ;;  %v3369_v42 = vpop.f32.mrb[37].mxu1 }
 0x246   : > { %v7869_v6 = vmax.f32 %v10558_v12, %v7741_v55  ;;  %v7867_v34 = vmax.f32 %v10559_v2, %v7739_v52  ;;  %v7215_v11 = vpop.f32.mrb[39].mxu0  ;;  %8506 = vst.msk [vmem:[%s12483_s10 + $0x78] sm:$0xf] %vm8475_vm4, %v9636_v45  ;;  %v9634_v19 = vpack.c.bf16 %v7863_v62, %v7863_v62  ;;  %v10562_v21 = vadd.f32 %v10436_v48, %v10172_v29  ;;  %v10173_v0 = vpop.f32.mrb[38].mxu1 }
 0x247   : > { %v9637_v7 = vpack.c.bf16 %v7866_v30, %v7866_v30  ;;  %v9635_v47 = vpack.c.bf16 %v7864_v49, %v7864_v49  ;;  %v7870_v54 = vmax.f32 %v10560_v37, %v7742_v53  ;;  %v7868_v56 = vmax.f32 %v10561_v41, %v7740_v59  ;;  %v3372_v58 = vpop.f32.mrb[39].mxu1 }
 0x248   : > { %v9640_v18 = vpack.c.bf16 %v7869_v6, %v7869_v6  ;;  %v9638_v27 = vpack.c.bf16 %v7867_v34, %v7867_v34  ;;  %8504 = vst.msk [vmem:[%s12483_s10 + $0x70] sm:$0xf] %vm8475_vm4, %v9634_v19  ;;  %v7745_v1 = vmul.f32 0.2, %v10562_v21  ;;  %v10563_v3 = vadd.f32 %v7212_v46, %v3369_v42 }
 0x249   : > { %8507 = vst.msk [vmem:[%s12483_s10 + $0x7c] sm:$0xf] %vm8475_vm4, %v9637_v7  ;;  %8505 = vst.msk [vmem:[%s12483_s10 + $0x74] sm:$0xf] %vm8475_vm4, %v9635_v47  ;;  %v10564_v43 = vadd.f32 %v10437_v25, %v10173_v0  ;;  %v10565_v8 = vadd.f32 %v7215_v11, %v3372_v58  ;;  %v9641_v5 = vpack.c.bf16 %v7870_v54, %v7870_v54  ;;  %v10440_v44 = vpop.f32.mrb[40].mxu0 }
 0x24a   : > { %8510 = vst.msk [vmem:[%s12483_s10 + $0x88] sm:$0xf] %vm8475_vm4, %v9640_v18  ;;  %8508 = vst.msk [vmem:[%s12483_s10 + $0x80] sm:$0xf] %vm8475_vm4, %v9638_v27  ;;  %v9639_v13 = vpack.c.bf16 %v7868_v56, %v7868_v56  ;;  %v7873_v51 = vmax.f32 %v10562_v21, %v7745_v1  ;;  %v7228_v10 = vpop.f32.mrb[41].mxu0 }
 0x24b   : > { %v7743_v15 = vmul.f32 0.2, %v10563_v3  ;;  %v7746_v57 = vmul.f32 0.2, %v10564_v43  ;;  %8511 = vst.msk [vmem:[%s12483_s10 + $0x8c] sm:$0xf] %vm8475_vm4, %v9641_v5 }
 0x24c   : > { %8509 = vst.msk [vmem:[%s12483_s10 + $0x84] sm:$0xf] %vm8475_vm4, %v9639_v13  ;;  %v10441_v20 = vpop.f32.mrb[42].mxu0  ;;  %v7744_v16 = vmul.f32 0.2, %v10565_v8  ;;  %v9644_v60 = vpack.c.bf16 %v7873_v51, %v7873_v51  ;;  %v10176_v36 = vpop.f32.mrb[40].mxu1 }
 0x24d   : > { %v7871_v23 = vmax.f32 %v10563_v3, %v7743_v15  ;;  %v7874_v50 = vmax.f32 %v10564_v43, %v7746_v57  ;;  %v7231_v28 = vpop.f32.mrb[43].mxu0  ;;  %v10566_v63 = vadd.f32 %v10440_v44, %v10176_v36  ;;  %v3385_v14 = vpop.f32.mrb[41].mxu1 }
 0x24e   : > { %v7872_v24 = vmax.f32 %v10565_v8, %v7744_v16  ;;  %8514 = vst.msk [vmem:[%s12483_s10 + $0x98] sm:$0xf] %vm8475_vm4, %v9644_v60  ;;  %v10567_v40 = vadd.f32 %v7228_v10, %v3385_v14  ;;  %v10177_v17 = vpop.f32.mrb[42].mxu1 }
 0x24f   : > { %v9642_v61 = vpack.c.bf16 %v7871_v23, %v7871_v23  ;;  %v9645_v26 = vpack.c.bf16 %v7874_v50, %v7874_v50  ;;  %v7749_v22 = vmul.f32 0.2, %v10566_v63  ;;  %v10568_v31 = vadd.f32 %v10441_v20, %v10177_v17  ;;  %v3388_v33 = vpop.f32.mrb[43].mxu1 }
 0x250   : > { %v9643_v4 = vpack.c.bf16 %v7872_v24, %v7872_v24  ;;  %v7747_v35 = vmul.f32 0.2, %v10567_v40  ;;  %v10569_v48 = vadd.f32 %v7231_v28, %v3388_v33 }
 0x251   : > { %8512 = vst.msk [vmem:[%s12483_s10 + $0x90] sm:$0xf] %vm8475_vm4, %v9642_v61  ;;  %8515 = vst.msk [vmem:[%s12483_s10 + $0x9c] sm:$0xf] %vm8475_vm4, %v9645_v26  ;;  %v7877_v12 = vmax.f32 %v10566_v63, %v7749_v22  ;;  %v7750_v2 = vmul.f32 0.2, %v10568_v31 }
 0x252   : > { %8513 = vst.msk [vmem:[%s12483_s10 + $0x94] sm:$0xf] %vm8475_vm4, %v9643_v4  ;;  %v7875_v9 = vmax.f32 %v10567_v40, %v7747_v35  ;;  %v7748_v38 = vmul.f32 0.2, %v10569_v48 }
 0x253   : > { %v10444_v32 = vpop.f32.mrb[44].mxu0  ;;  %v9648_v39 = vpack.c.bf16 %v7877_v12, %v7877_v12  ;;  %v7878_v46 = vmax.f32 %v10568_v31, %v7750_v2 }
 0x254   : > { %v7244_v55 = vpop.f32.mrb[45].mxu0  ;;  %v9646_v52 = vpack.c.bf16 %v7875_v9, %v7875_v9  ;;  %v7876_v41 = vmax.f32 %v10569_v48, %v7748_v38  ;;  %v10180_v45 = vpop.f32.mrb[44].mxu1 }
 0x255   : > { %v10445_v37 = vpop.f32.mrb[46].mxu0  ;;  %8518 = vst.msk [vmem:[%s12483_s10 + $0xa8] sm:$0xf] %vm8475_vm4, %v9648_v39  ;;  %v9649_v62 = vpack.c.bf16 %v7878_v46, %v7878_v46  ;;  %v10570_v49 = vadd.f32 %v10444_v32, %v10180_v45  ;;  %v3401_v25 = vpop.f32.mrb[45].mxu1 }
 0x256   : > { %v7247_v30 = vpop.f32.mrb[47].mxu0  ;;  %8516 = vst.msk [vmem:[%s12483_s10 + $0xa0] sm:$0xf] %vm8475_vm4, %v9646_v52  ;;  %v9647_v29 = vpack.c.bf16 %v7876_v41, %v7876_v41  ;;  %v10571_v6 = vadd.f32 %v7244_v55, %v3401_v25  ;;  %v10181_v34 = vpop.f32.mrb[46].mxu1 }
 0x257   : > { %8519 = vst.msk [vmem:[%s12483_s10 + $0xac] sm:$0xf] %vm8475_vm4, %v9649_v62  ;;  %v7753_v53 = vmul.f32 0.2, %v10570_v49  ;;  %v10572_v11 = vadd.f32 %v10445_v37, %v10181_v34  ;;  %v3404_v59 = vpop.f32.mrb[47].mxu1 }
 0x258   : > { %8517 = vst.msk [vmem:[%s12483_s10 + $0xa4] sm:$0xf] %vm8475_vm4, %v9647_v29  ;;  %v7751_v42 = vmul.f32 0.2, %v10571_v6  ;;  %v10573_v19 = vadd.f32 %v7247_v30, %v3404_v59 }
 0x259   : > { %v7881_v7 = vmax.f32 %v10570_v49, %v7753_v53  ;;  %v7754_v47 = vmul.f32 0.2, %v10572_v11 }
 0x25a   : > { %v7879_v0 = vmax.f32 %v10571_v6, %v7751_v42  ;;  %v7752_v18 = vmul.f32 0.2, %v10573_v19 }
 0x25b   : > { %v10448_v21 = vpop.f32.mrb[48].mxu0  ;;  %v9652_v27 = vpack.c.bf16 %v7881_v7, %v7881_v7  ;;  %v7882_v56 = vmax.f32 %v10572_v11, %v7754_v47 }
 0x25c   : > { %v7260_v54 = vpop.f32.mrb[49].mxu0  ;;  %v9650_v58 = vpack.c.bf16 %v7879_v0, %v7879_v0  ;;  %v7880_v3 = vmax.f32 %v10573_v19, %v7752_v18  ;;  %v10184_v43 = vpop.f32.mrb[48].mxu1 }
 0x25d   : > { %v10449_v1 = vpop.f32.mrb[50].mxu0  ;;  %8522 = vst.msk [vmem:[%s12483_s10 + $0xb8] sm:$0xf] %vm8475_vm4, %v9652_v27  ;;  %v9653_v8 = vpack.c.bf16 %v7882_v56, %v7882_v56  ;;  %v10574_v13 = vadd.f32 %v10448_v21, %v10184_v43  ;;  %v3417_v44 = vpop.f32.mrb[49].mxu1 }
 0x25e   : > { %v7263_v5 = vpop.f32.mrb[51].mxu0  ;;  %8520 = vst.msk [vmem:[%s12483_s10 + $0xb0] sm:$0xf] %vm8475_vm4, %v9650_v58  ;;  %v9651_v51 = vpack.c.bf16 %v7880_v3, %v7880_v3  ;;  %v10575_v10 = vadd.f32 %v7260_v54, %v3417_v44  ;;  %v10185_v15 = vpop.f32.mrb[50].mxu1 }
 0x25f   : > { %8523 = vst.msk [vmem:[%s12483_s10 + $0xbc] sm:$0xf] %vm8475_vm4, %v9653_v8  ;;  %v7757_v57 = vmul.f32 0.2, %v10574_v13  ;;  %v10576_v20 = vadd.f32 %v10449_v1, %v10185_v15  ;;  %v3420_v16 = vpop.f32.mrb[51].mxu1 }
 0x260   : > { %8521 = vst.msk [vmem:[%s12483_s10 + $0xb4] sm:$0xf] %vm8475_vm4, %v9651_v51  ;;  %v7755_v60 = vmul.f32 0.2, %v10575_v10  ;;  %v10577_v23 = vadd.f32 %v7263_v5, %v3420_v16 }
 0x261   : > { %v7885_v50 = vmax.f32 %v10574_v13, %v7757_v57  ;;  %v7758_v28 = vmul.f32 0.2, %v10576_v20 }
 0x262   : > { %v7883_v24 = vmax.f32 %v10575_v10, %v7755_v60  ;;  %v7756_v63 = vmul.f32 0.2, %v10577_v23 }
 0x263   : > { %v10452_v36 = vpop.f32.mrb[52].mxu0  ;;  %v9656_v14 = vpack.c.bf16 %v7885_v50, %v7885_v50  ;;  %v7886_v26 = vmax.f32 %v10576_v20, %v7758_v28 }
 0x264   : > { %v7276_v61 = vpop.f32.mrb[53].mxu0  ;;  %v9654_v40 = vpack.c.bf16 %v7883_v24, %v7883_v24  ;;  %v7884_v4 = vmax.f32 %v10577_v23, %v7756_v63  ;;  %v10188_v22 = vpop.f32.mrb[52].mxu1 }
 0x265   : > { %v10453_v17 = vpop.f32.mrb[54].mxu0  ;;  %8526 = vst.msk [vmem:[%s12483_s10 + $0xc8] sm:$0xf] %vm8475_vm4, %v9656_v14  ;;  %v9657_v31 = vpack.c.bf16 %v7886_v26, %v7886_v26  ;;  %v10578_v35 = vadd.f32 %v10452_v36, %v10188_v22  ;;  %v3433_v48 = vpop.f32.mrb[53].mxu1 }
 0x266   : > { %v7279_v33 = vpop.f32.mrb[55].mxu0  ;;  %8524 = vst.msk [vmem:[%s12483_s10 + $0xc0] sm:$0xf] %vm8475_vm4, %v9654_v40  ;;  %v9655_v12 = vpack.c.bf16 %v7884_v4, %v7884_v4  ;;  %v10579_v2 = vadd.f32 %v7276_v61, %v3433_v48  ;;  %v10189_v32 = vpop.f32.mrb[54].mxu1 }
 0x267   : > { %8527 = vst.msk [vmem:[%s12483_s10 + $0xcc] sm:$0xf] %vm8475_vm4, %v9657_v31  ;;  %v7761_v9 = vmul.f32 0.2, %v10578_v35  ;;  %v10580_v38 = vadd.f32 %v10453_v17, %v10189_v32  ;;  %v3436_v39 = vpop.f32.mrb[55].mxu1 }
 0x268   : > { %8525 = vst.msk [vmem:[%s12483_s10 + $0xc4] sm:$0xf] %vm8475_vm4, %v9655_v12  ;;  %v7759_v55 = vmul.f32 0.2, %v10579_v2  ;;  %v10581_v46 = vadd.f32 %v7279_v33, %v3436_v39 }
 0x269   : > { %v7889_v52 = vmax.f32 %v10578_v35, %v7761_v9  ;;  %v7762_v37 = vmul.f32 0.2, %v10580_v38 }
 0x26a   : > { %v7887_v41 = vmax.f32 %v10579_v2, %v7759_v55  ;;  %v7760_v45 = vmul.f32 0.2, %v10581_v46 }
 0x26b   : > { %v9660_v62 = vpack.c.bf16 %v7889_v52, %v7889_v52  ;;  %v7890_v30 = vmax.f32 %v10580_v38, %v7762_v37 }
 0x26c   : > { %v10456_v49 = vpop.f32.mrb[56].mxu0  ;;  %v9658_v25 = vpack.c.bf16 %v7887_v41, %v7887_v41  ;;  %v7888_v29 = vmax.f32 %v10581_v46, %v7760_v45 }
 0x26d   : > { %8530 = vst.msk [vmem:[%s12483_s10 + $0xd8] sm:$0xf] %vm8475_vm4, %v9660_v62  ;;  %v7292_v6 = vpop.f32.mrb[57].mxu0  ;;  %v9661_v34 = vpack.c.bf16 %v7890_v30, %v7890_v30  ;;  %v10192_v53 = vpop.f32.mrb[56].mxu1 }
 0x26e   : > { %8528 = vst.msk [vmem:[%s12483_s10 + $0xd0] sm:$0xf] %vm8475_vm4, %v9658_v25  ;;  %v10457_v11 = vpop.f32.mrb[58].mxu0  ;;  %v9659_v59 = vpack.c.bf16 %v7888_v29, %v7888_v29  ;;  %v10582_v42 = vadd.f32 %v10456_v49, %v10192_v53  ;;  %v3449_v19 = vpop.f32.mrb[57].mxu1 }
 0x26f   : > { %8531 = vst.msk [vmem:[%s12483_s10 + $0xdc] sm:$0xf] %vm8475_vm4, %v9661_v34  ;;  %v7295_v7 = vpop.f32.mrb[59].mxu0  ;;  %v10583_v47 = vadd.f32 %v7292_v6, %v3449_v19  ;;  %v10193_v21 = vpop.f32.mrb[58].mxu1 }
 0x270   : > { %8529 = vst.msk [vmem:[%s12483_s10 + $0xd4] sm:$0xf] %vm8475_vm4, %v9659_v59  ;;  %v7765_v0 = vmul.f32 0.2, %v10582_v42  ;;  %v10584_v18 = vadd.f32 %v10457_v11, %v10193_v21  ;;  %v3452_v27 = vpop.f32.mrb[59].mxu1 }
 0x271   : > { %v7763_v54 = vmul.f32 0.2, %v10583_v47  ;;  %v10585_v56 = vadd.f32 %v7295_v7, %v3452_v27 }
 0x272   : > { %v7893_v58 = vmax.f32 %v10582_v42, %v7765_v0  ;;  %v7766_v1 = vmul.f32 0.2, %v10584_v18 }
 0x273   : > { %v7891_v3 = vmax.f32 %v10583_v47, %v7763_v54  ;;  %v7764_v43 = vmul.f32 0.2, %v10585_v56 }
 0x274   : > { %v10460_v8 = vpop.f32.mrb[60].mxu0  ;;  %v9664_v5 = vpack.c.bf16 %v7893_v58, %v7893_v58  ;;  %v7894_v13 = vmax.f32 %v10584_v18, %v7766_v1 }
 0x275   : > { %v7308_v44 = vpop.f32.mrb[61].mxu0  ;;  %v9662_v51 = vpack.c.bf16 %v7891_v3, %v7891_v3  ;;  %v7892_v10 = vmax.f32 %v10585_v56, %v7764_v43  ;;  %v10196_v15 = vpop.f32.mrb[60].mxu1 }
 0x276   : > { %8534 = vst.msk [vmem:[%s12483_s10 + $0xe8] sm:$0xf] %vm8475_vm4, %v9664_v5  ;;  %v10461_v57 = vpop.f32.mrb[62].mxu0  ;;  %v9665_v20 = vpack.c.bf16 %v7894_v13, %v7894_v13  ;;  %v10586_v16 = vadd.f32 %v10460_v8, %v10196_v15  ;;  %v3465_v60 = vpop.f32.mrb[61].mxu1 }
 0x277   : > { %8532 = vst.msk [vmem:[%s12483_s10 + $0xe0] sm:$0xf] %vm8475_vm4, %v9662_v51  ;;  %v7311_v23 = vpop.f32.mrb[63].mxu0  ;;  %v9663_v50 = vpack.c.bf16 %v7892_v10, %v7892_v10  ;;  %v10587_v28 = vadd.f32 %v7308_v44, %v3465_v60  ;;  %v10197_v36 = vpop.f32.mrb[62].mxu1 }
 0x278   : > { %8535 = vst.msk [vmem:[%s12483_s10 + $0xec] sm:$0xf] %vm8475_vm4, %v9665_v20  ;;  %v7769_v24 = vmul.f32 0.2, %v10586_v16  ;;  %v10588_v63 = vadd.f32 %v10461_v57, %v10197_v36  ;;  %v3468_v14 = vpop.f32.mrb[63].mxu1 }
 0x279   : > { %8533 = vst.msk [vmem:[%s12483_s10 + $0xe4] sm:$0xf] %vm8475_vm4, %v9663_v50  ;;  %v7767_v61 = vmul.f32 0.2, %v10587_v28  ;;  %v10589_v26 = vadd.f32 %v7311_v23, %v3468_v14 }
 0x27a   : > { %v7897_v40 = vmax.f32 %v10586_v16, %v7769_v24  ;;  %v7770_v17 = vmul.f32 0.2, %v10588_v63 }
 0x27b   : > { %v7895_v4 = vmax.f32 %v10587_v28, %v7767_v61  ;;  %v7768_v22 = vmul.f32 0.2, %v10589_v26 }
 0x27c   : > { %v10464_v31 = vpop.f32.mrb[64].mxu0  ;;  %v9668_v33 = vpack.c.bf16 %v7897_v40, %v7897_v40  ;;  %v7898_v35 = vmax.f32 %v10588_v63, %v7770_v17 }
 0x27d   : > { %v7324_v48 = vpop.f32.mrb[65].mxu0  ;;  %v9666_v12 = vpack.c.bf16 %v7895_v4, %v7895_v4  ;;  %v7896_v2 = vmax.f32 %v10589_v26, %v7768_v22 }
 0x27e   : > { %v10200_v32 = vpop.f32.mrb[64].mxu1  ;;  %8538 = vst.msk [vmem:[%s12483_s10 + $0xf8] sm:$0xf] %vm8475_vm4, %v9668_v33  ;;  %v10465_v9 = vpop.f32.mrb[66].mxu0  ;;  %v9669_v38 = vpack.c.bf16 %v7898_v35, %v7898_v35 }
 0x27f   : > { %v10590_v39 = vadd.f32 %v10464_v31, %v10200_v32  ;;  %v3481_v55 = vpop.f32.mrb[65].mxu1  ;;  %8536 = vst.msk [vmem:[%s12483_s10 + $0xf0] sm:$0xf] %vm8475_vm4, %v9666_v12  ;;  %v7327_v46 = vpop.f32.mrb[67].mxu0  ;;  %v9667_v52 = vpack.c.bf16 %v7896_v2, %v7896_v2 }
 0x280   : > { %v10591_v37 = vadd.f32 %v7324_v48, %v3481_v55  ;;  %v10201_v41 = vpop.f32.mrb[66].mxu1  ;;  %8539 = vst.msk [vmem:[%s12483_s10 + $0xfc] sm:$0xf] %vm8475_vm4, %v9669_v38 }
 0x281   : > { %v7773_v45 = vmul.f32 0.2, %v10590_v39  ;;  %v10592_v62 = vadd.f32 %v10465_v9, %v10201_v41  ;;  %v3484_v30 = vpop.f32.mrb[67].mxu1  ;;  %8537 = vst.msk [vmem:[%s12483_s10 + $0xf4] sm:$0xf] %vm8475_vm4, %v9667_v52 }
 0x282   : > { %v7771_v49 = vmul.f32 0.2, %v10591_v37  ;;  %v10593_v25 = vadd.f32 %v7327_v46, %v3484_v30 }
 0x283   : > { %v7901_v29 = vmax.f32 %v10590_v39, %v7773_v45  ;;  %v7774_v6 = vmul.f32 0.2, %v10592_v62 }
 0x284   : > { %v7899_v34 = vmax.f32 %v10591_v37, %v7771_v49  ;;  %v7772_v53 = vmul.f32 0.2, %v10593_v25 }
 0x285   : > { %v9672_v11 = vpack.c.bf16 %v7901_v29, %v7901_v29  ;;  %v7902_v59 = vmax.f32 %v10592_v62, %v7774_v6  ;;  %v10468_v42 = vpop.f32.mrb[68].mxu0 }
 0x286   : > { %v9670_v19 = vpack.c.bf16 %v7899_v34, %v7899_v34  ;;  %v7900_v7 = vmax.f32 %v10593_v25, %v7772_v53  ;;  %v7340_v47 = vpop.f32.mrb[69].mxu0  ;;  %v10204_v0 = vpop.f32.mrb[68].mxu1 }
 0x287   : > { %8542 = vst.msk [vmem:[%s12483_s10 + $0x108] sm:$0xf] %vm8475_vm4, %v9672_v11  ;;  %v9673_v21 = vpack.c.bf16 %v7902_v59, %v7902_v59  ;;  %v10469_v18 = vpop.f32.mrb[70].mxu0  ;;  %v10594_v54 = vadd.f32 %v10468_v42, %v10204_v0  ;;  %v3497_v56 = vpop.f32.mrb[69].mxu1 }
 0x288   : > { %8540 = vst.msk [vmem:[%s12483_s10 + $0x100] sm:$0xf] %vm8475_vm4, %v9670_v19  ;;  %v9671_v27 = vpack.c.bf16 %v7900_v7, %v7900_v7  ;;  %v7343_v58 = vpop.f32.mrb[71].mxu0  ;;  %v10595_v1 = vadd.f32 %v7340_v47, %v3497_v56  ;;  %v10205_v3 = vpop.f32.mrb[70].mxu1 }
 0x289   : > { %8543 = vst.msk [vmem:[%s12483_s10 + $0x10c] sm:$0xf] %vm8475_vm4, %v9673_v21  ;;  %v7777_v43 = vmul.f32 0.2, %v10594_v54  ;;  %v10596_v8 = vadd.f32 %v10469_v18, %v10205_v3  ;;  %v3500_v5 = vpop.f32.mrb[71].mxu1 }
 0x28a   : > { %8541 = vst.msk [vmem:[%s12483_s10 + $0x104] sm:$0xf] %vm8475_vm4, %v9671_v27  ;;  %v7775_v13 = vmul.f32 0.2, %v10595_v1  ;;  %v10597_v44 = vadd.f32 %v7343_v58, %v3500_v5 }
 0x28b   : > { %v7905_v51 = vmax.f32 %v10594_v54, %v7777_v43  ;;  %v7778_v10 = vmul.f32 0.2, %v10596_v8 }
 0x28c   : > { %v7903_v15 = vmax.f32 %v10595_v1, %v7775_v13  ;;  %v7776_v57 = vmul.f32 0.2, %v10597_v44 }
 0x28d   : > { %v10472_v20 = vpop.f32.mrb[72].mxu0  ;;  %v9676_v16 = vpack.c.bf16 %v7905_v51, %v7905_v51  ;;  %v7906_v60 = vmax.f32 %v10596_v8, %v7778_v10 }
 0x28e   : > { %v7356_v23 = vpop.f32.mrb[73].mxu0  ;;  %v9674_v50 = vpack.c.bf16 %v7903_v15, %v7903_v15  ;;  %v7904_v28 = vmax.f32 %v10597_v44, %v7776_v57 }
 0x28f   : > { %v10208_v36 = vpop.f32.mrb[72].mxu1  ;;  %8546 = vst.msk [vmem:[%s12483_s10 + $0x118] sm:$0xf] %vm8475_vm4, %v9676_v16  ;;  %v10473_v24 = vpop.f32.mrb[74].mxu0  ;;  %v9677_v63 = vpack.c.bf16 %v7906_v60, %v7906_v60 }
 0x290   : > { %v10598_v14 = vadd.f32 %v10472_v20, %v10208_v36  ;;  %v3513_v61 = vpop.f32.mrb[73].mxu1  ;;  %8544 = vst.msk [vmem:[%s12483_s10 + $0x110] sm:$0xf] %vm8475_vm4, %v9674_v50  ;;  %v7359_v26 = vpop.f32.mrb[75].mxu0  ;;  %v9675_v40 = vpack.c.bf16 %v7904_v28, %v7904_v28 }
 0x291   : > { %v10599_v17 = vadd.f32 %v7356_v23, %v3513_v61  ;;  %v10209_v4 = vpop.f32.mrb[74].mxu1  ;;  %8547 = vst.msk [vmem:[%s12483_s10 + $0x11c] sm:$0xf] %vm8475_vm4, %v9677_v63 }
 0x292   : > { %v7781_v22 = vmul.f32 0.2, %v10598_v14  ;;  %v10600_v31 = vadd.f32 %v10473_v24, %v10209_v4  ;;  %v3516_v33 = vpop.f32.mrb[75].mxu1  ;;  %8545 = vst.msk [vmem:[%s12483_s10 + $0x114] sm:$0xf] %vm8475_vm4, %v9675_v40 }
 0x293   : > { %v7779_v35 = vmul.f32 0.2, %v10599_v17  ;;  %v10601_v48 = vadd.f32 %v7359_v26, %v3516_v33 }
 0x294   : > { %v7909_v12 = vmax.f32 %v10598_v14, %v7781_v22  ;;  %v7782_v2 = vmul.f32 0.2, %v10600_v31 }
 0x295   : > { %v7907_v32 = vmax.f32 %v10599_v17, %v7779_v35  ;;  %v7780_v9 = vmul.f32 0.2, %v10601_v48 }
 0x296   : > { %v9680_v38 = vpack.c.bf16 %v7909_v12, %v7909_v12  ;;  %v7910_v39 = vmax.f32 %v10600_v31, %v7782_v2 }
 0x297   : > { %v10476_v55 = vpop.f32.mrb[76].mxu0  ;;  %v9678_v46 = vpack.c.bf16 %v7907_v32, %v7907_v32  ;;  %v7908_v52 = vmax.f32 %v10601_v48, %v7780_v9 }
 0x298   : > { %8550 = vst.msk [vmem:[%s12483_s10 + $0x128] sm:$0xf] %vm8475_vm4, %v9680_v38  ;;  %v7372_v37 = vpop.f32.mrb[77].mxu0  ;;  %v9681_v41 = vpack.c.bf16 %v7910_v39, %v7910_v39  ;;  %v10212_v45 = vpop.f32.mrb[76].mxu1 }
 0x299   : > { %8548 = vst.msk [vmem:[%s12483_s10 + $0x120] sm:$0xf] %vm8475_vm4, %v9678_v46  ;;  %v10477_v62 = vpop.f32.mrb[78].mxu0  ;;  %v9679_v30 = vpack.c.bf16 %v7908_v52, %v7908_v52  ;;  %v10602_v49 = vadd.f32 %v10476_v55, %v10212_v45  ;;  %v3529_v25 = vpop.f32.mrb[77].mxu1 }
 0x29a   : > { %8551 = vst.msk [vmem:[%s12483_s10 + $0x12c] sm:$0xf] %vm8475_vm4, %v9681_v41  ;;  %v7375_v29 = vpop.f32.mrb[79].mxu0  ;;  %v10603_v6 = vadd.f32 %v7372_v37, %v3529_v25  ;;  %v10213_v34 = vpop.f32.mrb[78].mxu1 }
 0x29b   : > { %8549 = vst.msk [vmem:[%s12483_s10 + $0x124] sm:$0xf] %vm8475_vm4, %v9679_v30  ;;  %v7785_v53 = vmul.f32 0.2, %v10602_v49  ;;  %v10604_v11 = vadd.f32 %v10477_v62, %v10213_v34  ;;  %v3532_v59 = vpop.f32.mrb[79].mxu1 }
 0x29c   : > { %v7783_v42 = vmul.f32 0.2, %v10603_v6  ;;  %v10605_v19 = vadd.f32 %v7375_v29, %v3532_v59 }
 0x29d   : > { %v7913_v7 = vmax.f32 %v10602_v49, %v7785_v53  ;;  %v7786_v47 = vmul.f32 0.2, %v10604_v11 }
 0x29e   : > { %v7911_v21 = vmax.f32 %v10603_v6, %v7783_v42  ;;  %v7784_v0 = vmul.f32 0.2, %v10605_v19 }
 0x29f   : > { %v10480_v18 = vpop.f32.mrb[80].mxu0  ;;  %v9684_v27 = vpack.c.bf16 %v7913_v7, %v7913_v7  ;;  %v7914_v54 = vmax.f32 %v10604_v11, %v7786_v47 }
 0x2a0   : > { %v7388_v56 = vpop.f32.mrb[81].mxu0  ;;  %v9682_v58 = vpack.c.bf16 %v7911_v21, %v7911_v21  ;;  %v7912_v1 = vmax.f32 %v10605_v19, %v7784_v0  ;;  %v10216_v8 = vpop.f32.mrb[80].mxu1 }
 0x2a1   : > { %8554 = vst.msk [vmem:[%s12483_s10 + $0x138] sm:$0xf] %vm8475_vm4, %v9684_v27  ;;  %v10481_v3 = vpop.f32.mrb[82].mxu0  ;;  %v9685_v43 = vpack.c.bf16 %v7914_v54, %v7914_v54  ;;  %v10606_v44 = vadd.f32 %v10480_v18, %v10216_v8  ;;  %v3545_v51 = vpop.f32.mrb[81].mxu1 }
 0x2a2   : > { %8552 = vst.msk [vmem:[%s12483_s10 + $0x130] sm:$0xf] %vm8475_vm4, %v9682_v58  ;;  %v7391_v5 = vpop.f32.mrb[83].mxu0  ;;  %v9683_v13 = vpack.c.bf16 %v7912_v1, %v7912_v1  ;;  %v10607_v10 = vadd.f32 %v7388_v56, %v3545_v51  ;;  %v10217_v15 = vpop.f32.mrb[82].mxu1 }
 0x2a3   : > { %8555 = vst.msk [vmem:[%s12483_s10 + $0x13c] sm:$0xf] %vm8475_vm4, %v9685_v43  ;;  %v7789_v57 = vmul.f32 0.2, %v10606_v44  ;;  %v10608_v20 = vadd.f32 %v10481_v3, %v10217_v15  ;;  %v3548_v16 = vpop.f32.mrb[83].mxu1 }
 0x2a4   : > { %8553 = vst.msk [vmem:[%s12483_s10 + $0x134] sm:$0xf] %vm8475_vm4, %v9683_v13  ;;  %v7787_v60 = vmul.f32 0.2, %v10607_v10  ;;  %v10609_v23 = vadd.f32 %v7391_v5, %v3548_v16 }
 0x2a5   : > { %v7917_v50 = vmax.f32 %v10606_v44, %v7789_v57  ;;  %v7790_v28 = vmul.f32 0.2, %v10608_v20 }
 0x2a6   : > { %v7915_v24 = vmax.f32 %v10607_v10, %v7787_v60  ;;  %v7788_v63 = vmul.f32 0.2, %v10609_v23 }
 0x2a7   : > { %v10484_v36 = vpop.f32.mrb[84].mxu0  ;;  %v9688_v14 = vpack.c.bf16 %v7917_v50, %v7917_v50  ;;  %v7918_v26 = vmax.f32 %v10608_v20, %v7790_v28 }
 0x2a8   : > { %v7404_v61 = vpop.f32.mrb[85].mxu0  ;;  %v9686_v40 = vpack.c.bf16 %v7915_v24, %v7915_v24  ;;  %v7916_v4 = vmax.f32 %v10609_v23, %v7788_v63  ;;  %v10220_v22 = vpop.f32.mrb[84].mxu1 }
 0x2a9   : > { %v10485_v17 = vpop.f32.mrb[86].mxu0  ;;  %8558 = vst.msk [vmem:[%s12483_s10 + $0x148] sm:$0xf] %vm8475_vm4, %v9688_v14  ;;  %v9689_v31 = vpack.c.bf16 %v7918_v26, %v7918_v26  ;;  %v10610_v35 = vadd.f32 %v10484_v36, %v10220_v22  ;;  %v3561_v48 = vpop.f32.mrb[85].mxu1 }
 0x2aa   : > { %v7407_v33 = vpop.f32.mrb[87].mxu0  ;;  %8556 = vst.msk [vmem:[%s12483_s10 + $0x140] sm:$0xf] %vm8475_vm4, %v9686_v40  ;;  %v9687_v12 = vpack.c.bf16 %v7916_v4, %v7916_v4  ;;  %v10611_v2 = vadd.f32 %v7404_v61, %v3561_v48  ;;  %v10221_v32 = vpop.f32.mrb[86].mxu1 }
 0x2ab   : > { %8559 = vst.msk [vmem:[%s12483_s10 + $0x14c] sm:$0xf] %vm8475_vm4, %v9689_v31  ;;  %v7793_v9 = vmul.f32 0.2, %v10610_v35  ;;  %v10612_v38 = vadd.f32 %v10485_v17, %v10221_v32  ;;  %v3564_v39 = vpop.f32.mrb[87].mxu1 }
 0x2ac   : > { %8557 = vst.msk [vmem:[%s12483_s10 + $0x144] sm:$0xf] %vm8475_vm4, %v9687_v12  ;;  %v7791_v55 = vmul.f32 0.2, %v10611_v2  ;;  %v10613_v46 = vadd.f32 %v7407_v33, %v3564_v39 }
 0x2ad   : > { %v7921_v52 = vmax.f32 %v10610_v35, %v7793_v9  ;;  %v7794_v37 = vmul.f32 0.2, %v10612_v38 }
 0x2ae   : > { %v7919_v41 = vmax.f32 %v10611_v2, %v7791_v55  ;;  %v7792_v45 = vmul.f32 0.2, %v10613_v46 }
 0x2af   : > { %v9692_v62 = vpack.c.bf16 %v7921_v52, %v7921_v52  ;;  %v7922_v30 = vmax.f32 %v10612_v38, %v7794_v37 }
 0x2b0   : > { %v10488_v49 = vpop.f32.mrb[88].mxu0  ;;  %v9690_v25 = vpack.c.bf16 %v7919_v41, %v7919_v41  ;;  %v7920_v29 = vmax.f32 %v10613_v46, %v7792_v45 }
 0x2b1   : > { %8562 = vst.msk [vmem:[%s12483_s10 + $0x158] sm:$0xf] %vm8475_vm4, %v9692_v62  ;;  %v7420_v6 = vpop.f32.mrb[89].mxu0  ;;  %v9693_v34 = vpack.c.bf16 %v7922_v30, %v7922_v30  ;;  %v10224_v53 = vpop.f32.mrb[88].mxu1 }
 0x2b2   : > { %8560 = vst.msk [vmem:[%s12483_s10 + $0x150] sm:$0xf] %vm8475_vm4, %v9690_v25  ;;  %v10489_v11 = vpop.f32.mrb[90].mxu0  ;;  %v9691_v59 = vpack.c.bf16 %v7920_v29, %v7920_v29  ;;  %v10614_v42 = vadd.f32 %v10488_v49, %v10224_v53  ;;  %v3577_v19 = vpop.f32.mrb[89].mxu1 }
 0x2b3   : > { %8563 = vst.msk [vmem:[%s12483_s10 + $0x15c] sm:$0xf] %vm8475_vm4, %v9693_v34  ;;  %v7423_v7 = vpop.f32.mrb[91].mxu0  ;;  %v10615_v47 = vadd.f32 %v7420_v6, %v3577_v19  ;;  %v10225_v21 = vpop.f32.mrb[90].mxu1 }
 0x2b4   : > { %8561 = vst.msk [vmem:[%s12483_s10 + $0x154] sm:$0xf] %vm8475_vm4, %v9691_v59  ;;  %v7797_v0 = vmul.f32 0.2, %v10614_v42  ;;  %v10616_v18 = vadd.f32 %v10489_v11, %v10225_v21  ;;  %v3580_v27 = vpop.f32.mrb[91].mxu1 }
 0x2b5   : > { %v7795_v54 = vmul.f32 0.2, %v10615_v47  ;;  %v10617_v56 = vadd.f32 %v7423_v7, %v3580_v27 }
 0x2b6   : > { %v7925_v58 = vmax.f32 %v10614_v42, %v7797_v0  ;;  %v7798_v1 = vmul.f32 0.2, %v10616_v18 }
 0x2b7   : > { %v7923_v3 = vmax.f32 %v10615_v47, %v7795_v54  ;;  %v7796_v43 = vmul.f32 0.2, %v10617_v56 }
 0x2b8   : > { %v10492_v8 = vpop.f32.mrb[92].mxu0  ;;  %v9696_v5 = vpack.c.bf16 %v7925_v58, %v7925_v58  ;;  %v7926_v13 = vmax.f32 %v10616_v18, %v7798_v1 }
 0x2b9   : > { %v7436_v44 = vpop.f32.mrb[93].mxu0  ;;  %v9694_v51 = vpack.c.bf16 %v7923_v3, %v7923_v3  ;;  %v7924_v10 = vmax.f32 %v10617_v56, %v7796_v43  ;;  %v10228_v15 = vpop.f32.mrb[92].mxu1 }
 0x2ba   : > { %8566 = vst.msk [vmem:[%s12483_s10 + $0x168] sm:$0xf] %vm8475_vm4, %v9696_v5  ;;  %v10493_v57 = vpop.f32.mrb[94].mxu0  ;;  %v9697_v20 = vpack.c.bf16 %v7926_v13, %v7926_v13  ;;  %v10618_v16 = vadd.f32 %v10492_v8, %v10228_v15  ;;  %v3593_v60 = vpop.f32.mrb[93].mxu1 }
 0x2bb   : > { %8564 = vst.msk [vmem:[%s12483_s10 + $0x160] sm:$0xf] %vm8475_vm4, %v9694_v51  ;;  %v7439_v23 = vpop.f32.mrb[95].mxu0  ;;  %v9695_v50 = vpack.c.bf16 %v7924_v10, %v7924_v10  ;;  %v10619_v28 = vadd.f32 %v7436_v44, %v3593_v60  ;;  %v10229_v36 = vpop.f32.mrb[94].mxu1 }
 0x2bc   : > { %8567 = vst.msk [vmem:[%s12483_s10 + $0x16c] sm:$0xf] %vm8475_vm4, %v9697_v20  ;;  %v7801_v24 = vmul.f32 0.2, %v10618_v16  ;;  %v10620_v63 = vadd.f32 %v10493_v57, %v10229_v36  ;;  %v3596_v14 = vpop.f32.mrb[95].mxu1 }
 0x2bd   : > { %8565 = vst.msk [vmem:[%s12483_s10 + $0x164] sm:$0xf] %vm8475_vm4, %v9695_v50  ;;  %v7799_v61 = vmul.f32 0.2, %v10619_v28  ;;  %v10621_v26 = vadd.f32 %v7439_v23, %v3596_v14 }
 0x2be   : > { %v7929_v40 = vmax.f32 %v10618_v16, %v7801_v24  ;;  %v7802_v17 = vmul.f32 0.2, %v10620_v63 }
 0x2bf   : > { %v7927_v4 = vmax.f32 %v10619_v28, %v7799_v61  ;;  %v7800_v22 = vmul.f32 0.2, %v10621_v26 }
 0x2c0   : > { %v10496_v31 = vpop.f32.mrb[96].mxu0  ;;  %v9700_v33 = vpack.c.bf16 %v7929_v40, %v7929_v40  ;;  %v7930_v35 = vmax.f32 %v10620_v63, %v7802_v17 }
 0x2c1   : > { %v7452_v48 = vpop.f32.mrb[97].mxu0  ;;  %v9698_v12 = vpack.c.bf16 %v7927_v4, %v7927_v4  ;;  %v7928_v2 = vmax.f32 %v10621_v26, %v7800_v22 }
 0x2c2   : > { %v10232_v32 = vpop.f32.mrb[96].mxu1  ;;  %8570 = vst.msk [vmem:[%s12483_s10 + $0x178] sm:$0xf] %vm8475_vm4, %v9700_v33  ;;  %v10497_v9 = vpop.f32.mrb[98].mxu0  ;;  %v9701_v38 = vpack.c.bf16 %v7930_v35, %v7930_v35 }
 0x2c3   : > { %v10622_v39 = vadd.f32 %v10496_v31, %v10232_v32  ;;  %v3609_v55 = vpop.f32.mrb[97].mxu1  ;;  %8568 = vst.msk [vmem:[%s12483_s10 + $0x170] sm:$0xf] %vm8475_vm4, %v9698_v12  ;;  %v7455_v46 = vpop.f32.mrb[99].mxu0  ;;  %v9699_v52 = vpack.c.bf16 %v7928_v2, %v7928_v2 }
 0x2c4   : > { %v10623_v37 = vadd.f32 %v7452_v48, %v3609_v55  ;;  %v10233_v41 = vpop.f32.mrb[98].mxu1  ;;  %8571 = vst.msk [vmem:[%s12483_s10 + $0x17c] sm:$0xf] %vm8475_vm4, %v9701_v38 }
 0x2c5   : > { %v7805_v45 = vmul.f32 0.2, %v10622_v39  ;;  %v10624_v62 = vadd.f32 %v10497_v9, %v10233_v41  ;;  %v3612_v30 = vpop.f32.mrb[99].mxu1  ;;  %8569 = vst.msk [vmem:[%s12483_s10 + $0x174] sm:$0xf] %vm8475_vm4, %v9699_v52 }
 0x2c6   : > { %v7803_v49 = vmul.f32 0.2, %v10623_v37  ;;  %v10625_v25 = vadd.f32 %v7455_v46, %v3612_v30 }
 0x2c7   : > { %v7933_v29 = vmax.f32 %v10622_v39, %v7805_v45  ;;  %v7806_v6 = vmul.f32 0.2, %v10624_v62 }
 0x2c8   : > { %v7931_v34 = vmax.f32 %v10623_v37, %v7803_v49  ;;  %v7804_v53 = vmul.f32 0.2, %v10625_v25 }
 0x2c9   : > { %v9704_v11 = vpack.c.bf16 %v7933_v29, %v7933_v29  ;;  %v7934_v59 = vmax.f32 %v10624_v62, %v7806_v6  ;;  %v10500_v42 = vpop.f32.mrb[100].mxu0 }
 0x2ca   : > { %v9702_v19 = vpack.c.bf16 %v7931_v34, %v7931_v34  ;;  %v7932_v7 = vmax.f32 %v10625_v25, %v7804_v53  ;;  %v7468_v47 = vpop.f32.mrb[101].mxu0  ;;  %v10236_v0 = vpop.f32.mrb[100].mxu1 }
 0x2cb   : > { %8574 = vst.msk [vmem:[%s12483_s10 + $0x188] sm:$0xf] %vm8475_vm4, %v9704_v11  ;;  %v9705_v21 = vpack.c.bf16 %v7934_v59, %v7934_v59  ;;  %v10501_v18 = vpop.f32.mrb[102].mxu0  ;;  %v10626_v54 = vadd.f32 %v10500_v42, %v10236_v0  ;;  %v3625_v56 = vpop.f32.mrb[101].mxu1 }
 0x2cc   : > { %8572 = vst.msk [vmem:[%s12483_s10 + $0x180] sm:$0xf] %vm8475_vm4, %v9702_v19  ;;  %v9703_v27 = vpack.c.bf16 %v7932_v7, %v7932_v7  ;;  %v7471_v58 = vpop.f32.mrb[103].mxu0  ;;  %v10627_v1 = vadd.f32 %v7468_v47, %v3625_v56  ;;  %v10237_v3 = vpop.f32.mrb[102].mxu1 }
 0x2cd   : > { %8575 = vst.msk [vmem:[%s12483_s10 + $0x18c] sm:$0xf] %vm8475_vm4, %v9705_v21  ;;  %v7809_v43 = vmul.f32 0.2, %v10626_v54  ;;  %v10628_v8 = vadd.f32 %v10501_v18, %v10237_v3  ;;  %v3628_v5 = vpop.f32.mrb[103].mxu1 }
 0x2ce   : > { %8573 = vst.msk [vmem:[%s12483_s10 + $0x184] sm:$0xf] %vm8475_vm4, %v9703_v27  ;;  %v7807_v13 = vmul.f32 0.2, %v10627_v1  ;;  %v10629_v44 = vadd.f32 %v7471_v58, %v3628_v5 }
 0x2cf   : > { %v7937_v51 = vmax.f32 %v10626_v54, %v7809_v43  ;;  %v7810_v10 = vmul.f32 0.2, %v10628_v8 }
 0x2d0   : > { %v7935_v15 = vmax.f32 %v10627_v1, %v7807_v13  ;;  %v7808_v57 = vmul.f32 0.2, %v10629_v44 }
 0x2d1   : > { %v10504_v20 = vpop.f32.mrb[104].mxu0  ;;  %v9708_v16 = vpack.c.bf16 %v7937_v51, %v7937_v51  ;;  %v7938_v60 = vmax.f32 %v10628_v8, %v7810_v10 }
 0x2d2   : > { %v7484_v23 = vpop.f32.mrb[105].mxu0  ;;  %v9706_v50 = vpack.c.bf16 %v7935_v15, %v7935_v15  ;;  %v7936_v28 = vmax.f32 %v10629_v44, %v7808_v57 }
 0x2d3   : > { %v10240_v36 = vpop.f32.mrb[104].mxu1  ;;  %8578 = vst.msk [vmem:[%s12483_s10 + $0x198] sm:$0xf] %vm8475_vm4, %v9708_v16  ;;  %v10505_v24 = vpop.f32.mrb[106].mxu0  ;;  %v9709_v63 = vpack.c.bf16 %v7938_v60, %v7938_v60 }
 0x2d4   : > { %v10630_v14 = vadd.f32 %v10504_v20, %v10240_v36  ;;  %v3641_v61 = vpop.f32.mrb[105].mxu1  ;;  %8576 = vst.msk [vmem:[%s12483_s10 + $0x190] sm:$0xf] %vm8475_vm4, %v9706_v50  ;;  %v7487_v26 = vpop.f32.mrb[107].mxu0  ;;  %v9707_v40 = vpack.c.bf16 %v7936_v28, %v7936_v28 }
 0x2d5   : > { %v10631_v17 = vadd.f32 %v7484_v23, %v3641_v61  ;;  %v10241_v4 = vpop.f32.mrb[106].mxu1  ;;  %8579 = vst.msk [vmem:[%s12483_s10 + $0x19c] sm:$0xf] %vm8475_vm4, %v9709_v63 }
 0x2d6   : > { %v7813_v22 = vmul.f32 0.2, %v10630_v14  ;;  %v10632_v31 = vadd.f32 %v10505_v24, %v10241_v4  ;;  %v3644_v33 = vpop.f32.mrb[107].mxu1  ;;  %8577 = vst.msk [vmem:[%s12483_s10 + $0x194] sm:$0xf] %vm8475_vm4, %v9707_v40 }
 0x2d7   : > { %v7811_v35 = vmul.f32 0.2, %v10631_v17  ;;  %v10633_v48 = vadd.f32 %v7487_v26, %v3644_v33 }
 0x2d8   : > { %v7941_v12 = vmax.f32 %v10630_v14, %v7813_v22  ;;  %v7814_v2 = vmul.f32 0.2, %v10632_v31 }
 0x2d9   : > { %v7939_v32 = vmax.f32 %v10631_v17, %v7811_v35  ;;  %v7812_v9 = vmul.f32 0.2, %v10633_v48 }
 0x2da   : > { %v9712_v38 = vpack.c.bf16 %v7941_v12, %v7941_v12  ;;  %v7942_v39 = vmax.f32 %v10632_v31, %v7814_v2 }
 0x2db   : > { %v10508_v55 = vpop.f32.mrb[108].mxu0  ;;  %v9710_v46 = vpack.c.bf16 %v7939_v32, %v7939_v32  ;;  %v7940_v52 = vmax.f32 %v10633_v48, %v7812_v9 }
 0x2dc   : > { %8582 = vst.msk [vmem:[%s12483_s10 + $0x1a8] sm:$0xf] %vm8475_vm4, %v9712_v38  ;;  %v7500_v37 = vpop.f32.mrb[109].mxu0  ;;  %v9713_v41 = vpack.c.bf16 %v7942_v39, %v7942_v39 }
 0x2dd   : > { %8580 = vst.msk [vmem:[%s12483_s10 + $0x1a0] sm:$0xf] %vm8475_vm4, %v9710_v46  ;;  %v10509_v45 = vpop.f32.mrb[110].mxu0  ;;  %v9711_v62 = vpack.c.bf16 %v7940_v52, %v7940_v52 }
 0x2de   : > { %8583 = vst.msk [vmem:[%s12483_s10 + $0x1ac] sm:$0xf] %vm8475_vm4, %v9713_v41  ;;  %v7503_v30 = vpop.f32.mrb[111].mxu0  ;;  %v10244_v49 = vpop.f32.mrb[108].mxu1 }
 0x2df   : > { %8581 = vst.msk [vmem:[%s12483_s10 + $0x1a4] sm:$0xf] %vm8475_vm4, %v9711_v62  ;;  %v10634_v25 = vadd.f32 %v10508_v55, %v10244_v49  ;;  %v3657_v29 = vpop.f32.mrb[109].mxu1 }
 0x2e0   : > { %v10635_v6 = vadd.f32 %v7500_v37, %v3657_v29  ;;  %v10245_v34 = vpop.f32.mrb[110].mxu1 }
 0x2e1   : > { %v7817_v53 = vmul.f32 0.2, %v10634_v25  ;;  %v10636_v11 = vadd.f32 %v10509_v45, %v10245_v34  ;;  %v3660_v59 = vpop.f32.mrb[111].mxu1 }
 0x2e2   : > { %v7815_v42 = vmul.f32 0.2, %v10635_v6  ;;  %v10637_v19 = vadd.f32 %v7503_v30, %v3660_v59 }
 0x2e3   : > { %v7945_v7 = vmax.f32 %v10634_v25, %v7817_v53  ;;  %v7818_v47 = vmul.f32 0.2, %v10636_v11 }
 0x2e4   : > { %v7943_v21 = vmax.f32 %v10635_v6, %v7815_v42  ;;  %v7816_v0 = vmul.f32 0.2, %v10637_v19 }
 0x2e5   : > { %v9716_v18 = vpack.c.bf16 %v7945_v7, %v7945_v7  ;;  %v7946_v27 = vmax.f32 %v10636_v11, %v7818_v47 }
 0x2e6   : > { %v9714_v54 = vpack.c.bf16 %v7943_v21, %v7943_v21  ;;  %v7944_v56 = vmax.f32 %v10637_v19, %v7816_v0 }
 0x2e7   : > { %v10512_v58 = vpop.f32.mrb[112].mxu0  ;;  %8586 = vst.msk [vmem:[%s12483_s10 + $0x1b8] sm:$0xf] %vm8475_vm4, %v9716_v18  ;;  %v9717_v1 = vpack.c.bf16 %v7946_v27, %v7946_v27 }
 0x2e8   : > { %v7516_v3 = vpop.f32.mrb[113].mxu0  ;;  %8584 = vst.msk [vmem:[%s12483_s10 + $0x1b0] sm:$0xf] %vm8475_vm4, %v9714_v54  ;;  %v9715_v43 = vpack.c.bf16 %v7944_v56, %v7944_v56 }
 0x2e9   : > { %v10513_v8 = vpop.f32.mrb[114].mxu0  ;;  %8587 = vst.msk [vmem:[%s12483_s10 + $0x1bc] sm:$0xf] %vm8475_vm4, %v9717_v1 }
 0x2ea   : > { %v7519_v5 = vpop.f32.mrb[115].mxu0  ;;  %8585 = vst.msk [vmem:[%s12483_s10 + $0x1b4] sm:$0xf] %vm8475_vm4, %v9715_v43 }
 0x2eb   : > { %v10248_v13 = vpop.f32.mrb[112].mxu1 }
 0x2ec   : > { %v10638_v44 = vadd.f32 %v10512_v58, %v10248_v13  ;;  %v3673_v51 = vpop.f32.mrb[113].mxu1 }
 0x2ed   : > { %v10639_v10 = vadd.f32 %v7516_v3, %v3673_v51  ;;  %v10249_v15 = vpop.f32.mrb[114].mxu1 }
 0x2ee   : > { %v7821_v57 = vmul.f32 0.2, %v10638_v44  ;;  %v10640_v20 = vadd.f32 %v10513_v8, %v10249_v15  ;;  %v3676_v16 = vpop.f32.mrb[115].mxu1 }
 0x2ef   : > { %v7819_v60 = vmul.f32 0.2, %v10639_v10  ;;  %v10641_v23 = vadd.f32 %v7519_v5, %v3676_v16 }
 0x2f0   : > { %v7949_v50 = vmax.f32 %v10638_v44, %v7821_v57  ;;  %v7822_v28 = vmul.f32 0.2, %v10640_v20 }
 0x2f1   : > { %v7947_v36 = vmax.f32 %v10639_v10, %v7819_v60  ;;  %v7820_v24 = vmul.f32 0.2, %v10641_v23 }
 0x2f2   : > { %v9720_v63 = vpack.c.bf16 %v7949_v50, %v7949_v50  ;;  %v7950_v14 = vmax.f32 %v10640_v20, %v7822_v28 }
 0x2f3   : > { %v10516_v61 = vpop.f32.mrb[116].mxu0  ;;  %v9718_v26 = vpack.c.bf16 %v7947_v36, %v7947_v36  ;;  %v7948_v40 = vmax.f32 %v10641_v23, %v7820_v24 }
 0x2f4   : > { %8590 = vst.msk [vmem:[%s12483_s10 + $0x1c8] sm:$0xf] %vm8475_vm4, %v9720_v63  ;;  %v7532_v17 = vpop.f32.mrb[117].mxu0  ;;  %v9721_v4 = vpack.c.bf16 %v7950_v14, %v7950_v14 }
 0x2f5   : > { %8588 = vst.msk [vmem:[%s12483_s10 + $0x1c0] sm:$0xf] %vm8475_vm4, %v9718_v26  ;;  %v10517_v22 = vpop.f32.mrb[118].mxu0  ;;  %v9719_v31 = vpack.c.bf16 %v7948_v40, %v7948_v40  ;;  %v10252_v35 = vpop.f32.mrb[116].mxu1 }
 0x2f6   : > { %8591 = vst.msk [vmem:[%s12483_s10 + $0x1cc] sm:$0xf] %vm8475_vm4, %v9721_v4  ;;  %v7535_v33 = vpop.f32.mrb[119].mxu0  ;;  %v10642_v48 = vadd.f32 %v10516_v61, %v10252_v35  ;;  %v3689_v12 = vpop.f32.mrb[117].mxu1 }
 0x2f7   : > { %8589 = vst.msk [vmem:[%s12483_s10 + $0x1c4] sm:$0xf] %vm8475_vm4, %v9719_v31  ;;  %v10643_v2 = vadd.f32 %v7532_v17, %v3689_v12  ;;  %v10253_v32 = vpop.f32.mrb[118].mxu1 }
 0x2f8   : > { %v7825_v9 = vmul.f32 0.2, %v10642_v48  ;;  %v10644_v38 = vadd.f32 %v10517_v22, %v10253_v32  ;;  %v3692_v39 = vpop.f32.mrb[119].mxu1 }
 0x2f9   : > { %v7823_v55 = vmul.f32 0.2, %v10643_v2  ;;  %v10645_v46 = vadd.f32 %v7535_v33, %v3692_v39 }
 0x2fa   : > { %v7953_v52 = vmax.f32 %v10642_v48, %v7825_v9  ;;  %v7826_v37 = vmul.f32 0.2, %v10644_v38 }
 0x2fb   : > { %v7951_v41 = vmax.f32 %v10643_v2, %v7823_v55  ;;  %v7824_v45 = vmul.f32 0.2, %v10645_v46 }
 0x2fc   : > { %v9724_v62 = vpack.c.bf16 %v7953_v52, %v7953_v52  ;;  %v7954_v30 = vmax.f32 %v10644_v38, %v7826_v37 }
 0x2fd   : > { %v9722_v25 = vpack.c.bf16 %v7951_v41, %v7951_v41  ;;  %v7952_v29 = vmax.f32 %v10645_v46, %v7824_v45 }
 0x2fe   : > { %8594 = vst.msk [vmem:[%s12483_s10 + $0x1d8] sm:$0xf] %vm8475_vm4, %v9724_v62  ;;  %v9725_v34 = vpack.c.bf16 %v7954_v30, %v7954_v30 }
 0x2ff   : > { %v10520_v49 = vpop.f32.mrb[120].mxu0  ;;  %8592 = vst.msk [vmem:[%s12483_s10 + $0x1d0] sm:$0xf] %vm8475_vm4, %v9722_v25  ;;  %v9723_v11 = vpack.c.bf16 %v7952_v29, %v7952_v29 }
 0x300   : > { %v7548_v6 = vpop.f32.mrb[121].mxu0  ;;  %8595 = vst.msk [vmem:[%s12483_s10 + $0x1dc] sm:$0xf] %vm8475_vm4, %v9725_v34 }
 0x301   : > { %v10521_v53 = vpop.f32.mrb[122].mxu0  ;;  %8593 = vst.msk [vmem:[%s12483_s10 + $0x1d4] sm:$0xf] %vm8475_vm4, %v9723_v11 }
 0x302   : > { %v7551_v59 = vpop.f32.mrb[123].mxu0  ;;  %v10256_v42 = vpop.f32.mrb[120].mxu1 }
 0x303   : > { %v10646_v19 = vadd.f32 %v10520_v49, %v10256_v42  ;;  %v3705_v7 = vpop.f32.mrb[121].mxu1 }
 0x304   : > { %v10647_v47 = vadd.f32 %v7548_v6, %v3705_v7  ;;  %v10257_v21 = vpop.f32.mrb[122].mxu1 }
 0x305   : > { %v7829_v0 = vmul.f32 0.2, %v10646_v19  ;;  %v10648_v18 = vadd.f32 %v10521_v53, %v10257_v21  ;;  %v3708_v27 = vpop.f32.mrb[123].mxu1 }
 0x306   : > { %v7827_v54 = vmul.f32 0.2, %v10647_v47  ;;  %v10649_v56 = vadd.f32 %v7551_v59, %v3708_v27 }
 0x307   : > { %v7957_v58 = vmax.f32 %v10646_v19, %v7829_v0  ;;  %v7830_v1 = vmul.f32 0.2, %v10648_v18 }
 0x308   : > { %v7955_v3 = vmax.f32 %v10647_v47, %v7827_v54  ;;  %v7828_v43 = vmul.f32 0.2, %v10649_v56 }
 0x309   : > { %v9728_v8 = vpack.c.bf16 %v7957_v58, %v7957_v58  ;;  %v7958_v5 = vmax.f32 %v10648_v18, %v7830_v1 }
 0x30a   : > { %v9726_v44 = vpack.c.bf16 %v7955_v3, %v7955_v3  ;;  %v7956_v51 = vmax.f32 %v10649_v56, %v7828_v43 }
 0x30b   : > { %v10260_v10 = vpop.f32.mrb[124].mxu1  ;;  %8598 = vst.msk [vmem:[%s12483_s10 + $0x1e8] sm:$0xf] %vm8475_vm4, %v9728_v8  ;;  %v9729_v57 = vpack.c.bf16 %v7958_v5, %v7958_v5 }
 0x30c   : > { %v10524_v13 = vpop.f32.mrb[124].mxu0  ;;  %v3721_v16 = vpop.f32.mrb[125].mxu1  ;;  %8596 = vst.msk [vmem:[%s12483_s10 + $0x1e0] sm:$0xf] %vm8475_vm4, %v9726_v44  ;;  %v9727_v23 = vpack.c.bf16 %v7956_v51, %v7956_v51 }
 0x30d   : > { %v7564_v15 = vpop.f32.mrb[125].mxu0  ;;  %v10650_v20 = vadd.f32 %v10524_v13, %v10260_v10  ;;  %v10261_v28 = vpop.f32.mrb[126].mxu1  ;;  %8599 = vst.msk [vmem:[%s12483_s10 + $0x1ec] sm:$0xf] %vm8475_vm4, %v9729_v57 }
 0x30e   : > { %v10525_v60 = vpop.f32.mrb[126].mxu0  ;;  %v10651_v50 = vadd.f32 %v7564_v15, %v3721_v16  ;;  %v3724_v14 = vpop.f32.mrb[127].mxu1  ;;  %8597 = vst.msk [vmem:[%s12483_s10 + $0x1e4] sm:$0xf] %vm8475_vm4, %v9727_v23 }
 0x30f   : > { %v7567_v36 = vpop.f32.mrb[127].mxu0  ;;  %v7833_v24 = vmul.f32 0.2, %v10650_v20  ;;  %v10652_v63 = vadd.f32 %v10525_v60, %v10261_v28 }
 0x310   : > { %v7831_v61 = vmul.f32 0.2, %v10651_v50  ;;  %v10653_v26 = vadd.f32 %v7567_v36, %v3724_v14 }
 0x311   : > { %v7961_v40 = vmax.f32 %v10650_v20, %v7833_v24  ;;  %v7834_v17 = vmul.f32 0.2, %v10652_v63 }
 0x312   : > { %v7959_v4 = vmax.f32 %v10651_v50, %v7831_v61  ;;  %v7832_v22 = vmul.f32 0.2, %v10653_v26 }
 0x313   : > { %v9732_v31 = vpack.c.bf16 %v7961_v40, %v7961_v40  ;;  %v7962_v33 = vmax.f32 %v10652_v63, %v7834_v17 }
 0x314   : > { %v9730_v35 = vpack.c.bf16 %v7959_v4, %v7959_v4  ;;  %v7960_v48 = vmax.f32 %v10653_v26, %v7832_v22 }
 0x315   : > { %8602 = vst.msk [vmem:[%s12483_s10 + $0x1f8] sm:$0xf] %vm8475_vm4, %v9732_v31  ;;  %v9733_v12 = vpack.c.bf16 %v7962_v33, %v7962_v33 }
 0x316   : > { %8600 = vst.msk [vmem:[%s12483_s10 + $0x1f0] sm:$0xf] %vm8475_vm4, %v9730_v35  ;;  %v9731_v2 = vpack.c.bf16 %v7960_v48, %v7960_v48 }
 0x317   : > { %8603 = vst.msk [vmem:[%s12483_s10 + $0x1fc] sm:$0xf] %vm8475_vm4, %v9733_v12 }
 0x318   : > { %8601 = vst.msk [vmem:[%s12483_s10 + $0x1f4] sm:$0xf] %vm8475_vm4, %v9731_v2 }
 0x319 PF: > { %s12_s9 = sadd.s32 1, %s11177_s9  }
 0x31a   : > { %p9_p5 = scmp.ge.s32.totalorder %s12_s9, 4  }
 0x31c   :  { %11 = sbr.rel (!%p9_p5) target bundleno = 1 (0x1), region = 59 }

// kernel: wgangp_discriminator_forward.5
= control target key start
LH: loop header
LB: loop body
LE: loop exit
PB: predicated region body
PF: predicated region fallthrough
CT: control target
= control target key end

     0   :  { %s3326_s9 = smov 0   ;;  %s3961_s0 = inlined_call_operand.vmem [shape: bf16[2,17,17,64], index: 0, kind: input, shape index: {}]   ;;  %s3962_s1 = inlined_call_operand.vmem [shape: bf16[256,32], index: 1, kind: input, shape index: {}]   ;;  %s3963_s2 = inlined_call_operand.vmem [shape: bf16[512,32], index: 2, kind: output, shape index: {}]  }
   0x1 LB: > { %s3332_s10 = sadd.s32 4294967295, %s3309_s9   ;;  %p2616_p0 = scmp.ge.s32.totalorder %s3309_s9, 1  ;;  %s3309_s9 = sphi %s3326_s9, %s12_s9  }
   0x2   : > { %p112_p1 = scmp.lt.s32.totalorder %s3309_s9, 3 }
   0x4   : > { %p113_p2 = pnand %p2616_p0, %p112_p1 }
   0x5   : > { %v3255_v0 = vld [vmem:[%s3962_s1 + $0x20] sm:$0xff] (!%p113_p2)   ;;  %p134_p3 = scmp.lt.s32.totalorder (!%p113_p2), %s3332_s10, 1  ;;  %v3257_v2 = vld [vmem:[%s3962_s1 + $0x28] sm:$0xff] (!%p113_p2)   ;;  %v3259_v4 = vld [vmem:[%s3962_s1 + $0x30] sm:$0xff] (!%p113_p2)   ;;  %vm669_vm0 = vcmask (!%p113_p2), 523264   ;;  %vm2523_vm4 = vcmask (!%p113_p2), 257024  }
   0x6   : > { %116 = sbr.rel (%p113_p2) target bundleno = 389 (0x185), region = 28  ;;  %v3256_v1 = vld [vmem:[%s3962_s1 + $0x40] sm:$0xff] (!%p113_p2)   ;;  %2990 = vmatprep.subr.bf16.mxu1 (!%p113_p2), %v3255_v0  ;;  %v3258_v3 = vld [vmem:[%s3962_s1 + $0x48] sm:$0xff] (!%p113_p2)   ;;  %v3260_v5 = vld [vmem:[%s3962_s1 + $0x50] sm:$0xff] (!%p113_p2)   ;;  %vm202_vm1 = vsmask.f32 (!%p113_p2), 3328 }
   0x7   : > { %3070 = vmatprep.subr.bf16.mxu0 (!%p113_p2), %v3256_v1  ;;  %2991 = vmatpush3.bf16.msra.mxu1 (!%p113_p2), %v3255_v0  ;;  %v3261_v6 = vld [vmem:[%s3962_s1 + $0x38] sm:$0xff] (!%p113_p2)   ;;  %vm203_vm2 = vsmask.f32 (!%p113_p2), 7440  ;;  %v3383_v17 = vld [vmem:[%s3962_s1] sm:$0xff] (!%p113_p2)  }
   0x8   : > { %3071 = vmatpush3.bf16.msra.mxu0 (!%p113_p2), %v3256_v1  ;;  %2992 = vmatprep.subr.bf16.mxu1 (!%p113_p2), %v3257_v2  ;;  %v3262_v7 = vld [vmem:[%s3962_s1 + $0x58] sm:$0xff] (!%p113_p2)   ;;  %vm3388_vm3 = vmor (!%p113_p2), %vm202_vm1, %vm203_vm2  ;;  %v3266_v27 = vld [vmem:[%s3962_s1 + $0x60] sm:$0xff] (!%p113_p2)  }
   0x9   : > { %3072 = vmatprep.subr.bf16.mxu0 (!%p113_p2), %v3258_v3 }
   0xb   : > { %2993 = vmatpush3.bf16.msra.mxu1 (!%p113_p2), %v3257_v2 }
   0xc   : > { %3073 = vmatpush3.bf16.msra.mxu0 (!%p113_p2), %v3258_v3  ;;  %2994 = vmatprep.subr.bf16.mxu1 (!%p113_p2), %v3259_v4 }
   0xd   : > { %s135_s17 = scalar_select %p134_p3, %s3332_s10, 1  ;;  %3074 = vmatprep.subr.bf16.mxu0 %v3260_v5 }
   0xf   : > { %s3246_s22 = smul.u32 204, %s135_s17  ;;  %2995 = vmatpush3.bf16.msra.mxu1 %v3259_v4 }
  0x10   : > { %3075 = vmatpush3.bf16.msra.mxu0 %v3260_v5  ;;  %2996 = vmatprep.subr.bf16.mxu1 %v3261_v6 }
  0x11   : > { %s3362_s29 = scalar_lea.vmem %s3961_s0, %s3246_s22  ;;  %3076 = vmatprep.subr.bf16.mxu0 %v3262_v7  ;;  %s2618_s22 = sshll.u32 %s3332_s10, 5 }
  0x12   : > { %v3263_v8 = vld [vmem:[%s3362_s29 + $0xc] sm:$0xff]   ;;  %v3369_v9 = vld [vmem:[%s3362_s29] sm:$0xf]  ;;  %v3372_v10 = vld [vmem:[%s3362_s29 + $0x4] sm:$0xf]  ;;  %p140_p4 = scmp.lt.s32.totalorder %s2618_s22, 63 }
  0x13   : > { %v186_v11 = vld [vmem:[%s3362_s29 + $0x8] sm:$0x1]  ;;  %3078 = vmatprep.mubr.msk.bf16.mxu0 %vm669_vm0, %v3263_v8  ;;  %v206_v12 = vshrl.u32 %v3369_v9, 16  ;;  %v209_v13 = vshll.u32 %v3369_v9, 16  ;;  %v215_v14 = vshll.u32 %v3372_v10, 16  ;;  %v219_v15 = vshrl.u32 %v3372_v10, 16  ;;  %2997 = vmatpush3.bf16.msra.mxu1 %v3261_v6 }
  0x14   : > { %v225_v16 = vshll.u32 %v186_v11, 16  ;;  %v2656_v18 = vcombine.low %v3369_v9, %v3372_v10  ;;  %v3265_v24 = vld [vmem:[%s3362_s29 + $0x18] sm:$0xff]   ;;  %v3397_v29 = vld [vmem:[%s3362_s29 + $0xc] sm:$0xf]  ;;  %v3400_v30 = vld [vmem:[%s3362_s29 + $0x10] sm:$0xf]  ;;  %3077 = vmatpush3.bf16.msra.mxu0 %v3262_v7  ;;  %3030 = vmatprep.subr.bf16.mxu1 %v3383_v17 }
  0x15   : > { %v208_v19 = vrot.slane %v206_v12, 4  ;;  %v211_v20 = vrot.slane %v209_v13, 5  ;;  %v217_v22 = vrot.slane %v215_v14, 5  ;;  %v221_v23 = vrot.slane %v219_v15, 4  ;;  %v187_v31 = vld [vmem:[%s3362_s29 + $0x14] sm:$0x1]  ;;  %3110 = vmatprep.subr.bf16.mxu0 %v3266_v27 }
  0x16   : > { %v227_v26 = vrot.slane %v225_v16, 5  ;;  %v230_v33 = vshrl.u32 %v3397_v29, 16  ;;  %v233_v34 = vshll.u32 %v3397_v29, 16  ;;  %v239_v35 = vshll.u32 %v3400_v30, 16  ;;  %v3267_v39 = vld [vmem:[%s3362_s29 + $0x24] sm:$0xff]   ;;  %v3268_v59 = vld [vmem:[%s3362_s29 + $0x30] sm:$0xff]  }
  0x17   : > { %v212_v25 = vor.u32 %v211_v20, %v208_v19  ;;  %v222_v28 = vor.u32 %v221_v23, %v217_v22  ;;  %v243_v37 = vshrl.u32 %v3400_v30, 16  ;;  %v249_v38 = vshll.u32 %v187_v31, 16  ;;  %v3414_v45 = vld [vmem:[%s3362_s29 + $0x18] sm:$0xf]  ;;  %3079 = vmatmul.mubr.msk.bf16.vlgmr.msra.gmra.mrb[0].mxu0 %vm669_vm0, %v3265_v24  ;;  %v3420_v49 = vld [vmem:[%s3362_s29 + $0x1c] sm:$0xf] }
  0x18   : > { %v2657_v40 = vcombine.low %v3397_v29, %v3400_v30  ;;  %v232_v42 = vrot.slane %v230_v33, 4  ;;  %v235_v43 = vrot.slane %v233_v34, 5  ;;  %v241_v44 = vrot.slane %v239_v35, 5  ;;  %v188_v50 = vld [vmem:[%s3362_s29 + $0x20] sm:$0x1]  ;;  %3111 = vmatpush3.bf16.msra.mxu0 %v3266_v27  ;;  %3082 = vmatprep.mubr.msk.bf16.mxu0 %vm669_vm0, %v3267_v39  ;;  %s3973_s22 = smov (!%p140_p4, %s2618_s22), 63 }
  0x19   : > { %v213_v32 = vrot.slane %v212_v25, 4  ;;  %v223_v36 = vrot.slane %v222_v28, 4  ;;  %v245_v47 = vrot.slane %v243_v37, 4  ;;  %v251_v48 = vrot.slane %v249_v38, 5  ;;  %v3430_v60 = vld [vmem:[%s3362_s29 + $0x24] sm:$0xf] }
  0x1a   : > { %v236_v52 = vor.u32 %v235_v43, %v232_v42  ;;  %v254_v53 = vshrl.u32 %v3414_v45, 16  ;;  %v257_v54 = vshll.u32 %v3414_v45, 16  ;;  %v263_v56 = vshll.u32 %v3420_v49, 16  ;;  %v3434_v0 = vld [vmem:[%s3362_s29 + $0x28] sm:$0xf]  ;;  %v3269_v2 = vld [vmem:[%s3362_s29 + $0x3c] sm:$0xff]  }
  0x1b   : > { %v218_v41 = vsel %vm3388_vm3, %v213_v32, %v217_v22  ;;  %v228_v46 = vsel %vm3388_vm3, %v223_v36, %v227_v26  ;;  %v246_v55 = vor.u32 %v245_v47, %v241_v44  ;;  %v267_v57 = vshrl.u32 %v3420_v49, 16  ;;  %v189_v7 = vld [vmem:[%s3362_s29 + $0x2c] sm:$0x1]  ;;  %v3447_v20 = vld [vmem:[%s3362_s29 + $0x30] sm:$0xf]  ;;  %s2619_s23 = sshll.u32 %s3973_s22, 2 }
  0x1c   : > { %v2620_v51 = vcombine.low %v218_v41, %v228_v46  ;;  %v273_v58 = vshll.u32 %v188_v50, 16  ;;  %v237_v61 = vrot.slane %v236_v52, 4  ;;  %v256_v62 = vrot.slane %v254_v53, 4  ;;  %v3450_v22 = vld [vmem:[%s3362_s29 + $0x34] sm:$0xf]  ;;  %v3270_v28 = vld [vmem:[%s3962_s1 + $0x8] sm:$0xff]   ;;  %s3892_s25 = scalar_lea.vmem %s3963_s2, %s2619_s23 }
  0x1d   : > { %v259_v63 = vrot.slane %v257_v54, 5  ;;  %v278_v1 = vshrl.u32 %v3430_v60, 16  ;;  %v247_v3 = vrot.slane %v246_v55, 4  ;;  %v265_v4 = vrot.slane %v263_v56, 5  ;;  %v190_v27 = vld [vmem:[%s3362_s29 + $0x38] sm:$0x1] }
  0x1e   : > { %2998 = vmatprep.mubr.msk.bf16.mxu1 %vm669_vm0, %v2620_v51  ;;  %v269_v5 = vrot.slane %v267_v57, 4  ;;  %v275_v6 = vrot.slane %v273_v58, 5  ;;  %v242_v8 = vsel %vm3388_vm3, %v237_v61, %v241_v44  ;;  %v281_v13 = vshll.u32 %v3430_v60, 16  ;;  %v3272_v44 = vld [vmem:[%s3962_s1 + $0x68] sm:$0xff]   ;;  %v3478_v58 = vld [vmem:[%s3362_s29 + $0x3c] sm:$0xf] }
  0x1f   : > { %v260_v11 = vor.u32 %v259_v63, %v256_v62  ;;  %v280_v12 = vrot.slane %v278_v1, 4  ;;  %v252_v14 = vsel %vm3388_vm3, %v247_v3, %v251_v48  ;;  %v287_v16 = vshll.u32 %v3434_v0, 16  ;;  %3083 = vmatmul.mubr.msk.bf16.gmra.mrb[4].mxu0 %vm669_vm0, %v3268_v59  ;;  %v3271_v53 = vld [vmem:[%s3362_s29 + $0x48] sm:$0xff]   ;;  %3112 = vmatprep.subr.bf16.mxu0 %v3272_v44  ;;  %v3481_v59 = vld [vmem:[%s3362_s29 + $0x40] sm:$0xf]  ;;  %v3273_v61 = vld [vmem:[%s3362_s29 + $0x54] sm:$0xff]  }
  0x20   : > { %v270_v15 = vor.u32 %v269_v5, %v265_v4  ;;  %v291_v19 = vshrl.u32 %v3434_v0, 16  ;;  %v2621_v23 = vcombine.low %v242_v8, %v252_v14  ;;  %v283_v25 = vrot.slane %v281_v13, 5  ;;  %3086 = vmatprep.mubr.msk.bf16.mxu0 %vm669_vm0, %v3269_v2  ;;  %3113 = vmatpush3.bf16.msra.mxu0 %v3272_v44  ;;  %v191_v2 = vld [vmem:[%s3362_s29 + $0x44] sm:$0x1]  ;;  %v3276_v5 = vld [vmem:[%s3962_s1 + $0x10] sm:$0xff]  }
  0x21   : > { %v261_v24 = vrot.slane %v260_v11, 4  ;;  %v297_v26 = vshll.u32 %v189_v7, 16  ;;  %v289_v32 = vrot.slane %v287_v16, 5  ;;  %v302_v34 = vshrl.u32 %v3447_v20, 16  ;;  %v3498_v16 = vld [vmem:[%s3362_s29 + $0x48] sm:$0xf] }
  0x22   : > { %v271_v31 = vrot.slane %v270_v15, 4  ;;  %v293_v33 = vrot.slane %v291_v19, 4  ;;  %2999 = vmatmul.mubr.msk.bf16.vlgmr.msra.gmra.mrb[0].mxu1 %vm669_vm0, %v2621_v23  ;;  %v284_v36 = vor.u32 %v283_v25, %v280_v12  ;;  %v305_v38 = vshll.u32 %v3447_v20, 16  ;;  %v3505_v25 = vld [vmem:[%s3362_s29 + $0x4c] sm:$0xf] }
  0x23   : > { %v266_v35 = vsel %vm3388_vm3, %v261_v24, %v265_v4  ;;  %v299_v37 = vrot.slane %v297_v26, 5  ;;  %3031 = vmatpush3.bf16.msra.mxu1 %v3383_v17  ;;  %v304_v42 = vrot.slane %v302_v34, 4  ;;  %v311_v43 = vshll.u32 %v3450_v22, 16  ;;  %v192_v26 = vld [vmem:[%s3362_s29 + $0x50] sm:$0x1]  ;;  %v3274_v34 = vld [vmem:[%s3362_s29 + $0x60] sm:$0xff]  }
  0x24   : > { %v276_v39 = vsel %vm3388_vm3, %v271_v31, %v275_v6  ;;  %v294_v41 = vor.u32 %v293_v33, %v289_v32  ;;  %v285_v47 = vrot.slane %v284_v36, 4  ;;  %v307_v48 = vrot.slane %v305_v38, 5  ;;  %3032 = vmatprep.subr.bf16.mxu1 %v3270_v28  ;;  %v2776_v29 = vld [vmem:[%s3362_s29 + $0x4c] sm:$0xf] }
  0x25   : > { %v2622_v46 = vcombine.low %v266_v35, %v276_v39  ;;  %v315_v50 = vshrl.u32 %v3450_v22, 16  ;;  %v313_v51 = vrot.slane %v311_v43, 5  ;;  %v321_v52 = vshll.u32 %v190_v27, 16  ;;  %v3275_v39 = vld [vmem:[%s3362_s29 + $0x6c] sm:$0xff]  }
  0x26   : > { %v295_v17 = vrot.slane %v294_v41, 4  ;;  %v290_v55 = vsel %vm3388_vm3, %v285_v47, %v289_v32  ;;  %v308_v56 = vor.u32 %v307_v48, %v304_v42  ;;  %v326_v3 = vshrl.u32 %v3478_v58, 16  ;;  %v3278_v41 = vld [vmem:[%s3962_s1 + $0x70] sm:$0xff]   ;;  %v3525_v48 = vld [vmem:[%s3362_s29 + $0x58] sm:$0xf] }
  0x27   : > { %3002 = vmatprep.mubr.msk.bf16.mxu1 %vm669_vm0, %v2622_v46  ;;  %v317_v57 = vrot.slane %v315_v50, 4  ;;  %v323_v1 = vrot.slane %v321_v52, 5  ;;  %v329_v4 = vshll.u32 %v3478_v58, 16  ;;  %3033 = vmatpush3.bf16.msra.mxu1 %v3270_v28  ;;  %v335_v11 = vshll.u32 %v3481_v59, 16  ;;  %v3522_v47 = vld [vmem:[%s3362_s29 + $0x54] sm:$0xf] }
  0x28   : > { %v300_v63 = vsel %vm3388_vm3, %v295_v17, %v299_v37  ;;  %v309_v7 = vrot.slane %v308_v56, 4  ;;  %3087 = vmatmul.mubr.msk.bf16.gmra.mrb[8].mxu0 %vm669_vm0, %v3271_v53  ;;  %v328_v12 = vrot.slane %v326_v3, 4  ;;  %v339_v14 = vshrl.u32 %v3481_v59, 16  ;;  %3034 = vmatprep.subr.bf16.mxu1 %v3276_v5  ;;  %v193_v53 = vld [vmem:[%s3362_s29 + $0x5c] sm:$0x1] }
  0x29   : > { %v2623_v6 = vcombine.low %v290_v55, %v300_v63  ;;  %v318_v8 = vor.u32 %v317_v57, %v313_v51  ;;  %v331_v13 = vrot.slane %v329_v4, 5  ;;  %v345_v15 = vshll.u32 %v191_v2, 16  ;;  %3090 = vmatprep.mubr.msk.bf16.mxu0 %vm669_vm0, %v3273_v61  ;;  %3114 = vmatprep.subr.bf16.mxu0 %v3278_v41  ;;  %v3535_v4 = vld [vmem:[%s3362_s29 + $0x60] sm:$0xf] }
  0x2a   : > { %v314_v19 = vsel %vm3388_vm3, %v309_v7, %v313_v51  ;;  %v337_v24 = vrot.slane %v335_v11, 5  ;;  %v341_v31 = vrot.slane %v339_v14, 4  ;;  %v350_v33 = vshrl.u32 %v3498_v16, 16  ;;  %3115 = vmatpush3.bf16.msra.mxu0 %v3278_v41  ;;  %v3542_v11 = vld [vmem:[%s3362_s29 + $0x64] sm:$0xf] }
  0x2b   : > { %3003 = vmatmul.mubr.msk.bf16.gmra.mrb[4].mxu1 %vm669_vm0, %v2623_v6  ;;  %v319_v23 = vrot.slane %v318_v8, 4  ;;  %v332_v28 = vor.u32 %v331_v13, %v328_v12  ;;  %v347_v32 = vrot.slane %v345_v15, 5  ;;  %v353_v36 = vshll.u32 %v3498_v16, 16 }
  0x2c   : > { %3035 = vmatpush3.bf16.msra.mxu1 %v3276_v5  ;;  %v359_v37 = vshll.u32 %v3505_v25, 16  ;;  %v363_v38 = vshrl.u32 %v3505_v25, 16  ;;  %v342_v44 = vor.u32 %v341_v31, %v337_v24  ;;  %v352_v46 = vrot.slane %v350_v33, 4  ;;  %v3277_v31 = vld [vmem:[%s3362_s29 + $0x78] sm:$0xff]  }
  0x2d   : > { %v324_v35 = vsel %vm3388_vm3, %v319_v23, %v323_v1  ;;  %v333_v43 = vrot.slane %v332_v28, 4  ;;  %v355_v50 = vrot.slane %v353_v36, 5  ;;  %v369_v52 = vshll.u32 %v192_v26, 16 }
  0x2e   : > { %v2624_v42 = vcombine.low %v314_v19, %v324_v35  ;;  %v361_v17 = vrot.slane %v359_v37, 5  ;;  %v365_v51 = vrot.slane %v363_v38, 4  ;;  %v343_v56 = vrot.slane %v342_v44, 4  ;;  %v194_v19 = vld [vmem:[%s3362_s29 + $0x68] sm:$0x1] }
  0x2f   : > { %v338_v55 = vsel %vm3388_vm3, %v333_v43, %v337_v24  ;;  %v374_v57 = vshrl.u32 %v3522_v47, 16  ;;  %v377_v61 = vshll.u32 %v3522_v47, 16  ;;  %v356_v63 = vor.u32 %v355_v50, %v352_v46  ;;  %v3279_v37 = vld [vmem:[%s3362_s29 + $0x84] sm:$0xff]  }
  0x30   : > { %3006 = vmatprep.mubr.msk.bf16.mxu1 %vm669_vm0, %v2624_v42  ;;  %v366_v1 = vor.u32 %v365_v51, %v361_v17  ;;  %v371_v2 = vrot.slane %v369_v52, 5  ;;  %v383_v3 = vshll.u32 %v3525_v48, 16  ;;  %v348_v5 = vsel %vm3388_vm3, %v343_v56, %v347_v32  ;;  %3091 = vmatmul.mubr.msk.bf16.gmra.mrb[12].mxu0 %vm669_vm0, %v3274_v34  ;;  %v3282_v32 = vld [vmem:[%s3962_s1 + $0x18] sm:$0xff]  }
  0x31   : > { %v376_v6 = vrot.slane %v374_v57, 4  ;;  %v379_v7 = vrot.slane %v377_v61, 5  ;;  %v387_v8 = vshrl.u32 %v3525_v48, 16  ;;  %v2625_v12 = vcombine.low %v338_v55, %v348_v5  ;;  %3094 = vmatprep.mubr.msk.bf16.mxu0 %vm669_vm0, %v3275_v39  ;;  %3036 = vmatprep.subr.bf16.mxu1 %v3282_v32  ;;  %v3567_v55 = vld [vmem:[%s3362_s29 + $0x70] sm:$0xf] }
  0x32   : > { %v357_v13 = vrot.slane %v356_v63, 4  ;;  %v367_v14 = vrot.slane %v366_v1, 4  ;;  %v385_v15 = vrot.slane %v383_v3, 5  ;;  %v393_v26 = vshll.u32 %v193_v53, 16  ;;  %3037 = vmatpush3.bf16.msra.mxu1 %v3282_v32  ;;  %v3564_v53 = vld [vmem:[%s3362_s29 + $0x6c] sm:$0xf] }
  0x33   : > { %v380_v23 = vor.u32 %v379_v7, %v376_v6  ;;  %v389_v24 = vrot.slane %v387_v8, 4  ;;  %v398_v28 = vshrl.u32 %v3535_v4, 16  ;;  %3007 = vmatmul.mubr.msk.bf16.gmra.mrb[8].mxu1 %vm669_vm0, %v2625_v12  ;;  %v401_v35 = vshll.u32 %v3535_v4, 16  ;;  %v195_v63 = vld [vmem:[%s3362_s29 + $0x74] sm:$0x1]  ;;  %v3284_v8 = vld [vmem:[%s3962_s1 + $0x78] sm:$0xff]  }
  0x34   : > { %v362_v33 = vsel %vm3388_vm3, %v357_v13, %v361_v17  ;;  %v372_v34 = vsel %vm3388_vm3, %v367_v14, %v371_v2  ;;  %v407_v36 = vshll.u32 %v3542_v11, 16  ;;  %v395_v42 = vrot.slane %v393_v26, 5  ;;  %3116 = vmatprep.subr.bf16.mxu0 %v3284_v8 }
  0x35   : > { %v2626_v38 = vcombine.low %v362_v33, %v372_v34  ;;  %v381_v39 = vrot.slane %v380_v23, 4  ;;  %v390_v41 = vor.u32 %v389_v24, %v385_v15  ;;  %v400_v43 = vrot.slane %v398_v28, 4  ;;  %v196_v34 = vld [vmem:[%s3362_s29 + $0x80] sm:$0x1]  ;;  %3117 = vmatpush3.bf16.msra.mxu0 %v3284_v8 }
  0x36   : > { %v403_v44 = vrot.slane %v401_v35, 5  ;;  %v409_v46 = vrot.slane %v407_v36, 5  ;;  %v411_v50 = vshrl.u32 %v3542_v11, 16  ;;  %v417_v52 = vshll.u32 %v194_v19, 16  ;;  %v3584_v19 = vld [vmem:[%s3362_s29 + $0x78] sm:$0xf] }
  0x37   : > { %3010 = vmatprep.mubr.msk.bf16.mxu1 %vm669_vm0, %v2626_v38  ;;  %v386_v17 = vsel %vm3388_vm3, %v381_v39, %v385_v15  ;;  %v391_v51 = vrot.slane %v390_v41, 4  ;;  %v422_v1 = vshrl.u32 %v3564_v53, 16  ;;  %v425_v2 = vshll.u32 %v3564_v53, 16 }
  0x38   : > { %v404_v57 = vor.u32 %v403_v44, %v400_v43  ;;  %v413_v61 = vrot.slane %v411_v50, 4  ;;  %v419_v5 = vrot.slane %v417_v52, 5  ;;  %3095 = vmatmul.mubr.msk.bf16.gmra.mrb[16].mxu0 %vm669_vm0, %v3277_v31  ;;  %v431_v6 = vshll.u32 %v3567_v55, 16  ;;  %v3587_v31 = vld [vmem:[%s3362_s29 + $0x7c] sm:$0xf] }
  0x39   : > { %v396_v3 = vsel %vm3388_vm3, %v391_v51, %v395_v42  ;;  %v435_v7 = vshrl.u32 %v3567_v55, 16  ;;  %v424_v15 = vrot.slane %v422_v1, 4  ;;  %3098 = vmatprep.mubr.msk.bf16.mxu0 %vm669_vm0, %v3279_v37  ;;  %v427_v23 = vrot.slane %v425_v2, 5  ;;  %v3280_v37 = vld [vmem:[%s3362_s29 + $0x90] sm:$0xff]   ;;  %v3281_v51 = vld [vmem:[%s3362_s29 + $0x9c] sm:$0xff]  }
  0x3a   : > { %v2627_v12 = vcombine.low %v386_v17, %v396_v3  ;;  %v405_v13 = vrot.slane %v404_v57, 4  ;;  %v414_v14 = vor.u32 %v413_v61, %v409_v46  ;;  %v433_v24 = vrot.slane %v431_v6, 5  ;;  %v3601_v17 = vld [vmem:[%s3362_s29 + $0x84] sm:$0xf]  ;;  %v3605_v1 = vld [vmem:[%s3362_s29 + $0x88] sm:$0xf] }
  0x3b   : > { %v437_v26 = vrot.slane %v435_v7, 4  ;;  %v441_v28 = vshll.u32 %v195_v63, 16  ;;  %v446_v35 = vshrl.u32 %v3584_v19, 16  ;;  %v449_v36 = vshll.u32 %v3584_v19, 16  ;;  %v197_v7 = vld [vmem:[%s3362_s29 + $0x8c] sm:$0x1] }
  0x3c   : > { %3011 = vmatmul.mubr.msk.bf16.gmra.mrb[12].mxu1 %vm669_vm0, %v2627_v12  ;;  %v410_v32 = vsel %vm3388_vm3, %v405_v13, %v409_v46  ;;  %v415_v33 = vrot.slane %v414_v14, 4  ;;  %v428_v38 = vor.u32 %v427_v23, %v424_v15  ;;  %v455_v42 = vshll.u32 %v3587_v31, 16 }
  0x3d   : > { %v438_v39 = vor.u32 %v437_v26, %v433_v24  ;;  %v443_v41 = vrot.slane %v441_v28, 5  ;;  %v448_v44 = vrot.slane %v446_v35, 4  ;;  %v451_v46 = vrot.slane %v449_v36, 5 }
  0x3e   : > { %v420_v43 = vsel %vm3388_vm3, %v415_v33, %v419_v5  ;;  %v459_v50 = vshrl.u32 %v3587_v31, 16  ;;  %v429_v57 = vrot.slane %v428_v38, 4  ;;  %v457_v63 = vrot.slane %v455_v42, 5 }
  0x3f   : > { %v2628_v52 = vcombine.low %v410_v32, %v420_v43  ;;  %v439_v61 = vrot.slane %v438_v39, 4  ;;  %v452_v2 = vor.u32 %v451_v46, %v448_v44  ;;  %v465_v6 = vshll.u32 %v196_v34, 16  ;;  %v3619_v32 = vld [vmem:[%s3362_s29 + $0x90] sm:$0xf] }
  0x40   : > { %v461_v3 = vrot.slane %v459_v50, 4  ;;  %v470_v5 = vshrl.u32 %v3601_v17, 16  ;;  %v434_v8 = vsel %vm3388_vm3, %v429_v57, %v433_v24  ;;  %3099 = vmatmul.mubr.msk.bf16.gmra.mrb[20].mxu0 %vm669_vm0, %v3280_v37  ;;  %v473_v13 = vshll.u32 %v3601_v17, 16  ;;  %v3622_v24 = vld [vmem:[%s3362_s29 + $0x94] sm:$0xf] }
  0x41   : > { %3014 = vmatprep.mubr.msk.bf16.mxu1 %vm669_vm0, %v2628_v52  ;;  %v444_v12 = vsel %vm3388_vm3, %v439_v61, %v443_v41  ;;  %v479_v14 = vshll.u32 %v3605_v1, 16  ;;  %v453_v23 = vrot.slane %v452_v2, 4  ;;  %v467_v28 = vrot.slane %v465_v6, 5  ;;  %3102 = vmatprep.mubr.msk.bf16.mxu0 %vm669_vm0, %v3281_v51  ;;  %v198_v37 = vld [vmem:[%s3362_s29 + $0x98] sm:$0x1]  ;;  %v3283_v51 = vld [vmem:[%s3362_s29 + $0xa8] sm:$0xff]  }
  0x42   : > { %v2629_v15 = vcombine.low %v434_v8, %v444_v12  ;;  %v462_v26 = vor.u32 %v461_v3, %v457_v63  ;;  %v472_v33 = vrot.slane %v470_v5, 4  ;;  %v475_v34 = vrot.slane %v473_v13, 5 }
  0x43   : > { %v481_v35 = vrot.slane %v479_v14, 5  ;;  %v483_v36 = vshrl.u32 %v3605_v1, 16  ;;  %v458_v38 = vsel %vm3388_vm3, %v453_v23, %v457_v63  ;;  %v489_v41 = vshll.u32 %v197_v7, 16  ;;  %v3285_v63 = vld [vmem:[%s3362_s29 + $0xb4] sm:$0xff]  }
  0x44   : > { %3015 = vmatmul.mubr.msk.bf16.gmra.mrb[16].mxu1 %vm669_vm0, %v2629_v15  ;;  %v463_v39 = vrot.slane %v462_v26, 4  ;;  %v494_v42 = vshrl.u32 %v3619_v32, 16  ;;  %v476_v43 = vor.u32 %v475_v34, %v472_v33  ;;  %v497_v46 = vshll.u32 %v3619_v32, 16  ;;  %v3647_v33 = vld [vmem:[%s3362_s29 + $0xa0] sm:$0xf] }
  0x45   : > { %v485_v44 = vrot.slane %v483_v36, 4  ;;  %v503_v50 = vshll.u32 %v3622_v24, 16  ;;  %v491_v57 = vrot.slane %v489_v41, 5  ;;  %v507_v2 = vshrl.u32 %v3622_v24, 16 }
  0x46   : > { %v468_v52 = vsel %vm3388_vm3, %v463_v39, %v467_v28  ;;  %v496_v61 = vrot.slane %v494_v42, 4  ;;  %v477_v6 = vrot.slane %v476_v43, 4  ;;  %v499_v5 = vrot.slane %v497_v46, 5  ;;  %v3644_v28 = vld [vmem:[%s3362_s29 + $0x9c] sm:$0xf] }
  0x47   : > { %v2630_v3 = vcombine.low %v458_v38, %v468_v52  ;;  %v486_v7 = vor.u32 %v485_v44, %v481_v35  ;;  %v505_v8 = vrot.slane %v503_v50, 5  ;;  %v509_v12 = vrot.slane %v507_v2, 4  ;;  %v199_v38 = vld [vmem:[%s3362_s29 + $0xa4] sm:$0x1] }
  0x48   : > { %v513_v13 = vshll.u32 %v198_v37, 16  ;;  %v482_v15 = vsel %vm3388_vm3, %v477_v6, %v481_v35  ;;  %v500_v26 = vor.u32 %v499_v5, %v496_v61  ;;  %3103 = vmatmul.mubr.msk.bf16.gmra.mrb[24].mxu0 %vm669_vm0, %v3283_v51  ;;  %v518_v39 = vshrl.u32 %v3644_v28, 16  ;;  %v3662_v6 = vld [vmem:[%s3362_s29 + $0xa8] sm:$0xf] }
  0x49   : > { %3018 = vmatprep.mubr.msk.bf16.mxu1 %vm669_vm0, %v2630_v3  ;;  %v487_v23 = vrot.slane %v486_v7, 4  ;;  %v510_v36 = vor.u32 %v509_v12, %v505_v8  ;;  %v521_v35 = vshll.u32 %v3644_v28, 16  ;;  %3106 = vmatprep.mubr.msk.bf16.mxu0 %vm669_vm0, %v3285_v63  ;;  %v527_v43 = vshll.u32 %v3647_v33, 16  ;;  %v3669_v12 = vld [vmem:[%s3362_s29 + $0xac] sm:$0xf] }
  0x4a   : > { %v515_v37 = vrot.slane %v513_v13, 5  ;;  %v501_v42 = vrot.slane %v500_v26, 4  ;;  %v531_v44 = vshrl.u32 %v3647_v33, 16  ;;  %v520_v51 = vrot.slane %v518_v39, 4  ;;  %v200_v13 = vld [vmem:[%s3362_s29 + $0xb0] sm:$0x1] }
  0x4b   : > { %v492_v41 = vsel %vm3388_vm3, %v487_v23, %v491_v57  ;;  %v511_v50 = vrot.slane %v510_v36, 4  ;;  %v523_v52 = vrot.slane %v521_v35, 5  ;;  %v529_v2 = vrot.slane %v527_v43, 5  ;;  %v3286_v57 = vld [vmem:[%s3362_s29 + $0xc0] sm:$0xff]  }
  0x4c   : > { %v2631_v46 = vcombine.low %v482_v15, %v492_v41  ;;  %v506_v61 = vsel %vm3388_vm3, %v501_v42, %v505_v8  ;;  %v533_v3 = vrot.slane %v531_v44, 4  ;;  %v537_v63 = vshll.u32 %v199_v38, 16  ;;  %v3677_v42 = vld [vmem:[%s3362_s29 + $0xb4] sm:$0xf] }
  0x4d   : > { %v516_v7 = vsel %vm3388_vm3, %v511_v50, %v515_v37  ;;  %v524_v5 = vor.u32 %v523_v52, %v520_v51  ;;  %v542_v15 = vshrl.u32 %v3662_v6, 16  ;;  %v545_v8 = vshll.u32 %v3662_v6, 16  ;;  %v3682_v50 = vld [vmem:[%s3362_s29 + $0xb8] sm:$0xf] }
  0x4e   : > { %3019 = vmatmul.mubr.msk.bf16.gmra.mrb[20].mxu1 %vm669_vm0, %v2631_v46  ;;  %v2632_v23 = vcombine.low %v506_v61, %v516_v7  ;;  %v534_v26 = vor.u32 %v533_v3, %v529_v2  ;;  %v539_v36 = vrot.slane %v537_v63, 5  ;;  %v551_v38 = vshll.u32 %v3669_v12, 16  ;;  %v201_v63 = vld [vmem:[%s3362_s29 + $0xbc] sm:$0x1] }
  0x4f   : > { %v525_v39 = vrot.slane %v524_v5, 4  ;;  %v544_v35 = vrot.slane %v542_v15, 4  ;;  %v547_v41 = vrot.slane %v545_v8, 5  ;;  %v555_v37 = vshrl.u32 %v3669_v12, 16  ;;  %v2760_v5 = vld [vmem:[%s3362_s29 + $0xc] sm:$0xf] }
  0x50   : > { %3022 = vmatprep.mubr.msk.bf16.mxu1 %vm669_vm0, %v2632_v23  ;;  %v535_v43 = vrot.slane %v534_v26, 4  ;;  %v553_v44 = vrot.slane %v551_v38, 5  ;;  %v561_v46 = vshll.u32 %v200_v13, 16  ;;  %3107 = vmatmul.mubr.msk.bf16.gmra.mrb[28].mxu0 %vm669_vm0, %v3286_v57  ;;  %v566_v51 = vshrl.u32 %v3677_v42, 16 }
  0x51   : > { %v530_v52 = vsel %vm3388_vm3, %v525_v39, %v529_v2  ;;  %v548_v61 = vor.u32 %v547_v41, %v544_v35  ;;  %v557_v3 = vrot.slane %v555_v37, 4  ;;  %v569_v7 = vshll.u32 %v3677_v42, 16  ;;  %v2761_v2 = vld [vmem:[%s3362_s29 + $0x10] sm:$0xf] }
  0x52   : > { %v540_v15 = vsel %vm3388_vm3, %v535_v43, %v539_v36  ;;  %v563_v13 = vrot.slane %v561_v46, 5  ;;  %v568_v57 = vrot.slane %v566_v51, 4  ;;  %v575_v8 = vshll.u32 %v3682_v50, 16  ;;  %v2762_v51 = vld [vmem:[%s3362_s29 + $0x14] sm:$0x1] }
  0x53   : > { %v2633_v23 = vcombine.low %v530_v52, %v540_v15  ;;  %v549_v26 = vrot.slane %v548_v61, 4  ;;  %v558_v38 = vor.u32 %v557_v3, %v553_v44  ;;  %v571_v34 = vrot.slane %v569_v7, 5 }
  0x54   : > { %v577_v39 = vrot.slane %v575_v8, 5  ;;  %v579_v35 = vshrl.u32 %v3682_v50, 16  ;;  %v585_v41 = vshll.u32 %v201_v63, 16  ;;  %v1627_v37 = vshrl.u32 %v2760_v5, 16  ;;  %v2763_v8 = vld [vmem:[%s3362_s29 + $0x18] sm:$0xf] }
  0x55   : > { %v554_v36 = vsel %vm3388_vm3, %v549_v26, %v553_v44  ;;  %v559_v43 = vrot.slane %v558_v38, 4  ;;  %v572_v46 = vor.u32 %v571_v34, %v568_v57  ;;  %v1630_v52 = vshll.u32 %v2760_v5, 16  ;;  %v2765_v38 = vld [vmem:[%s3362_s29 + $0x20] sm:$0x1] }
  0x56   : > { %3023 = vmatmul.mubr.msk.bf16.gmra.mrb[24].mxu1 %vm669_vm0, %v2633_v23  ;;  %v581_v61 = vrot.slane %v579_v35, 4  ;;  %v587_v3 = vrot.slane %v585_v41, 5  ;;  %v1629_v7 = vrot.slane %v1627_v37, 4  ;;  %v1636_v15 = vshll.u32 %v2761_v2, 16  ;;  %v2764_v23 = vld [vmem:[%s3362_s29 + $0x1c] sm:$0xf] }
  0x57   : > { %v564_v63 = vsel %vm3388_vm3, %v559_v43, %v563_v13  ;;  %v573_v14 = vrot.slane %v572_v46, 4  ;;  %v1632_v56 = vrot.slane %v1630_v52, 5  ;;  %v1640_v27 = vshrl.u32 %v2761_v2, 16 }
  0x58   : > { %v2634_v62 = vcombine.low %v554_v36, %v564_v63  ;;  %v582_v54 = vor.u32 %v581_v61, %v577_v39  ;;  %v1638_v44 = vrot.slane %v1636_v15, 5  ;;  %v1646_v34 = vshll.u32 %v2762_v51, 16  ;;  %v2766_v51 = vld [vmem:[%s3362_s29 + $0x24] sm:$0xf]  ;;  %v2767_v61 = vld [vmem:[%s3362_s29 + $0x28] sm:$0xf] }
  0x59   : > { %v578_v5 = vsel %vm3388_vm3, %v573_v14, %v577_v39  ;;  %v1633_v57 = vor.u32 %v1632_v56, %v1629_v7  ;;  %v1642_v26 = vrot.slane %v1640_v27, 4  ;;  %v1651_v35 = vshrl.u32 %v2763_v8, 16 }
  0x5a   : > { %3026 = vmatprep.mubr.msk.bf16.mxu1 %vm669_vm0, %v2634_v62  ;;  %v583_v13 = vrot.slane %v582_v54, 4  ;;  %v1648_v41 = vrot.slane %v1646_v34, 5  ;;  %v1654_v37 = vshll.u32 %v2763_v8, 16  ;;  %v1660_v2 = vshll.u32 %v2764_v23, 16  ;;  %v2768_v34 = vld [vmem:[%s3362_s29 + $0x2c] sm:$0x1] }
  0x5b   : > { %v1634_v43 = vrot.slane %v1633_v57, 4  ;;  %v1643_v36 = vor.u32 %v1642_v26, %v1638_v44  ;;  %v1653_v46 = vrot.slane %v1651_v35, 4  ;;  %v1664_v52 = vshrl.u32 %v2764_v23, 16  ;;  %v2769_v35 = vld [vmem:[%s3362_s29 + $0x30] sm:$0xf] }
  0x5c   : > { %v588_v14 = vsel %vm3388_vm3, %v583_v13, %v587_v3  ;;  %v1656_v56 = vrot.slane %v1654_v37, 5  ;;  %v1662_v27 = vrot.slane %v1660_v2, 5  ;;  %v1670_v39 = vshll.u32 %v2765_v38, 16 }
  0x5d   : > { %v2635_v7 = vcombine.low %v578_v5, %v588_v14  ;;  %v1639_v54 = vsel %vm3388_vm3, %v1634_v43, %v1638_v44  ;;  %v1644_v62 = vrot.slane %v1643_v36, 4  ;;  %v1666_v15 = vrot.slane %v1664_v52, 4  ;;  %v2770_v43 = vld [vmem:[%s3362_s29 + $0x34] sm:$0xf] }
  0x5e   : > { %v1657_v8 = vor.u32 %v1656_v56, %v1653_v46  ;;  %v1672_v63 = vrot.slane %v1670_v39, 5  ;;  %v1675_v23 = vshrl.u32 %v2766_v51, 16  ;;  %v1678_v57 = vshll.u32 %v2766_v51, 16  ;;  %v2771_v56 = vld [vmem:[%s3362_s29 + $0x38] sm:$0x1] }
  0x5f   : > { %3027 = vmatmul.mubr.msk.bf16.gmra.mrb[28].mxu1 %vm669_vm0, %v2635_v7  ;;  %v1649_v3 = vsel %vm3388_vm3, %v1644_v62, %v1648_v41  ;;  %v1667_v26 = vor.u32 %v1666_v15, %v1662_v27  ;;  %v1684_v38 = vshll.u32 %v2767_v61, 16  ;;  %v1688_v5 = vshrl.u32 %v2767_v61, 16 }
  0x60   : > { %v2808_v13 = vcombine.low %v1639_v54, %v1649_v3  ;;  %3038 = vmatprep.mubr.msk.bf16.mxu1 %vm669_vm0, %v2656_v18  ;;  %v1658_v44 = vrot.slane %v1657_v8, 4  ;;  %v1677_v37 = vrot.slane %v1675_v23, 4  ;;  %v1680_v2 = vrot.slane %v1678_v57, 5  ;;  %v2772_v54 = vld [vmem:[%s3362_s29 + $0x3c] sm:$0xf] }
  0x61   : > { %v1668_v36 = vrot.slane %v1667_v26, 4  ;;  %v1686_v46 = vrot.slane %v1684_v38, 5  ;;  %v1690_v52 = vrot.slane %v1688_v5, 4  ;;  %v1694_v41 = vshll.u32 %v2768_v34, 16  ;;  %v2773_v23 = vld [vmem:[%s3362_s29 + $0x40] sm:$0xf] }
  0x62   : > { %3118 = vmatprep.mubr.msk.bf16.mxu0 %vm669_vm0, %v2808_v13  ;;  %v1663_v51 = vsel %vm3388_vm3, %v1658_v44, %v1662_v27  ;;  %v1681_v14 = vor.u32 %v1680_v2, %v1677_v37  ;;  %v1699_v9 = vshrl.u32 %v2769_v35, 16  ;;  %v1702_v10 = vshll.u32 %v2769_v35, 16  ;;  %v2774_v5 = vld [vmem:[%s3362_s29 + $0x44] sm:$0x1] }
  0x63   : > { %v1673_v18 = vsel %vm3388_vm3, %v1668_v36, %v1672_v63  ;;  %v1691_v39 = vor.u32 %v1690_v52, %v1686_v46  ;;  %v1696_v61 = vrot.slane %v1694_v41, 5  ;;  %v1708_v7 = vshll.u32 %v2770_v43, 16  ;;  %v2775_v36 = vld [vmem:[%s3362_s29 + $0x48] sm:$0xf] }
  0x64   : > { %v2809_v62 = vcombine.low %v1663_v51, %v1673_v18  ;;  %v1682_v15 = vrot.slane %v1681_v14, 4  ;;  %v1701_v8 = vrot.slane %v1699_v9, 4  ;;  %v1704_v34 = vrot.slane %v1702_v10, 5 }
  0x65   : > { %v1692_v57 = vrot.slane %v1691_v39, 4  ;;  %v1710_v27 = vrot.slane %v1708_v7, 5  ;;  %v1712_v3 = vshrl.u32 %v2770_v43, 16  ;;  %v1718_v26 = vshll.u32 %v2771_v56, 16  ;;  %v2777_v39 = vld [vmem:[%s3362_s29 + $0x50] sm:$0x1] }
  0x66   : > { %3119 = vmatmul.mubr.msk.bf16.vlgmr.msra.gmra.mrb[0].mxu0 %vm669_vm0, %v2809_v62  ;;  %v1687_v63 = vsel %vm3388_vm3, %v1682_v15, %v1686_v46  ;;  %v1705_v38 = vor.u32 %v1704_v34, %v1701_v8  ;;  %v1723_v35 = vshrl.u32 %v2772_v54, 16  ;;  %v1726_v13 = vshll.u32 %v2772_v54, 16 }
  0x67   : > { %3039 = vmatmul.mubr.msk.bf16.vlgmr.msra.gmra.mrb[0].mxu1 %vm669_vm0, %v2657_v40  ;;  %v1697_v44 = vsel %vm3388_vm3, %v1692_v57, %v1696_v61  ;;  %v1714_v37 = vrot.slane %v1712_v3, 4  ;;  %v1720_v2 = vrot.slane %v1718_v26, 5  ;;  %v1732_v43 = vshll.u32 %v2773_v23, 16  ;;  %v2778_v57 = vld [vmem:[%s3362_s29 + $0x54] sm:$0xf] }
  0x68   : > { %v2810_v52 = vcombine.low %v1687_v63, %v1697_v44  ;;  %v3966_v46 = vcombine.low %v3414_v45, %v3420_v49  ;;  %v1706_v41 = vrot.slane %v1705_v38, 4  ;;  %v1725_v51 = vrot.slane %v1723_v35, 4  ;;  %v2779_v38 = vld [vmem:[%s3362_s29 + $0x58] sm:$0xf] }
  0x69   : > { %v1728_v14 = vrot.slane %v1726_v13, 5  ;;  %v1715_v30 = vor.u32 %v1714_v37, %v1710_v27  ;;  %v1734_v40 = vrot.slane %v1732_v43, 5  ;;  %v1736_v56 = vshrl.u32 %v2773_v23, 16  ;;  %v2780_v37 = vld [vmem:[%s3362_s29 + $0x5c] sm:$0x1] }
  0x6a   : > { %3042 = vmatprep.mubr.msk.bf16.mxu1 %vm669_vm0, %v3966_v46  ;;  %v1742_v9 = vshll.u32 %v2774_v5, 16  ;;  %3122 = vmatprep.mubr.msk.bf16.mxu0 %vm669_vm0, %v2810_v52  ;;  %v1711_v10 = vsel %vm3388_vm3, %v1706_v41, %v1710_v27  ;;  %v1747_v45 = vshrl.u32 %v2775_v36, 16  ;;  %v1750_v49 = vshll.u32 %v2775_v36, 16 }
  0x6b   : > { %v1729_v18 = vor.u32 %v1728_v14, %v1725_v51  ;;  %v1716_v61 = vrot.slane %v1715_v30, 4  ;;  %v1738_v7 = vrot.slane %v1736_v56, 4  ;;  %v1756_v62 = vshll.u32 %v2776_v29, 16 }
  0x6c   : > { %v1744_v54 = vrot.slane %v1742_v9, 5  ;;  %v1749_v8 = vrot.slane %v1747_v45, 4  ;;  %v1752_v34 = vrot.slane %v1750_v49, 5  ;;  %v1760_v23 = vshrl.u32 %v2776_v29, 16 }
  0x6d   : > { %v1730_v15 = vrot.slane %v1729_v18, 4  ;;  %v1721_v3 = vsel %vm3388_vm3, %v1716_v61, %v1720_v2  ;;  %v1739_v26 = vor.u32 %v1738_v7, %v1734_v40  ;;  %v1758_v27 = vrot.slane %v1756_v62, 5  ;;  %v2783_v7 = vld [vmem:[%s3362_s29 + $0x68] sm:$0x1] }
  0x6e   : > { %v1766_v63 = vshll.u32 %v2777_v39, 16  ;;  %v2811_v5 = vcombine.low %v1711_v10, %v1721_v3  ;;  %v1753_v13 = vor.u32 %v1752_v34, %v1749_v8  ;;  %v1762_v44 = vrot.slane %v1760_v23, 4  ;;  %v2782_v10 = vld [vmem:[%s3362_s29 + $0x64] sm:$0xf]  ;;  %v2784_v23 = vld [vmem:[%s3362_s29 + $0x6c] sm:$0xf] }
  0x6f   : > { %v1735_v35 = vsel %vm3388_vm3, %v1730_v15, %v1734_v40  ;;  %v3967_v43 = vcombine.low %v3430_v60, %v3434_v0  ;;  %v1740_v36 = vrot.slane %v1739_v26, 4  ;;  %v1771_v52 = vshrl.u32 %v2778_v57, 16  ;;  %v2781_v60 = vld [vmem:[%s3362_s29 + $0x60] sm:$0xf] }
  0x70   : > { %v1768_v2 = vrot.slane %v1766_v63, 5  ;;  %v1774_v46 = vshll.u32 %v2778_v57, 16  ;;  %3123 = vmatmul.mubr.msk.bf16.gmra.mrb[4].mxu0 %vm669_vm0, %v2811_v5  ;;  %v3968_v41 = vcombine.low %v3447_v20, %v3450_v22  ;;  %v1754_v51 = vrot.slane %v1753_v13, 4  ;;  %v2785_v63 = vld [vmem:[%s3362_s29 + $0x70] sm:$0xf] }
  0x71   : > { %3043 = vmatmul.mubr.msk.bf16.gmra.mrb[4].mxu1 %vm669_vm0, %v3967_v43  ;;  %v1763_v14 = vor.u32 %v1762_v44, %v1758_v27  ;;  %v1780_v29 = vshll.u32 %v2779_v38, 16  ;;  %v1784_v30 = vshrl.u32 %v2779_v38, 16  ;;  %v1745_v0 = vsel %vm3388_vm3, %v1740_v36, %v1744_v54 }
  0x72   : > { %3046 = vmatprep.mubr.msk.bf16.mxu1 %vm669_vm0, %v3968_v41  ;;  %v1773_v40 = vrot.slane %v1771_v52, 4  ;;  %v1776_v56 = vrot.slane %v1774_v46, 5  ;;  %v1790_v9 = vshll.u32 %v2780_v37, 16  ;;  %v2812_v18 = vcombine.low %v1735_v35, %v1745_v0  ;;  %v2787_v0 = vld [vmem:[%s3362_s29 + $0x78] sm:$0xf] }
  0x73   : > { %v1759_v20 = vsel %vm3388_vm3, %v1754_v51, %v1758_v27  ;;  %v1764_v22 = vrot.slane %v1763_v14, 4  ;;  %v1782_v39 = vrot.slane %v1780_v29, 5  ;;  %v1786_v49 = vrot.slane %v1784_v30, 4 }
  0x74   : > { %v1777_v45 = vor.u32 %v1776_v56, %v1773_v40  ;;  %v1792_v61 = vrot.slane %v1790_v9, 5  ;;  %v1795_v62 = vshrl.u32 %v2781_v60, 16  ;;  %3126 = vmatprep.mubr.msk.bf16.mxu0 %vm669_vm0, %v2812_v18  ;;  %v1798_v15 = vshll.u32 %v2781_v60, 16 }
  0x75   : > { %v1769_v54 = vsel %vm3388_vm3, %v1764_v22, %v1768_v2  ;;  %v1804_v8 = vshll.u32 %v2782_v10, 16  ;;  %v1808_v34 = vshrl.u32 %v2782_v10, 16  ;;  %v1787_v26 = vor.u32 %v1786_v49, %v1782_v39  ;;  %v2788_v22 = vld [vmem:[%s3362_s29 + $0x7c] sm:$0xf]  ;;  %v2789_v49 = vld [vmem:[%s3362_s29 + $0x80] sm:$0x1] }
  0x76   : > { %v2813_v57 = vcombine.low %v1759_v20, %v1769_v54  ;;  %v1778_v3 = vrot.slane %v1777_v45, 4  ;;  %v1797_v27 = vrot.slane %v1795_v62, 4  ;;  %v1800_v38 = vrot.slane %v1798_v15, 5 }
  0x77   : > { %v1806_v5 = vrot.slane %v1804_v8, 5  ;;  %v1810_v35 = vrot.slane %v1808_v34, 4  ;;  %v1814_v13 = vshll.u32 %v2783_v7, 16  ;;  %v3969_v44 = vcombine.low %v3478_v58, %v3481_v59  ;;  %v2786_v58 = vld [vmem:[%s3362_s29 + $0x74] sm:$0x1] }
  0x78   : > { %v1783_v37 = vsel %vm3388_vm3, %v1778_v3, %v1782_v39  ;;  %v1788_v43 = vrot.slane %v1787_v26, 4  ;;  %v1819_v36 = vshrl.u32 %v2784_v23, 16  ;;  %v1822_v2 = vshll.u32 %v2784_v23, 16  ;;  %3127 = vmatmul.mubr.msk.bf16.gmra.mrb[8].mxu0 %vm669_vm0, %v2813_v57  ;;  %v2790_v34 = vld [vmem:[%s3362_s29 + $0x84] sm:$0xf] }
  0x79   : > { %3047 = vmatmul.mubr.msk.bf16.gmra.mrb[8].mxu1 %vm669_vm0, %v3969_v44  ;;  %v3970_v52 = vcombine.low %v3498_v16, %v3505_v25  ;;  %v1801_v46 = vor.u32 %v1800_v38, %v1797_v27  ;;  %v1811_v41 = vor.u32 %v1810_v35, %v1806_v5  ;;  %v1816_v51 = vrot.slane %v1814_v13, 5  ;;  %v2791_v3 = vld [vmem:[%s3362_s29 + $0x88] sm:$0xf] }
  0x7a   : > { %v1828_v59 = vshll.u32 %v2785_v63, 16  ;;  %v1793_v14 = vsel %vm3388_vm3, %v1788_v43, %v1792_v61  ;;  %v1821_v29 = vrot.slane %v1819_v36, 4  ;;  %v1824_v30 = vrot.slane %v1822_v2, 5 }
  0x7b   : > { %3050 = vmatprep.mubr.msk.bf16.mxu1 %vm669_vm0, %v3970_v52  ;;  %v1832_v60 = vshrl.u32 %v2785_v63, 16  ;;  %v2814_v40 = vcombine.low %v1783_v37, %v1793_v14  ;;  %v1802_v56 = vrot.slane %v1801_v46, 4  ;;  %v1812_v9 = vrot.slane %v1811_v41, 4  ;;  %v2793_v52 = vld [vmem:[%s3362_s29 + $0x90] sm:$0xf] }
  0x7c   : > { %v1830_v16 = vrot.slane %v1828_v59, 5  ;;  %v1825_v25 = vor.u32 %v1824_v30, %v1821_v29  ;;  %v1838_v18 = vshll.u32 %v2786_v58, 16  ;;  %v2664_v20 = vcombine.low %v3535_v4, %v3542_v11  ;;  %v2794_v29 = vld [vmem:[%s3362_s29 + $0x94] sm:$0xf] }
  0x7d   : > { %v1834_v10 = vrot.slane %v1832_v60, 4  ;;  %3130 = vmatprep.mubr.msk.bf16.mxu0 %vm669_vm0, %v2814_v40  ;;  %v1807_v39 = vsel %vm3388_vm3, %v1802_v56, %v1806_v5  ;;  %v1817_v45 = vsel %vm3388_vm3, %v1812_v9, %v1816_v51  ;;  %v1843_v61 = vshrl.u32 %v2787_v0, 16 }
  0x7e   : > { %v1846_v7 = vshll.u32 %v2787_v0, 16  ;;  %v2815_v62 = vcombine.low %v1807_v39, %v1817_v45  ;;  %v1826_v54 = vrot.slane %v1825_v25, 4  ;;  %v1840_v8 = vrot.slane %v1838_v18, 5  ;;  %v2795_v25 = vld [vmem:[%s3362_s29 + $0x98] sm:$0x1] }
  0x7f   : > { %v1835_v15 = vor.u32 %v1834_v10, %v1830_v16  ;;  %v1845_v4 = vrot.slane %v1843_v61, 4  ;;  %v1852_v23 = vshll.u32 %v2788_v22, 16  ;;  %v1856_v57 = vshrl.u32 %v2788_v22, 16  ;;  %v2796_v45 = vld [vmem:[%s3362_s29 + $0x9c] sm:$0xf] }
  0x80   : > { %v1848_v11 = vrot.slane %v1846_v7, 5  ;;  %v3971_v26 = vcombine.low %v3522_v47, %v3525_v48  ;;  %v1831_v27 = vsel %vm3388_vm3, %v1826_v54, %v1830_v16  ;;  %v1862_v38 = vshll.u32 %v2789_v49, 16  ;;  %3131 = vmatmul.mubr.msk.bf16.gmra.mrb[12].mxu0 %vm669_vm0, %v2815_v62  ;;  %v2792_v47 = vld [vmem:[%s3362_s29 + $0x8c] sm:$0x1]  ;;  %v2797_v7 = vld [vmem:[%s3362_s29 + $0xa0] sm:$0xf] }
  0x81   : > { %v1836_v63 = vrot.slane %v1835_v15, 4  ;;  %v2665_v5 = vcombine.low %v3564_v53, %v3567_v55  ;;  %v1854_v13 = vrot.slane %v1852_v23, 5  ;;  %v1858_v44 = vrot.slane %v1856_v57, 4 }
  0x82   : > { %3051 = vmatmul.mubr.msk.bf16.gmra.mrb[12].mxu1 %vm669_vm0, %v3971_v26  ;;  %v1849_v35 = vor.u32 %v1848_v11, %v1845_v4  ;;  %v1867_v48 = vshrl.u32 %v2790_v34, 16  ;;  %v1864_v43 = vrot.slane %v1862_v38, 5  ;;  %v1870_v36 = vshll.u32 %v2790_v34, 16  ;;  %v2798_v26 = vld [vmem:[%s3362_s29 + $0xa4] sm:$0x1] }
  0x83   : > { %3054 = vmatprep.mubr.msk.bf16.mxu1 %vm669_vm0, %v2664_v20  ;;  %v1841_v37 = vsel %vm3388_vm3, %v1836_v63, %v1840_v8  ;;  %v1876_v2 = vshll.u32 %v2791_v3, 16  ;;  %v1859_v53 = vor.u32 %v1858_v44, %v1854_v13  ;;  %v1880_v59 = vshrl.u32 %v2791_v3, 16 }
  0x84   : > { %v2816_v46 = vcombine.low %v1831_v27, %v1841_v37  ;;  %v1850_v41 = vrot.slane %v1849_v35, 4  ;;  %v1869_v55 = vrot.slane %v1867_v48, 4  ;;  %v1872_v51 = vrot.slane %v1870_v36, 5  ;;  %v2799_v35 = vld [vmem:[%s3362_s29 + $0xa8] sm:$0xf] }
  0x85   : > { %v1878_v58 = vrot.slane %v1876_v2, 5  ;;  %v1886_v14 = vshll.u32 %v2792_v47, 16  ;;  %v1860_v60 = vrot.slane %v1859_v53, 4  ;;  %v2666_v0 = vcombine.low %v3584_v19, %v3587_v31  ;;  %v2800_v37 = vld [vmem:[%s3362_s29 + $0xac] sm:$0xf] }
  0x86   : > { %3134 = vmatprep.mubr.msk.bf16.mxu0 %vm669_vm0, %v2816_v46  ;;  %v1855_v30 = vsel %vm3388_vm3, %v1850_v41, %v1854_v13  ;;  %v1891_v40 = vshrl.u32 %v2793_v52, 16  ;;  %v1873_v56 = vor.u32 %v1872_v51, %v1869_v55  ;;  %v1882_v9 = vrot.slane %v1880_v59, 4  ;;  %v2801_v53 = vld [vmem:[%s3362_s29 + $0xb0] sm:$0x1] }
  0x87   : > { %v1888_v16 = vrot.slane %v1886_v14, 5  ;;  %v1894_v10 = vshll.u32 %v2793_v52, 16  ;;  %v1865_v18 = vsel %vm3388_vm3, %v1860_v60, %v1864_v43  ;;  %v1900_v22 = vshll.u32 %v2794_v29, 16 }
  0x88   : > { %v1893_v20 = vrot.slane %v1891_v40, 4  ;;  %v1904_v39 = vshrl.u32 %v2794_v29, 16  ;;  %v2817_v49 = vcombine.low %v1855_v30, %v1865_v18  ;;  %v1874_v61 = vrot.slane %v1873_v56, 4  ;;  %v2802_v30 = vld [vmem:[%s3362_s29 + $0xb4] sm:$0xf] }
  0x89   : > { %v1883_v19 = vor.u32 %v1882_v9, %v1878_v58  ;;  %v1896_v31 = vrot.slane %v1894_v10, 5  ;;  %v1902_v62 = vrot.slane %v1900_v22, 5  ;;  %v1910_v15 = vshll.u32 %v2795_v25, 16  ;;  %v2803_v40 = vld [vmem:[%s3362_s29 + $0xb8] sm:$0xf] }
  0x8a   : > { %3055 = vmatmul.mubr.msk.bf16.gmra.mrb[16].mxu1 %vm669_vm0, %v2665_v5  ;;  %v1906_v54 = vrot.slane %v1904_v39, 4  ;;  %v2667_v8 = vcombine.low %v3601_v17, %v3605_v1  ;;  %3135 = vmatmul.mubr.msk.bf16.gmra.mrb[16].mxu0 %vm669_vm0, %v2817_v49  ;;  %v1879_v34 = vsel %vm3388_vm3, %v1874_v61, %v1878_v58  ;;  %v1915_v23 = vshrl.u32 %v2796_v45, 16  ;;  %v2804_v22 = vld [vmem:[%s3362_s29 + $0xbc] sm:$0x1] }
  0x8b   : > { %3058 = vmatprep.mubr.msk.bf16.mxu1 %vm669_vm0, %v2666_v0  ;;  %v1884_v4 = vrot.slane %v1883_v19, 4  ;;  %v1897_v11 = vor.u32 %v1896_v31, %v1893_v20  ;;  %v1912_v3 = vrot.slane %v1910_v15, 5  ;;  %v1918_v27 = vshll.u32 %v2796_v45, 16  ;;  %v2805_v31 = vld [vmem:[%s3362_s29 + $0xc0] sm:$0xf] }
  0x8c   : > { %v1907_v57 = vor.u32 %v1906_v54, %v1902_v62  ;;  %v1924_v63 = vshll.u32 %v2797_v7, 16  ;;  %v1917_v17 = vrot.slane %v1915_v23, 4  ;;  %v1928_v1 = vshrl.u32 %v2797_v7, 16 }
  0x8d   : > { %v1889_v38 = vsel %vm3388_vm3, %v1884_v4, %v1888_v16  ;;  %v1898_v5 = vrot.slane %v1897_v11, 4  ;;  %v1920_v47 = vrot.slane %v1918_v27, 5  ;;  %v1934_v2 = vshll.u32 %v2798_v26, 16  ;;  %v2806_v4 = vld [vmem:[%s3362_s29 + $0xc4] sm:$0xf] }
  0x8e   : > { %v2818_v13 = vcombine.low %v1879_v34, %v1889_v38  ;;  %v1908_v44 = vrot.slane %v1907_v57, 4  ;;  %v1926_v48 = vrot.slane %v1924_v63, 5  ;;  %v1930_v36 = vrot.slane %v1928_v1, 4  ;;  %v2807_v38 = vld [vmem:[%s3362_s29 + $0xc8] sm:$0x1] }
  0x8f   : > { %v1903_v43 = vsel %vm3388_vm3, %v1898_v5, %v1902_v62  ;;  %v2668_v52 = vcombine.low %v3619_v32, %v3622_v24  ;;  %v1921_v41 = vor.u32 %v1920_v47, %v1917_v17  ;;  %v1939_v55 = vshrl.u32 %v2799_v35, 16 }
  0x90   : > { %3138 = vmatprep.mubr.msk.bf16.mxu0 %vm669_vm0, %v2818_v13  ;;  %v1913_v46 = vsel %vm3388_vm3, %v1908_v44, %v1912_v3  ;;  %v1942_v51 = vshll.u32 %v2799_v35, 16  ;;  %v1931_v59 = vor.u32 %v1930_v36, %v1926_v48  ;;  %v1936_v14 = vrot.slane %v1934_v2, 5 }
  0x91   : > { %v2819_v58 = vcombine.low %v1903_v43, %v1913_v46  ;;  %v1948_v29 = vshll.u32 %v2800_v37, 16  ;;  %v1922_v60 = vrot.slane %v1921_v41, 4  ;;  %v1941_v32 = vrot.slane %v1939_v55, 4 }
  0x92   : > { %3059 = vmatmul.mubr.msk.bf16.gmra.mrb[20].mxu1 %vm669_vm0, %v2667_v8  ;;  %v1944_v24 = vrot.slane %v1942_v51, 5  ;;  %v1952_v0 = vshrl.u32 %v2800_v37, 16  ;;  %v1932_v56 = vrot.slane %v1931_v59, 4  ;;  %v1958_v16 = vshll.u32 %v2801_v53, 16 }
  0x93   : > { %3062 = vmatprep.mubr.msk.bf16.mxu1 %vm669_vm0, %v2668_v52  ;;  %3139 = vmatmul.mubr.msk.bf16.gmra.mrb[20].mxu0 %vm669_vm0, %v2819_v58  ;;  %v1950_v9 = vrot.slane %v1948_v29, 5  ;;  %v2669_v25 = vcombine.low %v3644_v28, %v3647_v33  ;;  %v1927_v10 = vsel %vm3388_vm3, %v1922_v60, %v1926_v48  ;;  %v1963_v39 = vshrl.u32 %v2802_v30, 16 }
  0x94   : > { %v1945_v18 = vor.u32 %v1944_v24, %v1941_v32  ;;  %v1954_v20 = vrot.slane %v1952_v0, 4  ;;  %v1937_v45 = vsel %vm3388_vm3, %v1932_v56, %v1936_v14  ;;  %v1960_v49 = vrot.slane %v1958_v16, 5 }
  0x95   : > { %v1966_v61 = vshll.u32 %v2802_v30, 16  ;;  %v1972_v19 = vshll.u32 %v2803_v40, 16  ;;  %v2820_v7 = vcombine.low %v1927_v10, %v1937_v45  ;;  %v1965_v28 = vrot.slane %v1963_v39, 4 }
  0x96   : > { %v1946_v62 = vrot.slane %v1945_v18, 4  ;;  %v1955_v54 = vor.u32 %v1954_v20, %v1950_v9  ;;  %v1976_v8 = vshrl.u32 %v2803_v40, 16  ;;  %v1982_v34 = vshll.u32 %v2804_v22, 16 }
  0x97   : > { %v1968_v33 = vrot.slane %v1966_v61, 5  ;;  %v1974_v15 = vrot.slane %v1972_v19, 5  ;;  %3142 = vmatprep.mubr.msk.bf16.mxu0 %vm669_vm0, %v2820_v7  ;;  %v2670_v57 = vcombine.low %v3662_v6, %v3669_v12  ;;  %v1987_v3 = vshrl.u32 %v2805_v31, 16 }
  0x98   : > { %v1951_v11 = vsel %vm3388_vm3, %v1946_v62, %v1950_v9  ;;  %v1956_v23 = vrot.slane %v1955_v54, 4  ;;  %v1978_v27 = vrot.slane %v1976_v8, 4  ;;  %v1984_v63 = vrot.slane %v1982_v34, 5 }
  0x99   : > { %v1969_v26 = vor.u32 %v1968_v33, %v1965_v28  ;;  %v1990_v5 = vshll.u32 %v2805_v31, 16  ;;  %v1989_v1 = vrot.slane %v1987_v3, 4  ;;  %v1996_v35 = vshll.u32 %v2806_v4, 16 }
  0x9a   : > { %3063 = vmatmul.mubr.msk.bf16.gmra.mrb[24].mxu1 %vm669_vm0, %v2669_v25  ;;  %v1961_v17 = vsel %vm3388_vm3, %v1956_v23, %v1960_v49  ;;  %v2000_v13 = vshrl.u32 %v2806_v4, 16  ;;  %v1979_v48 = vor.u32 %v1978_v27, %v1974_v15  ;;  %v2006_v43 = vshll.u32 %v2807_v38, 16 }
  0x9b   : > { %3066 = vmatprep.mubr.msk.bf16.mxu1 %vm669_vm0, %v2670_v57  ;;  %v2821_v44 = vcombine.low %v1951_v11, %v1961_v17  ;;  %v1970_v47 = vrot.slane %v1969_v26, 4  ;;  %v1992_v6 = vrot.slane %v1990_v5, 5  ;;  %v1998_v12 = vrot.slane %v1996_v35, 5 }
  0x9c   : > { %v2002_v37 = vrot.slane %v2000_v13, 4  ;;  %v1980_v2 = vrot.slane %v1979_v48, 4  ;;  %v2671_v46 = vcombine.low %v3677_v42, %v3682_v50  ;;  %v2008_v53 = vrot.slane %v2006_v43, 5 }
  0x9d   : > { %3143 = vmatmul.mubr.msk.bf16.gmra.mrb[24].mxu0 %vm669_vm0, %v2821_v44  ;;  %v1975_v36 = vsel %vm3388_vm3, %v1970_v47, %v1974_v15  ;;  %v1993_v52 = vor.u32 %v1992_v6, %v1989_v1 }
  0x9e   : > { %v2003_v41 = vor.u32 %v2002_v37, %v1998_v12  ;;  %v1985_v55 = vsel %vm3388_vm3, %v1980_v2, %v1984_v63 }
  0x9f   : > { %v1994_v51 = vrot.slane %v1993_v52, 4  ;;  %v2822_v58 = vcombine.low %v1975_v36, %v1985_v55 }
  0xa0   : > { %v2004_v59 = vrot.slane %v2003_v41, 4 }
  0xa1   : > { %v1999_v14 = vsel %vm3388_vm3, %v1994_v51, %v1998_v12  ;;  %3146 = vmatprep.mubr.msk.bf16.mxu0 %vm669_vm0, %v2822_v58 }
  0xa2   : > { %3067 = vmatmul.mubr.msk.bf16.gmra.mrb[28].mxu1 %vm669_vm0, %v2671_v46  ;;  %v2009_v29 = vsel %vm3388_vm3, %v2004_v59, %v2008_v53 }
  0xa3   : > { %v2823_v30 = vcombine.low %v1999_v14, %v2009_v29 }
  0xa5   : > { %3147 = vmatmul.mubr.msk.bf16.gmra.mrb[28].mxu0 %vm669_vm0, %v2823_v30 }
 0x139   : > { %v3120_v42 = vpop.f32.mrb[0].mxu0 }
 0x13a   : > { %v3040_v50 = vpop.f32.mrb[0].mxu1  ;;  %v2172_v60 = vpop.f32.mrb[1].mxu0 }
 0x13b   : > { %v3150_v32 = vadd.f32 %v3120_v42, %v3040_v50  ;;  %v1065_v24 = vpop.f32.mrb[1].mxu1  ;;  %v3121_v0 = vpop.f32.mrb[2].mxu0 }
 0x13c   : > { %v3151_v40 = vadd.f32 %v2172_v60, %v1065_v24  ;;  %v3041_v56 = vpop.f32.mrb[2].mxu1  ;;  %v2175_v9 = vpop.f32.mrb[3].mxu0 }
 0x13d   : > { %v2333_v16 = vmul.f32 0.2, %v3150_v32  ;;  %v3152_v25 = vadd.f32 %v3121_v0, %v3041_v56  ;;  %v1068_v21 = vpop.f32.mrb[3].mxu1 }
 0x13e   : > { %v2331_v10 = vmul.f32 0.2, %v3151_v40  ;;  %v3153_v18 = vadd.f32 %v2175_v9, %v1068_v21 }
 0x13f   : > { %v2365_v20 = vmax.f32 %v3150_v32, %v2333_v16  ;;  %v2334_v22 = vmul.f32 0.2, %v3152_v25 }
 0x140   : > { %v2363_v39 = vmax.f32 %v3151_v40, %v2331_v10  ;;  %v2332_v45 = vmul.f32 0.2, %v3153_v18 }
 0x141   : > { %v2880_v49 = vpack.c.bf16 %v2365_v20, %v2365_v20  ;;  %v2366_v61 = vmax.f32 %v3152_v25, %v2334_v22 }
 0x142   : > { %v2878_v19 = vpack.c.bf16 %v2363_v39, %v2363_v39  ;;  %v2364_v31 = vmax.f32 %v3153_v18, %v2332_v45 }
 0x143   : > { %2526 = vst.msk [vmem:[%s3892_s25 + $0x8] sm:$0xf] %vm2523_vm4, %v2880_v49  ;;  %v2881_v62 = vpack.c.bf16 %v2366_v61, %v2366_v61  ;;  %v3124_v54 = vpop.f32.mrb[4].mxu0 }
 0x144   : > { %v3044_v7 = vpop.f32.mrb[4].mxu1  ;;  %2524 = vst.msk [vmem:[%s3892_s25] sm:$0xf] %vm2523_vm4, %v2878_v19  ;;  %v2879_v33 = vpack.c.bf16 %v2364_v31, %v2364_v31  ;;  %v2188_v8 = vpop.f32.mrb[5].mxu0 }
 0x145   : > { %v1081_v28 = vpop.f32.mrb[5].mxu1  ;;  %v3154_v15 = vadd.f32 %v3124_v54, %v3044_v7  ;;  %2527 = vst.msk [vmem:[%s3892_s25 + $0xc] sm:$0xf] %vm2523_vm4, %v2881_v62  ;;  %v3125_v11 = vpop.f32.mrb[6].mxu0 }
 0x146   : > { %v3045_v34 = vpop.f32.mrb[6].mxu1  ;;  %v3155_v4 = vadd.f32 %v2188_v8, %v1081_v28  ;;  %2525 = vst.msk [vmem:[%s3892_s25 + $0x4] sm:$0xf] %vm2523_vm4, %v2879_v33  ;;  %v2191_v26 = vpop.f32.mrb[7].mxu0 }
 0x147   : > { %v1084_v23 = vpop.f32.mrb[7].mxu1  ;;  %v2337_v57 = vmul.f32 0.2, %v3154_v15  ;;  %v3156_v3 = vadd.f32 %v3125_v11, %v3045_v34 }
 0x148   : > { %v2335_v27 = vmul.f32 0.2, %v3155_v4  ;;  %v3157_v63 = vadd.f32 %v2191_v26, %v1084_v23 }
 0x149   : > { %v2369_v38 = vmax.f32 %v3154_v15, %v2337_v57  ;;  %v2338_v5 = vmul.f32 0.2, %v3156_v3 }
 0x14a   : > { %v2367_v17 = vmax.f32 %v3155_v4, %v2335_v27  ;;  %v2336_v1 = vmul.f32 0.2, %v3157_v63 }
 0x14b   : > { %v2884_v35 = vpack.c.bf16 %v2369_v38, %v2369_v38  ;;  %v2370_v13 = vmax.f32 %v3156_v3, %v2338_v5  ;;  %v3128_v6 = vpop.f32.mrb[8].mxu0 }
 0x14c   : > { %v3048_v44 = vpop.f32.mrb[8].mxu1  ;;  %v2882_v47 = vpack.c.bf16 %v2367_v17, %v2367_v17  ;;  %v2368_v48 = vmax.f32 %v3157_v63, %v2336_v1  ;;  %v2204_v36 = vpop.f32.mrb[9].mxu0 }
 0x14d   : > { %v1097_v12 = vpop.f32.mrb[9].mxu1  ;;  %2530 = vst.msk [vmem:[%s3892_s25 + $0x18] sm:$0xf] %vm2523_vm4, %v2884_v35  ;;  %v2885_v37 = vpack.c.bf16 %v2370_v13, %v2370_v13  ;;  %v3158_v43 = vadd.f32 %v3128_v6, %v3048_v44  ;;  %v3129_v41 = vpop.f32.mrb[10].mxu0 }
 0x14e   : > { %v3049_v2 = vpop.f32.mrb[10].mxu1  ;;  %2528 = vst.msk [vmem:[%s3892_s25 + $0x10] sm:$0xf] %vm2523_vm4, %v2882_v47  ;;  %v2883_v52 = vpack.c.bf16 %v2368_v48, %v2368_v48  ;;  %v3159_v46 = vadd.f32 %v2204_v36, %v1097_v12  ;;  %v2207_v58 = vpop.f32.mrb[11].mxu0 }
 0x14f   : > { %v1100_v53 = vpop.f32.mrb[11].mxu1  ;;  %2531 = vst.msk [vmem:[%s3892_s25 + $0x1c] sm:$0xf] %vm2523_vm4, %v2885_v37  ;;  %v2341_v55 = vmul.f32 0.2, %v3158_v43  ;;  %v3160_v51 = vadd.f32 %v3129_v41, %v3049_v2 }
 0x150   : > { %2529 = vst.msk [vmem:[%s3892_s25 + $0x14] sm:$0xf] %vm2523_vm4, %v2883_v52  ;;  %v2339_v59 = vmul.f32 0.2, %v3159_v46  ;;  %v3161_v14 = vadd.f32 %v2207_v58, %v1100_v53 }
 0x151   : > { %v2373_v29 = vmax.f32 %v3158_v43, %v2341_v55  ;;  %v2342_v30 = vmul.f32 0.2, %v3160_v51 }
 0x152   : > { %v2371_v42 = vmax.f32 %v3159_v46, %v2339_v59  ;;  %v2340_v50 = vmul.f32 0.2, %v3161_v14 }
 0x153   : > { %v2888_v60 = vpack.c.bf16 %v2373_v29, %v2373_v29  ;;  %v2374_v32 = vmax.f32 %v3160_v51, %v2342_v30  ;;  %v3132_v56 = vpop.f32.mrb[12].mxu0 }
 0x154   : > { %v2886_v0 = vpack.c.bf16 %v2371_v42, %v2371_v42  ;;  %v2372_v40 = vmax.f32 %v3161_v14, %v2340_v50  ;;  %v2220_v21 = vpop.f32.mrb[13].mxu0 }
 0x155   : > { %v3052_v24 = vpop.f32.mrb[12].mxu1  ;;  %2534 = vst.msk [vmem:[%s3892_s25 + $0x28] sm:$0xf] %vm2523_vm4, %v2888_v60  ;;  %v2889_v16 = vpack.c.bf16 %v2374_v32, %v2374_v32  ;;  %v3133_v22 = vpop.f32.mrb[14].mxu0 }
 0x156   : > { %v1113_v9 = vpop.f32.mrb[13].mxu1  ;;  %v3162_v25 = vadd.f32 %v3132_v56, %v3052_v24  ;;  %2532 = vst.msk [vmem:[%s3892_s25 + $0x20] sm:$0xf] %vm2523_vm4, %v2886_v0  ;;  %v2887_v18 = vpack.c.bf16 %v2372_v40, %v2372_v40  ;;  %v2223_v61 = vpop.f32.mrb[15].mxu0 }
 0x157   : > { %v3053_v10 = vpop.f32.mrb[14].mxu1  ;;  %v3163_v20 = vadd.f32 %v2220_v21, %v1113_v9  ;;  %2535 = vst.msk [vmem:[%s3892_s25 + $0x2c] sm:$0xf] %vm2523_vm4, %v2889_v16 }
 0x158   : > { %v1116_v39 = vpop.f32.mrb[15].mxu1  ;;  %v2345_v45 = vmul.f32 0.2, %v3162_v25  ;;  %v3164_v49 = vadd.f32 %v3133_v22, %v3053_v10  ;;  %2533 = vst.msk [vmem:[%s3892_s25 + $0x24] sm:$0xf] %vm2523_vm4, %v2887_v18 }
 0x159   : > { %v2343_v19 = vmul.f32 0.2, %v3163_v20  ;;  %v3165_v31 = vadd.f32 %v2223_v61, %v1116_v39 }
 0x15a   : > { %v2377_v7 = vmax.f32 %v3162_v25, %v2345_v45  ;;  %v2346_v62 = vmul.f32 0.2, %v3164_v49 }
 0x15b   : > { %v2375_v54 = vmax.f32 %v3163_v20, %v2343_v19  ;;  %v2344_v28 = vmul.f32 0.2, %v3165_v31 }
 0x15c   : > { %v2892_v33 = vpack.c.bf16 %v2377_v7, %v2377_v7  ;;  %v2378_v15 = vmax.f32 %v3164_v49, %v2346_v62 }
 0x15d   : > { %v3056_v8 = vpop.f32.mrb[16].mxu1  ;;  %v2890_v34 = vpack.c.bf16 %v2375_v54, %v2375_v54  ;;  %v2376_v4 = vmax.f32 %v3165_v31, %v2344_v28  ;;  %v3136_v57 = vpop.f32.mrb[16].mxu0 }
 0x15e   : > { %v1129_v11 = vpop.f32.mrb[17].mxu1  ;;  %2538 = vst.msk [vmem:[%s3892_s25 + $0x38] sm:$0xf] %vm2523_vm4, %v2892_v33  ;;  %v2893_v23 = vpack.c.bf16 %v2378_v15, %v2378_v15  ;;  %v3166_v27 = vadd.f32 %v3136_v57, %v3056_v8  ;;  %v2236_v63 = vpop.f32.mrb[17].mxu0 }
 0x15f   : > { %v3057_v3 = vpop.f32.mrb[18].mxu1  ;;  %2536 = vst.msk [vmem:[%s3892_s25 + $0x30] sm:$0xf] %vm2523_vm4, %v2890_v34  ;;  %v2891_v26 = vpack.c.bf16 %v2376_v4, %v2376_v4  ;;  %v3167_v5 = vadd.f32 %v2236_v63, %v1129_v11  ;;  %v3137_v17 = vpop.f32.mrb[18].mxu0 }
 0x160   : > { %v1132_v38 = vpop.f32.mrb[19].mxu1  ;;  %2539 = vst.msk [vmem:[%s3892_s25 + $0x3c] sm:$0xf] %vm2523_vm4, %v2893_v23  ;;  %v2349_v1 = vmul.f32 0.2, %v3166_v27  ;;  %v3168_v35 = vadd.f32 %v3137_v17, %v3057_v3  ;;  %v2239_v13 = vpop.f32.mrb[19].mxu0 }
 0x161   : > { %2537 = vst.msk [vmem:[%s3892_s25 + $0x34] sm:$0xf] %vm2523_vm4, %v2891_v26  ;;  %v2347_v44 = vmul.f32 0.2, %v3167_v5  ;;  %v3169_v47 = vadd.f32 %v2239_v13, %v1132_v38 }
 0x162   : > { %v2381_v48 = vmax.f32 %v3166_v27, %v2349_v1  ;;  %v2350_v6 = vmul.f32 0.2, %v3168_v35 }
 0x163   : > { %v2379_v12 = vmax.f32 %v3167_v5, %v2347_v44  ;;  %v2348_v37 = vmul.f32 0.2, %v3169_v47 }
 0x164   : > { %v2896_v36 = vpack.c.bf16 %v2381_v48, %v2381_v48  ;;  %v2382_v2 = vmax.f32 %v3168_v35, %v2350_v6 }
 0x165   : > { %v3060_v43 = vpop.f32.mrb[20].mxu1  ;;  %v2894_v46 = vpack.c.bf16 %v2379_v12, %v2379_v12  ;;  %v2380_v41 = vmax.f32 %v3169_v47, %v2348_v37 }
 0x166   : > { %v1145_v52 = vpop.f32.mrb[21].mxu1  ;;  %v3140_v53 = vpop.f32.mrb[20].mxu0  ;;  %2542 = vst.msk [vmem:[%s3892_s25 + $0x48] sm:$0xf] %vm2523_vm4, %v2896_v36  ;;  %v2897_v51 = vpack.c.bf16 %v2382_v2, %v2382_v2 }
 0x167   : > { %v3061_v55 = vpop.f32.mrb[22].mxu1  ;;  %v3170_v58 = vadd.f32 %v3140_v53, %v3060_v43  ;;  %v2252_v59 = vpop.f32.mrb[21].mxu0  ;;  %2540 = vst.msk [vmem:[%s3892_s25 + $0x40] sm:$0xf] %vm2523_vm4, %v2894_v46  ;;  %v2895_v29 = vpack.c.bf16 %v2380_v41, %v2380_v41 }
 0x168   : > { %v1148_v14 = vpop.f32.mrb[23].mxu1  ;;  %v3171_v30 = vadd.f32 %v2252_v59, %v1145_v52  ;;  %v3141_v42 = vpop.f32.mrb[22].mxu0  ;;  %2543 = vst.msk [vmem:[%s3892_s25 + $0x4c] sm:$0xf] %vm2523_vm4, %v2897_v51 }
 0x169   : > { %v2353_v50 = vmul.f32 0.2, %v3170_v58  ;;  %v3172_v60 = vadd.f32 %v3141_v42, %v3061_v55  ;;  %v2255_v32 = vpop.f32.mrb[23].mxu0  ;;  %2541 = vst.msk [vmem:[%s3892_s25 + $0x44] sm:$0xf] %vm2523_vm4, %v2895_v29 }
 0x16a   : > { %v2351_v24 = vmul.f32 0.2, %v3171_v30  ;;  %v3173_v0 = vadd.f32 %v2255_v32, %v1148_v14 }
 0x16b   : > { %v2385_v40 = vmax.f32 %v3170_v58, %v2353_v50  ;;  %v2354_v56 = vmul.f32 0.2, %v3172_v60 }
 0x16c   : > { %v2383_v9 = vmax.f32 %v3171_v30, %v2351_v24  ;;  %v2352_v16 = vmul.f32 0.2, %v3173_v0 }
 0x16d   : > { %v3064_v25 = vpop.f32.mrb[24].mxu1  ;;  %v2900_v21 = vpack.c.bf16 %v2385_v40, %v2385_v40  ;;  %v2386_v10 = vmax.f32 %v3172_v60, %v2354_v56 }
 0x16e   : > { %v1161_v18 = vpop.f32.mrb[25].mxu1  ;;  %v2898_v20 = vpack.c.bf16 %v2383_v9, %v2383_v9  ;;  %v2384_v22 = vmax.f32 %v3173_v0, %v2352_v16 }
 0x16f   : > { %v3065_v39 = vpop.f32.mrb[26].mxu1  ;;  %2546 = vst.msk [vmem:[%s3892_s25 + $0x58] sm:$0xf] %vm2523_vm4, %v2900_v21  ;;  %v2901_v45 = vpack.c.bf16 %v2386_v10, %v2386_v10 }
 0x170   : > { %v1164_v49 = vpop.f32.mrb[27].mxu1  ;;  %2544 = vst.msk [vmem:[%s3892_s25 + $0x50] sm:$0xf] %vm2523_vm4, %v2898_v20  ;;  %v2899_v61 = vpack.c.bf16 %v2384_v22, %v2384_v22  ;;  %v3144_v19 = vpop.f32.mrb[24].mxu0 }
 0x171   : > { %2547 = vst.msk [vmem:[%s3892_s25 + $0x5c] sm:$0xf] %vm2523_vm4, %v2901_v45  ;;  %v3174_v31 = vadd.f32 %v3144_v19, %v3064_v25  ;;  %v2268_v7 = vpop.f32.mrb[25].mxu0 }
 0x172   : > { %2545 = vst.msk [vmem:[%s3892_s25 + $0x54] sm:$0xf] %vm2523_vm4, %v2899_v61  ;;  %v3175_v62 = vadd.f32 %v2268_v7, %v1161_v18  ;;  %v3145_v54 = vpop.f32.mrb[26].mxu0 }
 0x173   : > { %v2357_v28 = vmul.f32 0.2, %v3174_v31  ;;  %v3176_v33 = vadd.f32 %v3145_v54, %v3065_v39  ;;  %v2271_v15 = vpop.f32.mrb[27].mxu0 }
 0x174   : > { %v2355_v8 = vmul.f32 0.2, %v3175_v62  ;;  %v3177_v34 = vadd.f32 %v2271_v15, %v1164_v49 }
 0x175   : > { %v3068_v4 = vpop.f32.mrb[28].mxu1  ;;  %v2389_v11 = vmax.f32 %v3174_v31, %v2357_v28  ;;  %v2358_v23 = vmul.f32 0.2, %v3176_v33 }
 0x176   : > { %v1177_v57 = vpop.f32.mrb[29].mxu1  ;;  %v2387_v3 = vmax.f32 %v3175_v62, %v2355_v8  ;;  %v2356_v26 = vmul.f32 0.2, %v3177_v34 }
 0x177   : > { %v3069_v27 = vpop.f32.mrb[30].mxu1  ;;  %v2904_v63 = vpack.c.bf16 %v2389_v11, %v2389_v11  ;;  %v2390_v38 = vmax.f32 %v3176_v33, %v2358_v23 }
 0x178   : > { %v1180_v5 = vpop.f32.mrb[31].mxu1  ;;  %v2902_v17 = vpack.c.bf16 %v2387_v3, %v2387_v3  ;;  %v2388_v1 = vmax.f32 %v3177_v34, %v2356_v26  ;;  %v3148_v35 = vpop.f32.mrb[28].mxu0 }
 0x179   : > { %2550 = vst.msk [vmem:[%s3892_s25 + $0x68] sm:$0xf] %vm2523_vm4, %v2904_v63  ;;  %v2905_v13 = vpack.c.bf16 %v2390_v38, %v2390_v38  ;;  %v3178_v44 = vadd.f32 %v3148_v35, %v3068_v4  ;;  %v2284_v47 = vpop.f32.mrb[29].mxu0 }
 0x17a   : > { %2548 = vst.msk [vmem:[%s3892_s25 + $0x60] sm:$0xf] %vm2523_vm4, %v2902_v17  ;;  %v2903_v48 = vpack.c.bf16 %v2388_v1, %v2388_v1  ;;  %v3179_v6 = vadd.f32 %v2284_v47, %v1177_v57  ;;  %v3149_v12 = vpop.f32.mrb[30].mxu0 }
 0x17b   : > { %2551 = vst.msk [vmem:[%s3892_s25 + $0x6c] sm:$0xf] %vm2523_vm4, %v2905_v13  ;;  %v2361_v37 = vmul.f32 0.2, %v3178_v44  ;;  %v3180_v43 = vadd.f32 %v3149_v12, %v3069_v27  ;;  %v2287_v36 = vpop.f32.mrb[31].mxu0 }
 0x17c   : > { %2549 = vst.msk [vmem:[%s3892_s25 + $0x64] sm:$0xf] %vm2523_vm4, %v2903_v48  ;;  %v2359_v2 = vmul.f32 0.2, %v3179_v6  ;;  %v3181_v52 = vadd.f32 %v2287_v36, %v1180_v5 }
 0x17d   : > { %v2393_v46 = vmax.f32 %v3178_v44, %v2361_v37  ;;  %v2362_v41 = vmul.f32 0.2, %v3180_v43 }
 0x17e   : > { %v2391_v53 = vmax.f32 %v3179_v6, %v2359_v2  ;;  %v2360_v55 = vmul.f32 0.2, %v3181_v52 }
 0x17f   : > { %v2908_v51 = vpack.c.bf16 %v2393_v46, %v2393_v46  ;;  %v2394_v58 = vmax.f32 %v3180_v43, %v2362_v41 }
 0x180   : > { %v2906_v59 = vpack.c.bf16 %v2391_v53, %v2391_v53  ;;  %v2392_v14 = vmax.f32 %v3181_v52, %v2360_v55 }
 0x181   : > { %2554 = vst.msk [vmem:[%s3892_s25 + $0x78] sm:$0xf] %vm2523_vm4, %v2908_v51  ;;  %v2909_v29 = vpack.c.bf16 %v2394_v58, %v2394_v58 }
 0x182   : > { %2552 = vst.msk [vmem:[%s3892_s25 + $0x70] sm:$0xf] %vm2523_vm4, %v2906_v59  ;;  %v2907_v30 = vpack.c.bf16 %v2392_v14, %v2392_v14 }
 0x183   : > { %2555 = vst.msk [vmem:[%s3892_s25 + $0x7c] sm:$0xf] %vm2523_vm4, %v2909_v29 }
 0x184   : > { %2553 = vst.msk [vmem:[%s3892_s25 + $0x74] sm:$0xf] %vm2523_vm4, %v2907_v30 }
 0x185 PF: > { %s12_s9 = sadd.s32 1, %s3309_s9  }
 0x186   : > { %p9_p5 = scmp.ge.s32.totalorder %s12_s9, 4  }
 0x188   :  { %11 = sbr.rel (!%p9_p5) target bundleno = 1 (0x1), region = 59 }

// kernel: wgangp_discriminator_forward.6
= control target key start
LH: loop header
LB: loop body
LE: loop exit
PB: predicated region body
PF: predicated region fallthrough
CT: control target
= control target key end

     0   :  { %vm60_vm0 = vsmask.f32 3328  ;;  %vm61_vm1 = vsmask.f32 7440  ;;  %vm1476_vm3 = vcmask 519168   ;;  %s2488_s1 = inlined_call_operand.vmem [shape: bf16[512,64], index: 1, kind: input, shape index: {}]   ;;  %s2489_s0 = inlined_call_operand.vmem [shape: bf16[2,9,9,128], index: 0, kind: input, shape index: {}]   ;;  %s2490_s2 = inlined_call_operand.vmem [shape: bf16[128,64], index: 2, kind: output, shape index: {}]  }
   0x1   :  { %v1881_v0 = vld [vmem:[%s2488_s1 + $0x40] sm:$0xff]   ;;  %v1883_v2 = vld [vmem:[%s2488_s1 + $0x48] sm:$0xff]   ;;  %v1885_v4 = vld [vmem:[%s2488_s1 + $0x50] sm:$0xff]  }
   0x2   :  { %v1882_v1 = vld [vmem:[%s2488_s1 + $0x80] sm:$0xff]   ;;  %1705 = vmatprep.subr.bf16.mxu1 %v1881_v0  ;;  %v1884_v3 = vld [vmem:[%s2488_s1 + $0x88] sm:$0xff]   ;;  %v1886_v5 = vld [vmem:[%s2488_s1 + $0x90] sm:$0xff]  }
   0x3   :  { %1769 = vmatprep.subr.bf16.mxu0 %v1882_v1  ;;  %1706 = vmatpush3.bf16.msra.mxu1 %v1881_v0  ;;  %v1887_v6 = vld [vmem:[%s2488_s1 + $0x58] sm:$0xff]   ;;  %v1889_v8 = vld [vmem:[%s2488_s1 + $0x60] sm:$0xff]   ;;  %v1891_v10 = vld [vmem:[%s2488_s1 + $0x68] sm:$0xff]  }
   0x4   :  { %1770 = vmatpush3.bf16.msra.mxu0 %v1882_v1  ;;  %1707 = vmatprep.subr.bf16.mxu1 %v1883_v2  ;;  %v1888_v7 = vld [vmem:[%s2488_s1 + $0x98] sm:$0xff]   ;;  %v1890_v9 = vld [vmem:[%s2488_s1 + $0xa0] sm:$0xff]   ;;  %v1892_v11 = vld [vmem:[%s2488_s1 + $0xa8] sm:$0xff]  }
   0x5   :  { %1771 = vmatprep.subr.bf16.mxu0 %v1884_v3  ;;  %v1983_v12 = vld [vmem:[%s2489_s0] sm:$0xf]  ;;  %v1988_v13 = vld [vmem:[%s2489_s0 + $0x8] sm:$0xf]  ;;  %v44_v14 = vld [vmem:[%s2489_s0 + $0x4] sm:$0x1] }
   0x6   :  { %v45_v15 = vld [vmem:[%s2489_s0 + $0xc] sm:$0x1]  ;;  %v64_v16 = vshrl.u32 %v1983_v12, 16  ;;  %v67_v17 = vshll.u32 %v1983_v12, 16  ;;  %v73_v18 = vshll.u32 %v44_v14, 16  ;;  %v78_v19 = vshrl.u32 %v1988_v13, 16  ;;  %vm2029_vm2 = vmor %vm60_vm0, %vm61_vm1 }
   0x7   :  { %1708 = vmatpush3.bf16.msra.mxu1 %v1883_v2  ;;  %v1893_v20 = vld [vmem:[%s2488_s1 + $0x70] sm:$0xff]   ;;  %v81_v21 = vshll.u32 %v1988_v13, 16  ;;  %v87_v22 = vshll.u32 %v45_v15, 16  ;;  %v2017_v32 = vld [vmem:[%s2489_s0 + $0x18] sm:$0xf]  ;;  %v1898_v60 = vld [vmem:[%s2488_s1] sm:$0xff]  }
   0x8   :  { %1772 = vmatpush3.bf16.msra.mxu0 %v1884_v3  ;;  %1709 = vmatprep.subr.bf16.mxu1 %v1885_v4  ;;  %v1894_v23 = vld [vmem:[%s2488_s1 + $0xb0] sm:$0xff]   ;;  %v66_v24 = vrot.slane %v64_v16, 4  ;;  %v69_v25 = vrot.slane %v67_v17, 5  ;;  %v75_v26 = vrot.slane %v73_v18, 5  ;;  %v80_v27 = vrot.slane %v78_v19, 4  ;;  %v1895_v47 = vld [vmem:[%s2488_s1 + $0x78] sm:$0xff]  }
   0x9   :  { %1773 = vmatprep.subr.bf16.mxu0 %v1886_v5  ;;  %v1897_v28 = vld [vmem:[%s2489_s0 + $0x8] ss:$8 sps:$4 sm:$0xff]   ;;  %v83_v29 = vrot.slane %v81_v21, 5  ;;  %v89_v30 = vrot.slane %v87_v22, 5  ;;  %v46_v34 = vld [vmem:[%s2489_s0 + $0x14] sm:$0x1] }
   0xa   :  { %v2012_v31 = vld [vmem:[%s2489_s0 + $0x10] sm:$0xf]  ;;  %v70_v33 = vor.u32 %v69_v25, %v66_v24  ;;  %1785 = vmatprep.mubr.bf16.mxu0 %v1897_v28  ;;  %v47_v35 = vld [vmem:[%s2489_s0 + $0x1c] sm:$0x1]  ;;  %v101_v40 = vshll.u32 %v46_v34, 16  ;;  %v106_v41 = vshrl.u32 %v2017_v32, 16 }
   0xb   :  { %1710 = vmatpush3.bf16.msra.mxu1 %v1885_v4  ;;  %v92_v36 = vshrl.u32 %v2012_v31, 16  ;;  %v95_v37 = vshll.u32 %v2012_v31, 16  ;;  %v84_v39 = vor.u32 %v83_v29, %v80_v27  ;;  %v109_v42 = vshll.u32 %v2017_v32, 16  ;;  %v1896_v51 = vld [vmem:[%s2488_s1 + $0xb8] sm:$0xff]   ;;  %v1900_v62 = vld [vmem:[%s2488_s1 + $0xc0] sm:$0xff]   ;;  %v1901_v15 = vld [vmem:[%s2488_s1 + $0x8] sm:$0xff]  }
   0xc   :  { %1774 = vmatpush3.bf16.msra.mxu0 %v1886_v5  ;;  %1711 = vmatprep.subr.bf16.mxu1 %v1887_v6  ;;  %v71_v43 = vrot.slane %v70_v33, 4  ;;  %v115_v46 = vshll.u32 %v47_v35, 16  ;;  %v108_v49 = vrot.slane %v106_v41, 4  ;;  %v103_v54 = vrot.slane %v101_v40, 5  ;;  %v2054_v63 = vld [vmem:[%s2489_s0 + $0x20] sm:$0xf] }
   0xd   :  { %1775 = vmatprep.subr.bf16.mxu0 %v1888_v7  ;;  %v94_v44 = vrot.slane %v92_v36, 4  ;;  %v97_v45 = vrot.slane %v95_v37, 5  ;;  %v85_v48 = vrot.slane %v84_v39, 4  ;;  %v111_v50 = vrot.slane %v109_v42, 5  ;;  %v1899_v1 = vld [vmem:[%s2489_s0 + $0x18] ss:$8 sps:$4 sm:$0xff]  }
   0xe   :  { %v76_v52 = vsel %vm2029_vm2, %v71_v43, %v75_v26  ;;  %v117_v55 = vrot.slane %v115_v46, 5  ;;  %v2064_v2 = vld [vmem:[%s2489_s0 + $0x28] sm:$0xf]  ;;  %v48_v3 = vld [vmem:[%s2489_s0 + $0x24] sm:$0x1]  ;;  %v1904_v29 = vld [vmem:[%s2488_s1 + $0x10] sm:$0xff]  }
   0xf   :  { %1712 = vmatpush3.bf16.msra.mxu1 %v1887_v6  ;;  %v98_v53 = vor.u32 %v97_v45, %v94_v44  ;;  %v90_v56 = vsel %vm2029_vm2, %v85_v48, %v89_v30  ;;  %v112_v57 = vor.u32 %v111_v50, %v108_v49  ;;  %v49_v4 = vld [vmem:[%s2489_s0 + $0x2c] sm:$0x1]  ;;  %v120_v6 = vshrl.u32 %v2054_v63, 16  ;;  %v1903_v19 = vld [vmem:[%s2489_s0 + $0x28] ss:$8 sps:$4 sm:$0xff]   ;;  %v1907_v50 = vld [vmem:[%s2488_s1 + $0x18] sm:$0xff]  }
  0x10   :  { %1776 = vmatpush3.bf16.msra.mxu0 %v1888_v7  ;;  %1713 = vmatprep.subr.bf16.mxu1 %v1889_v8  ;;  %v1497_v58 = vcombine.low %v76_v52, %v90_v56  ;;  %v123_v7 = vshll.u32 %v2054_v63, 16  ;;  %v143_v14 = vshll.u32 %v49_v4, 16  ;;  %v1902_v16 = vld [vmem:[%s2488_s1 + $0xc8] sm:$0xff]   ;;  %v2090_v24 = vld [vmem:[%s2489_s0 + $0x30] sm:$0xf] }
  0x11   :  { %1777 = vmatprep.subr.bf16.mxu0 %v1890_v9  ;;  %v99_v59 = vrot.slane %v98_v53, 4  ;;  %v113_v61 = vrot.slane %v112_v57, 4  ;;  %v122_v17 = vrot.slane %v120_v6, 4  ;;  %v2095_v26 = vld [vmem:[%s2489_s0 + $0x38] sm:$0xf]  ;;  %v148_v33 = vshrl.u32 %v2090_v24, 16 }
  0x12   :  { %1721 = vmatprep.mubr.bf16.mxu1 %v1497_v58  ;;  %v125_v18 = vrot.slane %v123_v7, 5  ;;  %v50_v27 = vld [vmem:[%s2489_s0 + $0x34] sm:$0x1]  ;;  %v51_v28 = vld [vmem:[%s2489_s0 + $0x3c] sm:$0x1]  ;;  %v151_v34 = vshll.u32 %v2090_v24, 16 }
  0x13   :  { %1714 = vmatpush3.bf16.msra.mxu1 %v1889_v8  ;;  %v104_v0 = vsel %vm2029_vm2, %v99_v59, %v103_v54  ;;  %v118_v5 = vsel %vm2029_vm2, %v113_v61, %v117_v55  ;;  %v129_v8 = vshll.u32 %v48_v3, 16  ;;  %v157_v35 = vshll.u32 %v50_v27, 16  ;;  %v1906_v36 = vld [vmem:[%s2488_s1 + $0xd0] sm:$0xff]   ;;  %v1905_v53 = vld [vmem:[%s2489_s0 + $0x38] ss:$8 sps:$4 sm:$0xff]  }
  0x14   :  { %1778 = vmatpush3.bf16.msra.mxu0 %v1890_v9  ;;  %1715 = vmatprep.subr.bf16.mxu1 %v1891_v10  ;;  %v1498_v9 = vcombine.low %v104_v0, %v118_v5  ;;  %v126_v25 = vor.u32 %v125_v18, %v122_v17  ;;  %v162_v39 = vshrl.u32 %v2095_v26, 16  ;;  %v165_v40 = vshll.u32 %v2095_v26, 16  ;;  %v1908_v57 = vld [vmem:[%s2488_s1 + $0xd8] sm:$0xff]   ;;  %v2129_v58 = vld [vmem:[%s2489_s0 + $0x48] sm:$0xf]  ;;  %v1912_v17 = vld [vmem:[%s2488_s1 + $0xe0] sm:$0xff]  }
  0x15   :  { %1779 = vmatprep.subr.bf16.mxu0 %v1892_v11  ;;  %v171_v41 = vshll.u32 %v51_v28, 16  ;;  %v150_v43 = vrot.slane %v148_v33, 4  ;;  %v153_v44 = vrot.slane %v151_v34, 5  ;;  %v159_v45 = vrot.slane %v157_v35, 5  ;;  %v52_v61 = vld [vmem:[%s2489_s0 + $0x4c] sm:$0x1] }
  0x16   :  { %v127_v37 = vrot.slane %v126_v25, 4  ;;  %v167_v48 = vrot.slane %v165_v40, 5  ;;  %v179_v3 = vshll.u32 %v2129_v58, 16  ;;  %v185_v4 = vshll.u32 %v52_v61, 16  ;;  %v54_v25 = vld [vmem:[%s2489_s0 + $0x5c] sm:$0x1] }
  0x17   :  { %1716 = vmatpush3.bf16.msra.mxu1 %v1891_v10  ;;  %v134_v10 = vshrl.u32 %v2064_v2, 16  ;;  %v173_v49 = vrot.slane %v171_v41, 5  ;;  %v154_v52 = vor.u32 %v153_v44, %v150_v43  ;;  %v55_v27 = vld [vmem:[%s2489_s0 + $0x64] sm:$0x1]  ;;  %v1913_v28 = vld [vmem:[%s2488_s1 + $0x28] sm:$0xff]   ;;  %v213_v34 = vshll.u32 %v54_v25, 16 }
  0x18   :  { %1780 = vmatpush3.bf16.msra.mxu0 %v1892_v11  ;;  %1717 = vmatprep.subr.bf16.mxu1 %v1893_v20  ;;  %v137_v11 = vshll.u32 %v2064_v2, 16  ;;  %v1914_v35 = vld [vmem:[%s2488_s1 + $0xe8] sm:$0xff]   ;;  %v227_v40 = vshll.u32 %v55_v27, 16  ;;  %v2206_v61 = vld [vmem:[%s2489_s0 + $0x70] sm:$0xf] }
  0x19   :  { %1781 = vmatprep.subr.bf16.mxu0 %v1894_v23  ;;  %v136_v21 = vrot.slane %v134_v10, 4  ;;  %v155_v56 = vrot.slane %v154_v52, 4  ;;  %v1910_v10 = vld [vmem:[%s2488_s1 + $0x20] sm:$0xff]   ;;  %v215_v44 = vrot.slane %v213_v34, 5  ;;  %v2234_v25 = vld [vmem:[%s2489_s0 + $0x78] sm:$0xf] }
  0x1a   :  { %v139_v22 = vrot.slane %v137_v11, 5  ;;  %v260_v34 = vshrl.u32 %v2234_v25, 16 }
  0x1b   :  { %1718 = vmatpush3.bf16.msra.mxu1 %v1893_v20  ;;  %v131_v20 = vrot.slane %v129_v8, 5  ;;  %v160_v0 = vsel %vm2029_vm2, %v155_v56, %v159_v45 }
  0x1c   :  { %1782 = vmatpush3.bf16.msra.mxu0 %v1894_v23  ;;  %1719 = vmatprep.subr.bf16.mxu1 %v1895_v47  ;;  %v145_v23 = vrot.slane %v143_v14, 5  ;;  %v140_v30 = vor.u32 %v139_v22, %v136_v21  ;;  %v181_v14 = vrot.slane %v179_v3, 5  ;;  %v2162_v21 = vld [vmem:[%s2489_s0 + $0x58] sm:$0xf]  ;;  %v57_v3 = vld [vmem:[%s2489_s0 + $0x74] sm:$0x1] }
  0x1d   :  { %1783 = vmatprep.subr.bf16.mxu0 %v1896_v51  ;;  %v132_v46 = vsel %vm2029_vm2, %v127_v37, %v131_v20  ;;  %v1909_v20 = vld [vmem:[%s2489_s0 + $0x50] ss:$8 sps:$4 sm:$0xff]   ;;  %v207_v33 = vshll.u32 %v2162_v21, 16 }
  0x1e   :  { %v141_v42 = vrot.slane %v140_v30, 4  ;;  %v204_v30 = vshrl.u32 %v2162_v21, 16 }
  0x1f   :  { %1720 = vmatpush3.bf16.msra.mxu1 %v1895_v47  ;;  %v164_v47 = vrot.slane %v162_v39, 4  ;;  %v209_v43 = vrot.slane %v207_v33, 5 }
  0x20   :  { %1784 = vmatpush3.bf16.msra.mxu0 %v1896_v51  ;;  %1737 = vmatprep.subr.bf16.mxu1 %v1898_v60  ;;  %v146_v51 = vsel %vm2029_vm2, %v141_v42, %v145_v23  ;;  %v2167_v23 = vld [vmem:[%s2489_s0 + $0x60] sm:$0xf]  ;;  %v206_v42 = vrot.slane %v204_v30, 4  ;;  %v59_v30 = vld [vmem:[%s2489_s0 + $0x84] sm:$0x1] }
  0x21   :  { %1801 = vmatprep.subr.bf16.mxu0 %v1900_v62  ;;  %v1499_v54 = vcombine.low %v132_v46, %v146_v51  ;;  %v168_v55 = vor.u32 %v167_v48, %v164_v47  ;;  %v218_v37 = vshrl.u32 %v2167_v23, 16  ;;  %v221_v39 = vshll.u32 %v2167_v23, 16 }
  0x22   :  { %1722 = vmatmul.mubr.bf16.vlgmr.msra.gmra.mrb[0].mxu1 %v1498_v9  ;;  %v229_v48 = vrot.slane %v227_v40, 5  ;;  %v210_v52 = vor.u32 %v209_v43, %v206_v42  ;;  %v262_v43 = vrot.slane %v260_v34, 4  ;;  %v1568_v34 = vld [vmem:[%s2489_s0 + $0x24] sm:$0x1] }
  0x23   :  { %1786 = vmatmul.mubr.bf16.vlgmr.msra.gmra.mrb[0].mxu0 %v1899_v1  ;;  %1738 = vmatpush3.bf16.msra.mxu1 %v1898_v60  ;;  %v169_v59 = vrot.slane %v168_v55, 4  ;;  %v2134_v60 = vld [vmem:[%s2489_s0 + $0x50] sm:$0xf]  ;;  %v53_v1 = vld [vmem:[%s2489_s0 + $0x54] sm:$0x1]  ;;  %v220_v46 = vrot.slane %v218_v37, 4 }
  0x24   :  { %1802 = vmatpush3.bf16.msra.mxu0 %v1900_v62  ;;  %1739 = vmatprep.subr.bf16.mxu1 %v1901_v15  ;;  %v176_v62 = vshrl.u32 %v2129_v58, 16  ;;  %v190_v5 = vshrl.u32 %v2134_v60, 16  ;;  %v193_v8 = vshll.u32 %v2134_v60, 16  ;;  %v199_v9 = vshll.u32 %v53_v1, 16 }
  0x25   :  { %1803 = vmatprep.subr.bf16.mxu0 %v1902_v16  ;;  %1789 = vmatprep.mubr.bf16.mxu0 %v1903_v19  ;;  %v174_v6 = vsel %vm2029_vm2, %v169_v59, %v173_v49  ;;  %v223_v47 = vrot.slane %v221_v39, 5  ;;  %v1916_v49 = vld [vmem:[%s2488_s1 + $0x30] sm:$0xff]   ;;  %v211_v56 = vrot.slane %v210_v52, 4  ;;  %v1917_v52 = vld [vmem:[%s2489_s0 + $0x80] ss:$8 sps:$4 sm:$0xff]  }
  0x26   :  { %1725 = vmatprep.mubr.bf16.mxu1 %v1499_v54  ;;  %v178_v7 = vrot.slane %v176_v62, 4  ;;  %v1500_v11 = vcombine.low %v160_v0, %v174_v6  ;;  %v195_v18 = vrot.slane %v193_v8, 5  ;;  %v201_v19 = vrot.slane %v199_v9, 5  ;;  %v56_v62 = vld [vmem:[%s2489_s0 + $0x6c] sm:$0x1] }
  0x27   :  { %1740 = vmatpush3.bf16.msra.mxu1 %v1901_v15  ;;  %v187_v15 = vrot.slane %v185_v4, 5  ;;  %v224_v55 = vor.u32 %v223_v47, %v220_v46  ;;  %v216_v1 = vsel %vm2029_vm2, %v211_v56, %v215_v44  ;;  %v246_v6 = vshrl.u32 %v2206_v61, 16 }
  0x28   :  { %1804 = vmatpush3.bf16.msra.mxu0 %v1902_v16  ;;  %1741 = vmatprep.subr.bf16.mxu1 %v1904_v29  ;;  %v192_v16 = vrot.slane %v190_v5, 4  ;;  %v182_v22 = vor.u32 %v181_v14, %v178_v7  ;;  %v241_v5 = vshll.u32 %v56_v62, 16  ;;  %v249_v9 = vshll.u32 %v2206_v61, 16 }
  0x29   :  { %1805 = vmatprep.subr.bf16.mxu0 %v1906_v36  ;;  %v225_v59 = vrot.slane %v224_v55, 4  ;;  %v1513_v56 = vcombine.low %v1983_v12, %v1988_v13  ;;  %v1514_v62 = vcombine.low %v2012_v31, %v2017_v32  ;;  %v1563_v12 = vld [vmem:[%s2489_s0 + $0x10] sm:$0xf] }
  0x2a   :  { %1726 = vmatmul.mubr.bf16.gmra.mrb[4].mxu1 %v1500_v11  ;;  %v1919_v11 = vld [vmem:[%s2488_s1 + $0x38] sm:$0xff]  }
  0x2b   :  { %1790 = vmatmul.mubr.bf16.gmra.mrb[4].mxu0 %v1905_v53  ;;  %1742 = vmatpush3.bf16.msra.mxu1 %v1904_v29  ;;  %v196_v29 = vor.u32 %v195_v18, %v192_v16  ;;  %v1911_v53 = vld [vmem:[%s2489_s0 + $0x60] ss:$8 sps:$4 sm:$0xff]   ;;  %v230_v7 = vsel %vm2029_vm2, %v225_v59, %v229_v48  ;;  %v243_v16 = vrot.slane %v241_v5, 5  ;;  %v1920_v18 = vld [vmem:[%s2488_s1 + $0xf8] sm:$0xff]   ;;  %v1517_v5 = vcombine.low %v2129_v58, %v2134_v60  ;;  %v1585_v58 = vld [vmem:[%s2489_s0 + $0x70] sm:$0xf] }
  0x2c   :  { %1806 = vmatpush3.bf16.msra.mxu0 %v1906_v36  ;;  %1743 = vmatprep.subr.bf16.mxu1 %v1907_v50  ;;  %v183_v36 = vrot.slane %v182_v22, 4  ;;  %v1502_v14 = vcombine.low %v216_v1, %v230_v7  ;;  %v1915_v22 = vld [vmem:[%s2489_s0 + $0x70] ss:$8 sps:$4 sm:$0xff]   ;;  %v1561_v59 = vld [vmem:[%s2489_s0 + $0x8] sm:$0xf] }
  0x2d   :  { %1807 = vmatprep.subr.bf16.mxu0 %v1908_v57  ;;  %1793 = vmatprep.mubr.bf16.mxu0 %v1909_v20  ;;  %v197_v41 = vrot.slane %v196_v29, 4  ;;  %v58_v29 = vld [vmem:[%s2489_s0 + $0x7c] sm:$0x1]  ;;  %v948_v13 = vshrl.u32 %v1561_v59, 16  ;;  %v1564_v7 = vld [vmem:[%s2489_s0 + $0x14] sm:$0x1] }
  0x2e   :  { %v188_v45 = vsel %vm2029_vm2, %v183_v36, %v187_v15  ;;  %v269_v36 = vshll.u32 %v58_v29, 16 }
  0x2f   :  { %1744 = vmatpush3.bf16.msra.mxu1 %v1907_v50  ;;  %v1918_v50 = vld [vmem:[%s2488_s1 + $0xf0] sm:$0xff]   ;;  %v202_v51 = vsel %vm2029_vm2, %v197_v41, %v201_v19  ;;  %v251_v19 = vrot.slane %v249_v9, 5  ;;  %v283_v41 = vshll.u32 %v59_v30, 16 }
  0x30   :  { %1808 = vmatpush3.bf16.msra.mxu0 %v1908_v57  ;;  %1745 = vmatprep.subr.bf16.mxu1 %v1910_v10  ;;  %v1501_v54 = vcombine.low %v188_v45, %v202_v51  ;;  %v2201_v57 = vld [vmem:[%s2489_s0 + $0x68] sm:$0xf]  ;;  %v271_v45 = vrot.slane %v269_v36, 5 }
  0x31   :  { %1809 = vmatprep.subr.bf16.mxu0 %v1912_v17  ;;  %v232_v0 = vshrl.u32 %v2201_v57, 16  ;;  %v235_v4 = vshll.u32 %v2201_v57, 16  ;;  %v1519_v36 = vcombine.low %v2201_v57, %v2206_v61 }
  0x32   :  { %1729 = vmatprep.mubr.bf16.mxu1 %v1501_v54 }
  0x33   :  { %1746 = vmatpush3.bf16.msra.mxu1 %v1910_v10  ;;  %1794 = vmatmul.mubr.bf16.gmra.mrb[8].mxu0 %v1911_v53  ;;  %v234_v8 = vrot.slane %v232_v0, 4  ;;  %v255_v10 = vshll.u32 %v57_v3, 16  ;;  %v237_v15 = vrot.slane %v235_v4, 5  ;;  %v1515_v0 = vcombine.low %v2054_v63, %v2064_v2  ;;  %v1562_v3 = vld [vmem:[%s2489_s0 + $0xc] sm:$0x1] }
  0x34   :  { %1810 = vmatpush3.bf16.msra.mxu0 %v1912_v17  ;;  %1747 = vmatprep.subr.bf16.mxu1 %v1913_v28  ;;  %v248_v17 = vrot.slane %v246_v6, 4  ;;  %v1516_v4 = vcombine.low %v2090_v24, %v2095_v26  ;;  %v957_v9 = vshll.u32 %v1562_v3, 16  ;;  %v1578_v63 = vld [vmem:[%s2489_s0 + $0x54] sm:$0x1] }
  0x35   :  { %1811 = vmatprep.subr.bf16.mxu0 %v1914_v35  ;;  %v257_v20 = vrot.slane %v255_v10, 5  ;;  %1730 = vmatmul.mubr.bf16.gmra.mrb[8].mxu1 %v1502_v14  ;;  %v238_v27 = vor.u32 %v237_v15, %v234_v8  ;;  %v951_v8 = vshll.u32 %v1561_v59, 16  ;;  %v962_v10 = vshrl.u32 %v1563_v12, 16 }
  0x36   :  { %v252_v33 = vor.u32 %v251_v19, %v248_v17  ;;  %1797 = vmatprep.mubr.bf16.mxu0 %v1915_v22  ;;  %v950_v14 = vrot.slane %v948_v13, 4  ;;  %v965_v15 = vshll.u32 %v1563_v12, 16  ;;  %v1565_v17 = vld [vmem:[%s2489_s0 + $0x18] sm:$0xf] }
  0x37   :  { %1748 = vmatpush3.bf16.msra.mxu1 %v1913_v28  ;;  %v2239_v28 = vld [vmem:[%s2489_s0 + $0x80] sm:$0xf]  ;;  %v239_v37 = vrot.slane %v238_v27, 4  ;;  %v953_v19 = vrot.slane %v951_v8, 5  ;;  %v964_v22 = vrot.slane %v962_v10, 4 }
  0x38   :  { %1812 = vmatpush3.bf16.msra.mxu0 %v1914_v35  ;;  %1749 = vmatprep.subr.bf16.mxu1 %v1916_v49  ;;  %v263_v35 = vshll.u32 %v2234_v25, 16  ;;  %v274_v39 = vshrl.u32 %v2239_v28, 16  ;;  %v277_v40 = vshll.u32 %v2239_v28, 16  ;;  %v253_v42 = vrot.slane %v252_v33, 4  ;;  %v1566_v27 = vld [vmem:[%s2489_s0 + $0x1c] sm:$0x1] }
  0x39   :  { %1813 = vmatprep.subr.bf16.mxu0 %v1918_v50  ;;  %v244_v46 = vsel %vm2029_vm2, %v239_v37, %v243_v16  ;;  %v971_v16 = vshll.u32 %v1564_v7, 16  ;;  %v967_v29 = vrot.slane %v965_v15, 5  ;;  %v1567_v33 = vld [vmem:[%s2489_s0 + $0x20] sm:$0xf]  ;;  %v954_v37 = vor.u32 %v953_v19, %v950_v14  ;;  %v1572_v7 = vld [vmem:[%s2489_s0 + $0x34] sm:$0x1] }
  0x3a   :  { %v265_v44 = vrot.slane %v263_v35, 5  ;;  %v276_v47 = vrot.slane %v274_v39, 4  ;;  %v279_v48 = vrot.slane %v277_v40, 5  ;;  %v1518_v35 = vcombine.low %v2162_v21, %v2167_v23  ;;  %v1573_v10 = vld [vmem:[%s2489_s0 + $0x38] sm:$0xf] }
  0x3b   :  { %1750 = vmatpush3.bf16.msra.mxu1 %v1916_v49  ;;  %v258_v49 = vsel %vm2029_vm2, %v253_v42, %v257_v20  ;;  %1798 = vmatmul.mubr.bf16.gmra.mrb[12].mxu0 %v1917_v52  ;;  %v959_v20 = vrot.slane %v957_v9, 5  ;;  %v973_v30 = vrot.slane %v971_v16, 5  ;;  %v976_v39 = vshrl.u32 %v1565_v17, 16  ;;  %v1569_v42 = vld [vmem:[%s2489_s0 + $0x28] sm:$0xf] }
  0x3c   :  { %1814 = vmatpush3.bf16.msra.mxu0 %v1918_v50  ;;  %1751 = vmatprep.subr.bf16.mxu1 %v1919_v11  ;;  %v285_v50 = vrot.slane %v283_v41, 5  ;;  %v266_v51 = vor.u32 %v265_v44, %v262_v43  ;;  %v1503_v53 = vcombine.low %v244_v46, %v258_v49  ;;  %v280_v54 = vor.u32 %v279_v48, %v276_v47  ;;  %v1570_v47 = vld [vmem:[%s2489_s0 + $0x2c] sm:$0x1]  ;;  %v1571_v52 = vld [vmem:[%s2489_s0 + $0x30] sm:$0xf] }
  0x3d   :  { %1815 = vmatprep.subr.bf16.mxu0 %v1920_v18  ;;  %v979_v40 = vshll.u32 %v1565_v17, 16  ;;  %v985_v41 = vshll.u32 %v1566_v27, 16  ;;  %v968_v43 = vor.u32 %v967_v29, %v964_v22  ;;  %v990_v44 = vshrl.u32 %v1567_v33, 16  ;;  %v1574_v17 = vld [vmem:[%s2489_s0 + $0x3c] sm:$0x1] }
  0x3e   :  { %v267_v55 = vrot.slane %v266_v51, 4  ;;  %1733 = vmatprep.mubr.bf16.mxu1 %v1503_v53  ;;  %v281_v1 = vrot.slane %v280_v54, 4  ;;  %v999_v46 = vshll.u32 %v1568_v34, 16  ;;  %v955_v48 = vrot.slane %v954_v37, 4  ;;  %v1576_v34 = vld [vmem:[%s2489_s0 + $0x44] sm:$0x1] }
  0x3f   :  { %1752 = vmatpush3.bf16.msra.mxu1 %v1919_v11  ;;  %v981_v49 = vrot.slane %v979_v40, 5  ;;  %v987_v51 = vrot.slane %v985_v41, 5  ;;  %v969_v53 = vrot.slane %v968_v43, 4  ;;  %v992_v54 = vrot.slane %v990_v44, 4  ;;  %v1577_v40 = vld [vmem:[%s2489_s0 + $0x50] sm:$0xf] }
  0x40   :  { %1816 = vmatpush3.bf16.msra.mxu0 %v1920_v18  ;;  %v272_v6 = vsel %vm2029_vm2, %v267_v55, %v271_v45  ;;  %v286_v11 = vsel %vm2029_vm2, %v281_v1, %v285_v50  ;;  %v993_v45 = vshll.u32 %v1567_v33, 16  ;;  %v978_v50 = vrot.slane %v976_v39, 4  ;;  %v1575_v33 = vld [vmem:[%s2489_s0 + $0x40] sm:$0xf]  ;;  %v1591_v21 = vld [vmem:[%s2489_s0 + $0x88] sm:$0xf] }
  0x41   :  { %v1504_v18 = vcombine.low %v272_v6, %v286_v11  ;;  %v960_v59 = vsel %vm2029_vm2, %v955_v48, %v959_v20  ;;  %v1004_v3 = vshrl.u32 %v1569_v42, 16  ;;  %v1007_v12 = vshll.u32 %v1569_v42, 16 }
  0x42   :  { %v995_v55 = vrot.slane %v993_v45, 5  ;;  %v982_v1 = vor.u32 %v981_v49, %v978_v50  ;;  %v974_v13 = vsel %vm2029_vm2, %v969_v53, %v973_v30  ;;  %v1013_v8 = vshll.u32 %v1570_v47, 16  ;;  %v1579_v49 = vld [vmem:[%s2489_s0 + $0x58] sm:$0xf] }
  0x43   :  { %1734 = vmatmul.mubr.bf16.gmra.mrb[12].mxu1 %v1504_v18  ;;  %v1018_v9 = vshrl.u32 %v1571_v52, 16  ;;  %v1593_v11 = vcombine.low %v960_v59, %v974_v13  ;;  %v1006_v15 = vrot.slane %v1004_v3, 4  ;;  %v1009_v16 = vrot.slane %v1007_v12, 5 }
  0x44   :  { %1753 = vmatprep.mubr.bf16.mxu1 %v1513_v56  ;;  %v1001_v56 = vrot.slane %v999_v46, 5  ;;  %v996_v6 = vor.u32 %v995_v55, %v992_v54  ;;  %v983_v14 = vrot.slane %v982_v1, 4  ;;  %v1015_v19 = vrot.slane %v1013_v8, 5  ;;  %v1580_v1 = vld [vmem:[%s2489_s0 + $0x5c] sm:$0x1] }
  0x45   :  { %v1020_v20 = vrot.slane %v1018_v9, 4  ;;  %v1021_v22 = vshll.u32 %v1571_v52, 16  ;;  %1817 = vmatprep.mubr.bf16.mxu0 %v1593_v11  ;;  %v1010_v29 = vor.u32 %v1009_v16, %v1006_v15  ;;  %v1027_v30 = vshll.u32 %v1572_v7, 16  ;;  %v1581_v9 = vld [vmem:[%s2489_s0 + $0x60] sm:$0xf] }
  0x46   :  { %v997_v18 = vrot.slane %v996_v6, 4  ;;  %v988_v27 = vsel %vm2029_vm2, %v983_v14, %v987_v51  ;;  %v1032_v37 = vshrl.u32 %v1573_v10, 16  ;;  %v1035_v32 = vshll.u32 %v1573_v10, 16  ;;  %v1582_v16 = vld [vmem:[%s2489_s0 + $0x64] sm:$0x1] }
  0x47   :  { %v1023_v31 = vrot.slane %v1021_v22, 5  ;;  %v1011_v42 = vrot.slane %v1010_v29, 4  ;;  %v1029_v43 = vrot.slane %v1027_v30, 5  ;;  %v1046_v48 = vshrl.u32 %v1575_v33, 16  ;;  %v1584_v22 = vld [vmem:[%s2489_s0 + $0x6c] sm:$0x1] }
  0x48   :  { %v1002_v39 = vsel %vm2029_vm2, %v997_v18, %v1001_v56  ;;  %v1034_v44 = vrot.slane %v1032_v37, 4  ;;  %v1037_v46 = vrot.slane %v1035_v32, 5  ;;  %v1055_v50 = vshll.u32 %v1576_v34, 16  ;;  %v1586_v32 = vld [vmem:[%s2489_s0 + $0x74] sm:$0x1] }
  0x49   :  { %v1594_v41 = vcombine.low %v988_v27, %v1002_v39  ;;  %v1024_v45 = vor.u32 %v1023_v31, %v1020_v20  ;;  %v1016_v2 = vsel %vm2029_vm2, %v1011_v42, %v1015_v19  ;;  %v1060_v51 = vshrl.u32 %v1577_v40, 16 }
  0x4a   :  { %v1038_v53 = vor.u32 %v1037_v46, %v1034_v44  ;;  %v1048_v54 = vrot.slane %v1046_v48, 4  ;;  %v1063_v55 = vshll.u32 %v1577_v40, 16  ;;  %v1057_v59 = vrot.slane %v1055_v50, 5  ;;  %v1588_v48 = vld [vmem:[%s2489_s0 + $0x7c] sm:$0x1] }
  0x4b   :  { %1754 = vmatmul.mubr.bf16.vlgmr.msra.gmra.mrb[0].mxu1 %v1514_v62  ;;  %v1041_v62 = vshll.u32 %v1574_v17, 16  ;;  %1818 = vmatmul.mubr.bf16.vlgmr.msra.gmra.mrb[0].mxu0 %v1594_v41  ;;  %v1025_v52 = vrot.slane %v1024_v45, 4  ;;  %v1062_v3 = vrot.slane %v1060_v51, 4  ;;  %v1069_v12 = vshll.u32 %v1578_v63, 16  ;;  %v1583_v17 = vld [vmem:[%s2489_s0 + $0x68] sm:$0xf] }
  0x4c   :  { %1757 = vmatprep.mubr.bf16.mxu1 %v1515_v0  ;;  %v1049_v0 = vshll.u32 %v1575_v33, 16  ;;  %v1039_v6 = vrot.slane %v1038_v53, 4  ;;  %v1065_v7 = vrot.slane %v1063_v55, 5  ;;  %v1074_v8 = vshrl.u32 %v1579_v49, 16 }
  0x4d   :  { %v1043_v47 = vrot.slane %v1041_v62, 5  ;;  %v1030_v13 = vsel %vm2029_vm2, %v1025_v52, %v1029_v43  ;;  %v1071_v14 = vrot.slane %v1069_v12, 5  ;;  %v1077_v15 = vshll.u32 %v1579_v49, 16  ;;  %v1587_v62 = vld [vmem:[%s2489_s0 + $0x78] sm:$0xf] }
  0x4e   :  { %v1051_v56 = vrot.slane %v1049_v0, 5  ;;  %v1595_v10 = vcombine.low %v1016_v2, %v1030_v13  ;;  %v1066_v24 = vor.u32 %v1065_v7, %v1062_v3  ;;  %v1076_v26 = vrot.slane %v1074_v8, 4  ;;  %v1589_v52 = vld [vmem:[%s2489_s0 + $0x80] sm:$0xf]  ;;  %v1590_v3 = vld [vmem:[%s2489_s0 + $0x84] sm:$0x1] }
  0x4f   :  { %v1044_v18 = vsel %vm2029_vm2, %v1039_v6, %v1043_v47  ;;  %v1079_v20 = vrot.slane %v1077_v15, 5  ;;  %v1088_v27 = vshrl.u32 %v1581_v9, 16  ;;  %v1091_v29 = vshll.u32 %v1581_v9, 16 }
  0x50   :  { %v1052_v11 = vor.u32 %v1051_v56, %v1048_v54  ;;  %1821 = vmatprep.mubr.bf16.mxu0 %v1595_v10  ;;  %v1067_v30 = vrot.slane %v1066_v24, 4  ;;  %v1097_v34 = vshll.u32 %v1582_v16, 16  ;;  %v1102_v37 = vshrl.u32 %v1583_v17, 16  ;;  %v1592_v10 = vld [vmem:[%s2489_s0 + $0x8c] sm:$0x1] }
  0x51   :  { %v1090_v39 = vrot.slane %v1088_v27, 4  ;;  %v1093_v31 = vrot.slane %v1091_v29, 5  ;;  %v1520_v43 = vcombine.low %v2234_v25, %v2239_v28  ;;  %v1105_v46 = vshll.u32 %v1583_v17, 16 }
  0x52   :  { %v1053_v19 = vrot.slane %v1052_v11, 4  ;;  %v1072_v41 = vsel %vm2029_vm2, %v1067_v30, %v1071_v14  ;;  %v1104_v42 = vrot.slane %v1102_v37, 4  ;;  %v1111_v47 = vshll.u32 %v1584_v22, 16 }
  0x53   :  { %1758 = vmatmul.mubr.bf16.gmra.mrb[4].mxu1 %v1516_v4  ;;  %v1083_v4 = vshll.u32 %v1580_v1, 16  ;;  %v1094_v45 = vor.u32 %v1093_v31, %v1090_v39  ;;  %v1116_v63 = vshrl.u32 %v1585_v58, 16  ;;  %v1119_v2 = vshll.u32 %v1585_v58, 16 }
  0x54   :  { %1761 = vmatprep.mubr.bf16.mxu1 %v1517_v5  ;;  %v1058_v60 = vsel %vm2029_vm2, %v1053_v19, %v1057_v59  ;;  %v1080_v5 = vor.u32 %v1079_v20, %v1076_v26  ;;  %v1125_v0 = vshll.u32 %v1586_v32, 16  ;;  %v1130_v50 = vshrl.u32 %v1587_v62, 16 }
  0x55   :  { %v1085_v33 = vrot.slane %v1083_v4, 5  ;;  %v1596_v40 = vcombine.low %v1044_v18, %v1058_v60  ;;  %v1095_v25 = vrot.slane %v1094_v45, 4  ;;  %v1099_v28 = vrot.slane %v1097_v34, 5 }
  0x56   :  { %v1081_v44 = vrot.slane %v1080_v5, 4  ;;  %v1107_v51 = vrot.slane %v1105_v46, 5  ;;  %v1113_v54 = vrot.slane %v1111_v47, 5  ;;  %v1118_v55 = vrot.slane %v1116_v63, 4 }
  0x57   :  { %1822 = vmatmul.mubr.bf16.gmra.mrb[4].mxu0 %v1596_v40  ;;  %v1121_v56 = vrot.slane %v1119_v2, 5  ;;  %v1132_v59 = vrot.slane %v1130_v50, 4  ;;  %v1133_v1 = vshll.u32 %v1587_v62, 16  ;;  %v1139_v13 = vshll.u32 %v1588_v48, 16 }
  0x58   :  { %v1086_v49 = vsel %vm2029_vm2, %v1081_v44, %v1085_v33  ;;  %v1108_v23 = vor.u32 %v1107_v51, %v1104_v42  ;;  %v1144_v6 = vshrl.u32 %v1589_v52, 16  ;;  %v1147_v57 = vshll.u32 %v1589_v52, 16 }
  0x59   :  { %v1597_v53 = vcombine.low %v1072_v41, %v1086_v49  ;;  %v1122_v12 = vor.u32 %v1121_v56, %v1118_v55  ;;  %v1100_v61 = vsel %vm2029_vm2, %v1095_v25, %v1099_v28  ;;  %v1135_v7 = vrot.slane %v1133_v1, 5 }
  0x5a   :  { %v1158_v8 = vshrl.u32 %v1591_v21, 16  ;;  %v1146_v11 = vrot.slane %v1144_v6, 4  ;;  %v1149_v14 = vrot.slane %v1147_v57, 5  ;;  %v1153_v15 = vshll.u32 %v1590_v3, 16 }
  0x5b   :  { %1762 = vmatmul.mubr.bf16.gmra.mrb[8].mxu1 %v1518_v35  ;;  %v1127_v35 = vrot.slane %v1125_v0, 5  ;;  %1825 = vmatprep.mubr.bf16.mxu0 %v1597_v53  ;;  %v1123_v9 = vrot.slane %v1122_v12, 4  ;;  %v1136_v17 = vor.u32 %v1135_v7, %v1132_v59  ;;  %v1141_v18 = vrot.slane %v1139_v13, 5 }
  0x5c   :  { %1765 = vmatprep.mubr.bf16.mxu1 %v1519_v36  ;;  %v1109_v36 = vrot.slane %v1108_v23, 4  ;;  %v1150_v26 = vor.u32 %v1149_v14, %v1146_v11  ;;  %v1160_v4 = vrot.slane %v1158_v8, 4  ;;  %v1161_v19 = vshll.u32 %v1591_v21, 16 }
  0x5d   :  { %v1128_v20 = vsel %vm2029_vm2, %v1123_v9, %v1127_v35  ;;  %v1137_v22 = vrot.slane %v1136_v17, 4  ;;  %v1167_v27 = vshll.u32 %v1592_v10, 16  ;;  %v1155_v30 = vrot.slane %v1153_v15, 5 }
  0x5e   :  { %v1114_v16 = vsel %vm2029_vm2, %v1109_v36, %v1113_v54  ;;  %v1151_v29 = vrot.slane %v1150_v26, 4  ;;  %v1163_v33 = vrot.slane %v1161_v19, 5 }
  0x5f   :  { %v1598_v24 = vcombine.low %v1100_v61, %v1114_v16  ;;  %v1142_v34 = vsel %vm2029_vm2, %v1137_v22, %v1141_v18  ;;  %v1169_v60 = vrot.slane %v1167_v27, 5 }
  0x60   :  { %v1599_v37 = vcombine.low %v1128_v20, %v1142_v34  ;;  %v1164_v58 = vor.u32 %v1163_v33, %v1160_v4  ;;  %v1156_v5 = vsel %vm2029_vm2, %v1151_v29, %v1155_v30 }
  0x61   :  { %1826 = vmatmul.mubr.bf16.gmra.mrb[8].mxu0 %v1598_v24 }
  0x62   :  { %1829 = vmatprep.mubr.bf16.mxu0 %v1599_v37  ;;  %v1165_v39 = vrot.slane %v1164_v58, 4 }
  0x63   :  { %1766 = vmatmul.mubr.bf16.gmra.mrb[12].mxu1 %v1520_v43 }
  0x64   :  { %v1170_v31 = vsel %vm2029_vm2, %v1165_v39, %v1169_v60 }
  0x65   :  { %v1600_v32 = vcombine.low %v1156_v5, %v1170_v31 }
  0x69   :  { %1830 = vmatmul.mubr.bf16.gmra.mrb[12].mxu0 %v1600_v32 }
 0x11e   :  { %v1755_v62 = vpop.f32.mrb[0].mxu1  ;;  %v1819_v43 = vpop.f32.mrb[0].mxu0 }
 0x11f   :  { %v610_v40 = vpop.f32.mrb[1].mxu1  ;;  %v1833_v44 = vadd.f32 %v1819_v43, %v1755_v62  ;;  %v1301_v45 = vpop.f32.mrb[1].mxu0 }
 0x120   :  { %v1756_v41 = vpop.f32.mrb[2].mxu1  ;;  %v1834_v46 = vadd.f32 %v1301_v45, %v610_v40  ;;  %v1820_v47 = vpop.f32.mrb[2].mxu0 }
 0x121   :  { %v613_v42 = vpop.f32.mrb[3].mxu1  ;;  %v1382_v48 = vmul.f32 0.2, %v1833_v44  ;;  %v1835_v63 = vadd.f32 %v1820_v47, %v1756_v41  ;;  %v1304_v2 = vpop.f32.mrb[3].mxu0 }
 0x122   :  { %v1380_v0 = vmul.f32 0.2, %v1834_v46  ;;  %v1836_v50 = vadd.f32 %v1304_v2, %v613_v42 }
 0x123   :  { %v1398_v25 = vmax.f32 %v1833_v44, %v1382_v48  ;;  %v1383_v38 = vmul.f32 0.2, %v1835_v63 }
 0x124   :  { %v1396_v51 = vmax.f32 %v1834_v46, %v1380_v0  ;;  %v1381_v52 = vmul.f32 0.2, %v1836_v50 }
 0x125   :  { %v1627_v54 = vpack.c.bf16 %v1398_v25, %v1398_v25  ;;  %v1399_v55 = vmax.f32 %v1835_v63, %v1383_v38 }
 0x126   :  { %v1759_v49 = vpop.f32.mrb[4].mxu1  ;;  %v1625_v21 = vpack.c.bf16 %v1396_v51, %v1396_v51  ;;  %v1397_v23 = vmax.f32 %v1836_v50, %v1381_v52 }
 0x127   :  { %v626_v28 = vpop.f32.mrb[5].mxu1  ;;  %1479 = vst.msk [vmem:[%s2490_s2 + $0x8] sm:$0xf] %vm1476_vm3, %v1627_v54  ;;  %v1628_v35 = vpack.c.bf16 %v1399_v55, %v1399_v55 }
 0x128   :  { %v1760_v53 = vpop.f32.mrb[6].mxu1  ;;  %1477 = vst.msk [vmem:[%s2490_s2] sm:$0xf] %vm1476_vm3, %v1625_v21  ;;  %v1626_v59 = vpack.c.bf16 %v1397_v23, %v1397_v23 }
 0x129   :  { %v629_v56 = vpop.f32.mrb[7].mxu1  ;;  %1480 = vst.msk [vmem:[%s2490_s2 + $0xc] sm:$0xf] %vm1476_vm3, %v1628_v35 }
 0x12a   :  { %v1823_v1 = vpop.f32.mrb[4].mxu0  ;;  %1478 = vst.msk [vmem:[%s2490_s2 + $0x4] sm:$0xf] %vm1476_vm3, %v1626_v59 }
 0x12b   :  { %v1837_v3 = vadd.f32 %v1823_v1, %v1759_v49  ;;  %v1317_v12 = vpop.f32.mrb[5].mxu0 }
 0x12c   :  { %v1838_v6 = vadd.f32 %v1317_v12, %v626_v28  ;;  %v1824_v57 = vpop.f32.mrb[6].mxu0 }
 0x12d   :  { %v1386_v36 = vmul.f32 0.2, %v1837_v3  ;;  %v1839_v7 = vadd.f32 %v1824_v57, %v1760_v53  ;;  %v1320_v8 = vpop.f32.mrb[7].mxu0 }
 0x12e   :  { %v1763_v13 = vpop.f32.mrb[8].mxu1  ;;  %v1384_v10 = vmul.f32 0.2, %v1838_v6  ;;  %v1840_v11 = vadd.f32 %v1320_v8, %v629_v56 }
 0x12f   :  { %v642_v61 = vpop.f32.mrb[9].mxu1  ;;  %v1402_v15 = vmax.f32 %v1837_v3, %v1386_v36  ;;  %v1387_v16 = vmul.f32 0.2, %v1839_v7 }
 0x130   :  { %v1764_v9 = vpop.f32.mrb[10].mxu1  ;;  %v1400_v17 = vmax.f32 %v1838_v6, %v1384_v10  ;;  %v1385_v18 = vmul.f32 0.2, %v1840_v11 }
 0x131   :  { %v645_v14 = vpop.f32.mrb[11].mxu1  ;;  %v1631_v24 = vpack.c.bf16 %v1402_v15, %v1402_v15  ;;  %v1403_v26 = vmax.f32 %v1839_v7, %v1387_v16 }
 0x132   :  { %v1629_v4 = vpack.c.bf16 %v1400_v17, %v1400_v17  ;;  %v1401_v19 = vmax.f32 %v1840_v11, %v1385_v18 }
 0x133   :  { %1483 = vst.msk [vmem:[%s2490_s2 + $0x18] sm:$0xf] %vm1476_vm3, %v1631_v24  ;;  %v1632_v20 = vpack.c.bf16 %v1403_v26, %v1403_v26 }
 0x134   :  { %1481 = vst.msk [vmem:[%s2490_s2 + $0x10] sm:$0xf] %vm1476_vm3, %v1629_v4  ;;  %v1630_v27 = vpack.c.bf16 %v1401_v19, %v1401_v19  ;;  %v1827_v29 = vpop.f32.mrb[8].mxu0 }
 0x135   :  { %1484 = vst.msk [vmem:[%s2490_s2 + $0x1c] sm:$0xf] %vm1476_vm3, %v1632_v20  ;;  %v1841_v33 = vadd.f32 %v1827_v29, %v1763_v13  ;;  %v1333_v34 = vpop.f32.mrb[9].mxu0 }
 0x136   :  { %v1767_v22 = vpop.f32.mrb[12].mxu1  ;;  %1482 = vst.msk [vmem:[%s2490_s2 + $0x14] sm:$0xf] %vm1476_vm3, %v1630_v27  ;;  %v1842_v58 = vadd.f32 %v1333_v34, %v642_v61  ;;  %v1828_v60 = vpop.f32.mrb[10].mxu0 }
 0x137   :  { %v658_v30 = vpop.f32.mrb[13].mxu1  ;;  %v1390_v39 = vmul.f32 0.2, %v1841_v33  ;;  %v1843_v31 = vadd.f32 %v1828_v60, %v1764_v9  ;;  %v1336_v32 = vpop.f32.mrb[11].mxu0 }
 0x138   :  { %v1768_v37 = vpop.f32.mrb[14].mxu1  ;;  %v1388_v62 = vmul.f32 0.2, %v1842_v58  ;;  %v1844_v40 = vadd.f32 %v1336_v32, %v645_v14 }
 0x139   :  { %v661_v5 = vpop.f32.mrb[15].mxu1  ;;  %v1406_v41 = vmax.f32 %v1841_v33, %v1390_v39  ;;  %v1391_v42 = vmul.f32 0.2, %v1843_v31 }
 0x13a   :  { %v1404_v43 = vmax.f32 %v1842_v58, %v1388_v62  ;;  %v1389_v44 = vmul.f32 0.2, %v1844_v40 }
 0x13b   :  { %v1635_v45 = vpack.c.bf16 %v1406_v41, %v1406_v41  ;;  %v1407_v46 = vmax.f32 %v1843_v31, %v1391_v42 }
 0x13c   :  { %v1633_v47 = vpack.c.bf16 %v1404_v43, %v1404_v43  ;;  %v1405_v48 = vmax.f32 %v1844_v40, %v1389_v44  ;;  %v1831_v2 = vpop.f32.mrb[12].mxu0 }
 0x13d   :  { %1487 = vst.msk [vmem:[%s2490_s2 + $0x28] sm:$0xf] %vm1476_vm3, %v1635_v45  ;;  %v1636_v63 = vpack.c.bf16 %v1407_v46, %v1407_v46  ;;  %v1845_v50 = vadd.f32 %v1831_v2, %v1767_v22  ;;  %v1349_v49 = vpop.f32.mrb[13].mxu0 }
 0x13e   :  { %1485 = vst.msk [vmem:[%s2490_s2 + $0x20] sm:$0xf] %vm1476_vm3, %v1633_v47  ;;  %v1634_v0 = vpack.c.bf16 %v1405_v48, %v1405_v48  ;;  %v1846_v25 = vadd.f32 %v1349_v49, %v658_v30  ;;  %v1832_v38 = vpop.f32.mrb[14].mxu0 }
 0x13f   :  { %1488 = vst.msk [vmem:[%s2490_s2 + $0x2c] sm:$0xf] %vm1476_vm3, %v1636_v63  ;;  %v1394_v28 = vmul.f32 0.2, %v1845_v50  ;;  %v1847_v51 = vadd.f32 %v1832_v38, %v1768_v37  ;;  %v1352_v52 = vpop.f32.mrb[15].mxu0 }
 0x140   :  { %1486 = vst.msk [vmem:[%s2490_s2 + $0x24] sm:$0xf] %vm1476_vm3, %v1634_v0  ;;  %v1392_v53 = vmul.f32 0.2, %v1846_v25  ;;  %v1848_v54 = vadd.f32 %v1352_v52, %v661_v5 }
 0x141   :  { %v1410_v55 = vmax.f32 %v1845_v50, %v1394_v28  ;;  %v1395_v56 = vmul.f32 0.2, %v1847_v51 }
 0x142   :  { %v1408_v21 = vmax.f32 %v1846_v25, %v1392_v53  ;;  %v1393_v23 = vmul.f32 0.2, %v1848_v54 }
 0x143   :  { %v1639_v35 = vpack.c.bf16 %v1410_v55, %v1410_v55  ;;  %v1411_v59 = vmax.f32 %v1847_v51, %v1395_v56 }
 0x144   :  { %v1637_v1 = vpack.c.bf16 %v1408_v21, %v1408_v21  ;;  %v1409_v3 = vmax.f32 %v1848_v54, %v1393_v23 }
 0x145   :  { %1491 = vst.msk [vmem:[%s2490_s2 + $0x38] sm:$0xf] %vm1476_vm3, %v1639_v35  ;;  %v1640_v12 = vpack.c.bf16 %v1411_v59, %v1411_v59 }
 0x146   :  { %1489 = vst.msk [vmem:[%s2490_s2 + $0x30] sm:$0xf] %vm1476_vm3, %v1637_v1  ;;  %v1638_v13 = vpack.c.bf16 %v1409_v3, %v1409_v3 }
 0x147   :  { %1492 = vst.msk [vmem:[%s2490_s2 + $0x3c] sm:$0xf] %vm1476_vm3, %v1640_v12 }
 0x148   :  { %1490 = vst.msk [vmem:[%s2490_s2 + $0x34] sm:$0xf] %vm1476_vm3, %v1638_v13 }

// kernel: wgangp_discriminator_forward.7
= control target key start
LH: loop header
LB: loop body
LE: loop exit
PB: predicated region body
PF: predicated region fallthrough
CT: control target
= control target key end

     0   :  { %s1384_s1 = inlined_call_operand.vmem [shape: bf16[1024,128], index: 1, kind: input, shape index: {}]   ;;  %s1385_s0 = inlined_call_operand.vmem [shape: bf16[32,1024], index: 0, kind: input, shape index: {}]   ;;  %s1386_s2 = inlined_call_operand.vmem [shape: bf16[32,128], index: 2, kind: output, shape index: {}]  }
   0x1   :  { %v1059_v0 = vld [vmem:[%s1384_s1 + $0x40] sm:$0xff]   ;;  %v1063_v4 = vld [vmem:[%s1384_s1 + $0x48] sm:$0xff]   ;;  %v1067_v8 = vld [vmem:[%s1384_s1 + $0x50] sm:$0xff]  }
   0x2   :  { %v1060_v1 = vld [vmem:[%s1384_s1 + $0xc0] sm:$0xff]   ;;  %947 = vmatprep.subr.bf16.mxu0 %v1059_v0  ;;  %v1064_v5 = vld [vmem:[%s1384_s1 + $0xc8] sm:$0xff]   ;;  %v1068_v9 = vld [vmem:[%s1384_s1 + $0xd0] sm:$0xff]  }
   0x3   :  { %v1061_v2 = vld [vmem:[%s1384_s1] sm:$0xff]   ;;  %975 = vmatprep.subr.bf16.mxu1 %v1060_v1  ;;  %v1065_v6 = vld [vmem:[%s1384_s1 + $0x8] sm:$0xff]   ;;  %v1069_v10 = vld [vmem:[%s1384_s1 + $0x10] sm:$0xff]  }
   0x4   :  { %v1062_v3 = vld [vmem:[%s1384_s1 + $0x80] sm:$0xff]   ;;  %948 = vmatpush3.bf16.msra.mxu0 %v1061_v2  ;;  %v1066_v7 = vld [vmem:[%s1384_s1 + $0x88] sm:$0xff]   ;;  %v1070_v11 = vld [vmem:[%s1384_s1 + $0x90] sm:$0xff]  }
   0x5   :  { %976 = vmatpush3.bf16.msra.mxu1 %v1062_v3  ;;  %949 = vmatprep.subr.bf16.mxu0 %v1063_v4  ;;  %v1071_v12 = vld [vmem:[%s1384_s1 + $0x58] sm:$0xff]   ;;  %v1075_v16 = vld [vmem:[%s1384_s1 + $0x60] sm:$0xff]   ;;  %v1079_v20 = vld [vmem:[%s1384_s1 + $0x68] sm:$0xff]  }
   0x6   :  { %977 = vmatprep.subr.bf16.mxu1 %v1064_v5  ;;  %v1072_v13 = vld [vmem:[%s1384_s1 + $0xd8] sm:$0xff]   ;;  %v1076_v17 = vld [vmem:[%s1384_s1 + $0xe0] sm:$0xff]   ;;  %v1080_v21 = vld [vmem:[%s1384_s1 + $0xe8] sm:$0xff]  }
   0x7   :  { %v1073_v14 = vld [vmem:[%s1384_s1 + $0x18] sm:$0xff]   ;;  %v1077_v18 = vld [vmem:[%s1384_s1 + $0x20] sm:$0xff]   ;;  %v1081_v22 = vld [vmem:[%s1384_s1 + $0x28] sm:$0xff]  }
   0x8   :  { %950 = vmatpush3.bf16.msra.mxu0 %v1065_v6  ;;  %v1074_v15 = vld [vmem:[%s1384_s1 + $0x98] sm:$0xff]   ;;  %v1078_v19 = vld [vmem:[%s1384_s1 + $0xa0] sm:$0xff]   ;;  %v1082_v23 = vld [vmem:[%s1384_s1 + $0xa8] sm:$0xff]  }
   0x9   :  { %978 = vmatpush3.bf16.msra.mxu1 %v1066_v7  ;;  %951 = vmatprep.subr.bf16.mxu0 %v1067_v8  ;;  %v1083_v24 = vld [vmem:[%s1384_s1 + $0x70] sm:$0xff]   ;;  %v1087_v28 = vld [vmem:[%s1384_s1 + $0x78] sm:$0xff]   ;;  %v12_v32 = vld [vmem:[%s1385_s0] sm:$0xff] }
   0xa   :  { %979 = vmatprep.subr.bf16.mxu1 %v1068_v9  ;;  %v1084_v25 = vld [vmem:[%s1384_s1 + $0xf0] sm:$0xff]   ;;  %v1088_v29 = vld [vmem:[%s1384_s1 + $0xf8] sm:$0xff]   ;;  %v16_v33 = vld [vmem:[%s1385_s0 + $0x20] sm:$0xff] }
   0xb   :  { %v1085_v26 = vld [vmem:[%s1384_s1 + $0x30] sm:$0xff]   ;;  %v1089_v30 = vld [vmem:[%s1384_s1 + $0x38] sm:$0xff]   ;;  %v13_v34 = vld [vmem:[%s1385_s0 + $0x8] sm:$0xff]  ;;  %v848_v35 = vcombine.low %v12_v32, %v16_v33  ;;  %v849_v36 = vcombine.high %v12_v32, %v16_v33 }
   0xc   :  { %952 = vmatpush3.bf16.msra.mxu0 %v1069_v10  ;;  %v1086_v27 = vld [vmem:[%s1384_s1 + $0xb0] sm:$0xff]   ;;  %v1090_v31 = vld [vmem:[%s1384_s1 + $0xb8] sm:$0xff]   ;;  %v17_v37 = vld [vmem:[%s1385_s0 + $0x28] sm:$0xff] }
   0xd   :  { %980 = vmatpush3.bf16.msra.mxu1 %v1070_v11  ;;  %953 = vmatprep.subr.bf16.mxu0 %v1071_v12  ;;  %v850_v38 = vcombine.low %v13_v34, %v17_v37  ;;  %v851_v39 = vcombine.high %v13_v34, %v17_v37  ;;  %v1091_v40 = vld [vmem:[%s1384_s1 + $0x140] sm:$0xff]   ;;  %v1095_v44 = vld [vmem:[%s1384_s1 + $0x148] sm:$0xff]   ;;  %v1099_v48 = vld [vmem:[%s1384_s1 + $0x150] sm:$0xff]  }
   0xe   :  { %981 = vmatprep.subr.bf16.mxu1 %v1072_v13  ;;  %652 = vmatprep.mubr.bf16.mxu0 %v849_v36  ;;  %v1092_v41 = vld [vmem:[%s1384_s1 + $0x1c0] sm:$0xff]   ;;  %v1096_v45 = vld [vmem:[%s1384_s1 + $0x1c8] sm:$0xff]   ;;  %v1100_v49 = vld [vmem:[%s1384_s1 + $0x1d0] sm:$0xff]  }
   0xf   :  { %701 = vmatprep.mubr.bf16.mxu1 %v851_v39  ;;  %v1093_v42 = vld [vmem:[%s1384_s1 + $0x100] sm:$0xff]   ;;  %v1097_v46 = vld [vmem:[%s1384_s1 + $0x108] sm:$0xff]   ;;  %v1101_v50 = vld [vmem:[%s1384_s1 + $0x110] sm:$0xff]  }
  0x10   :  { %954 = vmatpush3.bf16.msra.mxu0 %v1073_v14  ;;  %v1094_v43 = vld [vmem:[%s1384_s1 + $0x180] sm:$0xff]   ;;  %v1098_v47 = vld [vmem:[%s1384_s1 + $0x188] sm:$0xff]   ;;  %v1102_v51 = vld [vmem:[%s1384_s1 + $0x190] sm:$0xff]  }
  0x11   :  { %982 = vmatpush3.bf16.msra.mxu1 %v1074_v15  ;;  %955 = vmatprep.subr.bf16.mxu0 %v1075_v16  ;;  %v1103_v52 = vld [vmem:[%s1384_s1 + $0x158] sm:$0xff]   ;;  %v1107_v56 = vld [vmem:[%s1384_s1 + $0x160] sm:$0xff]   ;;  %v21_v63 = vld [vmem:[%s1385_s0 + $0x48] sm:$0xff] }
  0x12   :  { %983 = vmatprep.subr.bf16.mxu1 %v1076_v17  ;;  %v1104_v53 = vld [vmem:[%s1384_s1 + $0x1d8] sm:$0xff]   ;;  %v1108_v57 = vld [vmem:[%s1384_s1 + $0x1e0] sm:$0xff]   ;;  %v25_v0 = vld [vmem:[%s1385_s0 + $0x68] sm:$0xff] }
  0x13   :  { %v1105_v54 = vld [vmem:[%s1384_s1 + $0x118] sm:$0xff]   ;;  %v1109_v58 = vld [vmem:[%s1384_s1 + $0x120] sm:$0xff]   ;;  %v859_v2 = vcombine.high %v21_v63, %v25_v0  ;;  %v1111_v3 = vld [vmem:[%s1384_s1 + $0x168] sm:$0xff]   ;;  %v858_v4 = vcombine.low %v21_v63, %v25_v0 }
  0x14   :  { %956 = vmatpush3.bf16.msra.mxu0 %v1077_v18  ;;  %v1106_v55 = vld [vmem:[%s1384_s1 + $0x198] sm:$0xff]   ;;  %v1110_v59 = vld [vmem:[%s1384_s1 + $0x1a0] sm:$0xff]   ;;  %v1112_v5 = vld [vmem:[%s1384_s1 + $0x1e8] sm:$0xff]  }
  0x15   :  { %984 = vmatpush3.bf16.msra.mxu1 %v1078_v19  ;;  %957 = vmatprep.subr.bf16.mxu0 %v1079_v20  ;;  %v20_v60 = vld [vmem:[%s1385_s0 + $0x40] sm:$0xff]  ;;  %v1113_v6 = vld [vmem:[%s1384_s1 + $0x128] sm:$0xff]   ;;  %v1115_v8 = vld [vmem:[%s1384_s1 + $0x170] sm:$0xff]  }
  0x16   :  { %985 = vmatprep.subr.bf16.mxu1 %v1080_v21  ;;  %v24_v61 = vld [vmem:[%s1385_s0 + $0x60] sm:$0xff]  ;;  %v1114_v7 = vld [vmem:[%s1384_s1 + $0x1a8] sm:$0xff]   ;;  %v1116_v9 = vld [vmem:[%s1384_s1 + $0x1f0] sm:$0xff]  }
  0x17   :  { %v857_v62 = vcombine.high %v20_v60, %v24_v61  ;;  %v856_v1 = vcombine.low %v20_v60, %v24_v61  ;;  %v1117_v10 = vld [vmem:[%s1384_s1 + $0x130] sm:$0xff]   ;;  %v1119_v12 = vld [vmem:[%s1384_s1 + $0x178] sm:$0xff]  }
  0x18   :  { %958 = vmatpush3.bf16.msra.mxu0 %v1081_v22  ;;  %v1118_v11 = vld [vmem:[%s1384_s1 + $0x1b0] sm:$0xff]   ;;  %v1120_v13 = vld [vmem:[%s1384_s1 + $0x1f8] sm:$0xff]  }
  0x19   :  { %986 = vmatpush3.bf16.msra.mxu1 %v1082_v23  ;;  %959 = vmatprep.subr.bf16.mxu0 %v1083_v24  ;;  %v1121_v14 = vld [vmem:[%s1384_s1 + $0x138] sm:$0xff]   ;;  %v14_v16 = vld [vmem:[%s1385_s0 + $0x10] sm:$0xff] }
  0x1a   :  { %987 = vmatprep.subr.bf16.mxu1 %v1084_v25  ;;  %v1122_v15 = vld [vmem:[%s1384_s1 + $0x1b8] sm:$0xff]   ;;  %v18_v17 = vld [vmem:[%s1385_s0 + $0x30] sm:$0xff] }
  0x1b   :  { %v15_v18 = vld [vmem:[%s1385_s0 + $0x18] sm:$0xff]  ;;  %v852_v20 = vcombine.low %v14_v16, %v18_v17  ;;  %v853_v21 = vcombine.high %v14_v16, %v18_v17  ;;  %v22_v24 = vld [vmem:[%s1385_s0 + $0x50] sm:$0xff] }
  0x1c   :  { %960 = vmatpush3.bf16.msra.mxu0 %v1085_v26  ;;  %v19_v19 = vld [vmem:[%s1385_s0 + $0x38] sm:$0xff]  ;;  %v26_v25 = vld [vmem:[%s1385_s0 + $0x70] sm:$0xff] }
  0x1d   :  { %988 = vmatpush3.bf16.msra.mxu1 %v1086_v27  ;;  %961 = vmatprep.subr.bf16.mxu0 %v1087_v28  ;;  %v854_v22 = vcombine.low %v15_v18, %v19_v19  ;;  %v855_v23 = vcombine.high %v15_v18, %v19_v19  ;;  %v23_v26 = vld [vmem:[%s1385_s0 + $0x58] sm:$0xff]  ;;  %v861_v27 = vcombine.high %v22_v24, %v26_v25 }
  0x1e   :  { %989 = vmatprep.subr.bf16.mxu1 %v1088_v29  ;;  %v27_v28 = vld [vmem:[%s1385_s0 + $0x78] sm:$0xff] }
  0x1f   :  { %v863_v29 = vcombine.high %v23_v26, %v27_v28 }
  0x20   :  { %962 = vmatpush3.bf16.msra.mxu0 %v1089_v30  ;;  %v860_v30 = vcombine.low %v22_v24, %v26_v25 }
  0x21   :  { %990 = vmatpush3.bf16.msra.mxu1 %v1090_v31  ;;  %1003 = vmatprep.subr.bf16.mxu0 %v1091_v40  ;;  %v862_v31 = vcombine.low %v23_v26, %v27_v28 }
  0x22   :  { %1031 = vmatprep.subr.bf16.mxu1 %v1092_v41 }
  0x23   :  { %653 = vmatmul.mubr.bf16.vlgmr.msra.gmra.mrb[0].mxu0 %v848_v35 }
  0x24   :  { %702 = vmatmul.mubr.bf16.vlgmr.msra.gmra.mrb[0].mxu1 %v850_v38  ;;  %1004 = vmatpush3.bf16.msra.mxu0 %v1093_v42 }
  0x25   :  { %1032 = vmatpush3.bf16.msra.mxu1 %v1094_v43  ;;  %1005 = vmatprep.subr.bf16.mxu0 %v1095_v44 }
  0x26   :  { %1033 = vmatprep.subr.bf16.mxu1 %v1096_v45  ;;  %660 = vmatprep.mubr.bf16.mxu0 %v857_v62 }
  0x27   :  { %709 = vmatprep.mubr.bf16.mxu1 %v859_v2 }
  0x28   :  { %1006 = vmatpush3.bf16.msra.mxu0 %v1097_v46 }
  0x29   :  { %1034 = vmatpush3.bf16.msra.mxu1 %v1098_v47  ;;  %1007 = vmatprep.subr.bf16.mxu0 %v1099_v48 }
  0x2a   :  { %1035 = vmatprep.subr.bf16.mxu1 %v1100_v49 }
  0x2b   :  { %661 = vmatmul.mubr.bf16.gmra.mrb[4].mxu0 %v856_v1 }
  0x2c   :  { %1008 = vmatpush3.bf16.msra.mxu0 %v1101_v50  ;;  %710 = vmatmul.mubr.bf16.gmra.mrb[4].mxu1 %v858_v4 }
  0x2d   :  { %1036 = vmatpush3.bf16.msra.mxu1 %v1102_v51  ;;  %1009 = vmatprep.subr.bf16.mxu0 %v1103_v52 }
  0x2e   :  { %1037 = vmatprep.subr.bf16.mxu1 %v1104_v53  ;;  %750 = vmatprep.mubr.bf16.mxu0 %v853_v21 }
  0x2f   :  { %799 = vmatprep.mubr.bf16.mxu1 %v855_v23 }
  0x30   :  { %1010 = vmatpush3.bf16.msra.mxu0 %v1105_v54 }
  0x31   :  { %1038 = vmatpush3.bf16.msra.mxu1 %v1106_v55  ;;  %1011 = vmatprep.subr.bf16.mxu0 %v1107_v56 }
  0x32   :  { %1039 = vmatprep.subr.bf16.mxu1 %v1108_v57 }
  0x34   :  { %1012 = vmatpush3.bf16.msra.mxu0 %v1109_v58 }
  0x35   :  { %1040 = vmatpush3.bf16.msra.mxu1 %v1110_v59  ;;  %1013 = vmatprep.subr.bf16.mxu0 %v1111_v3 }
  0x36   :  { %1041 = vmatprep.subr.bf16.mxu1 %v1112_v5 }
  0x38   :  { %1014 = vmatpush3.bf16.msra.mxu0 %v1113_v6 }
  0x39   :  { %1042 = vmatpush3.bf16.msra.mxu1 %v1114_v7  ;;  %1015 = vmatprep.subr.bf16.mxu0 %v1115_v8 }
  0x3a   :  { %1043 = vmatprep.subr.bf16.mxu1 %v1116_v9 }
  0x3c   :  { %1016 = vmatpush3.bf16.msra.mxu0 %v1117_v10 }
  0x3d   :  { %1044 = vmatpush3.bf16.msra.mxu1 %v1118_v11  ;;  %1017 = vmatprep.subr.bf16.mxu0 %v1119_v12 }
  0x3e   :  { %1045 = vmatprep.subr.bf16.mxu1 %v1120_v13 }
  0x40   :  { %1018 = vmatpush3.bf16.msra.mxu0 %v1121_v14 }
  0x41   :  { %1046 = vmatpush3.bf16.msra.mxu1 %v1122_v15 }
  0x43   :  { %751 = vmatmul.mubr.bf16.vlgmr.msra.gmra.mrb[8].mxu0 %v852_v20 }
  0x44   :  { %800 = vmatmul.mubr.bf16.vlgmr.msra.gmra.mrb[8].mxu1 %v854_v22  ;;  %758 = vmatprep.mubr.bf16.mxu0 %v861_v27 }
  0x45   :  { %807 = vmatprep.mubr.bf16.mxu1 %v863_v29 }
  0x4b   :  { %759 = vmatmul.mubr.bf16.gmra.mrb[12].mxu0 %v860_v30 }
  0x4c   :  { %808 = vmatmul.mubr.bf16.gmra.mrb[12].mxu1 %v862_v31 }
  0xf6   :  { %v963_v32 = vpop.f32.mrb[0].mxu0 }
  0xf7   :  { %v991_v33 = vpop.f32.mrb[0].mxu1  ;;  %v964_v34 = vpop.f32.mrb[1].mxu0 }
  0xf8   :  { %v965_v35 = vadd.f32 %v964_v34, %v963_v32  ;;  %v992_v36 = vpop.f32.mrb[1].mxu1  ;;  %v966_v37 = vpop.f32.mrb[2].mxu0 }
  0xf9   :  { %v993_v38 = vadd.f32 %v992_v36, %v991_v33  ;;  %v994_v39 = vpop.f32.mrb[2].mxu1  ;;  %v967_v40 = vpop.f32.mrb[3].mxu0 }
  0xfa   :  { %v968_v41 = vadd.f32 %v967_v40, %v966_v37  ;;  %v995_v42 = vpop.f32.mrb[3].mxu1 }
  0xfb   :  { %v704_v43 = vadd.f32 %v993_v38, %v965_v35  ;;  %v996_v44 = vadd.f32 %v995_v42, %v994_v39 }
  0xfd   :  { %v707_v45 = vadd.f32 %v996_v44, %v968_v41 }
  0xfe   :  { %v969_v46 = vpop.f32.mrb[4].mxu0 }
  0xff   :  { %v997_v47 = vpop.f32.mrb[4].mxu1  ;;  %v970_v48 = vpop.f32.mrb[5].mxu0 }
 0x100   :  { %v971_v49 = vadd.f32 %v970_v48, %v969_v46  ;;  %v998_v50 = vpop.f32.mrb[5].mxu1  ;;  %v972_v51 = vpop.f32.mrb[6].mxu0 }
 0x101   :  { %v999_v52 = vadd.f32 %v998_v50, %v997_v47  ;;  %v1000_v53 = vpop.f32.mrb[6].mxu1  ;;  %v973_v54 = vpop.f32.mrb[7].mxu0 }
 0x102   :  { %v974_v55 = vadd.f32 %v973_v54, %v972_v51  ;;  %v1001_v56 = vpop.f32.mrb[7].mxu1 }
 0x103   :  { %v712_v57 = vadd.f32 %v999_v52, %v971_v49  ;;  %v1002_v58 = vadd.f32 %v1001_v56, %v1000_v53 }
 0x105   :  { %v715_v59 = vadd.f32 %v1002_v58, %v974_v55 }
 0x116   :  { %v1019_v60 = vpop.f32.mrb[8].mxu0 }
 0x117   :  { %v1047_v61 = vpop.f32.mrb[8].mxu1  ;;  %v1020_v62 = vpop.f32.mrb[9].mxu0 }
 0x118   :  { %v1048_v63 = vpop.f32.mrb[9].mxu1  ;;  %v1021_v0 = vadd.f32 %v1020_v62, %v1019_v60  ;;  %v1022_v2 = vpop.f32.mrb[10].mxu0 }
 0x119   :  { %v1049_v1 = vadd.f32 %v1048_v63, %v1047_v61  ;;  %v1050_v3 = vpop.f32.mrb[10].mxu1  ;;  %v1023_v4 = vpop.f32.mrb[11].mxu0 }
 0x11a   :  { %v1051_v5 = vpop.f32.mrb[11].mxu1  ;;  %v753_v6 = vadd.f32 %v1021_v0, %v704_v43  ;;  %v1024_v7 = vadd.f32 %v1023_v4, %v1022_v2 }
 0x11b   :  { %v1052_v8 = vadd.f32 %v1051_v5, %v1050_v3 }
 0x11c   :  { %v802_v9 = vadd.f32 %v1049_v1, %v753_v6  ;;  %v756_v10 = vadd.f32 %v1024_v7, %v707_v45 }
 0x11e   :  { %v816_v11 = vmul.f32 0.2, %v802_v9  ;;  %v805_v12 = vadd.f32 %v1052_v8, %v756_v10  ;;  %v1025_v13 = vpop.f32.mrb[12].mxu0 }
 0x11f   :  { %v1053_v14 = vpop.f32.mrb[12].mxu1  ;;  %v1026_v15 = vpop.f32.mrb[13].mxu0 }
 0x120   :  { %v1054_v16 = vpop.f32.mrb[13].mxu1  ;;  %v817_v17 = vmul.f32 0.2, %v805_v12  ;;  %v1027_v18 = vadd.f32 %v1026_v15, %v1025_v13  ;;  %v1028_v20 = vpop.f32.mrb[14].mxu0  ;;  %v820_v22 = vmax.f32 %v802_v9, %v816_v11 }
 0x121   :  { %v1055_v19 = vadd.f32 %v1054_v16, %v1053_v14  ;;  %v1056_v21 = vpop.f32.mrb[14].mxu1  ;;  %v1029_v23 = vpop.f32.mrb[15].mxu0 }
 0x122   :  { %v1057_v24 = vpop.f32.mrb[15].mxu1  ;;  %v821_v25 = vmax.f32 %v805_v12, %v817_v17  ;;  %v761_v26 = vadd.f32 %v1027_v18, %v712_v57  ;;  %v1030_v27 = vadd.f32 %v1029_v23, %v1028_v20 }
 0x123   :  { %v1058_v28 = vadd.f32 %v1057_v24, %v1056_v21 }
 0x124   :  { %v939_v29 = vpack.c.bf16 %v821_v25, %v820_v22  ;;  %v810_v30 = vadd.f32 %v1055_v19, %v761_v26  ;;  %v764_v31 = vadd.f32 %v1030_v27, %v715_v59 }
 0x126   :  { %940 = vst [vmem:[%s1386_s2] sm:$0xff] %v939_v29   ;;  %v818_v32 = vmul.f32 0.2, %v810_v30  ;;  %v813_v33 = vadd.f32 %v1058_v28, %v764_v31 }
 0x128   :  { %v819_v34 = vmul.f32 0.2, %v813_v33  ;;  %v822_v35 = vmax.f32 %v810_v30, %v818_v32 }
 0x12a   :  { %v823_v36 = vmax.f32 %v813_v33, %v819_v34 }
 0x12c   :  { %v944_v37 = vpack.c.bf16 %v823_v36, %v822_v35 }
 0x12e   :  { %946 = vst [vmem:[%s1386_s2 + $0x8] sm:$0xff] %v944_v37  }

</bundles_post_ra>
